<compile_context>
chip_gen: v6e
topology: v6e:2x2x1
jax: 0.10.0
libtpu: 0.0.40
codegen_flags: <defaults>
</compile_context>

<pallas_src>
import jax
import jax.numpy as jnp
from jax.experimental import pallas as pl
from jax.experimental.pallas import tpu as pltpu

FEATURE_DIM = 20
SEQ_LEN = 5
NUM_HEADS = 5            # m1, m2, m12, m21, mc
HIDDEN = FEATURE_DIM     # LSTM hidden size == feature dim
FC1_OUT = 20
FC2_OUT = 4
LH = NUM_HEADS * HIDDEN          # 100 (stacked per-head hidden rows)
HP = 104                         # LH padded to a multiple of 8 (sublane aligned)
G4 = 4 * HP                      # 416 stacked gate rows (i, f, o, g blocks)
OUT_ROWS = NUM_HEADS * FC2_OUT   # 20
TPAD = 24                        # FEATURE_DIM padded to a multiple of 8
XROWS = SEQ_LEN * TPAD           # 120 stacked input rows (time-major 24-row blocks)


def _round_up(x, m):
    return ((x + m - 1) // m) * m


def _sigmoid(x):
    # sigmoid(x) == 0.5*tanh(0.5*x) + 0.5  -> single EUP op (vs exp + reciprocal)
    return 0.5 * jnp.tanh(0.5 * x) + 0.5


# --------------------------------------------------------------------------
# Kernel: one batch tile (TB lanes) of the whole forward pass.
# Layout inside the kernel: rows = feature/head dims, lanes = batch.
# --------------------------------------------------------------------------
def _mind_kernel(x_ref, wbase_ref, bbase_ref, wih_ref, whh_ref, bg_ref,
                 w1h_ref, w1x_ref, b1_ref, w2_ref, b2_ref, out_ref):
    x_all = x_ref[...]                               # (120, TB) f32

    # ---- hoisted input-side projections (no serial dependence) -------------
    # base Linear + ReLU for all 5 timesteps in ONE MXU call (block-diag, K=120)
    bt_all = jnp.maximum(
        jnp.dot(wbase_ref[...], x_all, preferred_element_type=jnp.float32)
        + bbase_ref[...], 0.0)                       # (120, TB)

    wih = wih_ref[...]                               # (416, 24) bf16
    bg = bg_ref[...]                                 # (416, 1) f32, b_ih + b_hh folded
    gx = [jnp.dot(wih, bt_all[t * TPAD:(t + 1) * TPAD, :].astype(jnp.bfloat16),
                  preferred_element_type=jnp.float32) + bg
          for t in range(SEQ_LEN)]                   # 5 x (416, TB)

    whh = whh_ref[...]                               # (416, 104) bf16 block-diag heads

    # ---- serial recurrence: only whh@h + activations + state update --------
    # t = 0: h == c == 0  -> skip whh@h, the f-gate and the f*c multiply.
    g0 = gx[0]
    c = _sigmoid(g0[0 * HP:1 * HP, :]) * jnp.tanh(g0[3 * HP:4 * HP, :])   # i * g
    h = _sigmoid(g0[2 * HP:3 * HP, :]) * jnp.tanh(c)                      # o * tanh(c)

    for t in range(1, SEQ_LEN):                      # tiny static sequence -> unrolled
        gates = gx[t] + jnp.dot(whh, h.astype(jnp.bfloat16),
                                preferred_element_type=jnp.float32)
        # rows ordered [i | f | o | g], each block HP rows (8-aligned slices)
        ifo = _sigmoid(gates[0:3 * HP, :])
        g_g = jnp.tanh(gates[3 * HP:4 * HP, :])
        c = ifo[1 * HP:2 * HP, :] * c + ifo[0 * HP:1 * HP, :] * g_g
        h = ifo[2 * HP:3 * HP, :] * jnp.tanh(c)

    # ---- per-head fc1 + ReLU + fc2 (f32, tiny, off the critical path) ------
    # concat([h, x4]) @ W1^T split as W1h@h + W1x@x4 (no concat / broadcast)
    x4 = x_all[(SEQ_LEN - 1) * TPAD:SEQ_LEN * TPAD, :]   # (24, TB) raw x at t = 4
    o1 = jnp.maximum(
        jnp.dot(w1h_ref[...], h, preferred_element_type=jnp.float32)
        + jnp.dot(w1x_ref[...], x4, preferred_element_type=jnp.float32)
        + b1_ref[...], 0.0)                              # (104, TB)
    out_ref[...] = (jnp.dot(w2_ref[...], o1, preferred_element_type=jnp.float32)
                    + b2_ref[...])                       # (20, TB)


# --------------------------------------------------------------------------
# Wrapper-side layout plumbing (done once): merge heads, reorder gates,
# pre-sum biases, build block-diagonal matrices, pad LH -> HP and F -> 24,
# pre-cast the recurrent-path MXU weights to bf16.
# --------------------------------------------------------------------------
def prepare_params(params):
    (w_base, b_base, w_ih, w_hh, b_ih, b_hh, w1, b1, w2, b2) = params
    L, H, F = NUM_HEADS, HIDDEN, FEATURE_DIM

    def _reorder_gates(w):
        # PyTorch gate row order [i, f, g, o] -> kernel order [i, f, o, g]
        return jnp.concatenate([w[:, q * H:(q + 1) * H] for q in (0, 1, 3, 2)],
                               axis=1)

    def _stack_gate_head(w_r, ncols):
        # (L, 4H, ncols) in [i,f,o,g] order -> (4*HP, ncols), gate-major rows,
        # head-minor, zero-padded rows LH..HP-1 inside each gate block.
        wt = w_r.reshape(L, 4, H, ncols).transpose(1, 0, 2, 3).reshape(4, LH, ncols)
        padded = jnp.zeros((4, HP, ncols), jnp.float32).at[:, :LH, :].set(wt)
        return padded.reshape(4 * HP, ncols)

    # base layer replicated block-diagonally over the 5 timesteps (K = 120)
    wbase_bd = jnp.zeros((XROWS, XROWS), jnp.float32)
    bbase_all = jnp.zeros((XROWS, 1), jnp.float32)
    for t in range(SEQ_LEN):
        r = t * TPAD
        wbase_bd = wbase_bd.at[r:r + F, r:r + F].set(w_base)
        bbase_all = bbase_all.at[r:r + F, 0].set(b_base)

    w_ih_r = _reorder_gates(w_ih)                               # (L, 4H, F)
    w_hh_r = _reorder_gates(w_hh)                               # (L, 4H, H)
    b_r = _reorder_gates((b_ih + b_hh)[:, :, None])             # (L, 4H, 1)

    wih_all = _stack_gate_head(w_ih_r, F)                       # (416, 20)
    wih24 = jnp.zeros((G4, TPAD), jnp.float32).at[:, :F].set(wih_all)   # (416, 24)
    b_gate = _stack_gate_head(b_r, 1)                           # (416, 1)

    whh_g = w_hh_r.reshape(L, 4, H, H).transpose(1, 0, 2, 3)    # (4, L, H, H)
    whh_bd = jnp.zeros((4, HP, HP), jnp.float32)
    for l in range(L):
        whh_bd = whh_bd.at[:, l * H:(l + 1) * H, l * H:(l + 1) * H].set(whh_g[:, l])
    whh_bd = whh_bd.reshape(G4, HP)                             # (416, 104)

    # fc1: Linear(40, 20) per head, split into the h-part and the x4-part
    w1h = w1[:, :, :F]                                          # (L, 20, 20)
    w1x = w1[:, :, F:]                                          # (L, 20, 20)
    w1h_bd = jnp.zeros((HP, HP), jnp.float32)
    for l in range(L):
        w1h_bd = w1h_bd.at[l * FC1_OUT:(l + 1) * FC1_OUT,
                           l * H:(l + 1) * H].set(w1h[l])
    w1x24 = jnp.zeros((HP, TPAD), jnp.float32).at[:LH, :F].set(w1x.reshape(LH, F))
    b1_col = jnp.zeros((HP, 1), jnp.float32).at[:LH, 0].set(b1.reshape(LH))

    # fc2: Linear(20, 4) per head -> block-diagonal (20, 104)
    w2_all = jnp.zeros((OUT_ROWS, HP), jnp.float32)
    for l in range(L):
        w2_all = w2_all.at[l * FC2_OUT:(l + 1) * FC2_OUT,
                           l * H:(l + 1) * H].set(w2[l])
    b2_col = b2.reshape(OUT_ROWS, 1)

    # bf16 MXU operands on the recurrent path (f32 accumulation in-kernel);
    # base / fc1 / fc2 stay f32 (raw x has unbounded scale; heads are tiny).
    return (wbase_bd, bbase_all,
            wih24.astype(jnp.bfloat16), whh_bd.astype(jnp.bfloat16), b_gate,
            w1h_bd, w1x24, b1_col, w2_all, b2_col)


def _const_spec(shape):
    zeros = (0,) * len(shape)
    return pl.BlockSpec(shape, lambda i, _z=zeros: _z)


def _choose_tile(B, cap):
    if B <= 128:
        return 128
    # >= 2 grid steps so both v7x TensorCores get a tile on the "parallel" axis.
    # On single-TC v6e with B in the thousands, raise `cap` (sweep 1024-2048).
    half = _round_up((B + 1) // 2, 128)
    return max(128, min(cap, half))


def mind_lstm_sep_forward(x, prepared, *, tb_cap=512):
    """x: (B, 5, 20) f32, prepared = prepare_params(params).
    Returns tuple (m1, m2, m12, m21, mc), each (B, 4)."""
    B = x.shape[0]
    TB = _choose_tile(B, tb_cap)
    Bp = _round_up(B, TB)

    # batch -> lane axis; per-timestep feature rows padded 20 -> 24; time-major stack
    xT = jnp.transpose(x, (1, 2, 0)).astype(jnp.float32)          # (5, 20, B)
    xT = jnp.pad(xT, ((0, 0), (0, TPAD - FEATURE_DIM), (0, Bp - B)))
    x_stk = xT.reshape(XROWS, Bp)                                 # (120, Bp)

    grid = (Bp // TB,)
    in_specs = ([pl.BlockSpec((XROWS, TB), lambda i: (0, i))]
                + [_const_spec(p.shape) for p in prepared])

    # advisory cost estimate (lets XLA schedule the surrounding pad/transpose ops)
    n_tiles = Bp // TB
    w_bytes = sum(int(p.size) * p.dtype.itemsize for p in prepared)
    mm = (XROWS * XROWS + SEQ_LEN * G4 * TPAD + (SEQ_LEN - 1) * G4 * HP
          + HP * HP + HP * TPAD + OUT_ROWS * HP)
    cost = pl.CostEstimate(
        flops=2 * mm * Bp,
        transcendentals=(4 * HP + (SEQ_LEN - 1) * 5 * HP) * Bp,
        bytes_accessed=4 * (XROWS + OUT_ROWS) * Bp + w_bytes * n_tiles)

    out = pl.pallas_call(
        _mind_kernel,
        out_shape=jax.ShapeDtypeStruct((OUT_ROWS, Bp), jnp.float32),
        grid_spec=pltpu.PrefetchScalarGridSpec(
            num_scalar_prefetch=0,
            grid=grid,
            in_specs=in_specs,
            out_specs=pl.BlockSpec((OUT_ROWS, TB), lambda i: (0, i)),
        ),
        compiler_params=pltpu.CompilerParams(
            dimension_semantics=("parallel",)),
        cost_estimate=cost,
    )(x_stk, *prepared)

    outT = out[:, :B].T                                           # (B, 20)
    return tuple(outT[:, l * FC2_OUT:(l + 1) * FC2_OUT] for l in range(NUM_HEADS))


# --------------------------------------------------------------------------
# Synthetic parameters (PyTorch-shaped, stacked over the 5 heads) + reference.
# --------------------------------------------------------------------------
def init_params(key):
    ks = jax.random.split(key, 10)

    def u(k, shape, scale=0.2):
        return jax.random.uniform(k, shape, jnp.float32, -scale, scale)

    w_base = u(ks[0], (FEATURE_DIM, FEATURE_DIM))             # Linear(20,20).weight
    b_base = u(ks[1], (FEATURE_DIM,))
    w_ih = u(ks[2], (NUM_HEADS, 4 * HIDDEN, FEATURE_DIM))     # weight_ih_l0 (stacked)
    w_hh = u(ks[3], (NUM_HEADS, 4 * HIDDEN, HIDDEN))          # weight_hh_l0
    b_ih = u(ks[4], (NUM_HEADS, 4 * HIDDEN))                  # bias_ih_l0
    b_hh = u(ks[5], (NUM_HEADS, 4 * HIDDEN))                  # bias_hh_l0
    w1 = u(ks[6], (NUM_HEADS, FC1_OUT, 2 * FEATURE_DIM))      # fc1_* weights
    b1 = u(ks[7], (NUM_HEADS, FC1_OUT))
    w2 = u(ks[8], (NUM_HEADS, FC2_OUT, FC1_OUT))              # fc2_* weights
    b2 = u(ks[9], (NUM_HEADS, FC2_OUT))
    return (w_base, b_base, w_ih, w_hh, b_ih, b_hh, w1, b1, w2, b2)


def reference_forward(x, params):
    """Pure-JAX f32 reference with identical math (PyTorch semantics)."""
    (w_base, b_base, w_ih, w_hh, b_ih, b_hh, w1, b1, w2, b2) = params
    B = x.shape[0]
    base = jnp.maximum(x.reshape(B * SEQ_LEN, FEATURE_DIM) @ w_base.T + b_base, 0.0)
    base = base.reshape(B, SEQ_LEN, FEATURE_DIM)
    h = jnp.zeros((NUM_HEADS, B, HIDDEN), jnp.float32)
    c = jnp.zeros((NUM_HEADS, B, HIDDEN), jnp.float32)
    bsum = (b_ih + b_hh)[:, None, :]
    for t in range(SEQ_LEN):
        xt = base[:, t, :]
        gates = (jnp.einsum('bf,lgf->lbg', xt, w_ih)
                 + jnp.einsum('lbh,lgh->lbg', h, w_hh) + bsum)
        i_g = jax.nn.sigmoid(gates[..., 0 * HIDDEN:1 * HIDDEN])
        f_g = jax.nn.sigmoid(gates[..., 1 * HIDDEN:2 * HIDDEN])
        g_g = jnp.tanh(gates[..., 2 * HIDDEN:3 * HIDDEN])
        o_g = jax.nn.sigmoid(gates[..., 3 * HIDDEN:4 * HIDDEN])
        c = f_g * c + i_g * g_g
        h = o_g * jnp.tanh(c)
    x4 = jnp.broadcast_to(x[None, :, SEQ_LEN - 1, :], (NUM_HEADS, B, FEATURE_DIM))
    cat = jnp.concatenate([h, x4], axis=-1)
    o1 = jnp.maximum(jnp.einsum('lbf,lgf->lbg', cat, w1) + b1[:, None, :], 0.0)
    o2 = jnp.einsum('lbf,lgf->lbg', o1, w2) + b2[:, None, :]
    return tuple(o2[l] for l in range(NUM_HEADS))


if __name__ == "__main__":
    key = jax.random.PRNGKey(0)
    k_x, k_x2, k_p = jax.random.split(key, 3)

    params = init_params(k_p)
    prepared = prepare_params(params)

    # bf16 MXU operands on the recurrent path -> tolerance loosened vs pure-f32.
    ATOL, RTOL = 2e-2, 2e-2

    # Small-shape check (B=2, single padded batch tile).
    B = 2
    x = jax.random.normal(k_x, (B, SEQ_LEN, FEATURE_DIM), jnp.float32)
    outs = jax.block_until_ready(mind_lstm_sep_forward(x, prepared))
    refs = reference_forward(x, params)
    for o, r in zip(outs, refs):
        assert o.shape == (B, FC2_OUT)
        assert jnp.allclose(o, r, atol=ATOL, rtol=RTOL), "kernel/reference mismatch (B=2)"

    # Larger batch to exercise the multi-step (>=2 tiles) batch grid + padding.
    B2 = 1000
    x2 = jax.random.normal(k_x2, (B2, SEQ_LEN, FEATURE_DIM), jnp.float32)
    outs2 = jax.block_until_ready(mind_lstm_sep_forward(x2, prepared))
    refs2 = reference_forward(x2, params)
    for o, r in zip(outs2, refs2):
        assert o.shape == (B2, FC2_OUT)
        assert jnp.allclose(o, r, atol=ATOL, rtol=RTOL), "kernel/reference mismatch (B=1000)"

    print("KERNEL_OK")
</pallas_src>

<mosaic_0001>
module attributes {stable_mosaic.version = 11 : i64} {
  func.func @_mind_kernel(%arg0: i32, %arg1: memref<120x128xf32, #tpu.memory_space<vmem>>, %arg2: memref<120x120xf32, #tpu.memory_space<vmem>>, %arg3: memref<120x1xf32, #tpu.memory_space<vmem>>, %arg4: memref<416x24xbf16, #tpu.memory_space<vmem>>, %arg5: memref<416x104xbf16, #tpu.memory_space<vmem>>, %arg6: memref<416x1xf32, #tpu.memory_space<vmem>>, %arg7: memref<104x104xf32, #tpu.memory_space<vmem>>, %arg8: memref<104x24xf32, #tpu.memory_space<vmem>>, %arg9: memref<104x1xf32, #tpu.memory_space<vmem>>, %arg10: memref<20x104xf32, #tpu.memory_space<vmem>>, %arg11: memref<20x1xf32, #tpu.memory_space<vmem>>, %arg12: memref<20x128xf32, #tpu.memory_space<vmem>>) attributes {dimension_semantics = [#tpu.dimension_semantics<parallel>], iteration_bounds = array<i64: 1>, scalar_prefetch = 0 : i64, scratch_operands = 0 : i64, tpu.core_type = #tpu.core_type<tc>, window_params = [{transform_indices = @transform_0, window_bounds = array<i64: 120, 128>}, {pipeline_mode = #tpu.pipeline_mode<synchronous>, transform_indices = @transform_1, window_bounds = array<i64: 120, 120>}, {pipeline_mode = #tpu.pipeline_mode<synchronous>, transform_indices = @transform_2, window_bounds = array<i64: 120, 1>}, {pipeline_mode = #tpu.pipeline_mode<synchronous>, transform_indices = @transform_3, window_bounds = array<i64: 416, 24>}, {pipeline_mode = #tpu.pipeline_mode<synchronous>, transform_indices = @transform_4, window_bounds = array<i64: 416, 104>}, {pipeline_mode = #tpu.pipeline_mode<synchronous>, transform_indices = @transform_5, window_bounds = array<i64: 416, 1>}, {pipeline_mode = #tpu.pipeline_mode<synchronous>, transform_indices = @transform_6, window_bounds = array<i64: 104, 104>}, {pipeline_mode = #tpu.pipeline_mode<synchronous>, transform_indices = @transform_7, window_bounds = array<i64: 104, 24>}, {pipeline_mode = #tpu.pipeline_mode<synchronous>, transform_indices = @transform_8, window_bounds = array<i64: 104, 1>}, {pipeline_mode = #tpu.pipeline_mode<synchronous>, transform_indices = @transform_9, window_bounds = array<i64: 20, 104>}, {pipeline_mode = #tpu.pipeline_mode<synchronous>, transform_indices = @transform_10, window_bounds = array<i64: 20, 1>}, {transform_indices = @transform_11, window_bounds = array<i64: 20, 128>}]} {
    %c0 = arith.constant 0 : index
    %c0_0 = arith.constant 0 : index
    %0 = vector.load %arg1[%c0, %c0_0] : memref<120x128xf32, #tpu.memory_space<vmem>>, vector<120x128xf32>
    %c0_1 = arith.constant 0 : index
    %c0_2 = arith.constant 0 : index
    %1 = vector.load %arg2[%c0_1, %c0_2] : memref<120x120xf32, #tpu.memory_space<vmem>>, vector<120x120xf32>
    %cst = arith.constant dense<0.000000e+00> : vector<120x128xf32>
    %2 = tpu.matmul %1, %0, %cst {dimension_numbers = #tpu.dot_dimension_numbers<[1], [0], [0], [1], [0, 0, 1, 1], [], []>} : vector<120x120xf32>, vector<120x128xf32>, vector<120x128xf32> -> vector<120x128xf32>
    %c0_3 = arith.constant 0 : index
    %c0_4 = arith.constant 0 : index
    %3 = vector.load %arg3[%c0_3, %c0_4] : memref<120x1xf32, #tpu.memory_space<vmem>>, vector<120x1xf32>
    %4 = vector.broadcast %3 : vector<120x1xf32> to vector<120x128xf32>
    %5 = arith.addf %2, %4 : vector<120x128xf32>
    %cst_5 = arith.constant 0.000000e+00 : f32
    %6 = vector.broadcast %cst_5 : f32 to vector<120x128xf32>
    %7 = arith.maximumf %5, %6 : vector<120x128xf32>
    %c0_6 = arith.constant 0 : index
    %c0_7 = arith.constant 0 : index
    %8 = vector.load %arg4[%c0_6, %c0_7] : memref<416x24xbf16, #tpu.memory_space<vmem>>, vector<416x24xbf16>
    %c0_8 = arith.constant 0 : index
    %c0_9 = arith.constant 0 : index
    %9 = vector.load %arg6[%c0_8, %c0_9] : memref<416x1xf32, #tpu.memory_space<vmem>>, vector<416x1xf32>
    %10 = vector.extract_strided_slice %7 {offsets = [0, 0], sizes = [24, 128], strides = [1, 1]} : vector<120x128xf32> to vector<24x128xf32>
    %11 = arith.truncf %10 : vector<24x128xf32> to vector<24x128xbf16>
    %cst_10 = arith.constant dense<0.000000e+00> : vector<416x128xf32>
    %12 = tpu.matmul %8, %11, %cst_10 {dimension_numbers = #tpu.dot_dimension_numbers<[1], [0], [0], [1], [0, 0, 1, 1], [], []>} : vector<416x24xbf16>, vector<24x128xbf16>, vector<416x128xf32> -> vector<416x128xf32>
    %13 = vector.broadcast %9 : vector<416x1xf32> to vector<416x128xf32>
    %14 = arith.addf %12, %13 : vector<416x128xf32>
    %15 = vector.extract_strided_slice %7 {offsets = [24, 0], sizes = [24, 128], strides = [1, 1]} : vector<120x128xf32> to vector<24x128xf32>
    %16 = arith.truncf %15 : vector<24x128xf32> to vector<24x128xbf16>
    %cst_11 = arith.constant dense<0.000000e+00> : vector<416x128xf32>
    %17 = tpu.matmul %8, %16, %cst_11 {dimension_numbers = #tpu.dot_dimension_numbers<[1], [0], [0], [1], [0, 0, 1, 1], [], []>} : vector<416x24xbf16>, vector<24x128xbf16>, vector<416x128xf32> -> vector<416x128xf32>
    %18 = vector.broadcast %9 : vector<416x1xf32> to vector<416x128xf32>
    %19 = arith.addf %17, %18 : vector<416x128xf32>
    %20 = vector.extract_strided_slice %7 {offsets = [48, 0], sizes = [24, 128], strides = [1, 1]} : vector<120x128xf32> to vector<24x128xf32>
    %21 = arith.truncf %20 : vector<24x128xf32> to vector<24x128xbf16>
    %cst_12 = arith.constant dense<0.000000e+00> : vector<416x128xf32>
    %22 = tpu.matmul %8, %21, %cst_12 {dimension_numbers = #tpu.dot_dimension_numbers<[1], [0], [0], [1], [0, 0, 1, 1], [], []>} : vector<416x24xbf16>, vector<24x128xbf16>, vector<416x128xf32> -> vector<416x128xf32>
    %23 = vector.broadcast %9 : vector<416x1xf32> to vector<416x128xf32>
    %24 = arith.addf %22, %23 : vector<416x128xf32>
    %25 = vector.extract_strided_slice %7 {offsets = [72, 0], sizes = [24, 128], strides = [1, 1]} : vector<120x128xf32> to vector<24x128xf32>
    %26 = arith.truncf %25 : vector<24x128xf32> to vector<24x128xbf16>
    %cst_13 = arith.constant dense<0.000000e+00> : vector<416x128xf32>
    %27 = tpu.matmul %8, %26, %cst_13 {dimension_numbers = #tpu.dot_dimension_numbers<[1], [0], [0], [1], [0, 0, 1, 1], [], []>} : vector<416x24xbf16>, vector<24x128xbf16>, vector<416x128xf32> -> vector<416x128xf32>
    %28 = vector.broadcast %9 : vector<416x1xf32> to vector<416x128xf32>
    %29 = arith.addf %27, %28 : vector<416x128xf32>
    %30 = vector.extract_strided_slice %7 {offsets = [96, 0], sizes = [24, 128], strides = [1, 1]} : vector<120x128xf32> to vector<24x128xf32>
    %31 = arith.truncf %30 : vector<24x128xf32> to vector<24x128xbf16>
    %cst_14 = arith.constant dense<0.000000e+00> : vector<416x128xf32>
    %32 = tpu.matmul %8, %31, %cst_14 {dimension_numbers = #tpu.dot_dimension_numbers<[1], [0], [0], [1], [0, 0, 1, 1], [], []>} : vector<416x24xbf16>, vector<24x128xbf16>, vector<416x128xf32> -> vector<416x128xf32>
    %33 = vector.broadcast %9 : vector<416x1xf32> to vector<416x128xf32>
    %34 = arith.addf %32, %33 : vector<416x128xf32>
    %c0_15 = arith.constant 0 : index
    %c0_16 = arith.constant 0 : index
    %35 = vector.load %arg5[%c0_15, %c0_16] : memref<416x104xbf16, #tpu.memory_space<vmem>>, vector<416x104xbf16>
    %36 = vector.extract_strided_slice %14 {offsets = [0, 0], sizes = [104, 128], strides = [1, 1]} : vector<416x128xf32> to vector<104x128xf32>
    %cst_17 = arith.constant 5.000000e-01 : f32
    %37 = vector.broadcast %cst_17 : f32 to vector<104x128xf32>
    %38 = arith.mulf %37, %36 : vector<104x128xf32>
    %39 = math.tanh %38 : vector<104x128xf32>
    %cst_18 = arith.constant 5.000000e-01 : f32
    %40 = vector.broadcast %cst_18 : f32 to vector<104x128xf32>
    %41 = arith.mulf %40, %39 : vector<104x128xf32>
    %cst_19 = arith.constant 5.000000e-01 : f32
    %42 = vector.broadcast %cst_19 : f32 to vector<104x128xf32>
    %43 = arith.addf %41, %42 : vector<104x128xf32>
    %44 = vector.extract_strided_slice %14 {offsets = [312, 0], sizes = [104, 128], strides = [1, 1]} : vector<416x128xf32> to vector<104x128xf32>
    %45 = math.tanh %44 : vector<104x128xf32>
    %46 = arith.mulf %43, %45 : vector<104x128xf32>
    %47 = vector.extract_strided_slice %14 {offsets = [208, 0], sizes = [104, 128], strides = [1, 1]} : vector<416x128xf32> to vector<104x128xf32>
    %cst_20 = arith.constant 5.000000e-01 : f32
    %48 = vector.broadcast %cst_20 : f32 to vector<104x128xf32>
    %49 = arith.mulf %48, %47 : vector<104x128xf32>
    %50 = math.tanh %49 : vector<104x128xf32>
    %cst_21 = arith.constant 5.000000e-01 : f32
    %51 = vector.broadcast %cst_21 : f32 to vector<104x128xf32>
    %52 = arith.mulf %51, %50 : vector<104x128xf32>
    %cst_22 = arith.constant 5.000000e-01 : f32
    %53 = vector.broadcast %cst_22 : f32 to vector<104x128xf32>
    %54 = arith.addf %52, %53 : vector<104x128xf32>
    %55 = math.tanh %46 : vector<104x128xf32>
    %56 = arith.mulf %54, %55 : vector<104x128xf32>
    %57 = arith.truncf %56 : vector<104x128xf32> to vector<104x128xbf16>
    %cst_23 = arith.constant dense<0.000000e+00> : vector<416x128xf32>
    %58 = tpu.matmul %35, %57, %cst_23 {dimension_numbers = #tpu.dot_dimension_numbers<[1], [0], [0], [1], [0, 0, 1, 1], [], []>} : vector<416x104xbf16>, vector<104x128xbf16>, vector<416x128xf32> -> vector<416x128xf32>
    %59 = arith.addf %19, %58 : vector<416x128xf32>
    %60 = vector.extract_strided_slice %59 {offsets = [0, 0], sizes = [312, 128], strides = [1, 1]} : vector<416x128xf32> to vector<312x128xf32>
    %cst_24 = arith.constant 5.000000e-01 : f32
    %61 = vector.broadcast %cst_24 : f32 to vector<312x128xf32>
    %62 = arith.mulf %61, %60 : vector<312x128xf32>
    %63 = math.tanh %62 : vector<312x128xf32>
    %cst_25 = arith.constant 5.000000e-01 : f32
    %64 = vector.broadcast %cst_25 : f32 to vector<312x128xf32>
    %65 = arith.mulf %64, %63 : vector<312x128xf32>
    %cst_26 = arith.constant 5.000000e-01 : f32
    %66 = vector.broadcast %cst_26 : f32 to vector<312x128xf32>
    %67 = arith.addf %65, %66 : vector<312x128xf32>
    %68 = vector.extract_strided_slice %59 {offsets = [312, 0], sizes = [104, 128], strides = [1, 1]} : vector<416x128xf32> to vector<104x128xf32>
    %69 = math.tanh %68 : vector<104x128xf32>
    %70 = vector.extract_strided_slice %67 {offsets = [104, 0], sizes = [104, 128], strides = [1, 1]} : vector<312x128xf32> to vector<104x128xf32>
    %71 = arith.mulf %70, %46 : vector<104x128xf32>
    %72 = vector.extract_strided_slice %67 {offsets = [0, 0], sizes = [104, 128], strides = [1, 1]} : vector<312x128xf32> to vector<104x128xf32>
    %73 = arith.mulf %72, %69 : vector<104x128xf32>
    %74 = arith.addf %71, %73 : vector<104x128xf32>
    %75 = vector.extract_strided_slice %67 {offsets = [208, 0], sizes = [104, 128], strides = [1, 1]} : vector<312x128xf32> to vector<104x128xf32>
    %76 = math.tanh %74 : vector<104x128xf32>
    %77 = arith.mulf %75, %76 : vector<104x128xf32>
    %78 = arith.truncf %77 : vector<104x128xf32> to vector<104x128xbf16>
    %cst_27 = arith.constant dense<0.000000e+00> : vector<416x128xf32>
    %79 = tpu.matmul %35, %78, %cst_27 {dimension_numbers = #tpu.dot_dimension_numbers<[1], [0], [0], [1], [0, 0, 1, 1], [], []>} : vector<416x104xbf16>, vector<104x128xbf16>, vector<416x128xf32> -> vector<416x128xf32>
    %80 = arith.addf %24, %79 : vector<416x128xf32>
    %81 = vector.extract_strided_slice %80 {offsets = [0, 0], sizes = [312, 128], strides = [1, 1]} : vector<416x128xf32> to vector<312x128xf32>
    %cst_28 = arith.constant 5.000000e-01 : f32
    %82 = vector.broadcast %cst_28 : f32 to vector<312x128xf32>
    %83 = arith.mulf %82, %81 : vector<312x128xf32>
    %84 = math.tanh %83 : vector<312x128xf32>
    %cst_29 = arith.constant 5.000000e-01 : f32
    %85 = vector.broadcast %cst_29 : f32 to vector<312x128xf32>
    %86 = arith.mulf %85, %84 : vector<312x128xf32>
    %cst_30 = arith.constant 5.000000e-01 : f32
    %87 = vector.broadcast %cst_30 : f32 to vector<312x128xf32>
    %88 = arith.addf %86, %87 : vector<312x128xf32>
    %89 = vector.extract_strided_slice %80 {offsets = [312, 0], sizes = [104, 128], strides = [1, 1]} : vector<416x128xf32> to vector<104x128xf32>
    %90 = math.tanh %89 : vector<104x128xf32>
    %91 = vector.extract_strided_slice %88 {offsets = [104, 0], sizes = [104, 128], strides = [1, 1]} : vector<312x128xf32> to vector<104x128xf32>
    %92 = arith.mulf %91, %74 : vector<104x128xf32>
    %93 = vector.extract_strided_slice %88 {offsets = [0, 0], sizes = [104, 128], strides = [1, 1]} : vector<312x128xf32> to vector<104x128xf32>
    %94 = arith.mulf %93, %90 : vector<104x128xf32>
    %95 = arith.addf %92, %94 : vector<104x128xf32>
    %96 = vector.extract_strided_slice %88 {offsets = [208, 0], sizes = [104, 128], strides = [1, 1]} : vector<312x128xf32> to vector<104x128xf32>
    %97 = math.tanh %95 : vector<104x128xf32>
    %98 = arith.mulf %96, %97 : vector<104x128xf32>
    %99 = arith.truncf %98 : vector<104x128xf32> to vector<104x128xbf16>
    %cst_31 = arith.constant dense<0.000000e+00> : vector<416x128xf32>
    %100 = tpu.matmul %35, %99, %cst_31 {dimension_numbers = #tpu.dot_dimension_numbers<[1], [0], [0], [1], [0, 0, 1, 1], [], []>} : vector<416x104xbf16>, vector<104x128xbf16>, vector<416x128xf32> -> vector<416x128xf32>
    %101 = arith.addf %29, %100 : vector<416x128xf32>
    %102 = vector.extract_strided_slice %101 {offsets = [0, 0], sizes = [312, 128], strides = [1, 1]} : vector<416x128xf32> to vector<312x128xf32>
    %cst_32 = arith.constant 5.000000e-01 : f32
    %103 = vector.broadcast %cst_32 : f32 to vector<312x128xf32>
    %104 = arith.mulf %103, %102 : vector<312x128xf32>
    %105 = math.tanh %104 : vector<312x128xf32>
    %cst_33 = arith.constant 5.000000e-01 : f32
    %106 = vector.broadcast %cst_33 : f32 to vector<312x128xf32>
    %107 = arith.mulf %106, %105 : vector<312x128xf32>
    %cst_34 = arith.constant 5.000000e-01 : f32
    %108 = vector.broadcast %cst_34 : f32 to vector<312x128xf32>
    %109 = arith.addf %107, %108 : vector<312x128xf32>
    %110 = vector.extract_strided_slice %101 {offsets = [312, 0], sizes = [104, 128], strides = [1, 1]} : vector<416x128xf32> to vector<104x128xf32>
    %111 = math.tanh %110 : vector<104x128xf32>
    %112 = vector.extract_strided_slice %109 {offsets = [104, 0], sizes = [104, 128], strides = [1, 1]} : vector<312x128xf32> to vector<104x128xf32>
    %113 = arith.mulf %112, %95 : vector<104x128xf32>
    %114 = vector.extract_strided_slice %109 {offsets = [0, 0], sizes = [104, 128], strides = [1, 1]} : vector<312x128xf32> to vector<104x128xf32>
    %115 = arith.mulf %114, %111 : vector<104x128xf32>
    %116 = arith.addf %113, %115 : vector<104x128xf32>
    %117 = vector.extract_strided_slice %109 {offsets = [208, 0], sizes = [104, 128], strides = [1, 1]} : vector<312x128xf32> to vector<104x128xf32>
    %118 = math.tanh %116 : vector<104x128xf32>
    %119 = arith.mulf %117, %118 : vector<104x128xf32>
    %120 = arith.truncf %119 : vector<104x128xf32> to vector<104x128xbf16>
    %cst_35 = arith.constant dense<0.000000e+00> : vector<416x128xf32>
    %121 = tpu.matmul %35, %120, %cst_35 {dimension_numbers = #tpu.dot_dimension_numbers<[1], [0], [0], [1], [0, 0, 1, 1], [], []>} : vector<416x104xbf16>, vector<104x128xbf16>, vector<416x128xf32> -> vector<416x128xf32>
    %122 = arith.addf %34, %121 : vector<416x128xf32>
    %123 = vector.extract_strided_slice %122 {offsets = [0, 0], sizes = [312, 128], strides = [1, 1]} : vector<416x128xf32> to vector<312x128xf32>
    %cst_36 = arith.constant 5.000000e-01 : f32
    %124 = vector.broadcast %cst_36 : f32 to vector<312x128xf32>
    %125 = arith.mulf %124, %123 : vector<312x128xf32>
    %126 = math.tanh %125 : vector<312x128xf32>
    %cst_37 = arith.constant 5.000000e-01 : f32
    %127 = vector.broadcast %cst_37 : f32 to vector<312x128xf32>
    %128 = arith.mulf %127, %126 : vector<312x128xf32>
    %cst_38 = arith.constant 5.000000e-01 : f32
    %129 = vector.broadcast %cst_38 : f32 to vector<312x128xf32>
    %130 = arith.addf %128, %129 : vector<312x128xf32>
    %131 = vector.extract_strided_slice %122 {offsets = [312, 0], sizes = [104, 128], strides = [1, 1]} : vector<416x128xf32> to vector<104x128xf32>
    %132 = math.tanh %131 : vector<104x128xf32>
    %133 = vector.extract_strided_slice %130 {offsets = [104, 0], sizes = [104, 128], strides = [1, 1]} : vector<312x128xf32> to vector<104x128xf32>
    %134 = arith.mulf %133, %116 : vector<104x128xf32>
    %135 = vector.extract_strided_slice %130 {offsets = [0, 0], sizes = [104, 128], strides = [1, 1]} : vector<312x128xf32> to vector<104x128xf32>
    %136 = arith.mulf %135, %132 : vector<104x128xf32>
    %137 = arith.addf %134, %136 : vector<104x128xf32>
    %138 = vector.extract_strided_slice %130 {offsets = [208, 0], sizes = [104, 128], strides = [1, 1]} : vector<312x128xf32> to vector<104x128xf32>
    %139 = math.tanh %137 : vector<104x128xf32>
    %140 = arith.mulf %138, %139 : vector<104x128xf32>
    %141 = vector.extract_strided_slice %0 {offsets = [96, 0], sizes = [24, 128], strides = [1, 1]} : vector<120x128xf32> to vector<24x128xf32>
    %c0_39 = arith.constant 0 : index
    %c0_40 = arith.constant 0 : index
    %142 = vector.load %arg7[%c0_39, %c0_40] : memref<104x104xf32, #tpu.memory_space<vmem>>, vector<104x104xf32>
    %cst_41 = arith.constant dense<0.000000e+00> : vector<104x128xf32>
    %143 = tpu.matmul %142, %140, %cst_41 {dimension_numbers = #tpu.dot_dimension_numbers<[1], [0], [0], [1], [0, 0, 1, 1], [], []>} : vector<104x104xf32>, vector<104x128xf32>, vector<104x128xf32> -> vector<104x128xf32>
    %c0_42 = arith.constant 0 : index
    %c0_43 = arith.constant 0 : index
    %144 = vector.load %arg8[%c0_42, %c0_43] : memref<104x24xf32, #tpu.memory_space<vmem>>, vector<104x24xf32>
    %cst_44 = arith.constant dense<0.000000e+00> : vector<104x128xf32>
    %145 = tpu.matmul %144, %141, %cst_44 {dimension_numbers = #tpu.dot_dimension_numbers<[1], [0], [0], [1], [0, 0, 1, 1], [], []>} : vector<104x24xf32>, vector<24x128xf32>, vector<104x128xf32> -> vector<104x128xf32>
    %146 = arith.addf %143, %145 : vector<104x128xf32>
    %c0_45 = arith.constant 0 : index
    %c0_46 = arith.constant 0 : index
    %147 = vector.load %arg9[%c0_45, %c0_46] : memref<104x1xf32, #tpu.memory_space<vmem>>, vector<104x1xf32>
    %148 = vector.broadcast %147 : vector<104x1xf32> to vector<104x128xf32>
    %149 = arith.addf %146, %148 : vector<104x128xf32>
    %cst_47 = arith.constant 0.000000e+00 : f32
    %150 = vector.broadcast %cst_47 : f32 to vector<104x128xf32>
    %151 = arith.maximumf %149, %150 : vector<104x128xf32>
    %c0_48 = arith.constant 0 : index
    %c0_49 = arith.constant 0 : index
    %152 = vector.load %arg10[%c0_48, %c0_49] : memref<20x104xf32, #tpu.memory_space<vmem>>, vector<20x104xf32>
    %cst_50 = arith.constant dense<0.000000e+00> : vector<20x128xf32>
    %153 = tpu.matmul %152, %151, %cst_50 {dimension_numbers = #tpu.dot_dimension_numbers<[1], [0], [0], [1], [0, 0, 1, 1], [], []>} : vector<20x104xf32>, vector<104x128xf32>, vector<20x128xf32> -> vector<20x128xf32>
    %c0_51 = arith.constant 0 : index
    %c0_52 = arith.constant 0 : index
    %154 = vector.load %arg11[%c0_51, %c0_52] : memref<20x1xf32, #tpu.memory_space<vmem>>, vector<20x1xf32>
    %155 = vector.broadcast %154 : vector<20x1xf32> to vector<20x128xf32>
    %156 = arith.addf %153, %155 : vector<20x128xf32>
    %c0_53 = arith.constant 0 : index
    %c0_54 = arith.constant 0 : index
    %157 = vector.load %arg12[%c0_53, %c0_54] : memref<20x128xf32, #tpu.memory_space<vmem>>, vector<20x128xf32>
    tpu.vector_store %arg12[%c0_53, %c0_54], %156 {strides = array<i32>} : memref<20x128xf32, #tpu.memory_space<vmem>>, vector<20x128xf32>,
    return
  }
  func.func @transform_0(%arg0: i32) -> (i32, i32) {
    %c0_i32 = arith.constant 0 : i32
    %c0_i32_0 = arith.constant 0 : i32
    return %c0_i32, %arg0 : i32, i32
  }
  func.func @transform_1(%arg0: i32) -> (i32, i32) {
    %c0_i32 = arith.constant 0 : i32
    %c0_i32_0 = arith.constant 0 : i32
    %c0_i32_1 = arith.constant 0 : i32
    return %c0_i32, %c0_i32_0 : i32, i32
  }
  func.func @transform_2(%arg0: i32) -> (i32, i32) {
    %c0_i32 = arith.constant 0 : i32
    %c0_i32_0 = arith.constant 0 : i32
    %c0_i32_1 = arith.constant 0 : i32
    return %c0_i32, %c0_i32_0 : i32, i32
  }
  func.func @transform_3(%arg0: i32) -> (i32, i32) {
    %c0_i32 = arith.constant 0 : i32
    %c0_i32_0 = arith.constant 0 : i32
    %c0_i32_1 = arith.constant 0 : i32
    return %c0_i32, %c0_i32_0 : i32, i32
  }
  func.func @transform_4(%arg0: i32) -> (i32, i32) {
    %c0_i32 = arith.constant 0 : i32
    %c0_i32_0 = arith.constant 0 : i32
    %c0_i32_1 = arith.constant 0 : i32
    return %c0_i32, %c0_i32_0 : i32, i32
  }
  func.func @transform_5(%arg0: i32) -> (i32, i32) {
    %c0_i32 = arith.constant 0 : i32
    %c0_i32_0 = arith.constant 0 : i32
    %c0_i32_1 = arith.constant 0 : i32
    return %c0_i32, %c0_i32_0 : i32, i32
  }
  func.func @transform_6(%arg0: i32) -> (i32, i32) {
    %c0_i32 = arith.constant 0 : i32
    %c0_i32_0 = arith.constant 0 : i32
    %c0_i32_1 = arith.constant 0 : i32
    return %c0_i32, %c0_i32_0 : i32, i32
  }
  func.func @transform_7(%arg0: i32) -> (i32, i32) {
    %c0_i32 = arith.constant 0 : i32
    %c0_i32_0 = arith.constant 0 : i32
    %c0_i32_1 = arith.constant 0 : i32
    return %c0_i32, %c0_i32_0 : i32, i32
  }
  func.func @transform_8(%arg0: i32) -> (i32, i32) {
    %c0_i32 = arith.constant 0 : i32
    %c0_i32_0 = arith.constant 0 : i32
    %c0_i32_1 = arith.constant 0 : i32
    return %c0_i32, %c0_i32_0 : i32, i32
  }
  func.func @transform_9(%arg0: i32) -> (i32, i32) {
    %c0_i32 = arith.constant 0 : i32
    %c0_i32_0 = arith.constant 0 : i32
    %c0_i32_1 = arith.constant 0 : i32
    return %c0_i32, %c0_i32_0 : i32, i32
  }
  func.func @transform_10(%arg0: i32) -> (i32, i32) {
    %c0_i32 = arith.constant 0 : i32
    %c0_i32_0 = arith.constant 0 : i32
    %c0_i32_1 = arith.constant 0 : i32
    return %c0_i32, %c0_i32_0 : i32, i32
  }
  func.func @transform_11(%arg0: i32) -> (i32, i32) {
    %c0_i32 = arith.constant 0 : i32
    %c0_i32_0 = arith.constant 0 : i32
    return %c0_i32, %arg0 : i32, i32
  }
}

</mosaic_0001>

<bundles_post_ra>
// kernel: tpu_custom_call.1
= control target key start
LH: loop header
LB: loop body
LE: loop exit
PB: predicated region body
PF: predicated region fallthrough
CT: control target
= control target key end

     0   :  { %v11346_v3 = vmov 0.0   ;;  %v7538_v4 = vmov 0   ;;  %vm7539_vm0 = vmmov 0   ;;  %vm160_vm1 = vcmask 982016   ;;  %s11334_s0 = inlined_call_operand.vmem [shape: f32[120,128], index: 0, kind: input, shape index: {}]   ;;  %s11335_s1 = inlined_call_operand.vmem [shape: f32[120,120], index: 1, kind: input, shape index: {}]   ;;  %s11336_s2 = inlined_call_operand.vmem [shape: f32[120,1], index: 2, kind: input, shape index: {}]   ;;  %s11337_s3 = inlined_call_operand.vmem [shape: bf16[416,24], index: 3, kind: input, shape index: {}]   ;;  %s11338_s4 = inlined_call_operand.vmem [shape: bf16[416,104], index: 4, kind: input, shape index: {}]   ;;  %s11339_s5 = inlined_call_operand.vmem [shape: f32[416,1], index: 5, kind: input, shape index: {}]   ;;  %s11340_s6 = inlined_call_operand.vmem [shape: f32[104,104], index: 6, kind: input, shape index: {}]   ;;  %s11341_s7 = inlined_call_operand.vmem [shape: f32[104,24], index: 7, kind: input, shape index: {}]   ;;  %s11342_s8 = inlined_call_operand.vmem [shape: f32[104,1], index: 8, kind: input, shape index: {}]   ;;  %s11343_s9 = inlined_call_operand.vmem [shape: f32[20,104], index: 9, kind: input, shape index: {}]   ;;  %s11344_s10 = inlined_call_operand.vmem [shape: f32[20,1], index: 10, kind: input, shape index: {}]   ;;  %s11345_s11 = inlined_call_operand.hbm [shape: f32[20,128], index: 11, kind: output, shape index: {}]  }
   0x1   :  { %v72_v0 = vld [vmem:[%s11336_s2 + $0x10] sm:$0xff]  ;;  %v71_v1 = vld [vmem:[%s11336_s2 + $0x8] sm:$0xff]  ;;  %6004 = vmatprep.subr.mxu0 %v11346_v3  ;;  %6784 = vset.pattern.permute.xlu1 %v7538_v4  ;;  %v70_v7 = vld [vmem:[%s11336_s2] sm:$0xff] }
   0x2   :  { %v54_v2 = vld [vmem:[%s11334_s0 + $0x70] sm:$0xff]  ;;  %6783 = vset.pattern.permute.xlu0 %v7538_v4  ;;  %92 = vperm.xlu1 %6784, %v71_v1   ;;  %v53_v5 = vld [vmem:[%s11334_s0 + $0x68] sm:$0xff]  ;;  %v52_v8 = vld [vmem:[%s11334_s0 + $0x60] sm:$0xff] }
   0x3   :  { %97 = vperm.xlu0 %6783, %v72_v0   ;;  %6005 = vmatpush3.msra.mxu0 %v54_v2  ;;  %v75_v6 = vld [vmem:[%s11336_s2 + $0x28] sm:$0xff]  ;;  %v51_v9 = vld [vmem:[%s11334_s0 + $0x58] sm:$0xff]  ;;  %v74_v10 = vld [vmem:[%s11336_s2 + $0x20] sm:$0xff] }
   0x4   :  { %6006 = vmatprep.subr.mxu0 %v11346_v3  ;;  %6034 = vmatprep.mubr.msk.f32.mxu0 %vm7539_vm0, %v11346_v3  ;;  %v73_v11 = vld [vmem:[%s11336_s2 + $0x18] sm:$0xff]  ;;  %v50_v12 = vld [vmem:[%s11334_s0 + $0x50] sm:$0xff]  ;;  %v49_v13 = vld [vmem:[%s11334_s0 + $0x48] sm:$0xff] }
   0x5   :  { %6007 = vmatpush3.msra.mxu0 %v53_v5  ;;  %v79_v14 = vld [vmem:[%s11336_s2 + $0x48] sm:$0xff]  ;;  %v81_v15 = vld [vmem:[%s11336_s2 + $0x58] sm:$0xff]  ;;  %v48_v16 = vld [vmem:[%s11334_s0 + $0x40] sm:$0xff] }
   0x6   :  { %6008 = vmatprep.subr.mxu0 %v11346_v3  ;;  %112 = vperm.xlu1 %6784, %v75_v6   ;;  %v47_v17 = vld [vmem:[%s11334_s0 + $0x38] sm:$0xff]  ;;  %v425_v18 = vld [vmem:[%s11339_s5 + $0x60] sm:$0xff]  ;;  %v80_v19 = vld [vmem:[%s11336_s2 + $0x50] sm:$0xff] }
   0x7   :  { %87 = vperm.xlu0 %6783, %v70_v7   ;;  %6009 = vmatpush3.msra.mxu0 %v52_v8  ;;  %v46_v20 = vld [vmem:[%s11334_s0 + $0x30] sm:$0xff]  ;;  %v45_v21 = vld [vmem:[%s11334_s0 + $0x28] sm:$0xff]  ;;  %v424_v22 = vld [vmem:[%s11339_s5 + $0x58] sm:$0xff] }
   0x8   :  { %6010 = vmatprep.subr.mxu0 %v11346_v3  ;;  %v423_v23 = vld [vmem:[%s11339_s5 + $0x50] sm:$0xff]  ;;  %v44_v24 = vld [vmem:[%s11334_s0 + $0x20] sm:$0xff]  ;;  %v43_v25 = vld [vmem:[%s11334_s0 + $0x18] sm:$0xff] }
   0x9   :  { %6011 = vmatpush3.msra.mxu0 %v51_v9  ;;  %v421_v26 = vld [vmem:[%s11339_s5 + $0x40] sm:$0xff]  ;;  %v464_v27 = vld [vmem:[%s11339_s5 + $0x198] sm:$0xff]  ;;  %v42_v28 = vld [vmem:[%s11334_s0 + $0x10] sm:$0xff] }
   0xa   :  { %6012 = vmatprep.subr.mxu0 %v11346_v3  ;;  %107 = vperm.xlu1 %6784, %v74_v10   ;;  %v41_v29 = vld [vmem:[%s11334_s0 + $0x8] sm:$0xff]  ;;  %v40_v32 = vld [vmem:[%s11334_s0] sm:$0xff]  ;;  %v419_v34 = vld [vmem:[%s11339_s5 + $0x30] sm:$0xff] }
   0xb   :  { %102 = vperm.xlu0 %6783, %v73_v11   ;;  %6013 = vmatpush3.msra.mxu0 %v50_v12  ;;  %v462_v30 = vld [vmem:[%s11339_s5 + $0x188] sm:$0xff]  ;;  %v55_v33 = vld [vmem:[%s11335_s1] sm:$0xff]  ;;  %v463_v35 = vld [vmem:[%s11339_s5 + $0x190] sm:$0xff] }
   0xc   :  { %6014 = vmatprep.subr.mxu0 %v11346_v3  ;;  %v422_v31 = vld [vmem:[%s11339_s5 + $0x48] sm:$0xff]  ;;  %v460_v37 = vld [vmem:[%s11339_s5 + $0x178] sm:$0xff]  ;;  %v57_v39 = vld [vmem:[%s11335_s1 + $0x10] sm:$0xff] }
   0xd   :  { %6015 = vmatpush3.msra.mxu0 %v49_v13  ;;  %v56_v36 = vld [vmem:[%s11335_s1 + $0x8] sm:$0xff]  ;;  %v420_v38 = vld [vmem:[%s11339_s5 + $0x38] sm:$0xff]  ;;  %v417_v40 = vld [vmem:[%s11339_s5 + $0x20] sm:$0xff] }
   0xe   :  { %6016 = vmatprep.subr.mxu0 %v11346_v3  ;;  %132 = vperm.xlu1 %6784, %v79_v14   ;;  %v461_v41 = vld [vmem:[%s11339_s5 + $0x180] sm:$0xff]  ;;  %v58_v42 = vld [vmem:[%s11335_s1 + $0x18] sm:$0xff]  ;;  %v451_v43 = vld [vmem:[%s11339_s5 + $0x130] sm:$0xff] }
   0xf   :  { %142 = vperm.xlu0 %6783, %v81_v15   ;;  %6017 = vmatpush3.msra.mxu0 %v48_v16  ;;  %v418_v44 = vld [vmem:[%s11339_s5 + $0x28] sm:$0xff]  ;;  %v59_v45 = vld [vmem:[%s11335_s1 + $0x20] sm:$0xff]  ;;  %v459_v46 = vld [vmem:[%s11339_s5 + $0x170] sm:$0xff] }
  0x10   :  { %6018 = vmatprep.subr.mxu0 %v11346_v3  ;;  %v458_v47 = vld [vmem:[%s11339_s5 + $0x168] sm:$0xff]  ;;  %v416_v49 = vld [vmem:[%s11339_s5 + $0x18] sm:$0xff]  ;;  %v415_v50 = vld [vmem:[%s11339_s5 + $0x10] sm:$0xff] }
  0x11   :  { %6019 = vmatpush3.msra.mxu0 %v47_v17  ;;  %v60_v48 = vld [vmem:[%s11335_s1 + $0x28] sm:$0xff]  ;;  %v61_v51 = vld [vmem:[%s11335_s1 + $0x30] sm:$0xff]  ;;  %v449_v53 = vld [vmem:[%s11339_s5 + $0x120] sm:$0xff] }
  0x12   :  { %6020 = vmatprep.subr.mxu0 %v11346_v3  ;;  %529 = vperm.xlu1 %6784, %v425_v18   ;;  %v450_v52 = vld [vmem:[%s11339_s5 + $0x128] sm:$0xff]  ;;  %v62_v54 = vld [vmem:[%s11335_s1 + $0x38] sm:$0xff]  ;;  %v457_v55 = vld [vmem:[%s11339_s5 + $0x160] sm:$0xff] }
  0x13   :  { %137 = vperm.xlu0 %6783, %v80_v19   ;;  %6021 = vmatpush3.msra.mxu0 %v46_v20  ;;  %v456_v56 = vld [vmem:[%s11339_s5 + $0x158] sm:$0xff]  ;;  %v63_v57 = vld [vmem:[%s11335_s1 + $0x40] sm:$0xff]  ;;  %v414_v58 = vld [vmem:[%s11339_s5 + $0x8] sm:$0xff] }
  0x14   :  { %6022 = vmatprep.subr.mxu0 %v11346_v3  ;;  %v413_v59 = vld [vmem:[%s11339_s5] sm:$0xff]  ;;  %v64_v60 = vld [vmem:[%s11335_s1 + $0x48] sm:$0xff]  ;;  %v448_v61 = vld [vmem:[%s11339_s5 + $0x118] sm:$0xff] }
  0x15   :  { %6023 = vmatpush3.msra.mxu0 %v45_v21  ;;  %v447_v62 = vld [vmem:[%s11339_s5 + $0x110] sm:$0xff]  ;;  %v454_v1 = vld [vmem:[%s11339_s5 + $0x148] sm:$0xff] }
  0x16   :  { %6024 = vmatprep.subr.mxu0 %v11346_v3  ;;  %524 = vperm.xlu1 %6784, %v424_v22   ;;  %v65_v63 = vld [vmem:[%s11335_s1 + $0x50] sm:$0xff] }
  0x17   :  { %519 = vperm.xlu0 %6783, %v423_v23   ;;  %6025 = vmatpush3.msra.mxu0 %v44_v24  ;;  %v455_v0 = vld [vmem:[%s11339_s5 + $0x150] sm:$0xff] }
  0x18   :  { %6026 = vmatprep.subr.mxu0 %v11346_v3 }
  0x19   :  { %6027 = vmatpush3.msra.mxu0 %v43_v25 }
  0x1a   :  { %6028 = vmatprep.subr.mxu0 %v11346_v3  ;;  %509 = vperm.xlu1 %6784, %v421_v26  }
  0x1b   :  { %724 = vperm.xlu0 %6783, %v464_v27   ;;  %6029 = vmatpush3.msra.mxu0 %v42_v28 }
  0x1c   :  { %6030 = vmatprep.subr.mxu0 %v11346_v3 }
  0x1d   :  { %6031 = vmatpush3.msra.mxu0 %v41_v29 }
  0x1e   :  { %6032 = vmatprep.subr.mxu0 %v11346_v3  ;;  %714 = vperm.xlu1 %6784, %v462_v30  }
  0x1f   :  { %514 = vperm.xlu0 %6783, %v422_v31   ;;  %6033 = vmatpush3.msra.mxu0 %v40_v32 }
  0x20   :  { %6035 = vmatmul.mubr.msk.f32.vlgmr.msra.gmra.mxu0 %vm160_vm1, %v55_v33 }
  0x21   :  { %6037 = vmatprep.mubr.msk.f32.mxu0 %vm7539_vm0, %v11346_v3 }
  0x22   :  { %499 = vperm.xlu1 %6784, %v419_v34  }
  0x23   :  { %719 = vperm.xlu0 %6783, %v463_v35  }
  0x24   :  { %6038 = vmatmul.mubr.msk.f32.gmra.mxu0 %vm160_vm1, %v56_v36 }
  0x25   :  { %6040 = vmatprep.mubr.msk.f32.mxu0 %vm7539_vm0, %v11346_v3 }
  0x26   :  { %704 = vperm.xlu1 %6784, %v460_v37  }
  0x27   :  { %504 = vperm.xlu0 %6783, %v420_v38  }
  0x28   :  { %6041 = vmatmul.mubr.msk.f32.gmra.mxu0 %vm160_vm1, %v57_v39 }
  0x29   :  { %6043 = vmatprep.mubr.msk.f32.mxu0 %vm7539_vm0, %v11346_v3 }
  0x2a   :  { %489 = vperm.xlu1 %6784, %v417_v40  }
  0x2b   :  { %709 = vperm.xlu0 %6783, %v461_v41  }
  0x2c   :  { %6044 = vmatmul.mubr.msk.f32.gmra.mxu0 %vm160_vm1, %v58_v42 }
  0x2d   :  { %6046 = vmatprep.mubr.msk.f32.mxu0 %vm7539_vm0, %v11346_v3 }
  0x2e   :  { %659 = vperm.xlu1 %6784, %v451_v43  }
  0x2f   :  { %494 = vperm.xlu0 %6783, %v418_v44  }
  0x30   :  { %6047 = vmatmul.mubr.msk.f32.gmra.mxu0 %vm160_vm1, %v59_v45 }
  0x31   :  { %6049 = vmatprep.mubr.msk.f32.mxu0 %vm7539_vm0, %v11346_v3 }
  0x32   :  { %699 = vperm.xlu1 %6784, %v459_v46  }
  0x33   :  { %694 = vperm.xlu0 %6783, %v458_v47  }
  0x34   :  { %6050 = vmatmul.mubr.msk.f32.gmra.mxu0 %vm160_vm1, %v60_v48 }
  0x35   :  { %6052 = vmatprep.mubr.msk.f32.mxu0 %vm7539_vm0, %v11346_v3 }
  0x36   :  { %484 = vperm.xlu1 %6784, %v416_v49  }
  0x37   :  { %479 = vperm.xlu0 %6783, %v415_v50  }
  0x38   :  { %6053 = vmatmul.mubr.msk.f32.gmra.mxu0 %vm160_vm1, %v61_v51 }
  0x39   :  { %6055 = vmatprep.mubr.msk.f32.mxu0 %vm7539_vm0, %v11346_v3 }
  0x3a   :  { %654 = vperm.xlu1 %6784, %v450_v52  }
  0x3b   :  { %649 = vperm.xlu0 %6783, %v449_v53  }
  0x3c   :  { %6056 = vmatmul.mubr.msk.f32.gmra.mxu0 %vm160_vm1, %v62_v54 }
  0x3d   :  { %6058 = vmatprep.mubr.msk.f32.mxu0 %vm7539_vm0, %v11346_v3 }
  0x3e   :  { %689 = vperm.xlu1 %6784, %v457_v55  }
  0x3f   :  { %684 = vperm.xlu0 %6783, %v456_v56  }
  0x40   :  { %6059 = vmatmul.mubr.msk.f32.gmra.mxu0 %vm160_vm1, %v63_v57 }
  0x41   :  { %6061 = vmatprep.mubr.msk.f32.mxu0 %vm7539_vm0, %v11346_v3 }
  0x42   :  { %474 = vperm.xlu1 %6784, %v414_v58  }
  0x43   :  { %469 = vperm.xlu0 %6783, %v413_v59  }
  0x44   :  { %6062 = vmatmul.mubr.msk.f32.gmra.mxu0 %vm160_vm1, %v64_v60 }
  0x45   :  { %6064 = vmatprep.mubr.msk.f32.mxu0 %vm7539_vm0, %v11346_v3 }
  0x46   :  { %644 = vperm.xlu1 %6784, %v448_v61  }
  0x47   :  { %639 = vperm.xlu0 %6783, %v447_v62  }
  0x48   :  { %6065 = vmatmul.mubr.msk.f32.gmra.mxu0 %vm160_vm1, %v65_v63 }
  0x49   :  { %16 = vsyncpa [#allocation3], 0  ;;  %6067 = vmatprep.mubr.msk.f32.mxu0 %vm7539_vm0, %v11346_v3  ;;  %v66_v2 = vld [vmem:[%s11335_s1 + $0x58] sm:$0xff]  ;;  %v446_v4 = vld [vmem:[%s11339_s5 + $0x108] sm:$0xff]  ;;  %vm857_vm2 = vcmask 195584   ;;  %vm936_vm3 = vcmask 1043456  }
  0x4a   :  { %679 = vperm.xlu1 %6784, %v455_v0   ;;  %v445_v5 = vld [vmem:[%s11339_s5 + $0x100] sm:$0xff]  ;;  %v452_v8 = vld [vmem:[%s11339_s5 + $0x138] sm:$0xff]  ;;  %v68_v9 = vld [vmem:[%s11335_s1 + $0x68] sm:$0xff]  ;;  %vm2497_vm4 = vcmask 850944   ;;  %s7540_s15 = smov [#allocation2]  }
  0x4b   :  { %674 = vperm.xlu0 %6783, %v454_v1   ;;  %v67_v6 = vld [vmem:[%s11335_s1 + $0x60] sm:$0xff]  ;;  %v444_v10 = vld [vmem:[%s11339_s5 + $0xf8] sm:$0xff]  ;;  %v443_v11 = vld [vmem:[%s11339_s5 + $0xf0] sm:$0xff]  ;;  %s5303_s16 = sshll.u32 %s7540_s15, 4  ;;  %s5304_s16 = int_to_ptr.vmem [resolvable:$true] %s5303_s16 }
  0x4c   :  { %6068 = vmatmul.mubr.msk.f32.gmra.mxu0 %vm160_vm1, %v66_v2  ;;  %v453_v7 = vld [vmem:[%s11339_s5 + $0x140] sm:$0xff]  ;;  %v69_v12 = vld [vmem:[%s11335_s1 + $0x70] sm:$0xff]  ;;  %v442_v13 = vld [vmem:[%s11339_s5 + $0xe8] sm:$0xff]  ;;  %p7520_p1 = scmp.lt.s32.totalorder %s5304_s16, %s5304_s16 }
  0x4d   :  { %6070 = vmatprep.mubr.msk.f32.mxu0 %vm7539_vm0, %v11346_v3  ;;  %v441_v14 = vld [vmem:[%s11339_s5 + $0xe0] sm:$0xff]  ;;  %v440_v15 = vld [vmem:[%s11339_s5 + $0xd8] sm:$0xff]  ;;  %v439_v16 = vld [vmem:[%s11339_s5 + $0xd0] sm:$0xff] }
  0x4e   :  { %634 = vperm.xlu1 %6784, %v446_v4   ;;  %v76_v17 = vld [vmem:[%s11336_s2 + $0x30] sm:$0xff]  ;;  %v78_v18 = vld [vmem:[%s11336_s2 + $0x40] sm:$0xff]  ;;  %v77_v20 = vld [vmem:[%s11336_s2 + $0x38] sm:$0xff] }
  0x4f   :  { %629 = vperm.xlu0 %6783, %v445_v5   ;;  %v84_v19 = vld [vmem:[%s11336_s2 + $0x70] sm:$0xff]  ;;  %v83_v21 = vld [vmem:[%s11336_s2 + $0x68] sm:$0xff]  ;;  %v82_v22 = vld [vmem:[%s11336_s2 + $0x60] sm:$0xff] }
  0x50   :  { %6071 = vmatmul.mubr.msk.f32.gmra.mxu0 %vm160_vm1, %v67_v6  ;;  %v436_v23 = vld [vmem:[%s11339_s5 + $0xb8] sm:$0xff]  ;;  %v438_v24 = vld [vmem:[%s11339_s5 + $0xc8] sm:$0xff]  ;;  %v437_v26 = vld [vmem:[%s11339_s5 + $0xc0] sm:$0xff] }
  0x51   :  { %6073 = vmatprep.mubr.msk.f32.mxu0 %vm7539_vm0, %v11346_v3  ;;  %v434_v25 = vld [vmem:[%s11339_s5 + $0xa8] sm:$0xff]  ;;  %v432_v27 = vld [vmem:[%s11339_s5 + $0x98] sm:$0xff]  ;;  %v435_v28 = vld [vmem:[%s11339_s5 + $0xb0] sm:$0xff] }
  0x52   :  { %669 = vperm.xlu1 %6784, %v453_v7   ;;  %v7936_v29 = vld [vmem:[%s11337_s3] sm:$0xff]   ;;  %v430_v30 = vld [vmem:[%s11339_s5 + $0x88] sm:$0xff]  ;;  %v428_v32 = vld [vmem:[%s11339_s5 + $0x78] sm:$0xff] }
  0x53   :  { %664 = vperm.xlu0 %6783, %v452_v8   ;;  %6083 = vmatprep.mubr.msk.bf16.mxu1 %vm857_vm2, %v7936_v29  ;;  %v433_v31 = vld [vmem:[%s11339_s5 + $0xa0] sm:$0xff]  ;;  %v431_v33 = vld [vmem:[%s11339_s5 + $0x90] sm:$0xff]  ;;  %v426_v36 = vld [vmem:[%s11339_s5 + $0x68] sm:$0xff] }
  0x54   :  { %6074 = vmatmul.mubr.msk.f32.gmra.mxu0 %vm160_vm1, %v68_v9  ;;  %v429_v37 = vld [vmem:[%s11339_s5 + $0x80] sm:$0xff]  ;;  %v427_v41 = vld [vmem:[%s11339_s5 + $0x70] sm:$0xff]  ;;  %v5092_v45 = vld [vmem:[%s11342_s8 + $0x58] sm:$0xff] }
  0x55   :  { %6076 = vmatprep.mubr.msk.f32.mxu0 %vm7539_vm0, %v11346_v3  ;;  %v5093_v40 = vld [vmem:[%s11342_s8 + $0x60] sm:$0xff]  ;;  %v5091_v44 = vld [vmem:[%s11342_s8 + $0x50] sm:$0xff]  ;;  %v5090_v49 = vld [vmem:[%s11342_s8 + $0x48] sm:$0xff] }
  0x56   :  { %624 = vperm.xlu1 %6784, %v444_v10   ;;  %v5089_v48 = vld [vmem:[%s11342_s8 + $0x40] sm:$0xff]  ;;  %v5087_v52 = vld [vmem:[%s11342_s8 + $0x30] sm:$0xff]  ;;  %v5088_v53 = vld [vmem:[%s11342_s8 + $0x38] sm:$0xff] }
  0x57   :  { %619 = vperm.xlu0 %6783, %v443_v11   ;;  %v5085_v56 = vld [vmem:[%s11342_s8 + $0x20] sm:$0xff]  ;;  %v5086_v57 = vld [vmem:[%s11342_s8 + $0x28] sm:$0xff]  ;;  %v5083_v60 = vld [vmem:[%s11342_s8 + $0x10] sm:$0xff] }
  0x58   :  { %6077 = vmatmul.mubr.msk.f32.gmra.mxu0 %vm160_vm1, %v69_v12  ;;  %v5084_v61 = vld [vmem:[%s11342_s8 + $0x18] sm:$0xff]  ;;  %v5081_v0 = vld [vmem:[%s11342_s8] sm:$0xff]  ;;  %v5082_v1 = vld [vmem:[%s11342_s8 + $0x8] sm:$0xff] }
  0x59   :  { %6139 = vmatprep.mubr.msk.bf16.mxu0 %vm857_vm2, %v7936_v29  ;;  %v5189_v4 = vld [vmem:[%s11344_s10 + $0x8] sm:$0xff]  ;;  %v5188_v6 = vld [vmem:[%s11344_s10] sm:$0xff]  ;;  %v5190_v8 = vld [vmem:[%s11344_s10 + $0x10] sm:$0xf] }
  0x5a   :  { %614 = vperm.xlu1 %6784, %v442_v13  }
  0x5b   :  { %609 = vperm.xlu0 %6783, %v441_v14  }
  0x5e   :  { %604 = vperm.xlu1 %6784, %v440_v15  }
  0x5f   :  { %599 = vperm.xlu0 %6783, %v439_v16  }
  0x62   :  { %117 = vperm.xlu1 %6784, %v76_v17  }
  0x63   :  { %127 = vperm.xlu0 %6783, %v78_v18  }
  0x66   :  { %157 = vperm.xlu1 %6784, %v84_v19  }
  0x67   :  { %122 = vperm.xlu0 %6783, %v77_v20  }
  0x6a   :  { %152 = vperm.xlu1 %6784, %v83_v21  }
  0x6b   :  { %147 = vperm.xlu0 %6783, %v82_v22  }
  0x6e   :  { %584 = vperm.xlu1 %6784, %v436_v23  }
  0x6f   :  { %594 = vperm.xlu0 %6783, %v438_v24  }
  0x72   :  { %574 = vperm.xlu1 %6784, %v434_v25  }
  0x73   :  { %589 = vperm.xlu0 %6783, %v437_v26  }
  0x76   :  { %564 = vperm.xlu1 %6784, %v432_v27  }
  0x77   :  { %579 = vperm.xlu0 %6783, %v435_v28  }
  0x7a   :  { %554 = vperm.xlu1 %6784, %v430_v30  }
  0x7b   :  { %569 = vperm.xlu0 %6783, %v433_v31  }
  0x7d   :  { %v7954_v34 = vpop.permute.xlu1 %92 }
  0x7e   :  { %v7956_v35 = vpop.permute.xlu0 %97  ;;  %544 = vperm.xlu1 %6784, %v428_v32  }
  0x7f   :  { %559 = vperm.xlu0 %6783, %v431_v33  }
  0x81   :  { %v7964_v38 = vpop.permute.xlu1 %112 }
  0x82   :  { %v7966_v39 = vpop.permute.xlu0 %87  ;;  %534 = vperm.xlu1 %6784, %v426_v36  }
  0x83   :  { %549 = vperm.xlu0 %6783, %v429_v37  }
  0x85   :  { %v7974_v42 = vpop.permute.xlu1 %107 }
  0x86   :  { %v7976_v43 = vpop.permute.xlu0 %102  ;;  %5156 = vperm.xlu1 %6784, %v5093_v40  }
  0x87   :  { %539 = vperm.xlu0 %6783, %v427_v41  }
  0x89   :  { %v7984_v46 = vpop.permute.xlu1 %132 }
  0x8a   :  { %v7986_v47 = vpop.permute.xlu0 %142  ;;  %5146 = vperm.xlu1 %6784, %v5091_v44  }
  0x8b   :  { %5151 = vperm.xlu0 %6783, %v5092_v45  }
  0x8d   :  { %v7994_v50 = vpop.permute.xlu1 %529 }
  0x8e   :  { %11508 = vst [vmem:[#allocation5_spill] sm:$0xff] %v7994_v50  ;;  %v7996_v51 = vpop.permute.xlu0 %137  ;;  %5136 = vperm.xlu1 %6784, %v5089_v48  }
  0x8f   :  { %5141 = vperm.xlu0 %6783, %v5090_v49  }
  0x91   :  { %v8004_v54 = vpop.permute.xlu1 %524 }
  0x92   :  { %11509 = vst [vmem:[#allocation6_spill] sm:$0xff] %v8004_v54  ;;  %v8006_v55 = vpop.permute.xlu0 %519  ;;  %5126 = vperm.xlu1 %6784, %v5087_v52  }
  0x93   :  { %11510 = vst [vmem:[#allocation7_spill] sm:$0xff] %v8006_v55  ;;  %5131 = vperm.xlu0 %6783, %v5088_v53  }
  0x95   :  { %v8014_v58 = vpop.permute.xlu1 %509 }
  0x96   :  { %11511 = vst [vmem:[#allocation8_spill] sm:$0xff] %v8014_v58  ;;  %v8016_v59 = vpop.permute.xlu0 %724  ;;  %5116 = vperm.xlu1 %6784, %v5085_v56  }
  0x97   :  { %11512 = vst [vmem:[#allocation9_spill] sm:$0xff] %v8016_v59  ;;  %5121 = vperm.xlu0 %6783, %v5086_v57  }
  0x99   :  { %v8024_v62 = vpop.permute.xlu1 %714 }
  0x9a   :  { %11513 = vst [vmem:[#allocation10_spill] sm:$0xff] %v8024_v62  ;;  %v8026_v63 = vpop.permute.xlu0 %514  ;;  %5106 = vperm.xlu1 %6784, %v5083_v60  }
  0x9b   :  { %11514 = vst [vmem:[#allocation11_spill] sm:$0xff] %v8026_v63  ;;  %5111 = vperm.xlu0 %6783, %v5084_v61  }
  0x9d   :  { %v8039_v5 = vpop.permute.xlu1 %499 }
  0x9e   :  { %v8034_v2 = vpop.permute.xlu0 %719  ;;  %5096 = vperm.xlu1 %6784, %v5081_v0   ;;  %11516 = vst [vmem:[#allocation13_spill] sm:$0xff] %v8039_v5 }
  0x9f   :  { %11515 = vst [vmem:[#allocation12_spill] sm:$0xff] %v8034_v2  ;;  %5101 = vperm.xlu0 %6783, %v5082_v1  }
  0xa1   :  { %v8049_v9 = vpop.permute.xlu1 %704 }
  0xa2   :  { %v8044_v7 = vpop.permute.xlu0 %504  ;;  %5198 = vperm.xlu1 %6784, %v5189_v4   ;;  %11518 = vst [vmem:[#allocation15_spill] sm:$0xff] %v8049_v9 }
  0xa3   :  { %11517 = vst [vmem:[#allocation14_spill] sm:$0xff] %v8044_v7  ;;  %5193 = vperm.xlu0 %6783, %v5188_v6  }
  0xa5   :  { %v8055_v12 = vpop.permute.xlu1 %489 }
  0xa6   :  { %v8051_v10 = vpop.permute.xlu0 %709  ;;  %11521 = vst [vmem:[#allocation18_spill] sm:$0xff] %v8055_v12 }
  0xa7   :  { %11519 = vst [vmem:[#allocation16_spill] sm:$0xff] %v8051_v10  ;;  %5203 = vperm.xlu0 %6783, %v5190_v8  }
  0xa9   :  { %v8059_v14 = vpop.permute.xlu1 %659 }
  0xaa   :  { %v8053_v11 = vpop.permute.xlu0 %494  ;;  %11523 = vst [vmem:[#allocation20_spill] sm:$0xff] %v8059_v14 }
  0xab   :  { %11520 = vst [vmem:[#allocation17_spill] sm:$0xff] %v8053_v11 }
  0xad   :  { %v8063_v16 = vpop.permute.xlu1 %699 }
  0xae   :  { %v8057_v13 = vpop.permute.xlu0 %694  ;;  %11525 = vst [vmem:[#allocation22_spill] sm:$0xff] %v8063_v16 }
  0xaf   :  { %11522 = vst [vmem:[#allocation19_spill] sm:$0xff] %v8057_v13 }
  0xb1   :  { %v8067_v18 = vpop.permute.xlu1 %484 }
  0xb2   :  { %v8061_v15 = vpop.permute.xlu0 %479  ;;  %11527 = vst [vmem:[#allocation24_spill] sm:$0xff] %v8067_v18 }
  0xb3   :  { %11524 = vst [vmem:[#allocation21_spill] sm:$0xff] %v8061_v15 }
  0xb5   :  { %v8071_v20 = vpop.permute.xlu1 %654 }
  0xb6   :  { %v8065_v17 = vpop.permute.xlu0 %649  ;;  %11529 = vst [vmem:[#allocation26_spill] sm:$0xff] %v8071_v20 }
  0xb7   :  { %11526 = vst [vmem:[#allocation23_spill] sm:$0xff] %v8065_v17 }
  0xb9   :  { %v8075_v22 = vpop.permute.xlu1 %689 }
  0xba   :  { %v8069_v19 = vpop.permute.xlu0 %684  ;;  %11531 = vst [vmem:[#allocation28_spill] sm:$0xff] %v8075_v22 }
  0xbb   :  { %11528 = vst [vmem:[#allocation25_spill] sm:$0xff] %v8069_v19 }
  0xbd   :  { %v8079_v24 = vpop.permute.xlu1 %474 }
  0xbe   :  { %v8073_v21 = vpop.permute.xlu0 %469  ;;  %11533 = vst [vmem:[#allocation30_spill] sm:$0xff] %v8079_v24 }
  0xbf   :  { %11530 = vst [vmem:[#allocation27_spill] sm:$0xff] %v8073_v21 }
  0xc1   :  { %v8083_v26 = vpop.permute.xlu1 %644 }
  0xc2   :  { %v8077_v23 = vpop.permute.xlu0 %639  ;;  %11535 = vst [vmem:[#allocation32_spill] sm:$0xff] %v8083_v26 }
  0xc3   :  { %11532 = vst [vmem:[#allocation29_spill] sm:$0xff] %v8077_v23 }
  0xc5   :  { %v8087_v28 = vpop.permute.xlu1 %679 }
  0xc6   :  { %v8081_v25 = vpop.permute.xlu0 %674  ;;  %11537 = vst [vmem:[#allocation34_spill] sm:$0xff] %v8087_v28 }
  0xc7   :  { %11534 = vst [vmem:[#allocation31_spill] sm:$0xff] %v8081_v25 }
  0xc9   :  { %v8091_v32 = vpop.permute.xlu1 %634 }
  0xca   :  { %v8085_v27 = vpop.permute.xlu0 %629  ;;  %11539 = vst [vmem:[#allocation36_spill] sm:$0xff] %v8091_v32 }
  0xcb   :  { %11536 = vst [vmem:[#allocation33_spill] sm:$0xff] %v8085_v27  ;;  %v8338_v27 = vld [vmem:[%s11337_s3 + $0xc8] sm:$0xff]  }
  0xcc   :  { %11551 = vst [vmem:[#allocation48_spill] sm:$0xff] %v8338_v27 }
  0xcd   :  { %v8096_v44 = vpop.permute.xlu1 %669 }
  0xce   :  { %v8089_v30 = vpop.permute.xlu0 %664  ;;  %11541 = vst [vmem:[#allocation38_spill] sm:$0xff] %v8096_v44 }
  0xcf   :  { %11538 = vst [vmem:[#allocation35_spill] sm:$0xff] %v8089_v30 }
  0xd1   :  { %v8102_v1 = vpop.permute.xlu1 %624 }
  0xd2   :  { %v8093_v37 = vpop.permute.xlu0 %619  ;;  %11543 = vst [vmem:[#allocation40_spill] sm:$0xff] %v8102_v1 }
  0xd3   :  { %11540 = vst [vmem:[#allocation37_spill] sm:$0xff] %v8093_v37 }
  0xd6   :  { %v8100_v57 = vpop.permute.xlu0 %609 }
  0xd7   :  { %11542 = vst [vmem:[#allocation39_spill] sm:$0xff] %v8100_v57 }
  0xe0   :  { %v272_v31 = vpop.f32.mrf.mxu0 }
  0xe1   :  { %v273_v48 = vadd.f32 %v272_v31, %v7966_v39 }
  0xe2   :  { %v6036_v33 = vpop.f32.mrf.mxu0 }
  0xe3   :  { %v346_v61 = vmax.f32 %v273_v48, 0.0  ;;  %v8112_v33 = vld [vmem:[%s11337_s3 + $0x8] sm:$0xff]  }
  0xe4   :  { %v277_v36 = vpop.f32.mrf.mxu0 }
  0xe5   :  { %v278_v41 = vadd.f32 %v277_v36, %v7954_v34  ;;  %v8114_v36 = vpop.permute.xlu1 %614 }
  0xe6   :  { %v6039_v40 = vpop.f32.mrf.mxu0  ;;  %11545 = vst [vmem:[#allocation42_spill] sm:$0xff] %v8114_v36 }
  0xe7   :  { %v347_v53 = vmax.f32 %v278_v41, 0.0  ;;  %v8119_v41 = vld [vmem:[%s11337_s3 + $0x10] sm:$0xff]  }
  0xe8   :  { %v282_v45 = vpop.f32.mrf.mxu0 }
  0xe9   :  { %v283_v49 = vadd.f32 %v282_v45, %v7956_v35  ;;  %v465_v34 = vpack.c.bf16 %v347_v53, %v346_v61  ;;  %v8106_v35 = vpop.permute.xlu0 %599 }
  0xea   :  { %v6042_v52 = vpop.f32.mrf.mxu0  ;;  %11544 = vst [vmem:[#allocation41_spill] sm:$0xff] %v8106_v35 }
  0xeb   :  { %v348_v56 = vmax.f32 %v283_v49, 0.0 }
  0xec   :  { %v287_v60 = vpop.f32.mrf.mxu0 }
  0xed   :  { %v466_v0 = vpack.c.bf16 %v348_v56, %v348_v56  ;;  %v288_v45 = vadd.f32 %v287_v60, %v7976_v43  ;;  %v128_v53 = vpop.permute.xlu0 %127  ;;  %v8134_v43 = vld [vmem:[%s11337_s3 + $0x18] sm:$0xff]  }
  0xee   :  { %v6045_v4 = vpop.f32.mrf.mxu0 }
  0xef   :  { %6768 = vmatprep.subr.msk.bf16.mxu1 %vm936_vm3, %v466_v0  ;;  %v938_v6 = vsel %vm936_vm3, %v466_v0, 0  ;;  %v349_v61 = vmax.f32 %v288_v45, 0.0  ;;  %v8127_v4 = vpop.permute.xlu1 %604 }
  0xf0   :  { %v292_v39 = vpop.f32.mrf.mxu0  ;;  %6080 = vmatpush3.bf16.msra.mxu1 %v938_v6  ;;  %11546 = vst [vmem:[#allocation43_spill] sm:$0xff] %v8127_v4 }
  0xf1   :  { %6081 = vmatprep.subr.bf16.mxu1 %v465_v34  ;;  %v293_v31 = vadd.f32 %v292_v39, %v7974_v42  ;;  %v8139_v39 = vld [vmem:[%s11337_s3 + $0x20] sm:$0xff]  }
  0xf2   :  { %v6048_v8 = vpop.f32.mrf.mxu0 }
  0xf3   :  { %v350_v42 = vmax.f32 %v293_v31, 0.0  ;;  %v123_v8 = vpop.permute.xlu0 %122  ;;  %v118_v45 = vpop.permute.xlu1 %117 }
  0xf4   :  { %v297_v40 = vpop.f32.mrf.mxu0  ;;  %6082 = vmatpush3.bf16.msra.mxu1 %v465_v34 }
  0xf5   :  { %v298_v48 = vadd.f32 %v297_v40, %v7964_v38  ;;  %v1168_v6 = vpack.c.bf16 %v350_v42, %v349_v61 }
  0xf6   :  { %v6051_v49 = vpop.f32.mrf.mxu0 }
  0xf7   :  { %v351_v52 = vmax.f32 %v298_v48, 0.0  ;;  %6084 = vmatmul.mubr.msk.bf16.vlgmr.msra.gmra.mxu1 %vm857_vm2, %v8112_v33 }
  0xf8   :  { %v302_v56 = vpop.f32.mrf.mxu0  ;;  %6087 = vmatprep.mubr.msk.bf16.mxu1 %vm857_vm2, %v8119_v41 }
  0xf9   :  { %v1169_v0 = vpack.c.bf16 %v351_v52, %v351_v52  ;;  %v303_v49 = vadd.f32 %v302_v56, %v118_v45  ;;  %v8157_v56 = vld [vmem:[%s11337_s3 + $0x30] sm:$0xff]  }
  0xfa   :  { %v6054_v34 = vpop.f32.mrf.mxu0 }
  0xfb   :  { %6769 = vmatprep.subr.msk.bf16.mxu0 %vm936_vm3, %v1169_v0  ;;  %v1171_v38 = vsel %vm936_vm3, %v1169_v0, 0  ;;  %v8150_v34 = vld [vmem:[%s11337_s3 + $0x28] sm:$0xff]  }
  0xfc   :  { %v307_v60 = vpop.f32.mrf.mxu0  ;;  %6136 = vmatpush3.bf16.msra.mxu0 %v1171_v38 }
  0xfd   :  { %6137 = vmatprep.subr.bf16.mxu0 %v1168_v6  ;;  %v308_v40 = vadd.f32 %v307_v60, %v123_v8 }
  0xfe   :  { %v6057_v31 = vpop.f32.mrf.mxu0 }
  0xff   :  { %6088 = vmatmul.mubr.msk.bf16.gmra.mxu1 %vm857_vm2, %v8134_v43  ;;  %v353_v61 = vmax.f32 %v308_v40, 0.0 }
 0x100   :  { %v312_v48 = vpop.f32.mrf.mxu0  ;;  %6138 = vmatpush3.bf16.msra.mxu0 %v1168_v6  ;;  %6091 = vmatprep.mubr.msk.bf16.mxu1 %vm857_vm2, %v8139_v39 }
 0x101   :  { %v313_v42 = vadd.f32 %v312_v48, %v128_v53  ;;  %v352_v53 = vmax.f32 %v303_v49, 0.0  ;;  %v8171_v49 = vld [vmem:[%s11337_s3 + $0x38] sm:$0xff]  }
 0x102   :  { %v6060_v52 = vpop.f32.mrf.mxu0 }
 0x103   :  { %v354_v0 = vmax.f32 %v313_v42, 0.0  ;;  %6140 = vmatmul.mubr.msk.bf16.vlgmr.msra.gmra.mxu0 %vm857_vm2, %v8112_v33  ;;  %v1414_v8 = vpack.c.bf16 %v353_v61, %v352_v53  ;;  %v8178_v52 = vld [vmem:[%s11337_s3 + $0x40] sm:$0xff]  }
 0x104   :  { %v317_v38 = vpop.f32.mrf.mxu0  ;;  %6143 = vmatprep.mubr.msk.bf16.mxu0 %vm857_vm2, %v8119_v41 }
 0x105   :  { %v1415_v6 = vpack.c.bf16 %v354_v0, %v354_v0  ;;  %v158_v0 = vpop.permute.xlu1 %157 }
 0x106   :  { %v6063_v60 = vpop.f32.mrf.mxu0 }
 0x107   :  { %6092 = vmatmul.mubr.msk.bf16.gmra.mxu1 %vm857_vm2, %v8150_v34  ;;  %6770 = vmatprep.subr.msk.bf16.mxu1 %vm936_vm3, %v1415_v6  ;;  %v1417_v31 = vsel %vm936_vm3, %v1415_v6, 0 }
 0x108   :  { %v322_v40 = vpop.f32.mrf.mxu0  ;;  %6192 = vmatpush3.bf16.msra.mxu1 %v1417_v31  ;;  %6095 = vmatprep.mubr.msk.bf16.mxu1 %vm857_vm2, %v8157_v56 }
 0x109   :  { %6193 = vmatprep.subr.bf16.mxu1 %v1414_v8  ;;  %v323_v48 = vadd.f32 %v322_v40, %v7996_v51  ;;  %v318_v51 = vadd.f32 %v317_v38, %v7984_v46  ;;  %v153_v38 = vpop.permute.xlu1 %152 }
 0x10a   :  { %v6066_v45 = vpop.f32.mrf.mxu0 }
 0x10b   :  { %6144 = vmatmul.mubr.msk.bf16.gmra.mxu0 %vm857_vm2, %v8134_v43  ;;  %v356_v6 = vmax.f32 %v323_v48, 0.0  ;;  %v355_v31 = vmax.f32 %v318_v51, 0.0  ;;  %v148_v45 = vpop.permute.xlu0 %147 }
 0x10c   :  { %v327_v42 = vpop.f32.mrf.mxu0  ;;  %6194 = vmatpush3.bf16.msra.mxu1 %v1414_v8  ;;  %6147 = vmatprep.mubr.msk.bf16.mxu0 %vm857_vm2, %v8139_v39 }
 0x10d   :  { %v328_v61 = vadd.f32 %v327_v42, %v7986_v47  ;;  %v1660_v32 = vpack.c.bf16 %v356_v6, %v355_v31  ;;  %v8193_v47 = vld [vmem:[%s11337_s3 + $0x48] sm:$0xff]  }
 0x10e   :  { %v6069_v53 = vpop.f32.mrf.mxu0 }
 0x10f   :  { %v357_v60 = vmax.f32 %v328_v61, 0.0  ;;  %6096 = vmatmul.mubr.msk.bf16.gmra.mxu1 %vm857_vm2, %v8171_v49 }
 0x110   :  { %v332_v8 = vpop.f32.mrf.mxu0  ;;  %6099 = vmatprep.mubr.msk.bf16.mxu1 %vm857_vm2, %v8178_v52 }
 0x111   :  { %v1661_v40 = vpack.c.bf16 %v357_v60, %v357_v60  ;;  %v333_v26 = vadd.f32 %v332_v8, %v148_v45 }
 0x112   :  { %v6072_v3 = vpop.f32.mrf.mxu0 }
 0x113   :  { %6148 = vmatmul.mubr.msk.bf16.gmra.mxu0 %vm857_vm2, %v8150_v34  ;;  %6771 = vmatprep.subr.msk.bf16.mxu0 %vm936_vm3, %v1661_v40  ;;  %v1663_v46 = vsel %vm936_vm3, %v1661_v40, 0  ;;  %v8200_v3 = vld [vmem:[%s11337_s3 + $0x50] sm:$0xff]   ;;  %v358_v61 = vmax.f32 %v333_v26, 0.0  ;;  %v8211_v26 = vld [vmem:[%s11337_s3 + $0x58] sm:$0xff]  }
 0x114   :  { %v337_v48 = vpop.f32.mrf.mxu0  ;;  %6248 = vmatpush3.bf16.msra.mxu0 %v1663_v46  ;;  %6151 = vmatprep.mubr.msk.bf16.mxu0 %vm857_vm2, %v8157_v56  ;;  %v8237_v46 = vld [vmem:[%s11337_s3 + $0x70] sm:$0xff]  }
 0x115   :  { %v338_v42 = vadd.f32 %v337_v48, %v153_v38  ;;  %6249 = vmatprep.subr.bf16.mxu0 %v1660_v32  ;;  %v8248_v38 = vld [vmem:[%s11337_s3 + $0x78] sm:$0xff]   ;;  %v8255_v48 = vld [vmem:[%s11337_s3 + $0x80] sm:$0xff]  }
 0x116   :  { %v6075_v51 = vpop.f32.mrf.mxu0 }
 0x117   :  { %v359_v53 = vmax.f32 %v338_v42, 0.0  ;;  %6100 = vmatmul.mubr.msk.bf16.gmra.mxu1 %vm857_vm2, %v8193_v47  ;;  %v8266_v42 = vld [vmem:[%s11337_s3 + $0x88] sm:$0xff]   ;;  %v8273_v51 = vld [vmem:[%s11337_s3 + $0x90] sm:$0xff]  }
 0x118   :  { %v342_v6 = vpop.f32.mrf.mxu0  ;;  %6250 = vmatpush3.bf16.msra.mxu0 %v1660_v32  ;;  %6103 = vmatprep.mubr.msk.bf16.mxu1 %vm857_vm2, %v8200_v3  ;;  %v8218_v32 = vld [vmem:[%s11337_s3 + $0x60] sm:$0xff]  }
 0x119   :  { %v1906_v60 = vpack.c.bf16 %v359_v53, %v358_v61  ;;  %v343_v8 = vadd.f32 %v342_v6, %v158_v0  ;;  %v8230_v0 = vld [vmem:[%s11337_s3 + $0x68] sm:$0xff]   ;;  %v8284_v61 = vld [vmem:[%s11337_s3 + $0x98] sm:$0xff]   ;;  %v8291_v53 = vld [vmem:[%s11337_s3 + $0xa0] sm:$0xff]  }
 0x11a   :  { %v6078_v31 = vpop.f32.mrf.mxu0  ;;  %v8302_v6 = vld [vmem:[%s11337_s3 + $0xa8] sm:$0xff]  }
 0x11b   :  { %v360_v40 = vmax.f32 %v343_v8, 0.0  ;;  %6152 = vmatmul.mubr.msk.bf16.gmra.mxu0 %vm857_vm2, %v8171_v49  ;;  %11547 = vst [vmem:[#allocation44_spill] sm:$0xff] %v8302_v6  ;;  %v8309_v8 = vld [vmem:[%s11337_s3 + $0xb0] sm:$0xff]   ;;  %v8320_v31 = vld [vmem:[%s11337_s3 + $0xb8] sm:$0xff]  }
 0x11c   :  { %6155 = vmatprep.mubr.msk.bf16.mxu0 %vm857_vm2, %v8178_v52  ;;  %11548 = vst [vmem:[#allocation45_spill] sm:$0xff] %v8309_v8  ;;  %11549 = vst [vmem:[#allocation46_spill] sm:$0xff] %v8320_v31 }
 0x11d   :  { %v1907_v45 = vpack.c.bf16 %v360_v40, %v360_v40  ;;  %v8327_v40 = vld [vmem:[%s11337_s3 + $0xc0] sm:$0xff]  }
 0x11e   :  { %11550 = vst [vmem:[#allocation47_spill] sm:$0xff] %v8327_v40 }
 0x11f   :  { %6104 = vmatmul.mubr.msk.bf16.gmra.mxu1 %vm857_vm2, %v8211_v26  ;;  %6772 = vmatprep.subr.msk.bf16.mxu1 %vm936_vm3, %v1907_v45  ;;  %v1909_v20 = vsel %vm936_vm3, %v1907_v45, 0 }
 0x120   :  { %6107 = vmatprep.mubr.msk.bf16.mxu1 %vm857_vm2, %v8218_v32 }
 0x123   :  { %6156 = vmatmul.mubr.msk.bf16.gmra.mxu0 %vm857_vm2, %v8193_v47 }
 0x124   :  { %6159 = vmatprep.mubr.msk.bf16.mxu0 %vm857_vm2, %v8200_v3 }
 0x127   :  { %6108 = vmatmul.mubr.msk.bf16.gmra.mxu1 %vm857_vm2, %v8230_v0 }
 0x128   :  { %6111 = vmatprep.mubr.msk.bf16.mxu1 %vm857_vm2, %v8237_v46 }
 0x12b   :  { %6160 = vmatmul.mubr.msk.bf16.gmra.mxu0 %vm857_vm2, %v8211_v26 }
 0x12c   :  { %6163 = vmatprep.mubr.msk.bf16.mxu0 %vm857_vm2, %v8218_v32 }
 0x12f   :  { %6112 = vmatmul.mubr.msk.bf16.gmra.mxu1 %vm857_vm2, %v8248_v38 }
 0x130   :  { %6115 = vmatprep.mubr.msk.bf16.mxu1 %vm857_vm2, %v8255_v48 }
 0x133   :  { %6164 = vmatmul.mubr.msk.bf16.gmra.mxu0 %vm857_vm2, %v8230_v0 }
 0x134   :  { %6167 = vmatprep.mubr.msk.bf16.mxu0 %vm857_vm2, %v8237_v46 }
 0x137   :  { %6116 = vmatmul.mubr.msk.bf16.gmra.mxu1 %vm857_vm2, %v8266_v42 }
 0x138   :  { %6119 = vmatprep.mubr.msk.bf16.mxu1 %vm857_vm2, %v8273_v51 }
 0x13b   :  { %6168 = vmatmul.mubr.msk.bf16.gmra.mxu0 %vm857_vm2, %v8248_v38 }
 0x13c   :  { %6171 = vmatprep.mubr.msk.bf16.mxu0 %vm857_vm2, %v8255_v48 }
 0x13f   :  { %6120 = vmatmul.mubr.msk.bf16.gmra.mxu1 %vm857_vm2, %v8284_v61 }
 0x140   :  { %6123 = vmatprep.mubr.msk.bf16.mxu1 %vm857_vm2, %v8291_v53 }
 0x143   :  { %6172 = vmatmul.mubr.msk.bf16.gmra.mxu0 %vm857_vm2, %v8266_v42 }
 0x144   :  { %6175 = vmatprep.mubr.msk.bf16.mxu0 %vm857_vm2, %v8273_v51 }
 0x147   :  { %6124 = vmatmul.mubr.msk.bf16.gmra.mxu1 %vm857_vm2, %v8302_v6 }
 0x148   :  { %6127 = vmatprep.mubr.msk.bf16.mxu1 %vm857_vm2, %v8309_v8 }
 0x14b   :  { %6176 = vmatmul.mubr.msk.bf16.gmra.mxu0 %vm857_vm2, %v8284_v61 }
 0x14c   :  { %6179 = vmatprep.mubr.msk.bf16.mxu0 %vm857_vm2, %v8291_v53 }
 0x14f   :  { %6128 = vmatmul.mubr.msk.bf16.gmra.mxu1 %vm857_vm2, %v8320_v31 }
 0x150   :  { %6131 = vmatprep.mubr.msk.bf16.mxu1 %vm857_vm2, %v8327_v40 }
 0x153   :  { %6180 = vmatmul.mubr.msk.bf16.gmra.mxu0 %vm857_vm2, %v8302_v6 }
 0x154   :  { %6183 = vmatprep.mubr.msk.bf16.mxu0 %vm857_vm2, %v8309_v8 }
 0x157   :  { %6132 = vmatmul.mubr.msk.bf16.gmra.mxu1 %vm857_vm2, %v8338_v27 }
 0x158   :  { %6195 = vmatprep.mubr.msk.bf16.mxu1 %vm857_vm2, %v7936_v29 }
 0x15b   :  { %6184 = vmatmul.mubr.msk.bf16.gmra.mxu0 %vm857_vm2, %v8320_v31 }
 0x15c   :  { %6187 = vmatprep.mubr.msk.bf16.mxu0 %vm857_vm2, %v8327_v40 }
 0x15f   :  { %6196 = vmatmul.mubr.msk.bf16.vlgmr.msra.gmra.mxu1 %vm857_vm2, %v8112_v33 }
 0x160   :  { %6304 = vmatpush3.bf16.msra.mxu1 %v1909_v20  ;;  %6199 = vmatprep.mubr.msk.bf16.mxu1 %vm857_vm2, %v8119_v41 }
 0x161   :  { %6305 = vmatprep.subr.bf16.mxu1 %v1906_v60 }
 0x163   :  { %6188 = vmatmul.mubr.msk.bf16.gmra.mxu0 %vm857_vm2, %v8338_v27 }
 0x164   :  { %6306 = vmatpush3.bf16.msra.mxu1 %v1906_v60  ;;  %6251 = vmatprep.mubr.msk.bf16.mxu0 %vm857_vm2, %v7936_v29 }
 0x167   :  { %6200 = vmatmul.mubr.msk.bf16.gmra.mxu1 %vm857_vm2, %v8134_v43 }
 0x168   :  { %6203 = vmatprep.mubr.msk.bf16.mxu1 %vm857_vm2, %v8139_v39 }
 0x16b   :  { %6252 = vmatmul.mubr.msk.bf16.vlgmr.msra.gmra.mxu0 %vm857_vm2, %v8112_v33 }
 0x16c   :  { %6255 = vmatprep.mubr.msk.bf16.mxu0 %vm857_vm2, %v8119_v41 }
 0x16f   :  { %6204 = vmatmul.mubr.msk.bf16.gmra.mxu1 %vm857_vm2, %v8150_v34 }
 0x170   :  { %6207 = vmatprep.mubr.msk.bf16.mxu1 %vm857_vm2, %v8157_v56 }
 0x173   :  { %6256 = vmatmul.mubr.msk.bf16.gmra.mxu0 %vm857_vm2, %v8134_v43 }
 0x174   :  { %6259 = vmatprep.mubr.msk.bf16.mxu0 %vm857_vm2, %v8139_v39 }
 0x177   :  { %6208 = vmatmul.mubr.msk.bf16.gmra.mxu1 %vm857_vm2, %v8171_v49 }
 0x178   :  { %6211 = vmatprep.mubr.msk.bf16.mxu1 %vm857_vm2, %v8178_v52 }
 0x17b   :  { %6260 = vmatmul.mubr.msk.bf16.gmra.mxu0 %vm857_vm2, %v8150_v34 }
 0x17c   :  { %6263 = vmatprep.mubr.msk.bf16.mxu0 %vm857_vm2, %v8157_v56 }
 0x17f   :  { %6212 = vmatmul.mubr.msk.bf16.gmra.mxu1 %vm857_vm2, %v8193_v47 }
 0x180   :  { %6215 = vmatprep.mubr.msk.bf16.mxu1 %vm857_vm2, %v8200_v3 }
 0x183   :  { %6264 = vmatmul.mubr.msk.bf16.gmra.mxu0 %vm857_vm2, %v8171_v49 }
 0x184   :  { %6267 = vmatprep.mubr.msk.bf16.mxu0 %vm857_vm2, %v8178_v52 }
 0x187   :  { %6216 = vmatmul.mubr.msk.bf16.gmra.mxu1 %vm857_vm2, %v8211_v26 }
 0x188   :  { %6219 = vmatprep.mubr.msk.bf16.mxu1 %vm857_vm2, %v8218_v32 }
 0x18b   :  { %6268 = vmatmul.mubr.msk.bf16.gmra.mxu0 %vm857_vm2, %v8193_v47 }
 0x18c   :  { %6271 = vmatprep.mubr.msk.bf16.mxu0 %vm857_vm2, %v8200_v3 }
 0x18f   :  { %6220 = vmatmul.mubr.msk.bf16.gmra.mxu1 %vm857_vm2, %v8230_v0 }
 0x190   :  { %6223 = vmatprep.mubr.msk.bf16.mxu1 %vm857_vm2, %v8237_v46 }
 0x193   :  { %6272 = vmatmul.mubr.msk.bf16.gmra.mxu0 %vm857_vm2, %v8211_v26 }
 0x194   :  { %6275 = vmatprep.mubr.msk.bf16.mxu0 %vm857_vm2, %v8218_v32 }
 0x197   :  { %6224 = vmatmul.mubr.msk.bf16.gmra.mxu1 %vm857_vm2, %v8248_v38 }
 0x198   :  { %6227 = vmatprep.mubr.msk.bf16.mxu1 %vm857_vm2, %v8255_v48 }
 0x19b   :  { %6276 = vmatmul.mubr.msk.bf16.gmra.mxu0 %vm857_vm2, %v8230_v0 }
 0x19c   :  { %6279 = vmatprep.mubr.msk.bf16.mxu0 %vm857_vm2, %v8237_v46 }
 0x19f   :  { %6228 = vmatmul.mubr.msk.bf16.gmra.mxu1 %vm857_vm2, %v8266_v42 }
 0x1a0   :  { %6231 = vmatprep.mubr.msk.bf16.mxu1 %vm857_vm2, %v8273_v51 }
 0x1a3   :  { %6280 = vmatmul.mubr.msk.bf16.gmra.mxu0 %vm857_vm2, %v8248_v38 }
 0x1a4   :  { %6283 = vmatprep.mubr.msk.bf16.mxu0 %vm857_vm2, %v8255_v48 }
 0x1a7   :  { %6232 = vmatmul.mubr.msk.bf16.gmra.mxu1 %vm857_vm2, %v8284_v61 }
 0x1a8   :  { %6235 = vmatprep.mubr.msk.bf16.mxu1 %vm857_vm2, %v8291_v53 }
 0x1ab   :  { %6284 = vmatmul.mubr.msk.bf16.gmra.mxu0 %vm857_vm2, %v8266_v42 }
 0x1ac   :  { %6287 = vmatprep.mubr.msk.bf16.mxu0 %vm857_vm2, %v8273_v51 }
 0x1af   :  { %6236 = vmatmul.mubr.msk.bf16.gmra.mxu1 %vm857_vm2, %v8302_v6 }
 0x1b0   :  { %6239 = vmatprep.mubr.msk.bf16.mxu1 %vm857_vm2, %v8309_v8 }
 0x1b3   :  { %6288 = vmatmul.mubr.msk.bf16.gmra.mxu0 %vm857_vm2, %v8284_v61 }
 0x1b4   :  { %6291 = vmatprep.mubr.msk.bf16.mxu0 %vm857_vm2, %v8291_v53 }
 0x1b7   :  { %v8439_v20 = vpop.f32.mrf.mxu1  ;;  %6240 = vmatmul.mubr.msk.bf16.gmra.mxu1 %vm857_vm2, %v8320_v31 }
 0x1b8   :  { %6243 = vmatprep.mubr.msk.bf16.mxu1 %vm857_vm2, %v8327_v40 }
 0x1b9   :  { %v8445_v60 = vpop.f32.mrf.mxu1 }
 0x1bb   :  { %v8447_v45 = vpop.f32.mrf.mxu1  ;;  %6292 = vmatmul.mubr.msk.bf16.gmra.mxu0 %vm857_vm2, %v8302_v6 }
 0x1bc   :  { %6295 = vmatprep.mubr.msk.bf16.mxu0 %vm857_vm2, %v8309_v8 }
 0x1bd   :  { %v8453_v17 = vpop.f32.mrf.mxu1 }
 0x1bf   :  { %v8455_v16 = vpop.f32.mrf.mxu1  ;;  %6244 = vmatmul.mubr.msk.bf16.gmra.mxu1 %vm857_vm2, %v8338_v27 }
 0x1c0   :  { %6307 = vmatprep.mubr.msk.bf16.mxu1 %vm857_vm2, %v7936_v29 }
 0x1c1   :  { %v8461_v14 = vpop.f32.mrf.mxu1 }
 0x1c3   :  { %v8463_v62 = vpop.f32.mrf.mxu1  ;;  %v8465_v23 = vpop.f32.mrf.mxu0  ;;  %6296 = vmatmul.mubr.msk.bf16.gmra.mxu0 %vm857_vm2, %v8320_v31 }
 0x1c4   :  { %11552 = vst [vmem:[#allocation49_spill] sm:$0xff] %v8465_v23  ;;  %6299 = vmatprep.mubr.msk.bf16.mxu0 %vm857_vm2, %v8327_v40 }
 0x1c5   :  { %v8471_v59 = vpop.f32.mrf.mxu1  ;;  %v8473_v10 = vpop.f32.mrf.mxu0 }
 0x1c6   :  { %11553 = vst [vmem:[#allocation50_spill] sm:$0xff] %v8473_v10 }
 0x1c7   :  { %v8475_v8 = vpop.f32.mrf.mxu1  ;;  %v8477_v2 = vpop.f32.mrf.mxu0  ;;  %6308 = vmatmul.mubr.msk.bf16.vlgmr.msra.gmra.mxu1 %vm857_vm2, %v8112_v33 }
 0x1c8   :  { %11554 = vst [vmem:[#allocation51_spill] sm:$0xff] %v8477_v2  ;;  %6311 = vmatprep.mubr.msk.bf16.mxu1 %vm857_vm2, %v8119_v41 }
 0x1c9   :  { %v8483_v29 = vpop.f32.mrf.mxu1  ;;  %v8485_v23 = vpop.f32.mrf.mxu0 }
 0x1ca   :  { %11555 = vst [vmem:[#allocation52_spill] sm:$0xff] %v8485_v23 }
 0x1cb   :  { %v8487_v31 = vpop.f32.mrf.mxu1  ;;  %v8489_v40 = vpop.f32.mrf.mxu0  ;;  %6300 = vmatmul.mubr.msk.bf16.gmra.mxu0 %vm857_vm2, %v8338_v27 }
 0x1cc   :  { %11556 = vst [vmem:[#allocation53_spill] sm:$0xff] %v8489_v40 }
 0x1cd   :  { %v8493_v10 = vpop.f32.mrf.mxu1  ;;  %v8495_v2 = vpop.f32.mrf.mxu0 }
 0x1ce   :  { %11557 = vst [vmem:[#allocation54_spill] sm:$0xff] %v8495_v2 }
 0x1cf   :  { %v6097_v6 = vpop.f32.mrf.mxu1  ;;  %v8497_v33 = vpop.f32.mrf.mxu0  ;;  %6312 = vmatmul.mubr.msk.bf16.gmra.mxu1 %vm857_vm2, %v8134_v43 }
 0x1d0   :  { %6315 = vmatprep.mubr.msk.bf16.mxu1 %vm857_vm2, %v8139_v39 }
 0x1d1   :  { %v8503_v41 = vpop.f32.mrf.mxu1  ;;  %v8505_v23 = vpop.f32.mrf.mxu0 }
 0x1d2   :  { %11558 = vst [vmem:[#allocation55_spill] sm:$0xff] %v8505_v23 }
 0x1d3   :  { %v6098_v40 = vpop.f32.mrf.mxu1  ;;  %v8507_v13 = vpop.f32.mrf.mxu0 }
 0x1d4   :  { %11559 = vst [vmem:[#allocation56_spill] sm:$0xff] %v8507_v13  ;;  %v8522_v40 = vld [vmem:[%s11338_s4] sm:$0xff]  }
 0x1d5   :  { %v1025_v27 = vpop.f32.mrf.mxu1  ;;  %v8509_v9 = vpop.f32.mrf.mxu0  ;;  %6373 = vmatprep.mubr.msk.bf16.mxu0 %vm2497_vm4, %v8522_v40 }
 0x1d6   :  { %11560 = vst [vmem:[#allocation57_spill] sm:$0xff] %v8509_v9 }
 0x1d7   :  { %v6101_v2 = vpop.f32.mrf.mxu1  ;;  %v8511_v6 = vpop.f32.mrf.mxu0  ;;  %6316 = vmatmul.mubr.msk.bf16.gmra.mxu1 %vm857_vm2, %v8150_v34 }
 0x1d8   :  { %11561 = vst [vmem:[#allocation58_spill] sm:$0xff] %v8511_v6  ;;  %6319 = vmatprep.mubr.msk.bf16.mxu1 %vm857_vm2, %v8157_v56 }
 0x1d9   :  { %v1035_v43 = vpop.f32.mrf.mxu1  ;;  %v8517_v39 = vpop.f32.mrf.mxu0 }
 0x1da   :  { %11562 = vst [vmem:[#allocation59_spill] sm:$0xff] %v8517_v39 }
 0x1db   :  { %v6102_v27 = vpop.f32.mrf.mxu1  ;;  %v8524_v23 = vpop.f32.mrf.mxu0 }
 0x1dc   :  { %11563 = vst [vmem:[#allocation60_spill] sm:$0xff] %v8524_v23 }
 0x1dd   :  { %v1037_v2 = vpop.f32.mrf.mxu1  ;;  %v8528_v34 = vpop.f32.mrf.mxu0 }
 0x1de   :  { %11564 = vst [vmem:[#allocation61_spill] sm:$0xff] %v8528_v34 }
 0x1df   :  { %v6105_v9 = vpop.f32.mrf.mxu1  ;;  %v8530_v56 = vpop.f32.mrf.mxu0  ;;  %6320 = vmatmul.mubr.msk.bf16.gmra.mxu1 %vm857_vm2, %v8171_v49 }
 0x1e0   :  { %11565 = vst [vmem:[#allocation62_spill] sm:$0xff] %v8530_v56  ;;  %6323 = vmatprep.mubr.msk.bf16.mxu1 %vm857_vm2, %v8178_v52 }
 0x1e1   :  { %v1047_v43 = vpop.f32.mrf.mxu1  ;;  %v8536_v27 = vpop.f32.mrf.mxu0 }
 0x1e2   :  { %11566 = vst [vmem:[#allocation63_spill] sm:$0xff] %v8536_v27 }
 0x1e3   :  { %v6106_v39 = vpop.f32.mrf.mxu1  ;;  %v8538_v23 = vpop.f32.mrf.mxu0 }
 0x1e4   :  { %11567 = vst [vmem:[#allocation64_spill] sm:$0xff] %v8538_v23  ;;  %v1002_v23 = vadd.f32 %v8463_v62, %v8044_v7  ;;  %v1015_v62 = vadd.f32 %v8475_v8, %v8006_v55 }
 0x1e5   :  { %v1049_v6 = vpop.f32.mrf.mxu1  ;;  %v8540_v13 = vpop.f32.mrf.mxu0 }
 0x1e6   :  { %11568 = vst [vmem:[#allocation65_spill] sm:$0xff] %v8540_v13 }
 0x1e7   :  { %v8542_v2 = vpop.f32.mrf.mxu1  ;;  %v8544_v9 = vpop.f32.mrf.mxu0  ;;  %6324 = vmatmul.mubr.msk.bf16.gmra.mxu1 %vm857_vm2, %v8193_v47 }
 0x1e8   :  { %11569 = vst [vmem:[#allocation66_spill] sm:$0xff] %v8544_v9  ;;  %6327 = vmatprep.mubr.msk.bf16.mxu1 %vm857_vm2, %v8200_v3 }
 0x1e9   :  { %v1059_v49 = vpop.f32.mrf.mxu1  ;;  %v8550_v52 = vpop.f32.mrf.mxu0 }
 0x1ea   :  { %11570 = vst [vmem:[#allocation67_spill] sm:$0xff] %v8550_v52 }
 0x1eb   :  { %v8552_v43 = vpop.f32.mrf.mxu1  ;;  %v8554_v39 = vpop.f32.mrf.mxu0 }
 0x1ec   :  { %11571 = vst [vmem:[#allocation68_spill] sm:$0xff] %v8554_v39 }
 0x1ed   :  { %v1061_v6 = vpop.f32.mrf.mxu1  ;;  %v8556_v27 = vpop.f32.mrf.mxu0 }
 0x1ee   :  { %11572 = vst [vmem:[#allocation69_spill] sm:$0xff] %v8556_v27 }
 0x1ef   :  { %v8558_v13 = vpop.f32.mrf.mxu1  ;;  %v8560_v34 = vpop.f32.mrf.mxu0  ;;  %6328 = vmatmul.mubr.msk.bf16.gmra.mxu1 %vm857_vm2, %v8211_v26 }
 0x1f0   :  { %11573 = vst [vmem:[#allocation70_spill] sm:$0xff] %v8560_v34  ;;  %6331 = vmatprep.mubr.msk.bf16.mxu1 %vm857_vm2, %v8218_v32  ;;  %v975_v34 = vadd.f32 %v8445_v60, %v8073_v21  ;;  %v983_v32 = vadd.f32 %v8439_v20, %v8061_v15  ;;  %v978_v60 = vadd.f32 %v8453_v17, %v8079_v24 }
 0x1f1   :  { %v8566_v47 = vpop.f32.mrf.mxu1  ;;  %v8568_v3 = vpop.f32.mrf.mxu0 }
 0x1f2   :  { %11574 = vst [vmem:[#allocation71_spill] sm:$0xff] %v8568_v3  ;;  %v986_v3 = vadd.f32 %v8447_v45, %v8067_v18  ;;  %v2206_v9 = vmul.f32 0.5, %v983_v32  ;;  %v2205_v17 = vmul.f32 0.5, %v978_v60 }
 0x1f3   :  { %v8570_v49 = vpop.f32.mrf.mxu1  ;;  %v8572_v39 = vpop.f32.mrf.mxu0 }
 0x1f4   :  { %11575 = vst [vmem:[#allocation72_spill] sm:$0xff] %v8572_v39  ;;  %v2207_v45 = vmul.f32 0.5, %v986_v3  ;;  %v2211_v3 = vmul.f32 0.5, %v1002_v23 }
 0x1f5   :  { %v8574_v6 = vpop.f32.mrf.mxu1  ;;  %v8576_v27 = vpop.f32.mrf.mxu0 }
 0x1f6   :  { %11576 = vst [vmem:[#allocation73_spill] sm:$0xff] %v8576_v27 }
 0x1f7   :  { %v8580_v52 = vpop.f32.mrf.mxu1  ;;  %v8582_v26 = vpop.f32.mrf.mxu0  ;;  %6332 = vmatmul.mubr.msk.bf16.gmra.mxu1 %vm857_vm2, %v8230_v0  ;;  %v999_v0 = vadd.f32 %v8455_v16, %v8039_v5  ;;  %v994_v16 = vadd.f32 %v8471_v59, %v8053_v11  ;;  %v1007_v59 = vadd.f32 %v8483_v29, %v8014_v58  ;;  %v1010_v29 = vadd.f32 %v8493_v10, %v8026_v63 }
 0x1f8   :  { %11577 = vst [vmem:[#allocation74_spill] sm:$0xff] %v8582_v26  ;;  %6335 = vmatprep.mubr.msk.bf16.mxu1 %vm857_vm2, %v8237_v46  ;;  %v2204_v26 = vmul.f32 0.5, %v975_v34  ;;  %v991_v46 = vadd.f32 %v8461_v14, %v8055_v12 }
 0x1f9   :  { %v8592_v27 = vpop.f32.mrf.mxu1  ;;  %v8594_v39 = vpop.f32.mrf.mxu0  ;;  %v2210_v34 = vmul.f32 0.5, %v999_v0  ;;  %v2209_v0 = vmul.f32 0.5, %v994_v16  ;;  %v2212_v23 = vmul.f32 0.5, %v1007_v59 }
 0x1fa   :  { %11578 = vst [vmem:[#allocation75_spill] sm:$0xff] %v8594_v39  ;;  %6837 = vtanh.f32 %v2204_v26  ;;  %v2208_v14 = vmul.f32 0.5, %v991_v46 }
 0x1fb   :  { %v8600_v21 = vpop.f32.mrf.mxu1  ;;  %v8602_v20 = vpop.f32.mrf.mxu0  ;;  %6839 = vtanh.f32 %v2206_v9 }
 0x1fc   :  { %6841 = vtanh.f32 %v2207_v45 }
 0x1fd   :  { %v8608_v39 = vpop.f32.mrf.mxu1  ;;  %v8610_v56 = vpop.f32.mrf.mxu0  ;;  %6843 = vtanh.f32 %v2205_v17 }
 0x1fe   :  { %6845 = vtanh.f32 %v2210_v34 }
 0x1ff   :  { %v8614_v24 = vpop.f32.mrf.mxu1  ;;  %v8616_v32 = vpop.f32.mrf.mxu0  ;;  %6336 = vmatmul.mubr.msk.bf16.gmra.mxu1 %vm857_vm2, %v8248_v38  ;;  %v1018_v38 = vadd.f32 %v8487_v31, %v8004_v54  ;;  %6847 = vtanh.f32 %v2208_v14  ;;  %v1023_v31 = vadd.f32 %v8503_v41, %v7994_v50  ;;  %v1069_v41 = vadd.f32 %v8552_v43, %v8127_v4 }
 0x200   :  { %6339 = vmatprep.mubr.msk.bf16.mxu1 %vm857_vm2, %v8255_v48  ;;  %v2214_v48 = vmul.f32 0.5, %v1015_v62  ;;  %6849 = vtanh.f32 %v2211_v3  ;;  %v2213_v62 = vmul.f32 0.5, %v1010_v29  ;;  %v1066_v3 = vadd.f32 %v8542_v2, %v8106_v35 }
 0x201   :  { %v8626_v26 = vpop.f32.mrf.mxu1  ;;  %v8628_v60 = vpop.f32.mrf.mxu0  ;;  %6851 = vtanh.f32 %v2209_v0  ;;  %v2215_v16 = vmul.f32 0.5, %v1018_v38  ;;  %v2216_v38 = vmul.f32 0.5, %v1023_v31  ;;  %v1074_v43 = vadd.f32 %v8566_v47, %v8100_v57 }
 0x202   :  { %v2282_v29 = vmul.f32 0.5, %v1066_v3  ;;  %v2283_v31 = vmul.f32 0.5, %v1069_v41 }
 0x203   :  { %v6122_v9 = vpop.f32.mrf.mxu1  ;;  %v8632_v8 = vpop.f32.mrf.mxu0  ;;  %v2284_v41 = vmul.f32 0.5, %v1074_v43 }
 0x204   :  { %v1117_v46 = vadd.f32 %v6122_v9, %v8089_v30  ;;  %v11587_v30 = vld [vmem:[#allocation44_spill] sm:$0xff] }
 0x205   :  { %v8637_v45 = vpop.f32.mrf.mxu1  ;;  %v8639_v17 = vpop.f32.mrf.mxu0 }
 0x206   :  { %6853 = vtanh.f32 %v1117_v46 }
 0x207   :  { %v6125_v34 = vpop.f32.mrf.mxu1  ;;  %v8643_v14 = vpop.f32.mrf.mxu0  ;;  %6340 = vmatmul.mubr.msk.bf16.gmra.mxu1 %vm857_vm2, %v8266_v42  ;;  %6855 = vtanh.f32 %v2214_v48  ;;  %v1082_v42 = vadd.f32 %v8558_v13, %v8093_v37  ;;  %v1085_v13 = vadd.f32 %v8570_v49, %v8102_v1 }
 0x208   :  { %11579 = vst [vmem:[#allocation76_spill] sm:$0xff] %v8643_v14  ;;  %v1130_v10 = vadd.f32 %v6125_v34, %v8087_v28  ;;  %6343 = vmatprep.mubr.msk.bf16.mxu1 %vm857_vm2, %v8273_v51  ;;  %6857 = vtanh.f32 %v2212_v23  ;;  %v6838_v48 = vpop.eup %6837 }
 0x209   :  { %v1121_v59 = vpop.f32.mrf.mxu1  ;;  %6859 = vtanh.f32 %v2215_v16  ;;  %v8657_v9 = vpop.f32.mrf.mxu0 }
 0x20a   :  { %v1122_v0 = vadd.f32 %v1121_v59, %v8096_v44  ;;  %6861 = vtanh.f32 %v1130_v10  ;;  %11580 = vst [vmem:[#allocation77_spill] sm:$0xff] %v8657_v9  ;;  %v6840_v2 = vpop.eup %6839  ;;  %v2230_v59 = vmul.f32 0.5, %v6838_v48 }
 0x20b   :  { %v6126_v51 = vpop.f32.mrf.mxu1  ;;  %v6842_v16 = vpop.eup %6841 }
 0x20c   :  { %6863 = vtanh.f32 %v1122_v0  ;;  %v1133_v23 = vadd.f32 %v6126_v51, %v8069_v19  ;;  %v6844_v10 = vpop.eup %6843  ;;  %v2286_v0 = vmul.f32 0.5, %v1082_v42  ;;  %v8667_v3 = vpop.f32.mrf.mxu0 }
 0x20d   :  { %6865 = vtanh.f32 %v2213_v62  ;;  %v1124_v46 = vpop.f32.mrf.mxu1  ;;  %v1077_v62 = vadd.f32 %v8574_v6, %v8114_v36  ;;  %11581 = vst [vmem:[#allocation78_spill] sm:$0xff] %v8667_v3  ;;  %v8673_v47 = vpop.eup %6845  ;;  %v2287_v6 = vmul.f32 0.5, %v1085_v13 }
 0x20e   :  { %6867 = vtanh.f32 %v1133_v23  ;;  %v1125_v34 = vadd.f32 %v1124_v46, %v8081_v25  ;;  %v6848_v49 = vpop.eup %6847  ;;  %v2243_v46 = vadd.f32 0.5, %v2230_v59  ;;  %v2233_v25 = vmul.f32 0.5, %v6842_v16  ;;  %v8680_v19 = vpop.f32.mrf.mxu0 }
 0x20f   :  { %6869 = vtanh.f32 %v2216_v38  ;;  %v8669_v51 = vpop.f32.mrf.mxu1  ;;  %6344 = vmatmul.mubr.msk.bf16.gmra.mxu1 %vm857_vm2, %v8284_v61  ;;  %v8677_v42 = vpop.eup %6849  ;;  %v2285_v61 = vmul.f32 0.5, %v1077_v62  ;;  %11582 = vst [vmem:[#allocation79_spill] sm:$0xff] %v8680_v19  ;;  %v2232_v59 = vmul.f32 0.5, %v6840_v2  ;;  %v11589_v19 = vld [vmem:[#allocation45_spill] sm:$0xff] }
 0x210   :  { %6871 = vtanh.f32 %v1125_v34  ;;  %6347 = vmatprep.mubr.msk.bf16.mxu1 %vm857_vm2, %v8291_v53  ;;  %v6852_v23 = vpop.eup %6851  ;;  %v2231_v53 = vmul.f32 0.5, %v6844_v10  ;;  %v8689_v62 = vpop.f32.mrf.mxu0 }
 0x211   :  { %6873 = vtanh.f32 %v2282_v29  ;;  %v1137_v38 = vpop.f32.mrf.mxu1  ;;  %v11583_v29 = vld [vmem:[#allocation15_spill] sm:$0xff]  ;;  %11585 = vst [vmem:[#allocation81_spill] sm:$0xff] %v8689_v62  ;;  %v2235_v62 = vmul.f32 0.5, %v6852_v23 }
 0x212   :  { %6875 = vtanh.f32 %v2283_v31  ;;  %v1138_v48 = vadd.f32 %v1137_v38, %v8075_v22  ;;  %v11586_v22 = vld [vmem:[#allocation19_spill] sm:$0xff] }
 0x213   :  { %6877 = vtanh.f32 %v2286_v0  ;;  %v6130_v34 = vpop.f32.mrf.mxu1  ;;  %v6854_v44 = vpop.eup %6853  ;;  %v2246_v0 = vadd.f32 0.5, %v2233_v25 }
 0x214   :  { %6879 = vtanh.f32 %v1138_v48  ;;  %v1149_v43 = vadd.f32 %v6130_v34, %v11583_v29  ;;  %v8683_v28 = vpop.eup %6855  ;;  %v8685_v31 = vmul.f32 %v6854_v44, %v2243_v46  ;;  %v2234_v44 = vmul.f32 0.5, %v6848_v49  ;;  %v11588_v46 = vld [vmem:[#allocation12_spill] sm:$0xff] }
 0x215   :  { %6881 = vtanh.f32 %v2284_v41  ;;  %v1140_v13 = vpop.f32.mrf.mxu1  ;;  %v8687_v38 = vpop.eup %6857  ;;  %v2244_v41 = vadd.f32 0.5, %v2231_v53  ;;  %v2245_v49 = vadd.f32 0.5, %v2232_v59 }
 0x216   :  { %11584 = vst [vmem:[#allocation80_spill] sm:$0xff] %v8685_v31  ;;  %6883 = vtanh.f32 %v2287_v6  ;;  %v6860_v16 = vpop.eup %6859  ;;  %v1141_v10 = vadd.f32 %v1140_v13, %v11586_v22 }
 0x217   :  { %6885 = vtanh.f32 %v2285_v61  ;;  %v6133_v48 = vpop.f32.mrf.mxu1  ;;  %6348 = vmatmul.mubr.msk.bf16.gmra.mxu1 %vm857_vm2, %v11587_v30  ;;  %v6862_v34 = vpop.eup %6861  ;;  %v11592_v30 = vld [vmem:[#allocation16_spill] sm:$0xff] }
 0x218   :  { %6887 = vtanh.f32 %v1149_v43  ;;  %v1162_v29 = vadd.f32 %v6133_v48, %v11588_v46  ;;  %6351 = vmatprep.mubr.msk.bf16.mxu1 %vm857_vm2, %v11589_v19  ;;  %v8698_v61 = vmul.f32 %v6862_v34, %v2246_v0  ;;  %v8703_v43 = vpop.f32.mrf.mxu0  ;;  %v2247_v19 = vadd.f32 0.5, %v2234_v44  ;;  %v11595_v34 = vld [vmem:[#allocation29_spill] sm:$0xff] }
 0x219   :  { %v6864_v2 = vpop.eup %6863  ;;  %6889 = vtanh.f32 %v8685_v31  ;;  %v1153_v25 = vpop.f32.mrf.mxu1  ;;  %11593 = vst [vmem:[#allocation82_spill] sm:$0xff] %v8703_v43  ;;  %v11594_v31 = vld [vmem:[#allocation9_spill] sm:$0xff] }
 0x21a   :  { %v6866_v6 = vpop.eup %6865  ;;  %11590 = vst [vmem:[#allocation44_spill] sm:$0xff] %v8698_v61  ;;  %v8700_v13 = vmul.f32 %v6864_v2, %v2244_v41  ;;  %6891 = vtanh.f32 %v1162_v29  ;;  %v1154_v22 = vadd.f32 %v1153_v25, %v11592_v30  ;;  %v1098_v41 = vadd.f32 %v8580_v52, %v11595_v34  ;;  %v11598_v25 = vld [vmem:[#allocation10_spill] sm:$0xff]  ;;  %v11599_v30 = vld [vmem:[#allocation20_spill] sm:$0xff]  ;;  %v8719_v43 = vpop.f32.mrf.mxu0 }
 0x21b   :  { %v6868_v53 = vpop.eup %6867  ;;  %6893 = vtanh.f32 %v1141_v10  ;;  %v6134_v48 = vpop.f32.mrf.mxu1  ;;  %11601 = vst [vmem:[#allocation85_spill] sm:$0xff] %v8719_v43 }
 0x21c   :  { %11591 = vst [vmem:[#allocation45_spill] sm:$0xff] %v8700_v13  ;;  %v6870_v46 = vpop.eup %6869  ;;  %6895 = vtanh.f32 %v8700_v13  ;;  %v1165_v3 = vadd.f32 %v6134_v48, %v11594_v31  ;;  %v8710_v59 = vmul.f32 %v6868_v53, %v2247_v19  ;;  %v1114_v13 = vadd.f32 %v8614_v24, %v11599_v30  ;;  %v11600_v48 = vld [vmem:[#allocation22_spill] sm:$0xff]  ;;  %v11603_v19 = vld [vmem:[#allocation23_spill] sm:$0xff] }
 0x21d   :  { %v6872_v0 = vpop.eup %6871  ;;  %6897 = vtanh.f32 %v1154_v22  ;;  %v1156_v29 = vpop.f32.mrf.mxu1  ;;  %v1146_v31 = vadd.f32 %v8669_v51, %v11600_v48  ;;  %v11602_v22 = vld [vmem:[#allocation46_spill] sm:$0xff]  ;;  %v2248_v53 = vadd.f32 0.5, %v2235_v62  ;;  %v11606_v48 = vld [vmem:[#allocation33_spill] sm:$0xff] }
 0x21e   :  { %v6874_v2 = vpop.eup %6873  ;;  %6899 = vtanh.f32 %v8698_v61  ;;  %11596 = vst [vmem:[#allocation83_spill] sm:$0xff] %v8710_v59  ;;  %v8712_v10 = vmul.f32 %v6872_v0, %v2245_v49  ;;  %v1157_v44 = vadd.f32 %v1156_v29, %v11598_v25  ;;  %v1106_v49 = vadd.f32 %v8626_v26, %v11603_v19  ;;  %v11604_v0 = vld [vmem:[#allocation47_spill] sm:$0xff]  ;;  %v11605_v61 = vld [vmem:[#allocation26_spill] sm:$0xff] }
 0x21f   :  { %v6876_v23 = vpop.eup %6875  ;;  %6901 = vtanh.f32 %v1165_v3  ;;  %6352 = vmatmul.mubr.msk.bf16.gmra.mxu1 %vm857_vm2, %v11602_v22  ;;  %v2241_v29 = vmul.f32 0.5, %v6860_v16  ;;  %v1109_v51 = vadd.f32 %v8637_v45, %v11605_v61  ;;  %v2290_v25 = vmul.f32 0.5, %v1098_v41  ;;  %v8740_v45 = vpop.f32.mrf.mxu0 }
 0x220   :  { %11597 = vst [vmem:[#allocation84_spill] sm:$0xff] %v8712_v10  ;;  %v6878_v52 = vpop.eup %6877  ;;  %6903 = vtanh.f32 %v8712_v10  ;;  %6355 = vmatprep.mubr.msk.bf16.mxu1 %vm857_vm2, %v11604_v0  ;;  %v1090_v22 = vadd.f32 %v8592_v27, %v11606_v48  ;;  %v8736_v10 = vmul.f32 0.5, %v8673_v47  ;;  %v11608_v0 = vld [vmem:[#allocation32_spill] sm:$0xff]  ;;  %v2294_v43 = vmul.f32 0.5, %v1114_v13  ;;  %11609 = vst [vmem:[#allocation47_spill] sm:$0xff] %v8740_v45 }
 0x221   :  { %v6880_v24 = vpop.eup %6879  ;;  %6905 = vtanh.f32 %v1157_v44  ;;  %v1101_v16 = vadd.f32 %v8600_v21, %v11608_v0  ;;  %v2308_v41 = vmul.f32 0.5, %v6874_v2  ;;  %v2309_v61 = vmul.f32 0.5, %v6876_v23  ;;  %v11610_v47 = vld [vmem:[#allocation36_spill] sm:$0xff] }
 0x222   :  { %v6882_v3 = vpop.eup %6881  ;;  %6907 = vtanh.f32 %v8710_v59  ;;  %v8733_v62 = vmul.f32 %v6880_v24, %v2248_v53  ;;  %v2292_v19 = vmul.f32 0.5, %v1106_v49  ;;  %v8744_v53 = vmul.f32 0.5, %v8677_v42  ;;  %v11612_v42 = vld [vmem:[#allocation48_spill] sm:$0xff] }
 0x223   :  { %v6884_v26 = vpop.eup %6883  ;;  %6909 = vtanh.f32 %v1146_v31  ;;  %v2239_v24 = vmul.f32 0.5, %v6866_v6  ;;  %v1093_v59 = vadd.f32 %v8608_v39, %v11610_v47  ;;  %v2293_v30 = vmul.f32 0.5, %v1109_v51 }
 0x224   :  { %11607 = vst [vmem:[#allocation46_spill] sm:$0xff] %v8733_v62  ;;  %v6886_v44 = vpop.eup %6885  ;;  %6911 = vtanh.f32 %v8733_v62  ;;  %v2240_v31 = vmul.f32 0.5, %v8683_v28  ;;  %v2254_v13 = vadd.f32 0.5, %v2241_v29  ;;  %v2288_v45 = vmul.f32 0.5, %v1090_v22  ;;  %v8749_v62 = vpop.f32.mrf.mxu0 }
 0x225   :  { %v6888_v27 = vpop.eup %6887  ;;  %6913 = vtanh.f32 %v2290_v25  ;;  %v2242_v23 = vmul.f32 0.5, %v6870_v46  ;;  %v2310_v49 = vmul.f32 0.5, %v6882_v3  ;;  %v2291_v9 = vmul.f32 0.5, %v1101_v16  ;;  %11611 = vst [vmem:[#allocation86_spill] sm:$0xff] %v8749_v62 }
 0x226   :  { %v6890_v21 = vpop.eup %6889  ;;  %6915 = vtanh.f32 %v2294_v43  ;;  %v2321_v14 = vadd.f32 0.5, %v2308_v41  ;;  %v2322_v39 = vadd.f32 0.5, %v2309_v61  ;;  %v2311_v51 = vmul.f32 0.5, %v6886_v44 }
 0x227   :  { %v6892_v2 = vpop.eup %6891  ;;  %6356 = vmatmul.mubr.msk.bf16.gmra.mxu1 %vm857_vm2, %v11612_v42  ;;  %6917 = vtanh.f32 %v2292_v19  ;;  %v2238_v25 = vmul.f32 0.5, %v8687_v38  ;;  %v2252_v46 = vadd.f32 0.5, %v2239_v24  ;;  %v2289_v29 = vmul.f32 0.5, %v1093_v59  ;;  %v8758_v19 = vpop.f32.mrf.mxu0 }
 0x228   :  { %v6894_v6 = vpop.eup %6893  ;;  %6439 = vmatprep.mubr.msk.bf16.mxu1 %vm2497_vm4, %v8522_v40  ;;  %6919 = vtanh.f32 %v2293_v30  ;;  %v8756_v3 = vmul.f32 %v6892_v2, %v2254_v13  ;;  %v2347_v22 = vmul.f32 %v6890_v21, %v2321_v14  ;;  %v2255_v41 = vadd.f32 0.5, %v2242_v23 }
 0x229   :  { %v6896_v28 = vpop.eup %6895  ;;  %6921 = vtanh.f32 %v2288_v45  ;;  %v2312_v61 = vmul.f32 0.5, %v6878_v52  ;;  %v2323_v44 = vadd.f32 0.5, %v2310_v49  ;;  %v2313_v47 = vmul.f32 0.5, %v6884_v26  ;;  %v8771_v23 = vpop.f32.mrf.mxu0 }
 0x22a   :  { %v6898_v43 = vpop.eup %6897  ;;  %11613 = vst [vmem:[#allocation48_spill] sm:$0xff] %v8756_v3  ;;  %v2348_v16 = vmul.f32 %v6896_v28, %v2322_v39  ;;  %6923 = vtanh.f32 %v2291_v9  ;;  %v2324_v0 = vadd.f32 0.5, %v2311_v51  ;;  %v2253_v45 = vadd.f32 0.5, %v2240_v31  ;;  %11617 = vst [vmem:[#allocation90_spill] sm:$0xff] %v8771_v23 }
 0x22b   :  { %v6900_v42 = vpop.eup %6899  ;;  %v8760_v38 = vmul.f32 %v6898_v43, %v2252_v46  ;;  %v2251_v24 = vadd.f32 0.5, %v2238_v25  ;;  %6925 = vtanh.f32 %v2289_v29  ;;  %v2249_v2 = vadd.f32 0.5, %v8736_v10  ;;  %v8785_v43 = vpop.f32.mrf.mxu0 }
 0x22c   :  { %v6902_v62 = vpop.eup %6901  ;;  %v8762_v59 = vpack.c.bf16 %v2348_v16, %v2347_v22  ;;  %6927 = vtanh.f32 %v8756_v3  ;;  %v2350_v9 = vmul.f32 %v6900_v42, %v2324_v0  ;;  %v2325_v39 = vadd.f32 0.5, %v2312_v61  ;;  %11621 = vst [vmem:[#allocation94_spill] sm:$0xff] %v8785_v43 }
 0x22d   :  { %11614 = vst [vmem:[#allocation87_spill] sm:$0xff] %v8760_v38  ;;  %v6904_v30 = vpop.eup %6903  ;;  %v8764_v14 = vmul.f32 %v6902_v62, %v2255_v41  ;;  %v8768_v26 = vmul.f32 %v6888_v27, %v2251_v24  ;;  %v2326_v62 = vadd.f32 0.5, %v2313_v47  ;;  %v2250_v0 = vadd.f32 0.5, %v8744_v53  ;;  %v8789_v41 = vpop.f32.mrf.mxu0 }
 0x22e   :  { %v6906_v21 = vpop.eup %6905  ;;  %v2349_v52 = vmul.f32 %v6904_v30, %v2323_v44  ;;  %v8779_v25 = vmul.f32 %v6894_v6, %v2249_v2  ;;  %11622 = vst [vmem:[#allocation95_spill] sm:$0xff] %v8789_v41  ;;  %v11735_v41 = vld [vmem:[#allocation72_spill] sm:$0xff] }
 0x22f   :  { %11615 = vst [vmem:[#allocation88_spill] sm:$0xff] %v8764_v14  ;;  %v6908_v13 = vpop.eup %6907  ;;  %11616 = vst [vmem:[#allocation89_spill] sm:$0xff] %v8768_v26  ;;  %6929 = vtanh.f32 %v8764_v14  ;;  %v8773_v49 = vmul.f32 %v6906_v21, %v2253_v45  ;;  %v1312_v43 = vadd.f32 %v11735_v41, %v8106_v35 }
 0x230   :  { %v6910_v31 = vpop.eup %6909  ;;  %6931 = vtanh.f32 %v8760_v38  ;;  %v8776_v51 = vpack.c.bf16 %v2350_v9, %v2349_v52  ;;  %11619 = vst [vmem:[#allocation92_spill] sm:$0xff] %v8779_v25  ;;  %v2351_v10 = vmul.f32 %v6908_v13, %v2325_v39  ;;  %v8791_v9 = vpop.f32.mrf.mxu0 }
 0x231   :  { %11618 = vst [vmem:[#allocation91_spill] sm:$0xff] %v8773_v49  ;;  %v6912_v28 = vpop.eup %6911  ;;  %6933 = vtanh.f32 %v8773_v49  ;;  %v8782_v29 = vmul.f32 %v6910_v31, %v2250_v0  ;;  %11623 = vst [vmem:[#allocation96_spill] sm:$0xff] %v8791_v9 }
 0x232   :  { %v2352_v27 = vmul.f32 %v6912_v28, %v2326_v62  ;;  %v6914_v46 = vpop.eup %6913  ;;  %6935 = vtanh.f32 %v8768_v26 }
 0x233   :  { %11620 = vst [vmem:[#allocation93_spill] sm:$0xff] %v8782_v29  ;;  %v6916_v47 = vpop.eup %6915  ;;  %6937 = vtanh.f32 %v8779_v25  ;;  %v2316_v2 = vmul.f32 0.5, %v6914_v46 }
 0x234   :  { %v2362_v22 = vpack.c.bf16 %v2352_v27, %v2351_v10  ;;  %v6918_v16 = vpop.eup %6917  ;;  %v2320_v6 = vmul.f32 0.5, %v6916_v47  ;;  %6939 = vtanh.f32 %v8782_v29  ;;  %v8793_v47 = vpop.f32.mrf.mxu0 }
 0x235   :  { %v6920_v42 = vpop.eup %6919  ;;  %v2318_v44 = vmul.f32 0.5, %v6918_v16  ;;  %11624 = vst [vmem:[#allocation97_spill] sm:$0xff] %v8793_v47  ;;  %v2329_v3 = vadd.f32 0.5, %v2316_v2 }
 0x236   :  { %v6922_v53 = vpop.eup %6921  ;;  %v2319_v30 = vmul.f32 0.5, %v6920_v42  ;;  %v2333_v52 = vadd.f32 0.5, %v2320_v6 }
 0x237   :  { %v6924_v61 = vpop.eup %6923  ;;  %v2331_v39 = vadd.f32 0.5, %v2318_v44  ;;  %v2314_v10 = vmul.f32 0.5, %v6922_v53 }
 0x238   :  { %v6926_v45 = vpop.eup %6925  ;;  %v2317_v21 = vmul.f32 0.5, %v6924_v61  ;;  %v2332_v62 = vadd.f32 0.5, %v2319_v30 }
 0x239   :  { %v6928_v24 = vpop.eup %6927  ;;  %v2315_v61 = vmul.f32 0.5, %v6926_v45  ;;  %v2327_v30 = vadd.f32 0.5, %v2314_v10 }
 0x23a   :  { %v2330_v27 = vadd.f32 0.5, %v2317_v21  ;;  %v2358_v42 = vmul.f32 %v6928_v24, %v2332_v62 }
 0x23c   :  { %v6930_v13 = vpop.eup %6929 }
 0x23d   :  { %v6932_v31 = vpop.eup %6931  ;;  %v2359_v28 = vmul.f32 %v6930_v13, %v2333_v52  ;;  %v8797_v52 = vpop.f32.mrf.mxu0  ;;  %v2328_v13 = vadd.f32 0.5, %v2315_v61 }
 0x23e   :  { %v6934_v0 = vpop.eup %6933  ;;  %v2356_v26 = vmul.f32 %v6932_v31, %v2330_v27  ;;  %11625 = vst [vmem:[#allocation98_spill] sm:$0xff] %v8797_v52 }
 0x23f   :  { %v2366_v49 = vpack.c.bf16 %v2359_v28, %v2359_v28  ;;  %v2357_v16 = vmul.f32 %v6934_v0, %v2331_v39  ;;  %v6936_v14 = vpop.eup %6935  ;;  %v8799_v2 = vpop.f32.mrf.mxu0  ;;  %v6814_v0 = vld [vmem:[%s11338_s4 + $0x18] sm:$0xff]  }
 0x240   :  { %v6938_v44 = vpop.eup %6937  ;;  %v2355_v53 = vmul.f32 %v6936_v14, %v2329_v3  ;;  %11626 = vst [vmem:[#allocation99_spill] sm:$0xff] %v8799_v2  ;;  %v11723_v2 = vld [vmem:[#allocation66_spill] sm:$0xff] }
 0x241   :  { %6773 = vmatprep.subr.msk.bf16.mxu0 %vm936_vm3, %v2366_v49  ;;  %v2577_v6 = vsel %vm936_vm3, %v2366_v49, 0  ;;  %v2365_v46 = vpack.c.bf16 %v2358_v42, %v2357_v16  ;;  %v6940_v21 = vpop.eup %6939  ;;  %v2353_v24 = vmul.f32 %v6938_v44, %v2327_v30  ;;  %v8801_v49 = vpop.f32.mrf.mxu0  ;;  %v6816_v16 = vld [vmem:[%s11338_s4 + $0x28] sm:$0xff]   ;;  %v6817_v42 = vld [vmem:[%s11338_s4 + $0x30] sm:$0xff]   ;;  %v6819_v44 = vld [vmem:[%s11338_s4 + $0x40] sm:$0xff]  }
 0x242   :  { %6360 = vmatpush3.bf16.msra.mxu0 %v2577_v6  ;;  %v2364_v39 = vpack.c.bf16 %v2356_v26, %v2355_v53  ;;  %v2354_v45 = vmul.f32 %v6940_v21, %v2328_v13  ;;  %11627 = vst [vmem:[#allocation100_spill] sm:$0xff] %v8801_v49  ;;  %v6812_v26 = vld [vmem:[%s11338_s4 + $0x8] sm:$0xff]   ;;  %v6821_v13 = vld [vmem:[%s11338_s4 + $0x50] sm:$0xff]  }
 0x243   :  { %6361 = vmatprep.subr.bf16.mxu0 %v2365_v46  ;;  %v8803_v31 = vpop.f32.mrf.mxu0  ;;  %v6820_v21 = vld [vmem:[%s11338_s4 + $0x48] sm:$0xff]  }
 0x244   :  { %v2363_v62 = vpack.c.bf16 %v2354_v45, %v2353_v24  ;;  %11628 = vst [vmem:[#allocation101_spill] sm:$0xff] %v8803_v31  ;;  %v6822_v45 = vld [vmem:[%s11338_s4 + $0x58] sm:$0xff]  }
 0x245   :  { %v8805_v3 = vpop.f32.mrf.mxu0 }
 0x246   :  { %6362 = vmatpush3.bf16.msra.mxu0 %v2365_v46  ;;  %11629 = vst [vmem:[#allocation102_spill] sm:$0xff] %v8805_v3  ;;  %v6818_v46 = vld [vmem:[%s11338_s4 + $0x38] sm:$0xff]  }
 0x247   :  { %6363 = vmatprep.subr.bf16.mxu0 %v2364_v39  ;;  %v8809_v14 = vpop.f32.mrf.mxu0 }
 0x248   :  { %11630 = vst [vmem:[#allocation103_spill] sm:$0xff] %v8809_v14  ;;  %v9049_v14 = vpop.permute.xlu1 %584 }
 0x249   :  { %v8819_v28 = vpop.f32.mrf.mxu0 }
 0x24a   :  { %6364 = vmatpush3.bf16.msra.mxu0 %v2364_v39  ;;  %11631 = vst [vmem:[#allocation104_spill] sm:$0xff] %v8819_v28 }
 0x24b   :  { %6365 = vmatprep.subr.bf16.mxu0 %v2363_v62 }
 0x24e   :  { %6366 = vmatpush3.bf16.msra.mxu0 %v2363_v62  ;;  %v6823_v62 = vld [vmem:[%s11338_s4 + $0x60] sm:$0xff]  }
 0x24f   :  { %6367 = vmatprep.subr.bf16.mxu0 %v2362_v22 }
 0x252   :  { %6368 = vmatpush3.bf16.msra.mxu0 %v2362_v22  ;;  %v6813_v22 = vld [vmem:[%s11338_s4 + $0x10] sm:$0xff]  }
 0x253   :  { %6369 = vmatprep.subr.bf16.mxu0 %v8776_v51 }
 0x256   :  { %6370 = vmatpush3.bf16.msra.mxu0 %v8776_v51  ;;  %v8823_v51 = vpop.f32.mrf.mxu0 }
 0x257   :  { %6371 = vmatprep.subr.bf16.mxu0 %v8762_v59  ;;  %11632 = vst [vmem:[#allocation105_spill] sm:$0xff] %v8823_v51 }
 0x258   :  { %v8831_v10 = vpop.f32.mrf.mxu0 }
 0x259   :  { %11633 = vst [vmem:[#allocation106_spill] sm:$0xff] %v8831_v10  ;;  %v11697_v10 = vld [vmem:[#allocation49_spill] sm:$0xff] }
 0x25a   :  { %6372 = vmatpush3.bf16.msra.mxu0 %v8762_v59  ;;  %v6815_v59 = vld [vmem:[%s11338_s4 + $0x20] sm:$0xff]   ;;  %v8835_v27 = vpop.f32.mrf.mxu0  ;;  %v1216_v51 = vadd.f32 %v11697_v10, %v8061_v15  ;;  %11698 = vst [vmem:[#allocation49_spill] sm:$0xff] %v9049_v14  ;;  %v9063_v10 = vpop.permute.xlu1 %574 }
 0x25b   :  { %11634 = vst [vmem:[#allocation107_spill] sm:$0xff] %v8835_v27  ;;  %11703 = vst [vmem:[#allocation172_spill] sm:$0xff] %v9063_v10 }
 0x25c   :  { %v8843_v61 = vpop.f32.mrf.mxu0 }
 0x25d   :  { %6374 = vmatmul.mubr.msk.bf16.vlgmr.msra.gmra.mxu0 %vm2497_vm4, %v6812_v26  ;;  %11635 = vst [vmem:[#allocation108_spill] sm:$0xff] %v8843_v61 }
 0x25e   :  { %6377 = vmatprep.mubr.msk.bf16.mxu0 %vm2497_vm4, %v6813_v22  ;;  %v8847_v6 = vpop.f32.mrf.mxu0 }
 0x25f   :  { %11636 = vst [vmem:[#allocation109_spill] sm:$0xff] %v8847_v6 }
 0x260   :  { %v8855_v30 = vpop.f32.mrf.mxu0 }
 0x261   :  { %11637 = vst [vmem:[#allocation110_spill] sm:$0xff] %v8855_v30 }
 0x262   :  { %v8859_v53 = vpop.f32.mrf.mxu0 }
 0x263   :  { %11638 = vst [vmem:[#allocation111_spill] sm:$0xff] %v8859_v53 }
 0x264   :  { %v8867_v39 = vpop.f32.mrf.mxu0 }
 0x265   :  { %6378 = vmatmul.mubr.msk.bf16.gmra.mxu0 %vm2497_vm4, %v6814_v0  ;;  %11639 = vst [vmem:[#allocation112_spill] sm:$0xff] %v8867_v39  ;;  %v6824_v0 = vld [vmem:[%s11338_s4 + $0x68] sm:$0xff]  }
 0x266   :  { %6381 = vmatprep.mubr.msk.bf16.mxu0 %vm2497_vm4, %v6815_v59  ;;  %v8871_v24 = vpop.f32.mrf.mxu0  ;;  %v6825_v59 = vld [vmem:[%s11338_s4 + $0x70] sm:$0xff]  }
 0x267   :  { %11640 = vst [vmem:[#allocation113_spill] sm:$0xff] %v8871_v24 }
 0x268   :  { %v8879_v26 = vpop.f32.mrf.mxu0 }
 0x269   :  { %11641 = vst [vmem:[#allocation114_spill] sm:$0xff] %v8879_v26 }
 0x26a   :  { %v8883_v22 = vpop.f32.mrf.mxu0 }
 0x26b   :  { %11642 = vst [vmem:[#allocation115_spill] sm:$0xff] %v8883_v22 }
 0x26d   :  { %6382 = vmatmul.mubr.msk.bf16.gmra.mxu0 %vm2497_vm4, %v6816_v16  ;;  %v8891_v16 = vpop.f32.mrf.mxu0 }
 0x26e   :  { %6385 = vmatprep.mubr.msk.bf16.mxu0 %vm2497_vm4, %v6817_v42  ;;  %11643 = vst [vmem:[#allocation116_spill] sm:$0xff] %v8891_v16 }
 0x26f   :  { %v8895_v42 = vpop.f32.mrf.mxu0 }
 0x270   :  { %11644 = vst [vmem:[#allocation117_spill] sm:$0xff] %v8895_v42 }
 0x275   :  { %6386 = vmatmul.mubr.msk.bf16.gmra.mxu0 %vm2497_vm4, %v6818_v46  ;;  %v6826_v46 = vld [vmem:[%s11338_s4 + $0x78] sm:$0xff]  }
 0x276   :  { %6389 = vmatprep.mubr.msk.bf16.mxu0 %vm2497_vm4, %v6819_v44  ;;  %v6827_v44 = vld [vmem:[%s11338_s4 + $0x80] sm:$0xff]  }
 0x27d   :  { %6390 = vmatmul.mubr.msk.bf16.gmra.mxu0 %vm2497_vm4, %v6820_v21  ;;  %v8903_v21 = vpop.f32.mrf.mxu0 }
 0x27e   :  { %6393 = vmatprep.mubr.msk.bf16.mxu0 %vm2497_vm4, %v6821_v13  ;;  %11645 = vst [vmem:[#allocation118_spill] sm:$0xff] %v8903_v21 }
 0x27f   :  { %v8907_v13 = vpop.f32.mrf.mxu0 }
 0x280   :  { %11646 = vst [vmem:[#allocation119_spill] sm:$0xff] %v8907_v13 }
 0x285   :  { %6394 = vmatmul.mubr.msk.bf16.gmra.mxu0 %vm2497_vm4, %v6822_v45  ;;  %v6828_v45 = vld [vmem:[%s11338_s4 + $0x88] sm:$0xff]  }
 0x286   :  { %6397 = vmatprep.mubr.msk.bf16.mxu0 %vm2497_vm4, %v6823_v62  ;;  %v6829_v62 = vld [vmem:[%s11338_s4 + $0x90] sm:$0xff]  }
 0x28d   :  { %6398 = vmatmul.mubr.msk.bf16.gmra.mxu0 %vm2497_vm4, %v6824_v0  ;;  %v8915_v0 = vpop.f32.mrf.mxu0 }
 0x28e   :  { %6401 = vmatprep.mubr.msk.bf16.mxu0 %vm2497_vm4, %v6825_v59  ;;  %11647 = vst [vmem:[#allocation120_spill] sm:$0xff] %v8915_v0 }
 0x28f   :  { %v8919_v59 = vpop.f32.mrf.mxu0 }
 0x290   :  { %11648 = vst [vmem:[#allocation121_spill] sm:$0xff] %v8919_v59 }
 0x291   :  { %v8927_v16 = vpop.f32.mrf.mxu0 }
 0x292   :  { %11649 = vst [vmem:[#allocation122_spill] sm:$0xff] %v8927_v16 }
 0x293   :  { %v8931_v0 = vpop.f32.mrf.mxu0 }
 0x294   :  { %11650 = vst [vmem:[#allocation123_spill] sm:$0xff] %v8931_v0 }
 0x295   :  { %6402 = vmatmul.mubr.msk.bf16.gmra.mxu0 %vm2497_vm4, %v6826_v46  ;;  %v6830_v46 = vld [vmem:[%s11338_s4 + $0x98] sm:$0xff]   ;;  %v8939_v59 = vpop.f32.mrf.mxu0 }
 0x296   :  { %6405 = vmatprep.mubr.msk.bf16.mxu0 %vm2497_vm4, %v6827_v44  ;;  %v6831_v44 = vld [vmem:[%s11338_s4 + $0xa0] sm:$0xff]   ;;  %11651 = vst [vmem:[#allocation124_spill] sm:$0xff] %v8939_v59 }
 0x297   :  { %v8943_v16 = vpop.f32.mrf.mxu0 }
 0x298   :  { %11652 = vst [vmem:[#allocation125_spill] sm:$0xff] %v8943_v16 }
 0x299   :  { %v8951_v0 = vpop.f32.mrf.mxu0 }
 0x29a   :  { %11653 = vst [vmem:[#allocation126_spill] sm:$0xff] %v8951_v0 }
 0x29b   :  { %v8955_v59 = vpop.f32.mrf.mxu0 }
 0x29c   :  { %11654 = vst [vmem:[#allocation127_spill] sm:$0xff] %v8955_v59 }
 0x29d   :  { %6406 = vmatmul.mubr.msk.bf16.gmra.mxu0 %vm2497_vm4, %v6828_v45  ;;  %v6832_v45 = vld [vmem:[%s11338_s4 + $0xa8] sm:$0xff]  }
 0x29e   :  { %6409 = vmatprep.mubr.msk.bf16.mxu0 %vm2497_vm4, %v6829_v62  ;;  %v6833_v62 = vld [vmem:[%s11338_s4 + $0xb0] sm:$0xff]  }
 0x2a5   :  { %6410 = vmatmul.mubr.msk.bf16.gmra.mxu0 %vm2497_vm4, %v6830_v46  ;;  %v6834_v46 = vld [vmem:[%s11338_s4 + $0xb8] sm:$0xff]  }
 0x2a6   :  { %6413 = vmatprep.mubr.msk.bf16.mxu0 %vm2497_vm4, %v6831_v44  ;;  %v6835_v44 = vld [vmem:[%s11338_s4 + $0xc0] sm:$0xff]  }
 0x2ad   :  { %6414 = vmatmul.mubr.msk.bf16.gmra.mxu0 %vm2497_vm4, %v6832_v45  ;;  %v6836_v45 = vld [vmem:[%s11338_s4 + $0xc8] sm:$0xff]  }
 0x2ae   :  { %6417 = vmatprep.mubr.msk.bf16.mxu0 %vm2497_vm4, %v6833_v62  ;;  %v8960_v62 = vpop.f32.mrf.mxu0 }
 0x2af   :  { %11655 = vst [vmem:[#allocation128_spill] sm:$0xff] %v8960_v62 }
 0x2b0   :  { %v8965_v39 = vpop.f32.mrf.mxu0 }
 0x2b1   :  { %11656 = vst [vmem:[#allocation129_spill] sm:$0xff] %v8965_v39 }
 0x2b2   :  { %v8967_v0 = vpop.f32.mrf.mxu0 }
 0x2b3   :  { %11657 = vst [vmem:[#allocation130_spill] sm:$0xff] %v8967_v0 }
 0x2b5   :  { %6418 = vmatmul.mubr.msk.bf16.gmra.mxu0 %vm2497_vm4, %v6834_v46  ;;  %v8969_v46 = vpop.f32.mrf.mxu0 }
 0x2b6   :  { %6421 = vmatprep.mubr.msk.bf16.mxu0 %vm2497_vm4, %v6835_v44  ;;  %11658 = vst [vmem:[#allocation131_spill] sm:$0xff] %v8969_v46 }
 0x2b7   :  { %v8971_v44 = vpop.f32.mrf.mxu0 }
 0x2b8   :  { %11659 = vst [vmem:[#allocation132_spill] sm:$0xff] %v8971_v44 }
 0x2b9   :  { %v8973_v59 = vpop.f32.mrf.mxu0 }
 0x2ba   :  { %11660 = vst [vmem:[#allocation133_spill] sm:$0xff] %v8973_v59 }
 0x2bb   :  { %v8975_v61 = vpop.f32.mrf.mxu0 }
 0x2bc   :  { %11661 = vst [vmem:[#allocation134_spill] sm:$0xff] %v8975_v61 }
 0x2bd   :  { %6422 = vmatmul.mubr.msk.bf16.gmra.mxu0 %vm2497_vm4, %v6836_v45  ;;  %v8977_v16 = vpop.f32.mrf.mxu0 }
 0x2be   :  { %6505 = vmatprep.mubr.msk.bf16.mxu0 %vm2497_vm4, %v8522_v40  ;;  %11662 = vst [vmem:[#allocation135_spill] sm:$0xff] %v8977_v16  ;;  %v8985_v40 = vpop.f32.mrf.mxu1 }
 0x2bf   :  { %v8979_v62 = vpop.f32.mrf.mxu0  ;;  %11666 = vst [vmem:[#allocation139_spill] sm:$0xff] %v8985_v40 }
 0x2c0   :  { %11663 = vst [vmem:[#allocation136_spill] sm:$0xff] %v8979_v62  ;;  %v8989_v0 = vpop.f32.mrf.mxu1 }
 0x2c1   :  { %v8981_v45 = vpop.f32.mrf.mxu0  ;;  %11668 = vst [vmem:[#allocation141_spill] sm:$0xff] %v8989_v0 }
 0x2c2   :  { %11664 = vst [vmem:[#allocation137_spill] sm:$0xff] %v8981_v45  ;;  %v8993_v44 = vpop.f32.mrf.mxu1 }
 0x2c3   :  { %v8983_v28 = vpop.f32.mrf.mxu0  ;;  %11670 = vst [vmem:[#allocation143_spill] sm:$0xff] %v8993_v44 }
 0x2c4   :  { %11665 = vst [vmem:[#allocation138_spill] sm:$0xff] %v8983_v28  ;;  %v8997_v61 = vpop.f32.mrf.mxu1 }
 0x2c5   :  { %v8987_v39 = vpop.f32.mrf.mxu0  ;;  %11672 = vst [vmem:[#allocation145_spill] sm:$0xff] %v8997_v61  ;;  %v11704_v61 = vld [vmem:[#allocation53_spill] sm:$0xff] }
 0x2c6   :  { %11667 = vst [vmem:[#allocation140_spill] sm:$0xff] %v8987_v39  ;;  %v9001_v62 = vpop.f32.mrf.mxu1 }
 0x2c7   :  { %v8991_v46 = vpop.f32.mrf.mxu0  ;;  %11674 = vst [vmem:[#allocation147_spill] sm:$0xff] %v9001_v62  ;;  %v11710_v62 = vld [vmem:[#allocation56_spill] sm:$0xff] }
 0x2c8   :  { %11669 = vst [vmem:[#allocation142_spill] sm:$0xff] %v8991_v46  ;;  %v9005_v28 = vpop.f32.mrf.mxu1 }
 0x2c9   :  { %v8995_v59 = vpop.f32.mrf.mxu0  ;;  %11676 = vst [vmem:[#allocation149_spill] sm:$0xff] %v9005_v28 }
 0x2ca   :  { %11671 = vst [vmem:[#allocation144_spill] sm:$0xff] %v8995_v59  ;;  %v9009_v39 = vpop.f32.mrf.mxu1 }
 0x2cb   :  { %v8999_v16 = vpop.f32.mrf.mxu0  ;;  %11678 = vst [vmem:[#allocation151_spill] sm:$0xff] %v9009_v39 }
 0x2cc   :  { %11673 = vst [vmem:[#allocation146_spill] sm:$0xff] %v8999_v16  ;;  %v9013_v46 = vpop.f32.mrf.mxu1 }
 0x2cd   :  { %v9003_v45 = vpop.f32.mrf.mxu0  ;;  %11680 = vst [vmem:[#allocation153_spill] sm:$0xff] %v9013_v46 }
 0x2ce   :  { %11675 = vst [vmem:[#allocation148_spill] sm:$0xff] %v9003_v45  ;;  %v9017_v59 = vpop.f32.mrf.mxu1  ;;  %v9025_v45 = vpop.permute.xlu0 %594 }
 0x2cf   :  { %v9007_v13 = vpop.f32.mrf.mxu0  ;;  %11682 = vst [vmem:[#allocation155_spill] sm:$0xff] %v9017_v59  ;;  %11686 = vst [vmem:[#allocation159_spill] sm:$0xff] %v9025_v45 }
 0x2d0   :  { %11677 = vst [vmem:[#allocation150_spill] sm:$0xff] %v9007_v13  ;;  %v9021_v16 = vpop.f32.mrf.mxu1 }
 0x2d1   :  { %v9011_v21 = vpop.f32.mrf.mxu0  ;;  %11684 = vst [vmem:[#allocation157_spill] sm:$0xff] %v9021_v16 }
 0x2d2   :  { %11679 = vst [vmem:[#allocation152_spill] sm:$0xff] %v9011_v21  ;;  %v9027_v24 = vpop.f32.mrf.mxu1  ;;  %v9035_v30 = vpop.permute.xlu0 %589 }
 0x2d3   :  { %v9015_v42 = vpop.f32.mrf.mxu0  ;;  %11687 = vst [vmem:[#allocation160_spill] sm:$0xff] %v9027_v24  ;;  %11691 = vst [vmem:[#allocation164_spill] sm:$0xff] %v9035_v30 }
 0x2d4   :  { %11681 = vst [vmem:[#allocation154_spill] sm:$0xff] %v9015_v42  ;;  %v9031_v53 = vpop.f32.mrf.mxu1 }
 0x2d5   :  { %v9019_v22 = vpop.f32.mrf.mxu0  ;;  %11689 = vst [vmem:[#allocation162_spill] sm:$0xff] %v9031_v53 }
 0x2d6   :  { %11683 = vst [vmem:[#allocation156_spill] sm:$0xff] %v9019_v22  ;;  %v9037_v42 = vpop.f32.mrf.mxu1  ;;  %v9041_v22 = vpop.permute.xlu0 %579 }
 0x2d7   :  { %v9023_v26 = vpop.f32.mrf.mxu0  ;;  %11692 = vst [vmem:[#allocation165_spill] sm:$0xff] %v9037_v42  ;;  %11694 = vst [vmem:[#allocation167_spill] sm:$0xff] %v9041_v22 }
 0x2d8   :  { %11685 = vst [vmem:[#allocation158_spill] sm:$0xff] %v9023_v26  ;;  %v9043_v27 = vpop.f32.mrf.mxu1 }
 0x2d9   :  { %v9029_v13 = vpop.f32.mrf.mxu0  ;;  %11695 = vst [vmem:[#allocation168_spill] sm:$0xff] %v9043_v27 }
 0x2da   :  { %11688 = vst [vmem:[#allocation161_spill] sm:$0xff] %v9029_v13  ;;  %v9055_v53 = vpop.permute.xlu0 %569 }
 0x2db   :  { %v9033_v21 = vpop.f32.mrf.mxu0  ;;  %11700 = vst [vmem:[#allocation171_spill] sm:$0xff] %v9055_v53 }
 0x2dc   :  { %11690 = vst [vmem:[#allocation163_spill] sm:$0xff] %v9033_v21  ;;  %v9053_v21 = vpop.f32.mrf.mxu1 }
 0x2dd   :  { %v9039_v6 = vpop.f32.mrf.mxu0  ;;  %11699 = vst [vmem:[#allocation170_spill] sm:$0xff] %v9053_v21 }
 0x2de   :  { %11693 = vst [vmem:[#allocation166_spill] sm:$0xff] %v9039_v6  ;;  %v11701_v6 = vld [vmem:[#allocation51_spill] sm:$0xff]  ;;  %v9067_v0 = vpop.permute.xlu0 %559 }
 0x2df   :  { %v9045_v26 = vpop.f32.mrf.mxu0  ;;  %v1219_v16 = vadd.f32 %v11701_v6, %v8067_v18  ;;  %11705 = vst [vmem:[#allocation53_spill] sm:$0xff] %v9067_v0  ;;  %v1235_v6 = vadd.f32 %v8497_v33, %v8044_v7 }
 0x2e0   :  { %11696 = vst [vmem:[#allocation169_spill] sm:$0xff] %v9045_v26  ;;  %v9061_v26 = vpop.f32.mrf.mxu1 }
 0x2e1   :  { %11702 = vst [vmem:[#allocation51_spill] sm:$0xff] %v9061_v26 }
 0x2e2   :  { %v9071_v42 = vpop.f32.mrf.mxu1 }
 0x2e3   :  { %11706 = vst [vmem:[#allocation173_spill] sm:$0xff] %v9071_v42 }
 0x2e4   :  { %v9079_v59 = vpop.f32.mrf.mxu1 }
 0x2e5   :  { %11708 = vst [vmem:[#allocation175_spill] sm:$0xff] %v9079_v59 }
 0x2e6   :  { %v9087_v42 = vpop.f32.mrf.mxu1 }
 0x2e7   :  { %11711 = vst [vmem:[#allocation56_spill] sm:$0xff] %v9087_v42 }
 0x2e8   :  { %v9097_v18 = vpop.f32.mrf.mxu1 }
 0x2e9   :  { %11715 = vst [vmem:[#allocation178_spill] sm:$0xff] %v9097_v18 }
 0x2ea   :  { %v9109_v29 = vpop.f32.mrf.mxu1 }
 0x2eb   :  { %11718 = vst [vmem:[#allocation179_spill] sm:$0xff] %v9109_v29 }
 0x31d   :  { %v6375_v13 = vpop.f32.mrf.mxu0 }
 0x31e   :  { %v9051_v3 = vadd.f32 %v6375_v13, %v1216_v51  ;;  %v1232_v51 = vadd.f32 %v11704_v61, %v8039_v5  ;;  %v9081_v61 = vpop.permute.xlu0 %549 }
 0x31f   :  { %v2613_v31 = vpop.f32.mrf.mxu0  ;;  %11709 = vst [vmem:[#allocation176_spill] sm:$0xff] %v9081_v61 }
 0x321   :  { %v6376_v46 = vpop.f32.mrf.mxu0 }
 0x322   :  { %v9059_v27 = vadd.f32 %v6376_v46, %v1219_v16  ;;  %v9075_v46 = vpop.permute.xlu1 %564  ;;  %v9095_v59 = vpop.permute.xlu0 %539 }
 0x323   :  { %v2616_v28 = vpop.f32.mrf.mxu0  ;;  %11707 = vst [vmem:[#allocation174_spill] sm:$0xff] %v9075_v46 }
 0x325   :  { %v6379_v13 = vpop.f32.mrf.mxu0 }
 0x326   :  { %v9069_v21 = vadd.f32 %v6379_v13, %v1232_v51  ;;  %v1248_v51 = vadd.f32 %v11710_v62, %v8006_v55  ;;  %v9091_v33 = vpop.permute.xlu1 %554 }
 0x327   :  { %v2629_v24 = vpop.f32.mrf.mxu0  ;;  %11712 = vst [vmem:[#allocation177_spill] sm:$0xff] %v9091_v33 }
 0x329   :  { %v6380_v16 = vpop.f32.mrf.mxu0 }
 0x32a   :  { %v9077_v26 = vadd.f32 %v6380_v16, %v1235_v6  ;;  %v11713_v6 = vld [vmem:[#allocation58_spill] sm:$0xff]  ;;  %v9105_v55 = vpop.permute.xlu1 %544 }
 0x32b   :  { %v2632_v39 = vpop.f32.mrf.mxu0  ;;  %v1251_v16 = vadd.f32 %v11713_v6, %v8004_v54  ;;  %11714 = vst [vmem:[#allocation58_spill] sm:$0xff] %v9095_v59  ;;  %v11719_v54 = vld [vmem:[#allocation62_spill] sm:$0xff] }
 0x32c   :  { %v1267_v38 = vadd.f32 %v11719_v54, %v9105_v55  ;;  %v1283_v54 = vadd.f32 %v11723_v2, %v9075_v46 }
 0x32d   :  { %v6383_v13 = vpop.f32.mrf.mxu0 }
 0x32e   :  { %v9085_v5 = vadd.f32 %v6383_v13, %v1248_v51  ;;  %v11716_v51 = vld [vmem:[#allocation60_spill] sm:$0xff] }
 0x32f   :  { %v9089_v44 = vpop.f32.mrf.mxu0  ;;  %v1264_v13 = vadd.f32 %v11716_v51, %v9095_v59  ;;  %11717 = vst [vmem:[#allocation60_spill] sm:$0xff] %v9105_v55  ;;  %v11721_v51 = vld [vmem:[#allocation64_spill] sm:$0xff] }
 0x330   :  { %v1280_v59 = vadd.f32 %v11721_v51, %v9067_v0 }
 0x331   :  { %v6384_v7 = vpop.f32.mrf.mxu0 }
 0x332   :  { %v9099_v40 = vadd.f32 %v6384_v7, %v1251_v16  ;;  %v9117_v16 = vpop.f32.mrf.mxu1 }
 0x333   :  { %v9101_v62 = vpop.f32.mrf.mxu0  ;;  %11720 = vst [vmem:[#allocation62_spill] sm:$0xff] %v9117_v16 }
 0x335   :  { %v6387_v42 = vpop.f32.mrf.mxu0 }
 0x336   :  { %v9107_v15 = vadd.f32 %v6387_v42, %v1264_v13  ;;  %v9123_v42 = vpop.f32.mrf.mxu1 }
 0x337   :  { %v9111_v6 = vpop.f32.mrf.mxu0  ;;  %11722 = vst [vmem:[#allocation64_spill] sm:$0xff] %v9123_v42  ;;  %v11730_v42 = vld [vmem:[#allocation50_spill] sm:$0xff] }
 0x339   :  { %v6388_v18 = vpop.f32.mrf.mxu0 }
 0x33a   :  { %v9115_v7 = vadd.f32 %v6388_v18, %v1267_v38  ;;  %v9133_v38 = vpop.f32.mrf.mxu1 }
 0x33b   :  { %v9119_v25 = vpop.f32.mrf.mxu0  ;;  %11724 = vst [vmem:[#allocation66_spill] sm:$0xff] %v9133_v38 }
 0x33c   :  { %v9139_v51 = vpop.f32.mrf.mxu1 }
 0x33d   :  { %v6391_v49 = vpop.f32.mrf.mxu0  ;;  %11726 = vst [vmem:[#allocation181_spill] sm:$0xff] %v9139_v51  ;;  %v11736_v51 = vld [vmem:[#allocation54_spill] sm:$0xff] }
 0x33e   :  { %v9125_v13 = vadd.f32 %v6391_v49, %v1280_v59  ;;  %v11729_v59 = vld [vmem:[#allocation27_spill] sm:$0xff]  ;;  %v9147_v9 = vpop.f32.mrf.mxu1 }
 0x33f   :  { %v9127_v29 = vpop.f32.mrf.mxu0  ;;  %v1208_v47 = vadd.f32 %v11730_v42, %v11729_v59  ;;  %11731 = vst [vmem:[#allocation50_spill] sm:$0xff] %v9147_v9  ;;  %v2874_v42 = vmul.f32 0.5, %v9051_v3 }
 0x341   :  { %v6392_v55 = vpop.f32.mrf.mxu0  ;;  %v2820_v46 = vadd.f32 %v2613_v31, %v1208_v47  ;;  %v11739_v47 = vld [vmem:[#allocation74_spill] sm:$0xff]  ;;  %6941 = vtanh.f32 %v2874_v42  ;;  %v2879_v42 = vmul.f32 0.5, %v9077_v26  ;;  %v1331_v26 = vadd.f32 %v8616_v32, %v8102_v1  ;;  %v11750_v32 = vld [vmem:[#allocation69_spill] sm:$0xff] }
 0x342   :  { %v9131_v18 = vadd.f32 %v6392_v55, %v1283_v54  ;;  %v11733_v55 = vld [vmem:[#allocation30_spill] sm:$0xff]  ;;  %v11734_v54 = vld [vmem:[#allocation52_spill] sm:$0xff]  ;;  %v1315_v31 = vadd.f32 %v11739_v47, %v8127_v4 }
 0x343   :  { %v9135_v16 = vpop.f32.mrf.mxu0  ;;  %v1211_v38 = vadd.f32 %v11734_v54, %v11733_v55  ;;  %v2872_v41 = vmul.f32 0.5, %v2820_v46  ;;  %v2875_v55 = vmul.f32 0.5, %v9059_v27  ;;  %v2878_v27 = vmul.f32 0.5, %v9069_v21  ;;  %v11784_v1 = vld [vmem:[#allocation94_spill] sm:$0xff] }
 0x344   :  { %v1320_v21 = vadd.f32 %v8610_v56, %v8100_v57 }
 0x345   :  { %v9137_v52 = vpop.f32.mrf.mxu0  ;;  %6943 = vtanh.f32 %v2872_v41 }
 0x346   :  { %11725 = vst [vmem:[#allocation180_spill] sm:$0xff] %v9137_v52  ;;  %v2821_v52 = vadd.f32 %v2616_v28, %v1211_v38  ;;  %v9169_v28 = vpop.permute.xlu1 %534  ;;  %v11741_v38 = vld [vmem:[#allocation57_spill] sm:$0xff]  ;;  %6945 = vtanh.f32 %v2875_v55 }
 0x347   :  { %v9141_v0 = vpop.f32.mrf.mxu0  ;;  %11740 = vst [vmem:[#allocation72_spill] sm:$0xff] %v9169_v28  ;;  %v1240_v3 = vadd.f32 %v11741_v38, %v8014_v58 }
 0x348   :  { %11727 = vst [vmem:[#allocation182_spill] sm:$0xff] %v9141_v0  ;;  %v1224_v0 = vadd.f32 %v11736_v51, %v8055_v12  ;;  %v11742_v12 = vld [vmem:[#allocation59_spill] sm:$0xff] }
 0x349   :  { %v9143_v49 = vpop.f32.mrf.mxu0 }
 0x34a   :  { %11728 = vst [vmem:[#allocation183_spill] sm:$0xff] %v9143_v49  ;;  %v9157_v49 = vpop.f32.mrf.mxu1  ;;  %v2824_v35 = vadd.f32 %v2629_v24, %v1224_v0  ;;  %v11745_v0 = vld [vmem:[#allocation63_spill] sm:$0xff] }
 0x34b   :  { %v9149_v2 = vpop.f32.mrf.mxu0  ;;  %11737 = vst [vmem:[#allocation52_spill] sm:$0xff] %v9157_v49  ;;  %v1259_v38 = vadd.f32 %v11745_v0, %v9169_v28  ;;  %v2882_v0 = vmul.f32 0.5, %v9085_v5  ;;  %v11794_v28 = vld [vmem:[#allocation16_spill] sm:$0xff] }
 0x34c   :  { %11732 = vst [vmem:[#allocation184_spill] sm:$0xff] %v9149_v2  ;;  %v11738_v2 = vld [vmem:[#allocation55_spill] sm:$0xff]  ;;  %v9179_v46 = vpop.f32.mrf.mxu1 }
 0x34d   :  { %v6399_v23 = vpop.f32.mrf.mxu0  ;;  %v1227_v54 = vadd.f32 %v11738_v2, %v8053_v11  ;;  %v1243_v2 = vadd.f32 %v11742_v12, %v8026_v63  ;;  %v11743_v11 = vld [vmem:[#allocation61_spill] sm:$0xff]  ;;  %11744 = vst [vmem:[#allocation54_spill] sm:$0xff] %v9179_v46  ;;  %v11770_v46 = vld [vmem:[#allocation82_spill] sm:$0xff] }
 0x34e   :  { %v9160_v59 = vadd.f32 %v6399_v23, %v1312_v43  ;;  %v2873_v23 = vmul.f32 0.5, %v2821_v52  ;;  %v1256_v47 = vadd.f32 %v11743_v11, %v7994_v50  ;;  %v2876_v52 = vmul.f32 0.5, %v2824_v35  ;;  %v11747_v35 = vld [vmem:[#allocation67_spill] sm:$0xff]  ;;  %v11795_v50 = vld [vmem:[#allocation98_spill] sm:$0xff] }
 0x34f   :  { %v9162_v9 = vpop.f32.mrf.mxu0  ;;  %v2825_v43 = vadd.f32 %v2632_v39, %v1227_v54  ;;  %v2828_v39 = vadd.f32 %v9089_v44, %v1240_v3  ;;  %v11746_v54 = vld [vmem:[#allocation65_spill] sm:$0xff]  ;;  %v1328_v11 = vadd.f32 %v8602_v20, %v8093_v37  ;;  %v2829_v41 = vadd.f32 %v9101_v62, %v1243_v2  ;;  %v9197_v3 = vpop.f32.mrf.mxu1  ;;  %v11749_v62 = vld [vmem:[#allocation68_spill] sm:$0xff] }
 0x350   :  { %v1272_v12 = vadd.f32 %v11746_v54, %v9081_v61  ;;  %6947 = vtanh.f32 %v2873_v23  ;;  %v1275_v44 = vadd.f32 %v11747_v35, %v9091_v33  ;;  %11748 = vst [vmem:[#allocation55_spill] sm:$0xff] %v9197_v3  ;;  %v2883_v2 = vmul.f32 0.5, %v9099_v40  ;;  %v11790_v3 = vld [vmem:[#allocation12_spill] sm:$0xff] }
 0x351   :  { %v6400_v51 = vpop.f32.mrf.mxu0  ;;  %6949 = vtanh.f32 %v2878_v27  ;;  %v2880_v56 = vmul.f32 0.5, %v2828_v39  ;;  %v2833_v27 = vadd.f32 %v9119_v25, %v1259_v38  ;;  %v2881_v5 = vmul.f32 0.5, %v2829_v41  ;;  %v11751_v39 = vld [vmem:[#allocation70_spill] sm:$0xff]  ;;  %v9219_v35 = vpop.f32.mrf.mxu1  ;;  %v11753_v38 = vld [vmem:[#allocation71_spill] sm:$0xff] }
 0x352   :  { %v9173_v49 = vadd.f32 %v6400_v51, %v1315_v31  ;;  %v2877_v51 = vmul.f32 0.5, %v2825_v43  ;;  %6951 = vtanh.f32 %v2876_v52  ;;  %v1296_v43 = vadd.f32 %v11749_v62, %v9041_v22  ;;  %11752 = vst [vmem:[#allocation74_spill] sm:$0xff] %v9219_v35  ;;  %v11786_v35 = vld [vmem:[#allocation15_spill] sm:$0xff] }
 0x353   :  { %v9182_v24 = vpop.f32.mrf.mxu0  ;;  %6953 = vtanh.f32 %v2879_v42  ;;  %v1288_v52 = vadd.f32 %v11750_v32, %v9055_v53  ;;  %v2886_v40 = vmul.f32 0.5, %v9107_v15  ;;  %v9226_v42 = vadd.f32 %v11753_v38, %v9063_v10  ;;  %v11756_v32 = vld [vmem:[#allocation32_spill] sm:$0xff] }
 0x354   :  { %6955 = vtanh.f32 %v2877_v51  ;;  %v11755_v51 = vld [vmem:[#allocation75_spill] sm:$0xff]  ;;  %v2885_v15 = vmul.f32 0.5, %v2833_v27  ;;  %v9245_v62 = vadd.f32 %v8632_v8, %v11595_v34  ;;  %v11759_v27 = vld [vmem:[#allocation77_spill] sm:$0xff]  ;;  %v2887_v8 = vmul.f32 0.5, %v9115_v7 }
 0x355   :  { %v6403_v31 = vpop.f32.mrf.mxu0  ;;  %6957 = vtanh.f32 %v2882_v0  ;;  %v9234_v41 = vadd.f32 %v11755_v51, %v9025_v45  ;;  %v9238_v0 = vadd.f32 %v8628_v60, %v8114_v36  ;;  %v11764_v51 = vld [vmem:[#allocation78_spill] sm:$0xff]  ;;  %v11768_v34 = vld [vmem:[#allocation81_spill] sm:$0xff]  ;;  %v9335_v63 = vadd.f32 %v11795_v50, %v11794_v28 }
 0x356   :  { %v9200_v20 = vadd.f32 %v6403_v31, %v1328_v11  ;;  %v2832_v11 = vadd.f32 %v9111_v6, %v1256_v47  ;;  %v11754_v6 = vld [vmem:[#allocation73_spill] sm:$0xff]  ;;  %6959 = vtanh.f32 %v2880_v56  ;;  %v11771_v45 = vld [vmem:[#allocation34_spill] sm:$0xff] }
 0x357   :  { %v2725_v55 = vpop.f32.mrf.mxu0  ;;  %v9230_v47 = vadd.f32 %v11754_v6, %v9035_v30  ;;  %6961 = vtanh.f32 %v2883_v2  ;;  %v11758_v2 = vld [vmem:[#allocation36_spill] sm:$0xff]  ;;  %v6942_v6 = vpop.eup %6941  ;;  %v11772_v30 = vld [vmem:[#allocation85_spill] sm:$0xff] }
 0x358   :  { %v9204_v23 = vadd.f32 %v2725_v55, %v1320_v21  ;;  %v9217_v21 = vadd.f32 %v11751_v39, %v9049_v14  ;;  %v2836_v55 = vadd.f32 %v9127_v29, %v1272_v12  ;;  %6963 = vtanh.f32 %v2881_v5  ;;  %v11757_v39 = vld [vmem:[#allocation76_spill] sm:$0xff]  ;;  %v9259_v29 = vpop.f32.mrf.mxu1  ;;  %v6944_v36 = vpop.eup %6943  ;;  %v11774_v14 = vld [vmem:[#allocation47_spill] sm:$0xff] }
 0x359   :  { %v6404_v54 = vpop.f32.mrf.mxu0  ;;  %v2884_v56 = vmul.f32 0.5, %v2832_v11  ;;  %v9253_v60 = vadd.f32 %v11757_v39, %v11756_v32  ;;  %v9257_v38 = vadd.f32 %v11759_v27, %v11758_v2  ;;  %11761 = vst [vmem:[#allocation59_spill] sm:$0xff] %v9259_v29  ;;  %6965 = vtanh.f32 %v2886_v40  ;;  %v11765_v11 = vld [vmem:[#allocation23_spill] sm:$0xff]  ;;  %v11769_v40 = vld [vmem:[#allocation26_spill] sm:$0xff] }
 0x35a   :  { %v9211_v31 = vadd.f32 %v6404_v54, %v1331_v26  ;;  %v9249_v54 = vadd.f32 %v8639_v17, %v11606_v48  ;;  %v11763_v17 = vld [vmem:[#allocation20_spill] sm:$0xff]  ;;  %v11766_v48 = vld [vmem:[#allocation79_spill] sm:$0xff]  ;;  %v2890_v2 = vmul.f32 0.5, %v9125_v13  ;;  %v9277_v7 = vadd.f32 %v11770_v46, %v11769_v40  ;;  %v11775_v40 = vld [vmem:[#allocation25_spill] sm:$0xff] }
 0x35b   :  { %v9222_v25 = vpop.f32.mrf.mxu0  ;;  %11760 = vst [vmem:[#allocation57_spill] sm:$0xff] %v9257_v38  ;;  %v9266_v5 = vadd.f32 %v11764_v51, %v11763_v17  ;;  %v9270_v39 = vadd.f32 %v11766_v48, %v11765_v11  ;;  %v11767_v32 = vld [vmem:[#allocation35_spill] sm:$0xff]  ;;  %v9281_v10 = vadd.f32 %v11772_v30, %v11771_v45  ;;  %6967 = vtanh.f32 %v2885_v15  ;;  %v6946_v48 = vpop.eup %6945  ;;  %v11773_v11 = vld [vmem:[#allocation38_spill] sm:$0xff]  ;;  %v11779_v45 = vld [vmem:[#allocation180_spill] sm:$0xff] }
 0x35c   :  { %v1363_v27 = vadd.f32 %v11768_v34, %v11767_v32  ;;  %v2888_v51 = vmul.f32 0.5, %v2836_v55  ;;  %v9287_v53 = vadd.f32 %v11774_v14, %v11773_v11  ;;  %6969 = vtanh.f32 %v2884_v56  ;;  %v11776_v32 = vld [vmem:[#allocation86_spill] sm:$0xff]  ;;  %v11777_v30 = vld [vmem:[#allocation31_spill] sm:$0xff]  ;;  %v9299_v55 = vpop.f32.mrf.mxu1 }
 0x35d   :  { %v9241_v26 = vpop.f32.mrf.mxu0  ;;  %v2891_v34 = vmul.f32 0.5, %v9131_v18  ;;  %v2837_v13 = vadd.f32 %v9135_v16, %v1275_v44  ;;  %v6948_v46 = vpop.eup %6947  ;;  %v9293_v22 = vadd.f32 %v11776_v32, %v11775_v40  ;;  %v9297_v15 = vadd.f32 %v8758_v19, %v11777_v30  ;;  %11778 = vst [vmem:[#allocation63_spill] sm:$0xff] %v9299_v55  ;;  %v11781_v18 = vld [vmem:[#allocation22_spill] sm:$0xff]  ;;  %v11783_v44 = vld [vmem:[#allocation28_spill] sm:$0xff]  ;;  %v11787_v55 = vld [vmem:[#allocation95_spill] sm:$0xff] }
 0x35e   :  { %6971 = vtanh.f32 %v2887_v8  ;;  %v2842_v14 = vadd.f32 %v11779_v45, %v1296_v43  ;;  %v6950_v56 = vpop.eup %6949  ;;  %v11782_v29 = vld [vmem:[#allocation90_spill] sm:$0xff]  ;;  %v9310_v32 = vadd.f32 %v11784_v1, %v11783_v44  ;;  %v9315_v8 = vadd.f32 %v11787_v55, %v11786_v35  ;;  %v11788_v45 = vld [vmem:[#allocation19_spill] sm:$0xff]  ;;  %v11789_v43 = vld [vmem:[#allocation96_spill] sm:$0xff]  ;;  %v9327_v37 = vpop.f32.mrf.mxu1 }
 0x35f   :  { %v9262_v12 = vpop.f32.mrf.mxu0  ;;  %v9306_v16 = vadd.f32 %v11782_v29, %v11781_v18  ;;  %6973 = vtanh.f32 %v2890_v2  ;;  %v11785_v40 = vld [vmem:[#allocation182_spill] sm:$0xff]  ;;  %v6952_v30 = vpop.eup %6951  ;;  %v9319_v57 = vadd.f32 %v11789_v43, %v11788_v45  ;;  %v2952_v33 = vmul.f32 0.5, %v6942_v6  ;;  %v11791_v1 = vld [vmem:[#allocation97_spill] sm:$0xff]  ;;  %11792 = vst [vmem:[#allocation67_spill] sm:$0xff] %v9327_v37  ;;  %v11793_v43 = vld [vmem:[#allocation183_spill] sm:$0xff] }
 0x360   :  { %11762 = vst [vmem:[#allocation61_spill] sm:$0xff] %v9262_v12  ;;  %v2840_v19 = vadd.f32 %v11785_v40, %v1288_v52  ;;  %6975 = vtanh.f32 %v2888_v51  ;;  %v6954_v18 = vpop.eup %6953  ;;  %v9325_v44 = vadd.f32 %v11791_v1, %v11790_v3  ;;  %v2950_v2 = vmul.f32 0.5, %v6944_v36  ;;  %v11796_v1 = vld [vmem:[#allocation9_spill] sm:$0xff]  ;;  %v11797_v36 = vld [vmem:[#allocation99_spill] sm:$0xff]  ;;  %v11798_v3 = vld [vmem:[#allocation184_spill] sm:$0xff] }
 0x361   :  { %v9283_v17 = vpop.f32.mrf.mxu0  ;;  %6977 = vtanh.f32 %v2891_v34  ;;  %v2889_v52 = vmul.f32 0.5, %v2837_v13  ;;  %v6956_v40 = vpop.eup %6955  ;;  %v2953_v55 = vmul.f32 0.5, %v6946_v48  ;;  %v2951_v35 = vmul.f32 0.5, %v6948_v46  ;;  %v11800_v37 = vld [vmem:[#allocation100_spill] sm:$0xff] }
 0x362   :  { %v2894_v61 = vmul.f32 0.5, %v2842_v14  ;;  %v2843_v6 = vadd.f32 %v11793_v43, %v9217_v21  ;;  %v6958_v45 = vpop.eup %6957  ;;  %v9339_v34 = vadd.f32 %v11797_v36, %v11796_v1  ;;  %v2892_v13 = vmul.f32 0.5, %v2840_v19  ;;  %v11799_v14 = vld [vmem:[#allocation10_spill] sm:$0xff]  ;;  %v9351_v1 = vpop.f32.mrf.mxu1 }
 0x363   :  { %v9302_v11 = vpop.f32.mrf.mxu0  ;;  %v2841_v48 = vadd.f32 %v11798_v3, %v9226_v42  ;;  %v6960_v46 = vpop.eup %6959  ;;  %v9345_v58 = vadd.f32 %v11800_v37, %v11799_v14  ;;  %v9347_v21 = vadd.f32 0.5, %v2952_v33  ;;  %v2956_v43 = vmul.f32 0.5, %v6950_v56  ;;  %11801 = vst [vmem:[#allocation68_spill] sm:$0xff] %v9351_v1 }
 0x364   :  { %11780 = vst [vmem:[#allocation65_spill] sm:$0xff] %v9302_v11  ;;  %v2954_v4 = vmul.f32 0.5, %v6952_v30  ;;  %v6962_v50 = vpop.eup %6961  ;;  %v9349_v28 = vadd.f32 0.5, %v2950_v2  ;;  %v2957_v38 = vmul.f32 0.5, %v6954_v18  ;;  %6979 = vtanh.f32 %v2889_v52 }
 0x365   :  { %v9321_v29 = vpop.f32.mrf.mxu0  ;;  %v6964_v19 = vpop.eup %6963  ;;  %v9353_v3 = vadd.f32 0.5, %v2953_v55  ;;  %v9355_v42 = vadd.f32 0.5, %v2951_v35  ;;  %6981 = vtanh.f32 %v2894_v61  ;;  %v2895_v37 = vmul.f32 0.5, %v2843_v6 }
 0x366   :  { %v6966_v56 = vpop.eup %6965  ;;  %v2955_v30 = vmul.f32 0.5, %v6956_v40  ;;  %v2960_v14 = vmul.f32 0.5, %v6958_v45  ;;  %6983 = vtanh.f32 %v2892_v13  ;;  %v2893_v2 = vmul.f32 0.5, %v2841_v48  ;;  %v9368_v45 = vpop.f32.mrf.mxu1 }
 0x367   :  { %v9331_v51 = vpop.f32.mrf.mxu0  ;;  %v9359_v12 = vadd.f32 0.5, %v2956_v43  ;;  %v9361_v18 = vadd.f32 0.5, %v2954_v4  ;;  %v9365_v52 = vadd.f32 0.5, %v2957_v38  ;;  %v2958_v61 = vmul.f32 0.5, %v6960_v46 }
 0x368   :  { %v6968_v35 = vpop.eup %6967  ;;  %v2961_v55 = vmul.f32 0.5, %v6962_v50  ;;  %v2959_v13 = vmul.f32 0.5, %v6964_v19  ;;  %v2964_v48 = vmul.f32 0.5, %v6966_v56  ;;  %v2898_v4 = vmul.f32 0.5, %v9160_v59 }
 0x369   :  { %v6412_v11 = vpop.f32.mrf.mxu0  ;;  %v6970_v40 = vpop.eup %6969  ;;  %v2963_v50 = vmul.f32 0.5, %v6968_v35  ;;  %v9378_v56 = vadd.f32 0.5, %v2958_v61 }
 0x36a   :  { %v2859_v36 = vadd.f32 %v6412_v11, %v1363_v27  ;;  %v2844_v11 = vadd.f32 %v9162_v9, %v9230_v47  ;;  %v9371_v9 = vadd.f32 0.5, %v2955_v30  ;;  %v9373_v47 = vadd.f32 0.5, %v2960_v14 }
 0x36b   :  { %v9357_v33 = vpop.f32.mrf.mxu0  ;;  %v6972_v1 = vpop.eup %6971  ;;  %v9380_v59 = vadd.f32 0.5, %v2961_v55  ;;  %v3002_v55 = vadd.f32 0.5, %v2963_v50 }
 0x36c   :  { %6985 = vtanh.f32 %v2859_v36  ;;  %v6974_v46 = vpop.eup %6973  ;;  %v2845_v36 = vadd.f32 %v9182_v24, %v9234_v41  ;;  %v2962_v41 = vmul.f32 0.5, %v6970_v40  ;;  %v2965_v35 = vmul.f32 0.5, %v6972_v1 }
 0x36d   :  { %v6415_v27 = vpop.f32.mrf.mxu0  ;;  %6987 = vtanh.f32 %v2895_v37  ;;  %v6976_v37 = vpop.eup %6975  ;;  %v2902_v1 = vmul.f32 0.5, %v9200_v20 }
 0x36e   :  { %v2862_v6 = vadd.f32 %v6415_v27, %v9281_v10  ;;  %6989 = vtanh.f32 %v2893_v2  ;;  %v2896_v10 = vmul.f32 0.5, %v2844_v11  ;;  %v6978_v30 = vpop.eup %6977  ;;  %v9383_v2 = vpop.f32.mrf.mxu1  ;;  %v3003_v27 = vadd.f32 0.5, %v2964_v48 }
 0x36f   :  { %v2773_v43 = vpop.f32.mrf.mxu0  ;;  %11802 = vst [vmem:[#allocation69_spill] sm:$0xff] %v9383_v2  ;;  %v2899_v11 = vmul.f32 0.5, %v9173_v49  ;;  %v11803_v49 = vld [vmem:[#allocation45_spill] sm:$0xff]  ;;  %v9396_v50 = vadd.f32 0.5, %v2962_v41 }
 0x370   :  { %v2860_v38 = vadd.f32 %v2773_v43, %v9287_v53  ;;  %6991 = vtanh.f32 %v2862_v6  ;;  %v9385_v53 = vadd.f32 0.5, %v2959_v13  ;;  %v2968_v6 = vmul.f32 0.5, %v6974_v46 }
 0x371   :  { %v6416_v19 = vpop.f32.mrf.mxu0  ;;  %v2897_v43 = vmul.f32 0.5, %v2845_v36  ;;  %v6980_v48 = vpop.eup %6979  ;;  %v3042_v2 = vmul.f32 %v3003_v27, %v11803_v49  ;;  %v2900_v27 = vmul.f32 0.5, %v9204_v23 }
 0x372   :  { %6993 = vtanh.f32 %v2860_v38  ;;  %v2863_v14 = vadd.f32 %v6416_v19, %v9293_v22  ;;  %v2966_v38 = vmul.f32 0.5, %v6976_v37  ;;  %v2969_v19 = vmul.f32 0.5, %v6978_v30  ;;  %v6982_v46 = vpop.eup %6981  ;;  %v11804_v37 = vld [vmem:[#allocation80_spill] sm:$0xff] }
 0x373   :  { %6995 = vtanh.f32 %v2898_v4  ;;  %v2776_v24 = vpop.f32.mrf.mxu0  ;;  %v9390_v4 = vpop.f32.mrf.mxu1  ;;  %v3007_v30 = vadd.f32 0.5, %v2968_v6  ;;  %v2967_v41 = vmul.f32 0.5, %v6980_v48  ;;  %v11805_v6 = vld [vmem:[#allocation84_spill] sm:$0xff]  ;;  %v2972_v23 = vmul.f32 0.5, %v6982_v46 }
 0x374   :  { %6997 = vtanh.f32 %v2863_v14  ;;  %v2861_v61 = vadd.f32 %v2776_v24, %v9297_v15  ;;  %v2849_v15 = vadd.f32 %v9222_v25, %v9238_v0  ;;  %v3041_v14 = vmul.f32 %v3002_v55, %v11804_v37 }
 0x375   :  { %6999 = vtanh.f32 %v2896_v10  ;;  %v6419_v22 = vpop.f32.mrf.mxu0  ;;  %v3004_v10 = vadd.f32 0.5, %v2965_v35  ;;  %v3005_v24 = vadd.f32 0.5, %v2966_v38  ;;  %v9402_v0 = vpop.f32.mrf.mxu1 }
 0x376   :  { %7001 = vtanh.f32 %v2861_v61  ;;  %v2866_v13 = vadd.f32 %v6419_v22, %v9306_v16  ;;  %v6984_v16 = vpop.eup %6983  ;;  %v3008_v61 = vadd.f32 0.5, %v2969_v19  ;;  %v2901_v35 = vmul.f32 0.5, %v2849_v15 }
 0x377   :  { %7003 = vtanh.f32 %v2899_v11  ;;  %v2789_v40 = vpop.f32.mrf.mxu0 }
 0x378   :  { %7005 = vtanh.f32 %v2866_v13  ;;  %v2864_v36 = vadd.f32 %v2789_v40, %v9310_v32  ;;  %v11806_v13 = vld [vmem:[#allocation46_spill] sm:$0xff] }
 0x379   :  { %7007 = vtanh.f32 %v2897_v43  ;;  %v6420_v11 = vpop.f32.mrf.mxu0  ;;  %v6986_v20 = vpop.eup %6985  ;;  %v3043_v43 = vmul.f32 %v3004_v10, %v11805_v6  ;;  %v9410_v49 = vmul.f32 %v3007_v30, %v11806_v13  ;;  %v2903_v30 = vmul.f32 0.5, %v9211_v31 }
 0x37a   :  { %7009 = vtanh.f32 %v2864_v36  ;;  %v2867_v25 = vadd.f32 %v6420_v11, %v9315_v8  ;;  %v3054_v32 = vmul.f32 %v6986_v20, %v9349_v28  ;;  %v9405_v55 = vpop.eup %6987  ;;  %v2970_v8 = vmul.f32 0.5, %v6984_v16  ;;  %v11808_v28 = vld [vmem:[#allocation44_spill] sm:$0xff] }
 0x37b   :  { %7011 = vtanh.f32 %v2902_v1  ;;  %v2792_v22 = vpop.f32.mrf.mxu0  ;;  %v6990_v19 = vpop.eup %6989  ;;  %v3044_v40 = vmul.f32 %v3005_v24, %v11808_v28  ;;  %v11809_v36 = vld [vmem:[#allocation92_spill] sm:$0xff]  ;;  %v3006_v11 = vadd.f32 0.5, %v2967_v41  ;;  %v3011_v20 = vadd.f32 0.5, %v2972_v23  ;;  %v11812_v23 = vld [vmem:[#allocation83_spill] sm:$0xff]  ;;  %v11814_v28 = vld [vmem:[#allocation93_spill] sm:$0xff] }
 0x37c   :  { %7013 = vtanh.f32 %v2867_v25  ;;  %v2865_v38 = vadd.f32 %v2792_v22, %v9319_v57  ;;  %v9412_v48 = vadd.f32 %v3054_v32, %v3041_v14  ;;  %v9416_v37 = vmul.f32 %v3008_v61, %v11809_v36  ;;  %v9419_v57 = vpop.f32.mrf.mxu1 }
 0x37d   :  { %7015 = vtanh.f32 %v2900_v27  ;;  %v6423_v1 = vpop.f32.mrf.mxu0  ;;  %v6992_v15 = vpop.eup %6991  ;;  %v3009_v32 = vadd.f32 0.5, %v2970_v8  ;;  %v2971_v13 = vmul.f32 0.5, %v6990_v19 }
 0x37e   :  { %11807 = vst [vmem:[#allocation70_spill] sm:$0xff] %v9412_v48  ;;  %7017 = vtanh.f32 %v2865_v38  ;;  %v2870_v46 = vadd.f32 %v6423_v1, %v9325_v44  ;;  %v3057_v16 = vmul.f32 %v6992_v15, %v9353_v3  ;;  %v2854_v44 = vadd.f32 %v9241_v26, %v9245_v62  ;;  %v11813_v1 = vld [vmem:[#allocation87_spill] sm:$0xff] }
 0x37f   :  { %v6994_v10 = vpop.eup %6993  ;;  %7019 = vtanh.f32 %v2901_v35  ;;  %v2805_v14 = vpop.f32.mrf.mxu0  ;;  %v3045_v38 = vmul.f32 %v3006_v11, %v11812_v23  ;;  %v2855_v26 = vadd.f32 %v9283_v17, %v9253_v60  ;;  %v11820_v23 = vld [vmem:[#allocation61_spill] sm:$0xff] }
 0x380   :  { %v6996_v27 = vpop.eup %6995  ;;  %v3055_v24 = vmul.f32 %v6994_v10, %v9355_v42  ;;  %7021 = vtanh.f32 %v2870_v46  ;;  %v2868_v61 = vadd.f32 %v2805_v14, %v9335_v63  ;;  %v9428_v41 = vadd.f32 %v3057_v16, %v3044_v40  ;;  %v9434_v63 = vpop.f32.mrf.mxu1 }
 0x381   :  { %v6998_v25 = vpop.eup %6997  ;;  %7023 = vtanh.f32 %v9412_v48  ;;  %v6424_v31 = vpop.f32.mrf.mxu0  ;;  %v3048_v40 = vmul.f32 %v3009_v32, %v11814_v28  ;;  %v2906_v19 = vmul.f32 0.5, %v2854_v44  ;;  %v2858_v16 = vadd.f32 %v9321_v29, %v9266_v5  ;;  %v11918_v48 = vld [vmem:[#allocation157_spill] sm:$0xff] }
 0x382   :  { %11810 = vst [vmem:[#allocation71_spill] sm:$0xff] %v9428_v41  ;;  %v7000_v35 = vpop.eup %6999  ;;  %v9430_v3 = vadd.f32 %v3055_v24, %v3042_v2  ;;  %v3058_v22 = vmul.f32 %v6998_v25, %v9361_v18  ;;  %7025 = vtanh.f32 %v2868_v61  ;;  %v2871_v42 = vadd.f32 %v6424_v31, %v9339_v34 }
 0x383   :  { %v7002_v6 = vpop.eup %7001  ;;  %7027 = vtanh.f32 %v2903_v30  ;;  %v2808_v62 = vpop.f32.mrf.mxu0  ;;  %v9440_v2 = vmul.f32 %v3011_v20, %v11813_v1  ;;  %v2974_v36 = vmul.f32 0.5, %v7000_v35  ;;  %v2856_v20 = vadd.f32 %v9331_v51, %v9270_v39  ;;  %v11823_v1 = vld [vmem:[#allocation48_spill] sm:$0xff] }
 0x384   :  { %11811 = vst [vmem:[#allocation73_spill] sm:$0xff] %v9430_v3  ;;  %v7004_v8 = vpop.eup %7003  ;;  %7029 = vtanh.f32 %v9430_v3  ;;  %v3056_v18 = vmul.f32 %v7002_v6, %v9347_v21  ;;  %v2869_v34 = vadd.f32 %v2808_v62, %v9345_v58  ;;  %v9447_v60 = vadd.f32 %v3058_v22, %v3045_v38  ;;  %v9452_v30 = vpop.f32.mrf.mxu1  ;;  %v11819_v22 = vld [vmem:[#allocation89_spill] sm:$0xff] }
 0x385   :  { %v7006_v15 = vpop.eup %7005  ;;  %7031 = vtanh.f32 %v2871_v42  ;;  %v3010_v21 = vadd.f32 0.5, %v2971_v13  ;;  %v2907_v58 = vmul.f32 0.5, %v2855_v26  ;;  %v2973_v61 = vmul.f32 0.5, %v9405_v55  ;;  %v11821_v38 = vld [vmem:[#allocation57_spill] sm:$0xff] }
 0x386   :  { %v7008_v46 = vpop.eup %7007  ;;  %7033 = vtanh.f32 %v9428_v41  ;;  %11815 = vst [vmem:[#allocation75_spill] sm:$0xff] %v9447_v60  ;;  %v9449_v17 = vadd.f32 %v3056_v18, %v3043_v43  ;;  %v3061_v10 = vmul.f32 %v7006_v15, %v9365_v52  ;;  %v2976_v25 = vmul.f32 0.5, %v6996_v27  ;;  %v9470_v31 = vpop.f32.mrf.mxu1  ;;  %v11822_v13 = vld [vmem:[#allocation65_spill] sm:$0xff] }
 0x387   :  { %v7010_v11 = vpop.eup %7009  ;;  %7035 = vtanh.f32 %v2869_v34  ;;  %v2857_v32 = vadd.f32 %v9357_v33, %v9277_v7  ;;  %v3013_v29 = vadd.f32 0.5, %v2974_v36  ;;  %v2975_v35 = vmul.f32 0.5, %v7008_v46 }
 0x388   :  { %11816 = vst [vmem:[#allocation76_spill] sm:$0xff] %v9449_v17  ;;  %v7012_v14 = vpop.eup %7011  ;;  %7037 = vtanh.f32 %v9449_v17  ;;  %v9459_v24 = vadd.f32 %v3061_v10, %v3048_v40  ;;  %v3059_v43 = vmul.f32 %v7010_v11, %v9371_v9  ;;  %v2977_v9 = vmul.f32 0.5, %v7004_v8  ;;  %v9486_v40 = vpop.f32.mrf.mxu1  ;;  %v11916_v17 = vld [vmem:[#allocation52_spill] sm:$0xff] }
 0x389   :  { %v7014_v52 = vpop.eup %7013  ;;  %7039 = vtanh.f32 %v2906_v19  ;;  %v2910_v55 = vmul.f32 0.5, %v2858_v16  ;;  %v3049_v42 = vmul.f32 %v3010_v21, %v11819_v22  ;;  %v2908_v7 = vmul.f32 0.5, %v2856_v20  ;;  %v11829_v22 = vld [vmem:[#allocation91_spill] sm:$0xff] }
 0x38a   :  { %11817 = vst [vmem:[#allocation77_spill] sm:$0xff] %v9459_v24  ;;  %v7016_v5 = vpop.eup %7015  ;;  %7041 = vtanh.f32 %v9447_v60  ;;  %v9467_v39 = vadd.f32 %v3059_v43, %v9410_v49  ;;  %v3062_v51 = vmul.f32 %v7014_v52, %v9378_v56  ;;  %v3015_v49 = vadd.f32 0.5, %v2976_v25 }
 0x38b   :  { %v7018_v44 = vpop.eup %7017  ;;  %7043 = vtanh.f32 %v2907_v58  ;;  %v2852_v56 = vadd.f32 %v11820_v23, %v9249_v54  ;;  %v2853_v26 = vadd.f32 %v11822_v13, %v11821_v38  ;;  %v2909_v62 = vmul.f32 0.5, %v2857_v32 }
 0x38c   :  { %11818 = vst [vmem:[#allocation78_spill] sm:$0xff] %v9467_v39  ;;  %v7020_v27 = vpop.eup %7019  ;;  %7045 = vtanh.f32 %v9467_v39  ;;  %v3060_v33 = vmul.f32 %v7018_v44, %v9359_v12  ;;  %v3052_v18 = vmul.f32 %v3013_v29, %v11823_v1  ;;  %v9480_v34 = vadd.f32 %v3062_v51, %v3049_v42  ;;  %v11828_v29 = vld [vmem:[#allocation88_spill] sm:$0xff]  ;;  %v11915_v39 = vld [vmem:[#allocation43_spill] sm:$0xff] }
 0x38d   :  { %v7022_v6 = vpop.eup %7021  ;;  %v3016_v36 = vadd.f32 0.5, %v2977_v9  ;;  %v3014_v19 = vadd.f32 0.5, %v2975_v35  ;;  %v2978_v54 = vmul.f32 0.5, %v7016_v5  ;;  %7047 = vtanh.f32 %v2910_v55  ;;  %v9495_v5 = vpop.f32.mrf.mxu1 }
 0x38e   :  { %v7024_v8 = vpop.eup %7023  ;;  %11824 = vst [vmem:[#allocation79_spill] sm:$0xff] %v9480_v34  ;;  %v9483_v15 = vadd.f32 %v3060_v33, %v9416_v37  ;;  %v3065_v28 = vmul.f32 %v7022_v6, %v9380_v59  ;;  %v2979_v10 = vmul.f32 0.5, %v7020_v27  ;;  %7049 = vtanh.f32 %v2908_v7 }
 0x38f   :  { %v7026_v12 = vpop.eup %7025  ;;  %v3012_v16 = vadd.f32 0.5, %v2973_v61  ;;  %v2904_v37 = vmul.f32 0.5, %v2852_v56  ;;  %v2905_v20 = vmul.f32 0.5, %v2853_v26  ;;  %7051 = vtanh.f32 %v2909_v62  ;;  %v9507_v23 = vpop.f32.mrf.mxu1 }
 0x390   :  { %11825 = vst [vmem:[#allocation81_spill] sm:$0xff] %v9483_v15  ;;  %v7028_v46 = vpop.eup %7027  ;;  %v9488_v11 = vadd.f32 %v3065_v28, %v3052_v18  ;;  %v3063_v21 = vmul.f32 %v7026_v12, %v9385_v53  ;;  %7053 = vtanh.f32 %v9480_v34  ;;  %v3093_v52 = vmul.f32 %v7024_v8, %v3015_v49 }
 0x391   :  { %v7030_v58 = vpop.eup %7029  ;;  %v3053_v51 = vmul.f32 %v3014_v19, %v11828_v29  ;;  %v2980_v44 = vmul.f32 0.5, %v7012_v14  ;;  %v3017_v53 = vadd.f32 0.5, %v2978_v54  ;;  %v2981_v35 = vmul.f32 0.5, %v7028_v46  ;;  %v9515_v18 = vpop.f32.mrf.mxu1 }
 0x392   :  { %11826 = vst [vmem:[#allocation82_spill] sm:$0xff] %v9488_v11  ;;  %v7032_v59 = vpop.eup %7031  ;;  %v9493_v43 = vadd.f32 %v3063_v21, %v9440_v2  ;;  %v3094_v25 = vmul.f32 %v7030_v58, %v3016_v36  ;;  %v3018_v55 = vadd.f32 0.5, %v2979_v10  ;;  %v3051_v42 = vmul.f32 %v3012_v16, %v11829_v22 }
 0x393   :  { %v7034_v32 = vpop.eup %7033  ;;  %v3066_v61 = vmul.f32 %v7032_v59, %v9396_v50  ;;  %v3019_v13 = vadd.f32 0.5, %v2980_v44  ;;  %v3020_v26 = vadd.f32 0.5, %v2981_v35  ;;  %v9518_v21 = vpop.f32.mrf.mxu1 }
 0x394   :  { %11827 = vst [vmem:[#allocation85_spill] sm:$0xff] %v9493_v43  ;;  %v7036_v9 = vpop.eup %7035  ;;  %7055 = vtanh.f32 %v9493_v43  ;;  %v9500_v27 = vpack.c.bf16 %v3094_v25, %v3093_v52  ;;  %v3096_v50 = vmul.f32 %v7034_v32, %v3018_v55 }
 0x395   :  { %v7038_v2 = vpop.eup %7037  ;;  %7057 = vtanh.f32 %v2904_v37  ;;  %v9503_v7 = vadd.f32 %v3066_v61, %v3053_v51  ;;  %v3064_v33 = vmul.f32 %v7036_v9, %v9373_v47  ;;  %v9521_v44 = vpop.f32.mrf.mxu1 }
 0x396   :  { %v7040_v6 = vpop.eup %7039  ;;  %7059 = vtanh.f32 %v9488_v11  ;;  %v3095_v14 = vmul.f32 %v7038_v2, %v3017_v53  ;;  %v11911_v11 = vld [vmem:[#allocation149_spill] sm:$0xff] }
 0x397   :  { %11830 = vst [vmem:[#allocation47_spill] sm:$0xff] %v9503_v7  ;;  %v7042_v49 = vpop.eup %7041  ;;  %7061 = vtanh.f32 %v9503_v7  ;;  %v9510_v56 = vadd.f32 %v3064_v33, %v3051_v42  ;;  %v2984_v12 = vmul.f32 0.5, %v7040_v6  ;;  %v9523_v33 = vpop.f32.mrf.mxu1  ;;  %v11910_v7 = vld [vmem:[#allocation18_spill] sm:$0xff] }
 0x398   :  { %v7044_v38 = vpop.eup %7043  ;;  %7063 = vtanh.f32 %v2905_v20  ;;  %v9512_v62 = vpack.c.bf16 %v3096_v50, %v3095_v14  ;;  %v3097_v47 = vmul.f32 %v7042_v49, %v3019_v13  ;;  %v1470_v34 = vadd.f32 %v11911_v11, %v11910_v7  ;;  %v11922_v7 = vld [vmem:[#allocation5_spill] sm:$0xff] }
 0x399   :  { %11831 = vst [vmem:[#allocation86_spill] sm:$0xff] %v9510_v56  ;;  %v7046_v8 = vpop.eup %7045  ;;  %7065 = vtanh.f32 %v9510_v56  ;;  %v2985_v36 = vmul.f32 0.5, %v7044_v38  ;;  %v3023_v16 = vadd.f32 0.5, %v2984_v12 }
 0x39a   :  { %v3098_v1 = vmul.f32 %v7046_v8, %v3020_v26  ;;  %v7048_v28 = vpop.eup %7047  ;;  %7067 = vtanh.f32 %v9483_v15 }
 0x39b   :  { %v7050_v54 = vpop.eup %7049  ;;  %v2988_v58 = vmul.f32 0.5, %v7048_v28  ;;  %7069 = vtanh.f32 %v9459_v24  ;;  %v3024_v37 = vadd.f32 0.5, %v2985_v36 }
 0x39c   :  { %v3108_v19 = vpack.c.bf16 %v3098_v1, %v3097_v47  ;;  %v7052_v46 = vpop.eup %7051  ;;  %v2986_v59 = vmul.f32 0.5, %v7050_v54  ;;  %v9527_v47 = vpop.f32.mrf.mxu1 }
 0x39d   :  { %v7054_v10 = vpop.eup %7053  ;;  %v2987_v52 = vmul.f32 0.5, %v7052_v46  ;;  %v3027_v53 = vadd.f32 0.5, %v2988_v58 }
 0x39e   :  { %v3101_v32 = vmul.f32 %v7054_v10, %v3023_v16  ;;  %v3025_v55 = vadd.f32 0.5, %v2986_v59  ;;  %v9529_v54 = vpop.f32.mrf.mxu1 }
 0x39f   :  { %v3026_v2 = vadd.f32 0.5, %v2987_v52  ;;  %v7461_v52 = vld [vmem:[%s11338_s4 + $0x8] sm:$0xff]  }
 0x3a0   :  { %v9531_v58 = vpop.f32.mrf.mxu1 }
 0x3a1   :  { %v7056_v20 = vpop.eup %7055 }
 0x3a2   :  { %v7058_v25 = vpop.eup %7057  ;;  %v3102_v29 = vmul.f32 %v7056_v20, %v3024_v37  ;;  %v9533_v16 = vpop.f32.mrf.mxu1 }
 0x3a3   :  { %v7060_v51 = vpop.eup %7059  ;;  %v2982_v6 = vmul.f32 0.5, %v7058_v25  ;;  %11832 = vst [vmem:[#allocation180_spill] sm:$0xff] %v9533_v16 }
 0x3a4   :  { %v7062_v61 = vpop.eup %7061  ;;  %v3110_v9 = vpack.c.bf16 %v3102_v29, %v3101_v32  ;;  %v3104_v49 = vmul.f32 %v7060_v51, %v3026_v2  ;;  %v9535_v37 = vpop.f32.mrf.mxu1  ;;  %v7464_v32 = vld [vmem:[%s11338_s4 + $0x20] sm:$0xff]  }
 0x3a5   :  { %v7064_v35 = vpop.eup %7063  ;;  %v3105_v22 = vmul.f32 %v7062_v61, %v3027_v53  ;;  %v3021_v1 = vadd.f32 0.5, %v2982_v6  ;;  %11833 = vst [vmem:[#allocation90_spill] sm:$0xff] %v9535_v37  ;;  %v7465_v53 = vld [vmem:[%s11338_s4 + $0x28] sm:$0xff]   ;;  %v7466_v61 = vld [vmem:[%s11338_s4 + $0x30] sm:$0xff]   ;;  %v7468_v2 = vld [vmem:[%s11338_s4 + $0x40] sm:$0xff]  }
 0x3a6   :  { %v7066_v42 = vpop.eup %7065  ;;  %v2983_v38 = vmul.f32 0.5, %v7064_v35  ;;  %v9539_v20 = vpop.f32.mrf.mxu1  ;;  %v7469_v6 = vld [vmem:[%s11338_s4 + $0x48] sm:$0xff]  }
 0x3a7   :  { %v3112_v14 = vpack.c.bf16 %v3105_v22, %v3105_v22  ;;  %v3103_v50 = vmul.f32 %v7066_v42, %v3025_v55  ;;  %v7068_v8 = vpop.eup %7067  ;;  %11834 = vst [vmem:[#allocation94_spill] sm:$0xff] %v9539_v20  ;;  %v7467_v55 = vld [vmem:[%s11338_s4 + $0x38] sm:$0xff]  }
 0x3a8   :  { %v7070_v28 = vpop.eup %7069  ;;  %v3022_v12 = vadd.f32 0.5, %v2983_v38  ;;  %v3099_v36 = vmul.f32 %v7068_v8, %v3021_v1  ;;  %v9543_v59 = vpop.f32.mrf.mxu1  ;;  %v7471_v38 = vld [vmem:[%s11338_s4 + $0x58] sm:$0xff]   ;;  %v7473_v1 = vld [vmem:[%s11338_s4 + $0x68] sm:$0xff]  }
 0x3a9   :  { %6774 = vmatprep.subr.msk.bf16.mxu1 %vm936_vm3, %v3112_v14  ;;  %v3114_v13 = vsel %vm936_vm3, %v3112_v14, 0  ;;  %v3111_v26 = vpack.c.bf16 %v3104_v49, %v3103_v50  ;;  %11835 = vst [vmem:[#allocation182_spill] sm:$0xff] %v9543_v59  ;;  %v7470_v14 = vld [vmem:[%s11338_s4 + $0x50] sm:$0xff]  }
 0x3aa   :  { %6426 = vmatpush3.bf16.msra.mxu1 %v3114_v13  ;;  %v3100_v46 = vmul.f32 %v7070_v28, %v3022_v12  ;;  %v7472_v13 = vld [vmem:[%s11338_s4 + $0x60] sm:$0xff]   ;;  %v7474_v28 = vld [vmem:[%s11338_s4 + $0x70] sm:$0xff]  }
 0x3ab   :  { %6427 = vmatprep.subr.bf16.mxu1 %v3111_v26 }
 0x3ac   :  { %v3109_v10 = vpack.c.bf16 %v3100_v46, %v3099_v36  ;;  %v7475_v46 = vld [vmem:[%s11338_s4 + $0x78] sm:$0xff]  }
 0x3ae   :  { %6428 = vmatpush3.bf16.msra.mxu1 %v3111_v26 }
 0x3af   :  { %6429 = vmatprep.subr.bf16.mxu1 %v3110_v9 }
 0x3b2   :  { %6430 = vmatpush3.bf16.msra.mxu1 %v3110_v9 }
 0x3b3   :  { %6431 = vmatprep.subr.bf16.mxu1 %v3109_v10 }
 0x3b6   :  { %6432 = vmatpush3.bf16.msra.mxu1 %v3109_v10  ;;  %v7476_v10 = vld [vmem:[%s11338_s4 + $0x80] sm:$0xff]  }
 0x3b7   :  { %6433 = vmatprep.subr.bf16.mxu1 %v3108_v19 }
 0x3ba   :  { %6434 = vmatpush3.bf16.msra.mxu1 %v3108_v19  ;;  %v7462_v19 = vld [vmem:[%s11338_s4 + $0x10] sm:$0xff]  }
 0x3bb   :  { %6435 = vmatprep.subr.bf16.mxu1 %v9512_v62 }
 0x3be   :  { %6436 = vmatpush3.bf16.msra.mxu1 %v9512_v62  ;;  %v9553_v62 = vpop.f32.mrf.mxu1 }
 0x3bf   :  { %6437 = vmatprep.subr.bf16.mxu1 %v9500_v27  ;;  %11836 = vst [vmem:[#allocation95_spill] sm:$0xff] %v9553_v62  ;;  %v11899_v62 = vld [vmem:[#allocation170_spill] sm:$0xff] }
 0x3c0   :  { %v9555_v25 = vpop.f32.mrf.mxu1 }
 0x3c1   :  { %11837 = vst [vmem:[#allocation96_spill] sm:$0xff] %v9555_v25 }
 0x3c2   :  { %6438 = vmatpush3.bf16.msra.mxu1 %v9500_v27  ;;  %v7463_v27 = vld [vmem:[%s11338_s4 + $0x18] sm:$0xff]   ;;  %v9565_v29 = vpop.f32.mrf.mxu1 }
 0x3c3   :  { %11838 = vst [vmem:[#allocation97_spill] sm:$0xff] %v9565_v29  ;;  %v11897_v29 = vld [vmem:[#allocation165_spill] sm:$0xff] }
 0x3c4   :  { %v9567_v51 = vpop.f32.mrf.mxu1 }
 0x3c5   :  { %6440 = vmatmul.mubr.msk.bf16.vlgmr.msra.gmra.mxu1 %vm2497_vm4, %v7461_v52  ;;  %11839 = vst [vmem:[#allocation183_spill] sm:$0xff] %v9567_v51 }
 0x3c6   :  { %6443 = vmatprep.mubr.msk.bf16.mxu1 %vm2497_vm4, %v7462_v19  ;;  %v9577_v9 = vpop.f32.mrf.mxu1 }
 0x3c7   :  { %11840 = vst [vmem:[#allocation98_spill] sm:$0xff] %v9577_v9 }
 0x3c8   :  { %v9579_v35 = vpop.f32.mrf.mxu1 }
 0x3c9   :  { %11841 = vst [vmem:[#allocation99_spill] sm:$0xff] %v9579_v35 }
 0x3ca   :  { %v9589_v22 = vpop.f32.mrf.mxu1 }
 0x3cb   :  { %11842 = vst [vmem:[#allocation184_spill] sm:$0xff] %v9589_v22  ;;  %v11895_v22 = vld [vmem:[#allocation160_spill] sm:$0xff] }
 0x3cc   :  { %v9591_v42 = vpop.f32.mrf.mxu1 }
 0x3cd   :  { %6444 = vmatmul.mubr.msk.bf16.gmra.mxu1 %vm2497_vm4, %v7463_v27  ;;  %11843 = vst [vmem:[#allocation100_spill] sm:$0xff] %v9591_v42  ;;  %v7477_v27 = vld [vmem:[%s11338_s4 + $0x88] sm:$0xff]  }
 0x3ce   :  { %6447 = vmatprep.mubr.msk.bf16.mxu1 %vm2497_vm4, %v7464_v32  ;;  %v9601_v50 = vpop.f32.mrf.mxu1  ;;  %v7478_v32 = vld [vmem:[%s11338_s4 + $0x90] sm:$0xff]  }
 0x3cf   :  { %11844 = vst [vmem:[#allocation45_spill] sm:$0xff] %v9601_v50 }
 0x3d0   :  { %v9603_v49 = vpop.f32.mrf.mxu1 }
 0x3d1   :  { %11845 = vst [vmem:[#allocation80_spill] sm:$0xff] %v9603_v49 }
 0x3d2   :  { %v9613_v26 = vpop.f32.mrf.mxu1 }
 0x3d3   :  { %11846 = vst [vmem:[#allocation84_spill] sm:$0xff] %v9613_v26 }
 0x3d4   :  { %v9615_v8 = vpop.f32.mrf.mxu1 }
 0x3d5   :  { %6448 = vmatmul.mubr.msk.bf16.gmra.mxu1 %vm2497_vm4, %v7465_v53  ;;  %11847 = vst [vmem:[#allocation46_spill] sm:$0xff] %v9615_v8  ;;  %v11886_v8 = vld [vmem:[#allocation24_spill] sm:$0xff] }
 0x3d6   :  { %6451 = vmatprep.mubr.msk.bf16.mxu1 %vm2497_vm4, %v7466_v61  ;;  %v9625_v12 = vpop.f32.mrf.mxu1 }
 0x3d7   :  { %11848 = vst [vmem:[#allocation44_spill] sm:$0xff] %v9625_v12 }
 0x3d8   :  { %v9627_v36 = vpop.f32.mrf.mxu1 }
 0x3d9   :  { %11849 = vst [vmem:[#allocation92_spill] sm:$0xff] %v9627_v36 }
 0x3da   :  { %v9637_v52 = vpop.f32.mrf.mxu1 }
 0x3db   :  { %11850 = vst [vmem:[#allocation83_spill] sm:$0xff] %v9637_v52  ;;  %v11890_v52 = vld [vmem:[#allocation14_spill] sm:$0xff] }
 0x3dc   :  { %v9639_v19 = vpop.f32.mrf.mxu1 }
 0x3dd   :  { %6452 = vmatmul.mubr.msk.bf16.gmra.mxu1 %vm2497_vm4, %v7467_v55  ;;  %11851 = vst [vmem:[#allocation87_spill] sm:$0xff] %v9639_v19  ;;  %v7479_v55 = vld [vmem:[%s11338_s4 + $0x98] sm:$0xff]  }
 0x3de   :  { %6455 = vmatprep.mubr.msk.bf16.mxu1 %vm2497_vm4, %v7468_v2  ;;  %v9649_v53 = vpop.f32.mrf.mxu1  ;;  %v7480_v2 = vld [vmem:[%s11338_s4 + $0xa0] sm:$0xff]  }
 0x3df   :  { %11852 = vst [vmem:[#allocation93_spill] sm:$0xff] %v9649_v53 }
 0x3e0   :  { %v9651_v61 = vpop.f32.mrf.mxu1 }
 0x3e1   :  { %11853 = vst [vmem:[#allocation89_spill] sm:$0xff] %v9651_v61 }
 0x3e5   :  { %6456 = vmatmul.mubr.msk.bf16.gmra.mxu1 %vm2497_vm4, %v7469_v6  ;;  %v9661_v6 = vpop.f32.mrf.mxu1 }
 0x3e6   :  { %6459 = vmatprep.mubr.msk.bf16.mxu1 %vm2497_vm4, %v7470_v14  ;;  %11854 = vst [vmem:[#allocation61_spill] sm:$0xff] %v9661_v6 }
 0x3e7   :  { %v9663_v14 = vpop.f32.mrf.mxu1 }
 0x3e8   :  { %11855 = vst [vmem:[#allocation57_spill] sm:$0xff] %v9663_v14 }
 0x3ed   :  { %6460 = vmatmul.mubr.msk.bf16.gmra.mxu1 %vm2497_vm4, %v7471_v38  ;;  %v7481_v38 = vld [vmem:[%s11338_s4 + $0xa8] sm:$0xff]  }
 0x3ee   :  { %6463 = vmatprep.mubr.msk.bf16.mxu1 %vm2497_vm4, %v7472_v13  ;;  %v7482_v13 = vld [vmem:[%s11338_s4 + $0xb0] sm:$0xff]  }
 0x3f5   :  { %6464 = vmatmul.mubr.msk.bf16.gmra.mxu1 %vm2497_vm4, %v7473_v1  ;;  %v9673_v1 = vpop.f32.mrf.mxu1 }
 0x3f6   :  { %6467 = vmatprep.mubr.msk.bf16.mxu1 %vm2497_vm4, %v7474_v28  ;;  %11856 = vst [vmem:[#allocation65_spill] sm:$0xff] %v9673_v1 }
 0x3f7   :  { %v9675_v28 = vpop.f32.mrf.mxu1 }
 0x3f8   :  { %11857 = vst [vmem:[#allocation48_spill] sm:$0xff] %v9675_v28 }
 0x3fd   :  { %6468 = vmatmul.mubr.msk.bf16.gmra.mxu1 %vm2497_vm4, %v7475_v46  ;;  %v7483_v46 = vld [vmem:[%s11338_s4 + $0xb8] sm:$0xff]  }
 0x3fe   :  { %6471 = vmatprep.mubr.msk.bf16.mxu1 %vm2497_vm4, %v7476_v10  ;;  %v7484_v10 = vld [vmem:[%s11338_s4 + $0xc0] sm:$0xff]  }
 0x405   :  { %6472 = vmatmul.mubr.msk.bf16.gmra.mxu1 %vm2497_vm4, %v7477_v27  ;;  %v9685_v27 = vpop.f32.mrf.mxu1 }
 0x406   :  { %6475 = vmatprep.mubr.msk.bf16.mxu1 %vm2497_vm4, %v7478_v32  ;;  %11858 = vst [vmem:[#allocation88_spill] sm:$0xff] %v9685_v27  ;;  %v11888_v27 = vld [vmem:[#allocation13_spill] sm:$0xff] }
 0x407   :  { %v9687_v32 = vpop.f32.mrf.mxu1 }
 0x408   :  { %11859 = vst [vmem:[#allocation91_spill] sm:$0xff] %v9687_v32 }
 0x40d   :  { %6476 = vmatmul.mubr.msk.bf16.gmra.mxu1 %vm2497_vm4, %v7479_v55  ;;  %v7485_v55 = vld [vmem:[%s11338_s4 + $0xc8] sm:$0xff]  }
 0x40e   :  { %6479 = vmatprep.mubr.msk.bf16.mxu1 %vm2497_vm4, %v7480_v2  ;;  %v7486_v2 = vld [vmem:[%s11338_s4] sm:$0xff]  }
 0x415   :  { %6480 = vmatmul.mubr.msk.bf16.gmra.mxu1 %vm2497_vm4, %v7481_v38  ;;  %v9697_v38 = vpop.f32.mrf.mxu1 }
 0x416   :  { %6483 = vmatprep.mubr.msk.bf16.mxu1 %vm2497_vm4, %v7482_v13  ;;  %11860 = vst [vmem:[#allocation185_spill] sm:$0xff] %v9697_v38 }
 0x417   :  { %v9699_v13 = vpop.f32.mrf.mxu1 }
 0x418   :  { %11861 = vst [vmem:[#allocation186_spill] sm:$0xff] %v9699_v13 }
 0x41d   :  { %6484 = vmatmul.mubr.msk.bf16.gmra.mxu1 %vm2497_vm4, %v7483_v46  ;;  %v9701_v46 = vpop.f32.mrf.mxu1 }
 0x41e   :  { %6487 = vmatprep.mubr.msk.bf16.mxu1 %vm2497_vm4, %v7484_v10  ;;  %11862 = vst [vmem:[#allocation187_spill] sm:$0xff] %v9701_v46 }
 0x41f   :  { %v9703_v10 = vpop.f32.mrf.mxu1 }
 0x420   :  { %11863 = vst [vmem:[#allocation188_spill] sm:$0xff] %v9703_v10 }
 0x421   :  { %v9705_v32 = vpop.f32.mrf.mxu1 }
 0x422   :  { %11864 = vst [vmem:[#allocation189_spill] sm:$0xff] %v9705_v32 }
 0x423   :  { %v9707_v28 = vpop.f32.mrf.mxu1 }
 0x424   :  { %11865 = vst [vmem:[#allocation190_spill] sm:$0xff] %v9707_v28 }
 0x425   :  { %6488 = vmatmul.mubr.msk.bf16.gmra.mxu1 %vm2497_vm4, %v7485_v55  ;;  %v9709_v14 = vpop.f32.mrf.mxu1 }
 0x426   :  { %6571 = vmatprep.mubr.msk.bf16.mxu1 %vm2497_vm4, %v7486_v2  ;;  %11866 = vst [vmem:[#allocation191_spill] sm:$0xff] %v9709_v14 }
 0x427   :  { %v9711_v55 = vpop.f32.mrf.mxu1 }
 0x428   :  { %11867 = vst [vmem:[#allocation192_spill] sm:$0xff] %v9711_v55 }
 0x429   :  { %v9713_v6 = vpop.f32.mrf.mxu1 }
 0x42a   :  { %11868 = vst [vmem:[#allocation193_spill] sm:$0xff] %v9713_v6 }
 0x42b   :  { %v9715_v61 = vpop.f32.mrf.mxu1 }
 0x42c   :  { %11869 = vst [vmem:[#allocation194_spill] sm:$0xff] %v9715_v61 }
 0x42d   :  { %v9717_v2 = vpop.f32.mrf.mxu1 }
 0x42e   :  { %11870 = vst [vmem:[#allocation195_spill] sm:$0xff] %v9717_v2 }
 0x42f   :  { %v9719_v38 = vpop.f32.mrf.mxu1 }
 0x430   :  { %11871 = vst [vmem:[#allocation196_spill] sm:$0xff] %v9719_v38 }
 0x431   :  { %v9721_v13 = vpop.f32.mrf.mxu1 }
 0x432   :  { %11872 = vst [vmem:[#allocation197_spill] sm:$0xff] %v9721_v13 }
 0x433   :  { %v9723_v46 = vpop.f32.mrf.mxu1 }
 0x434   :  { %11873 = vst [vmem:[#allocation198_spill] sm:$0xff] %v9723_v46  ;;  %v11884_v46 = vld [vmem:[#allocation21_spill] sm:$0xff] }
 0x435   :  { %v9725_v10 = vpop.f32.mrf.mxu1 }
 0x436   :  { %11874 = vst [vmem:[#allocation199_spill] sm:$0xff] %v9725_v10  ;;  %v11885_v10 = vld [vmem:[#allocation139_spill] sm:$0xff] }
 0x437   :  { %v9727_v32 = vpop.f32.mrf.mxu1  ;;  %v1462_v53 = vadd.f32 %v11885_v10, %v11884_v46 }
 0x438   :  { %11875 = vst [vmem:[#allocation200_spill] sm:$0xff] %v9727_v32 }
 0x439   :  { %v9729_v28 = vpop.f32.mrf.mxu1 }
 0x43a   :  { %11876 = vst [vmem:[#allocation201_spill] sm:$0xff] %v9729_v28 }
 0x43b   :  { %v9731_v14 = vpop.f32.mrf.mxu1 }
 0x43c   :  { %11877 = vst [vmem:[#allocation202_spill] sm:$0xff] %v9731_v14  ;;  %v11887_v14 = vld [vmem:[#allocation143_spill] sm:$0xff] }
 0x43d   :  { %v9733_v55 = vpop.f32.mrf.mxu1  ;;  %v1465_v42 = vadd.f32 %v11887_v14, %v11886_v8  ;;  %v11907_v8 = vld [vmem:[#allocation145_spill] sm:$0xff] }
 0x43e   :  { %11878 = vst [vmem:[#allocation203_spill] sm:$0xff] %v9733_v55 }
 0x43f   :  { %v9735_v6 = vpop.f32.mrf.mxu1 }
 0x440   :  { %11879 = vst [vmem:[#allocation204_spill] sm:$0xff] %v9735_v6 }
 0x441   :  { %v9737_v61 = vpop.f32.mrf.mxu1 }
 0x442   :  { %11880 = vst [vmem:[#allocation205_spill] sm:$0xff] %v9737_v61  ;;  %v11889_v61 = vld [vmem:[#allocation147_spill] sm:$0xff] }
 0x443   :  { %v9739_v2 = vpop.f32.mrf.mxu1  ;;  %v1478_v1 = vadd.f32 %v11889_v61, %v11888_v27  ;;  %v11906_v27 = vld [vmem:[#allocation30_spill] sm:$0xff] }
 0x444   :  { %11881 = vst [vmem:[#allocation206_spill] sm:$0xff] %v9739_v2  ;;  %v1457_v46 = vadd.f32 %v11907_v8, %v11906_v27  ;;  %v1561_v8 = vadd.f32 %v11916_v17, %v11915_v39 }
 0x445   :  { %v9741_v38 = vpop.f32.mrf.mxu1 }
 0x446   :  { %11882 = vst [vmem:[#allocation207_spill] sm:$0xff] %v9741_v38 }
 0x447   :  { %v9743_v13 = vpop.f32.mrf.mxu1 }
 0x448   :  { %11883 = vst [vmem:[#allocation208_spill] sm:$0xff] %v9743_v13  ;;  %v11891_v13 = vld [vmem:[#allocation151_spill] sm:$0xff] }
 0x449   :  { %v1481_v36 = vadd.f32 %v11891_v13, %v11890_v52 }
 0x485   :  { %v6441_v32 = vpop.f32.mrf.mxu1 }
 0x486   :  { %v3359_v19 = vadd.f32 %v6441_v32, %v1462_v53  ;;  %v11892_v53 = vld [vmem:[#allocation7_spill] sm:$0xff] }
 0x487   :  { %v3150_v28 = vpop.f32.mrf.mxu1  ;;  %v11893_v32 = vld [vmem:[#allocation155_spill] sm:$0xff] }
 0x488   :  { %v1494_v49 = vadd.f32 %v11893_v32, %v11892_v53  ;;  %v11898_v32 = vld [vmem:[#allocation60_spill] sm:$0xff]  ;;  %v3411_v43 = vmul.f32 0.5, %v3359_v19 }
 0x489   :  { %v6442_v55 = vpop.f32.mrf.mxu1 }
 0x48a   :  { %v3360_v51 = vadd.f32 %v6442_v55, %v1465_v42  ;;  %v11894_v55 = vld [vmem:[#allocation6_spill] sm:$0xff]  ;;  %7071 = vtanh.f32 %v3411_v43 }
 0x48b   :  { %v3153_v6 = vpop.f32.mrf.mxu1  ;;  %v1497_v35 = vadd.f32 %v11895_v22, %v11894_v55  ;;  %v11900_v22 = vld [vmem:[#allocation53_spill] sm:$0xff]  ;;  %v11931_v43 = vld [vmem:[#allocation178_spill] sm:$0xff] }
 0x48c   :  { %v3358_v24 = vadd.f32 %v3153_v6, %v1457_v46  ;;  %v3412_v27 = vmul.f32 0.5, %v3360_v51  ;;  %v11921_v46 = vld [vmem:[#allocation162_spill] sm:$0xff]  ;;  %v11925_v51 = vld [vmem:[#allocation51_spill] sm:$0xff] }
 0x48d   :  { %v6445_v2 = vpop.f32.mrf.mxu1 }
 0x48e   :  { %v3363_v59 = vadd.f32 %v6445_v2, %v1478_v1  ;;  %v11896_v2 = vld [vmem:[#allocation58_spill] sm:$0xff]  ;;  %v3410_v11 = vmul.f32 0.5, %v3358_v24  ;;  %v11926_v24 = vld [vmem:[#allocation176_spill] sm:$0xff] }
 0x48f   :  { %v3166_v38 = vpop.f32.mrf.mxu1  ;;  %v1510_v13 = vadd.f32 %v11897_v29, %v11896_v2 }
 0x491   :  { %v6446_v12 = vpop.f32.mrf.mxu1 }
 0x492   :  { %v3364_v10 = vadd.f32 %v6446_v12, %v1481_v36 }
 0x493   :  { %v3169_v26 = vpop.f32.mrf.mxu1 }
 0x495   :  { %v6449_v50 = vpop.f32.mrf.mxu1 }
 0x496   :  { %v9755_v14 = vadd.f32 %v6449_v50, %v1494_v49  ;;  %v1513_v50 = vadd.f32 %v11899_v62, %v11898_v32 }
 0x497   :  { %v3182_v42 = vpop.f32.mrf.mxu1 }
 0x499   :  { %v6450_v61 = vpop.f32.mrf.mxu1 }
 0x49a   :  { %v9759_v9 = vadd.f32 %v6450_v61, %v1497_v35  ;;  %v11901_v35 = vld [vmem:[#allocation173_spill] sm:$0xff] }
 0x49b   :  { %v3185_v1 = vpop.f32.mrf.mxu1  ;;  %v1526_v61 = vadd.f32 %v11901_v35, %v11900_v22  ;;  %v11904_v35 = vld [vmem:[#allocation27_spill] sm:$0xff]  ;;  %v11905_v22 = vld [vmem:[#allocation141_spill] sm:$0xff] }
 0x49d   :  { %v6453_v25 = vpop.f32.mrf.mxu1 }
 0x49e   :  { %v9763_v12 = vadd.f32 %v6453_v25, %v1510_v13  ;;  %v11902_v25 = vld [vmem:[#allocation174_spill] sm:$0xff]  ;;  %v11903_v13 = vld [vmem:[#allocation56_spill] sm:$0xff] }
 0x49f   :  { %v9765_v36 = vpop.f32.mrf.mxu1  ;;  %v1529_v2 = vadd.f32 %v11903_v13, %v11902_v25  ;;  %v11908_v25 = vld [vmem:[#allocation41_spill] sm:$0xff] }
 0x4a1   :  { %v6454_v49 = vpop.f32.mrf.mxu1 }
 0x4a2   :  { %v9769_v20 = vadd.f32 %v6454_v49, %v1513_v50 }
 0x4a3   :  { %v9771_v37 = vpop.f32.mrf.mxu1 }
 0x4a5   :  { %v6457_v16 = vpop.f32.mrf.mxu1 }
 0x4a6   :  { %v9775_v55 = vadd.f32 %v6457_v16, %v1526_v61  ;;  %v1454_v16 = vadd.f32 %v11905_v22, %v11904_v35  ;;  %v11913_v22 = vld [vmem:[#allocation17_spill] sm:$0xff] }
 0x4a7   :  { %v9777_v29 = vpop.f32.mrf.mxu1  ;;  %v11914_v35 = vld [vmem:[#allocation153_spill] sm:$0xff] }
 0x4a8   :  { %v3357_v13 = vadd.f32 %v3150_v28, %v1454_v16  ;;  %v1473_v41 = vadd.f32 %v11914_v35, %v11913_v22  ;;  %v3361_v16 = vadd.f32 %v3166_v38, %v1470_v34  ;;  %v3415_v22 = vmul.f32 0.5, %v3363_v59  ;;  %v11924_v34 = vld [vmem:[#allocation72_spill] sm:$0xff] }
 0x4a9   :  { %v6458_v53 = vpop.f32.mrf.mxu1  ;;  %v1505_v38 = vadd.f32 %v11925_v51, %v11924_v34 }
 0x4aa   :  { %v9781_v52 = vadd.f32 %v6458_v53, %v1529_v2  ;;  %v11909_v53 = vld [vmem:[#allocation181_spill] sm:$0xff]  ;;  %v3409_v28 = vmul.f32 0.5, %v3357_v13  ;;  %v3362_v6 = vadd.f32 %v3169_v26, %v1473_v41  ;;  %v3413_v13 = vmul.f32 0.5, %v3361_v16  ;;  %v11927_v41 = vld [vmem:[#allocation175_spill] sm:$0xff] }
 0x4ab   :  { %v9783_v62 = vpop.f32.mrf.mxu1  ;;  %v1558_v2 = vadd.f32 %v11909_v53, %v11908_v25  ;;  %v11917_v25 = vld [vmem:[#allocation8_spill] sm:$0xff]  ;;  %v1518_v26 = vadd.f32 %v11927_v41, %v11926_v24 }
 0x4ac   :  { %v1486_v3 = vadd.f32 %v11918_v48, %v11917_v25  ;;  %7073 = vtanh.f32 %v3409_v28  ;;  %v11933_v25 = vld [vmem:[#allocation74_spill] sm:$0xff]  ;;  %v3414_v51 = vmul.f32 0.5, %v3362_v6  ;;  %v11934_v41 = vld [vmem:[#allocation40_spill] sm:$0xff]  ;;  %v3423_v6 = vmul.f32 0.5, %v9763_v12  ;;  %v11946_v12 = vld [vmem:[#allocation159_spill] sm:$0xff] }
 0x4ad   :  { %v9785_v50 = vpop.f32.mrf.mxu1  ;;  %7075 = vtanh.f32 %v3412_v27 }
 0x4ae   :  { %v3365_v48 = vadd.f32 %v3182_v42, %v1486_v3  ;;  %7077 = vtanh.f32 %v3410_v11  ;;  %v3419_v3 = vmul.f32 0.5, %v9755_v14 }
 0x4af   :  { %v9787_v49 = vpop.f32.mrf.mxu1  ;;  %7079 = vtanh.f32 %v3415_v22  ;;  %v3370_v22 = vadd.f32 %v9771_v37, %v1505_v38  ;;  %v11942_v37 = vld [vmem:[#allocation172_spill] sm:$0xff]  ;;  %v11943_v38 = vld [vmem:[#allocation66_spill] sm:$0xff] }
 0x4b0   :  { %7081 = vtanh.f32 %v3413_v13 }
 0x4b1   :  { %v9789_v32 = vpop.f32.mrf.mxu1 }
 0x4b3   :  { %v9793_v61 = vpop.f32.mrf.mxu1 }
 0x4b5   :  { %v6465_v56 = vpop.f32.mrf.mxu1 }
 0x4b6   :  { %v9801_v15 = vadd.f32 %v6465_v56, %v1558_v2  ;;  %v11920_v56 = vld [vmem:[#allocation11_spill] sm:$0xff] }
 0x4b7   :  { %v9803_v60 = vpop.f32.mrf.mxu1  ;;  %v1489_v2 = vadd.f32 %v11921_v46, %v11920_v56  ;;  %v3416_v46 = vmul.f32 0.5, %v3364_v10  ;;  %v3417_v10 = vmul.f32 0.5, %v3365_v48 }
 0x4b8   :  { %11912 = vst [vmem:[#allocation139_spill] sm:$0xff] %v9801_v15  ;;  %v11923_v15 = vld [vmem:[#allocation168_spill] sm:$0xff] }
 0x4b9   :  { %v6466_v53 = vpop.f32.mrf.mxu1  ;;  %v1502_v35 = vadd.f32 %v11923_v15, %v11922_v7  ;;  %v11930_v15 = vld [vmem:[#allocation177_spill] sm:$0xff]  ;;  %v11932_v7 = vld [vmem:[#allocation39_spill] sm:$0xff]  ;;  %v3366_v42 = vadd.f32 %v3185_v1, %v1489_v2  ;;  %7083 = vtanh.f32 %v3416_v46 }
 0x4ba   :  { %v9811_v19 = vadd.f32 %v6466_v53, %v1561_v8  ;;  %v11928_v8 = vld [vmem:[#allocation37_spill] sm:$0xff]  ;;  %v11929_v53 = vld [vmem:[#allocation55_spill] sm:$0xff]  ;;  %v1521_v59 = vadd.f32 %v11931_v43, %v11930_v15  ;;  %7085 = vtanh.f32 %v3414_v51  ;;  %v11945_v51 = vld [vmem:[#allocation50_spill] sm:$0xff] }
 0x4bb   :  { %v9817_v17 = vpop.f32.mrf.mxu1  ;;  %v1574_v39 = vadd.f32 %v11929_v53, %v11928_v8  ;;  %v11935_v53 = vld [vmem:[#allocation59_spill] sm:$0xff]  ;;  %v11940_v2 = vld [vmem:[#allocation49_spill] sm:$0xff]  ;;  %7087 = vtanh.f32 %v3419_v3  ;;  %v3418_v48 = vmul.f32 0.5, %v3366_v42  ;;  %v3369_v46 = vadd.f32 %v9765_v36, %v1502_v35 }
 0x4bc   :  { %11919 = vst [vmem:[#allocation143_spill] sm:$0xff] %v9811_v19  ;;  %v1566_v19 = vadd.f32 %v11933_v25, %v11932_v7  ;;  %v1577_v27 = vadd.f32 %v11935_v53, %v11934_v41  ;;  %v11936_v43 = vld [vmem:[#allocation167_spill] sm:$0xff]  ;;  %v3420_v25 = vmul.f32 0.5, %v9759_v9  ;;  %7089 = vtanh.f32 %v3417_v10  ;;  %v11950_v36 = vld [vmem:[#allocation29_spill] sm:$0xff]  ;;  %v11968_v41 = vld [vmem:[#allocation28_spill] sm:$0xff] }
 0x4bd   :  { %v6469_v56 = vpop.f32.mrf.mxu1  ;;  %v11937_v15 = vld [vmem:[#allocation179_spill] sm:$0xff]  ;;  %v3373_v10 = vadd.f32 %v9777_v29, %v1518_v26 }
 0x4be   :  { %v9830_v28 = vadd.f32 %v6469_v56, %v1574_v39  ;;  %v1542_v8 = vadd.f32 %v11937_v15, %v11936_v43  ;;  %v11938_v1 = vld [vmem:[#allocation171_spill] sm:$0xff]  ;;  %v11939_v39 = vld [vmem:[#allocation62_spill] sm:$0xff]  ;;  %v9854_v15 = vadd.f32 %v11943_v38, %v11942_v37  ;;  %7091 = vtanh.f32 %v3420_v25 }
 0x4bf   :  { %v3262_v16 = vpop.f32.mrf.mxu1  ;;  %v1534_v11 = vadd.f32 %v11939_v39, %v11938_v1  ;;  %v11948_v39 = vld [vmem:[#allocation42_spill] sm:$0xff]  ;;  %v11949_v3 = vld [vmem:[#allocation63_spill] sm:$0xff]  ;;  %v3422_v38 = vmul.f32 0.5, %v3370_v22  ;;  %v11954_v1 = vld [vmem:[#allocation32_spill] sm:$0xff]  ;;  %7093 = vtanh.f32 %v3423_v6  ;;  %v3421_v25 = vmul.f32 0.5, %v3369_v46 }
 0x4c0   :  { %v9834_v34 = vadd.f32 %v3262_v16, %v1566_v19  ;;  %v11941_v19 = vld [vmem:[#allocation64_spill] sm:$0xff]  ;;  %v9866_v42 = vadd.f32 %v11949_v3, %v11948_v39  ;;  %v11951_v35 = vld [vmem:[#allocation67_spill] sm:$0xff]  ;;  %v11956_v39 = vld [vmem:[#allocation69_spill] sm:$0xff]  ;;  %7095 = vtanh.f32 %v3418_v48  ;;  %v3374_v22 = vadd.f32 %v9783_v62, %v1521_v59 }
 0x4c1   :  { %v6470_v14 = vpop.f32.mrf.mxu1  ;;  %v9847_v13 = vadd.f32 %v11941_v19, %v11940_v2  ;;  %v11944_v16 = vld [vmem:[#allocation164_spill] sm:$0xff]  ;;  %v9870_v19 = vadd.f32 %v11951_v35, %v11950_v36  ;;  %v11952_v2 = vld [vmem:[#allocation33_spill] sm:$0xff]  ;;  %v7072_v36 = vpop.eup %7071  ;;  %v11960_v29 = vld [vmem:[#allocation35_spill] sm:$0xff]  ;;  %7097 = vtanh.f32 %v3422_v38  ;;  %v3379_v43 = vadd.f32 %v9785_v50, %v1542_v8 }
 0x4c2   :  { %v9843_v56 = vadd.f32 %v6470_v14, %v1577_v27  ;;  %v9858_v53 = vadd.f32 %v11945_v51, %v11944_v16  ;;  %v11947_v27 = vld [vmem:[#allocation54_spill] sm:$0xff]  ;;  %v11953_v51 = vld [vmem:[#allocation68_spill] sm:$0xff]  ;;  %v1609_v26 = vadd.f32 %v9419_v57, %v11960_v29  ;;  %v7074_v48 = vpop.eup %7073  ;;  %7099 = vtanh.f32 %v3421_v25 }
 0x4c3   :  { %v9850_v9 = vpop.f32.mrf.mxu1  ;;  %v9862_v14 = vadd.f32 %v11947_v27, %v11946_v12  ;;  %v9876_v16 = vadd.f32 %v11953_v51, %v11952_v2  ;;  %v9880_v27 = vadd.f32 %v9368_v45, %v11954_v1  ;;  %v11955_v3 = vld [vmem:[#allocation36_spill] sm:$0xff]  ;;  %v11959_v45 = vld [vmem:[#allocation23_spill] sm:$0xff]  ;;  %v11961_v46 = vld [vmem:[#allocation26_spill] sm:$0xff]  ;;  %v3426_v1 = vmul.f32 0.5, %v3374_v22 }
 0x4c4   :  { %v9885_v12 = vadd.f32 %v11956_v39, %v11955_v3  ;;  %v11958_v51 = vld [vmem:[#allocation20_spill] sm:$0xff]  ;;  %v9896_v6 = vadd.f32 %v9402_v0, %v11959_v45  ;;  %v3424_v39 = vmul.f32 0.5, %v9769_v20  ;;  %v9903_v62 = vadd.f32 %v9434_v63, %v11961_v46  ;;  %v11962_v59 = vld [vmem:[#allocation34_spill] sm:$0xff]  ;;  %v7076_v0 = vpop.eup %7075  ;;  %v11964_v20 = vld [vmem:[#allocation25_spill] sm:$0xff] }
 0x4c5   :  { %v9872_v37 = vpop.f32.mrf.mxu1  ;;  %v9892_v2 = vadd.f32 %v9390_v4, %v11958_v51  ;;  %v9907_v3 = vadd.f32 %v9452_v30, %v11962_v59  ;;  %v3427_v4 = vmul.f32 0.5, %v9775_v55  ;;  %v11963_v45 = vld [vmem:[#allocation38_spill] sm:$0xff]  ;;  %v9918_v29 = vadd.f32 %v9486_v40, %v11964_v20  ;;  %v11965_v63 = vld [vmem:[#allocation31_spill] sm:$0xff]  ;;  %v7078_v59 = vpop.eup %7077  ;;  %v11971_v50 = vld [vmem:[#allocation12_spill] sm:$0xff] }
 0x4c6   :  { %11957 = vst [vmem:[#allocation147_spill] sm:$0xff] %v9885_v12  ;;  %v9914_v57 = vadd.f32 %v9470_v31, %v11963_v45  ;;  %v9922_v46 = vadd.f32 %v9495_v5, %v11965_v63  ;;  %v3425_v30 = vmul.f32 0.5, %v3373_v10  ;;  %v11966_v38 = vld [vmem:[#allocation22_spill] sm:$0xff]  ;;  %v7080_v45 = vpop.eup %7079  ;;  %v9933_v40 = vadd.f32 %v9515_v18, %v11968_v41  ;;  %v11969_v20 = vld [vmem:[#allocation15_spill] sm:$0xff] }
 0x4c7   :  { %v9888_v35 = vpop.f32.mrf.mxu1  ;;  %v9926_v55 = vadd.f32 %v9507_v23, %v11966_v38  ;;  %v9937_v5 = vadd.f32 %v9518_v21, %v11969_v20  ;;  %7101 = vtanh.f32 %v3424_v39  ;;  %v3377_v10 = vadd.f32 %v9787_v49, %v1534_v11  ;;  %v7082_v23 = vpop.eup %7081  ;;  %v11970_v38 = vld [vmem:[#allocation19_spill] sm:$0xff] }
 0x4c8   :  { %v9942_v25 = vadd.f32 %v9521_v44, %v11970_v38  ;;  %v9946_v8 = vadd.f32 %v9523_v33, %v11971_v50  ;;  %v3489_v22 = vmul.f32 0.5, %v7072_v36  ;;  %7103 = vtanh.f32 %v3427_v4  ;;  %v7084_v41 = vpop.eup %7083  ;;  %v11972_v36 = vld [vmem:[#allocation16_spill] sm:$0xff]  ;;  %v11973_v50 = vld [vmem:[#allocation9_spill] sm:$0xff] }
 0x4c9   :  { %v9910_v51 = vpop.f32.mrf.mxu1  ;;  %v3487_v63 = vmul.f32 0.5, %v7074_v48  ;;  %v3490_v21 = vmul.f32 0.5, %v7076_v0  ;;  %7105 = vtanh.f32 %v3425_v30  ;;  %v3428_v39 = vmul.f32 0.5, %v9781_v52  ;;  %v7086_v49 = vpop.eup %7085 }
 0x4ca   :  { %v3488_v11 = vmul.f32 0.5, %v7078_v59  ;;  %7107 = vtanh.f32 %v3426_v1  ;;  %v3431_v20 = vmul.f32 0.5, %v3379_v43  ;;  %v3380_v44 = vadd.f32 %v9789_v32, %v9847_v13  ;;  %v7088_v33 = vpop.eup %7087  ;;  %v11974_v43 = vld [vmem:[#allocation10_spill] sm:$0xff] }
 0x4cb   :  { %v9929_v31 = vpop.f32.mrf.mxu1  ;;  %v9957_v4 = vadd.f32 %v9527_v47, %v11972_v36  ;;  %v9961_v48 = vadd.f32 %v9529_v54, %v11973_v50  ;;  %v3429_v0 = vmul.f32 0.5, %v3377_v10  ;;  %v3378_v52 = vadd.f32 %v9793_v61, %v9854_v15  ;;  %v7090_v1 = vpop.eup %7089 }
 0x4cc   :  { %11967 = vst [vmem:[#allocation151_spill] sm:$0xff] %v9929_v31  ;;  %v9967_v59 = vadd.f32 %v9531_v58, %v11974_v43  ;;  %v9969_v32 = vadd.f32 0.5, %v3489_v22  ;;  %v3493_v13 = vmul.f32 0.5, %v7080_v45  ;;  %v3491_v30 = vmul.f32 0.5, %v7082_v23  ;;  %v7092_v47 = vpop.eup %7091 }
 0x4cd   :  { %v9948_v18 = vpop.f32.mrf.mxu1  ;;  %v9971_v36 = vadd.f32 0.5, %v3487_v63  ;;  %v3494_v24 = vmul.f32 0.5, %v7084_v41  ;;  %7109 = vtanh.f32 %v3428_v39  ;;  %v7094_v10 = vpop.eup %7093  ;;  %v9973_v50 = vadd.f32 0.5, %v3490_v21 }
 0x4ce   :  { %v9975_v61 = vadd.f32 0.5, %v3488_v11  ;;  %7111 = vtanh.f32 %v3431_v20  ;;  %v3432_v15 = vmul.f32 0.5, %v3380_v44  ;;  %v7096_v22 = vpop.eup %7095  ;;  %v3492_v43 = vmul.f32 0.5, %v7086_v49 }
 0x4cf   :  { %v9953_v38 = vpop.f32.mrf.mxu1  ;;  %v3497_v45 = vmul.f32 0.5, %v7088_v33  ;;  %7113 = vtanh.f32 %v3429_v0  ;;  %v3430_v23 = vmul.f32 0.5, %v3378_v52  ;;  %v9979_v31 = vadd.f32 0.5, %v3493_v13  ;;  %v11975_v33 = vld [vmem:[#allocation139_spill] sm:$0xff] }
 0x4d0   :  { %v9981_v63 = vadd.f32 0.5, %v3491_v30  ;;  %v9985_v21 = vadd.f32 0.5, %v3494_v24  ;;  %v3495_v20 = vmul.f32 0.5, %v7090_v1  ;;  %v3501_v39 = vmul.f32 0.5, %v7094_v10 }
 0x4d1   :  { %v6478_v7 = vpop.f32.mrf.mxu1  ;;  %v3498_v49 = vmul.f32 0.5, %v7092_v47  ;;  %v3496_v44 = vmul.f32 0.5, %v7096_v22  ;;  %v3435_v0 = vmul.f32 0.5, %v11975_v33  ;;  %v9989_v30 = vadd.f32 0.5, %v3492_v43 }
 0x4d2   :  { %v3396_v54 = vadd.f32 %v6478_v7, %v1609_v26  ;;  %v3381_v7 = vadd.f32 %v9803_v60, %v9858_v53  ;;  %v7098_v26 = vpop.eup %7097  ;;  %v9991_v12 = vadd.f32 0.5, %v3497_v45  ;;  %v9996_v10 = vadd.f32 0.5, %v3495_v20 }
 0x4d3   :  { %v9977_v58 = vpop.f32.mrf.mxu1  ;;  %v7100_v13 = vpop.eup %7099  ;;  %v3500_v53 = vmul.f32 0.5, %v7098_v26  ;;  %v9999_v45 = vadd.f32 0.5, %v3498_v49 }
 0x4d4   :  { %7115 = vtanh.f32 %v3396_v54  ;;  %v7102_v24 = vpop.eup %7101  ;;  %v3433_v1 = vmul.f32 0.5, %v3381_v7 }
 0x4d5   :  { %v6481_v41 = vpop.f32.mrf.mxu1  ;;  %7117 = vtanh.f32 %v3432_v15  ;;  %v7104_v54 = vpop.eup %7103  ;;  %v3540_v15 = vadd.f32 0.5, %v3501_v39 }
 0x4d6   :  { %v3399_v11 = vadd.f32 %v6481_v41, %v9907_v3  ;;  %7119 = vtanh.f32 %v3430_v23  ;;  %v3382_v3 = vadd.f32 %v9817_v17, %v9862_v14  ;;  %v7106_v22 = vpop.eup %7105  ;;  %v10001_v23 = vadd.f32 0.5, %v3496_v44 }
 0x4d7   :  { %v3310_v52 = vpop.f32.mrf.mxu1  ;;  %v7108_v26 = vpop.eup %7107  ;;  %v3499_v17 = vmul.f32 0.5, %v7100_v13  ;;  %v3502_v14 = vmul.f32 0.5, %v7102_v24  ;;  %v3505_v39 = vmul.f32 0.5, %v7104_v54  ;;  %v3503_v44 = vmul.f32 0.5, %v7106_v22 }
 0x4d8   :  { %v3397_v60 = vadd.f32 %v3310_v52, %v9914_v57  ;;  %7121 = vtanh.f32 %v3399_v11  ;;  %v11976_v57 = vld [vmem:[#allocation143_spill] sm:$0xff]  ;;  %v3539_v11 = vadd.f32 0.5, %v3500_v53  ;;  %v3434_v33 = vmul.f32 0.5, %v3382_v3  ;;  %v11977_v52 = vld [vmem:[#allocation73_spill] sm:$0xff] }
 0x4d9   :  { %v6482_v47 = vpop.f32.mrf.mxu1  ;;  %v3436_v7 = vmul.f32 0.5, %v11976_v57  ;;  %v10006_v49 = vmul.f32 %v3540_v15, %v11977_v52  ;;  %v3439_v13 = vmul.f32 0.5, %v9830_v28  ;;  %v3541_v3 = vadd.f32 0.5, %v3502_v14  ;;  %v11980_v52 = vld [vmem:[#allocation78_spill] sm:$0xff] }
 0x4da   :  { %7123 = vtanh.f32 %v3397_v60  ;;  %v3400_v43 = vadd.f32 %v6482_v47, %v9918_v29  ;;  %v7110_v60 = vpop.eup %7109  ;;  %v3504_v47 = vmul.f32 0.5, %v7108_v26  ;;  %v3437_v57 = vmul.f32 0.5, %v9834_v34 }
 0x4db   :  { %7125 = vtanh.f32 %v3435_v0  ;;  %v3313_v41 = vpop.f32.mrf.mxu1  ;;  %v7112_v53 = vpop.eup %7111  ;;  %v3506_v26 = vmul.f32 0.5, %v7110_v60 }
 0x4dc   :  { %7127 = vtanh.f32 %v3400_v43  ;;  %v3398_v20 = vadd.f32 %v3313_v41, %v9922_v46  ;;  %v3386_v46 = vadd.f32 %v9850_v9, %v9866_v42  ;;  %v7114_v15 = vpop.eup %7113  ;;  %v11978_v43 = vld [vmem:[#allocation70_spill] sm:$0xff]  ;;  %v3542_v41 = vadd.f32 0.5, %v3503_v44 }
 0x4dd   :  { %7129 = vtanh.f32 %v3433_v1  ;;  %v6485_v29 = vpop.f32.mrf.mxu1  ;;  %v10012_v1 = vadd.f32 0.5, %v3499_v17  ;;  %v3578_v22 = vmul.f32 %v3539_v11, %v11978_v43  ;;  %v3543_v42 = vadd.f32 0.5, %v3504_v47  ;;  %v11979_v11 = vld [vmem:[#allocation76_spill] sm:$0xff] }
 0x4de   :  { %7131 = vtanh.f32 %v3398_v20  ;;  %v3403_v0 = vadd.f32 %v6485_v29, %v9926_v55  ;;  %v3544_v55 = vadd.f32 0.5, %v3505_v39  ;;  %v3438_v17 = vmul.f32 0.5, %v3386_v46 }
 0x4df   :  { %7133 = vtanh.f32 %v3436_v7  ;;  %v3326_v24 = vpop.f32.mrf.mxu1  ;;  %v3580_v39 = vmul.f32 %v3541_v3, %v11979_v11  ;;  %v3545_v46 = vadd.f32 0.5, %v3506_v26  ;;  %v11982_v3 = vld [vmem:[#allocation75_spill] sm:$0xff] }
 0x4e0   :  { %7135 = vtanh.f32 %v3403_v0  ;;  %v3401_v54 = vadd.f32 %v3326_v24, %v9933_v40  ;;  %v10024_v44 = vmul.f32 %v3544_v55, %v11980_v52  ;;  %v3507_v0 = vmul.f32 0.5, %v7114_v15 }
 0x4e1   :  { %7137 = vtanh.f32 %v3434_v33  ;;  %v6486_v7 = vpop.f32.mrf.mxu1  ;;  %v7116_v28 = vpop.eup %7115  ;;  %v3509_v33 = vmul.f32 0.5, %v7112_v53 }
 0x4e2   :  { %7139 = vtanh.f32 %v3401_v54  ;;  %v3404_v9 = vadd.f32 %v6486_v7, %v9937_v5  ;;  %v3591_v14 = vmul.f32 %v7116_v28, %v9971_v36  ;;  %v10019_v20 = vpop.eup %7117  ;;  %v11981_v36 = vld [vmem:[#allocation71_spill] sm:$0xff]  ;;  %v3582_v54 = vmul.f32 %v3543_v42, %v11982_v3 }
 0x4e3   :  { %7141 = vtanh.f32 %v3439_v13  ;;  %v3329_v40 = vpop.f32.mrf.mxu1  ;;  %v7120_v29 = vpop.eup %7119  ;;  %v3581_v13 = vmul.f32 %v3542_v41, %v11981_v36  ;;  %v3546_v41 = vadd.f32 0.5, %v3507_v0  ;;  %v11985_v0 = vld [vmem:[#allocation77_spill] sm:$0xff] }
 0x4e4   :  { %7143 = vtanh.f32 %v3404_v9  ;;  %v3402_v34 = vadd.f32 %v3329_v40, %v9942_v25  ;;  %v10026_v5 = vadd.f32 %v3591_v14, %v3578_v22  ;;  %v3440_v25 = vmul.f32 0.5, %v9843_v56 }
 0x4e5   :  { %7145 = vtanh.f32 %v3437_v57  ;;  %v6489_v60 = vpop.f32.mrf.mxu1  ;;  %v7122_v47 = vpop.eup %7121  ;;  %v3548_v22 = vadd.f32 0.5, %v3509_v33  ;;  %v3508_v40 = vmul.f32 0.5, %v7120_v29  ;;  %v3585_v29 = vmul.f32 %v3546_v41, %v11985_v0 }
 0x4e6   :  { %7147 = vtanh.f32 %v3402_v34  ;;  %v3407_v24 = vadd.f32 %v6489_v60, %v9946_v8  ;;  %v3594_v43 = vmul.f32 %v7122_v47, %v9973_v50  ;;  %v3391_v8 = vadd.f32 %v9872_v37, %v9870_v19 }
 0x4e7   :  { %v7124_v53 = vpop.eup %7123  ;;  %7149 = vtanh.f32 %v3438_v17  ;;  %v3342_v15 = vpop.f32.mrf.mxu1  ;;  %v11983_v17 = vld [vmem:[#allocation81_spill] sm:$0xff]  ;;  %v3392_v37 = vadd.f32 %v9910_v51, %v9880_v27 }
 0x4e8   :  { %v7126_v55 = vpop.eup %7125  ;;  %v3592_v57 = vmul.f32 %v7124_v53, %v9975_v61  ;;  %7151 = vtanh.f32 %v3407_v24  ;;  %v3405_v7 = vadd.f32 %v3342_v15, %v9957_v4  ;;  %v10038_v26 = vadd.f32 %v3594_v43, %v3581_v13 }
 0x4e9   :  { %v7128_v28 = vpop.eup %7127  ;;  %7153 = vtanh.f32 %v10026_v5  ;;  %v6490_v56 = vpop.f32.mrf.mxu1  ;;  %v3584_v14 = vmul.f32 %v3545_v46, %v11983_v17  ;;  %v3443_v60 = vmul.f32 0.5, %v3391_v8  ;;  %v3444_v46 = vmul.f32 0.5, %v3392_v37  ;;  %v11988_v8 = vld [vmem:[#allocation147_spill] sm:$0xff] }
 0x4ea   :  { %v7130_v9 = vpop.eup %7129  ;;  %v10041_v50 = vadd.f32 %v3592_v57, %v10006_v49  ;;  %v3595_v42 = vmul.f32 %v7128_v28, %v9981_v63  ;;  %7155 = vtanh.f32 %v3405_v7  ;;  %v3408_v61 = vadd.f32 %v6490_v56, %v9961_v48  ;;  %v11984_v48 = vld [vmem:[#allocation85_spill] sm:$0xff] }
 0x4eb   :  { %v7132_v4 = vpop.eup %7131  ;;  %7157 = vtanh.f32 %v3440_v25  ;;  %v3345_v19 = vpop.f32.mrf.mxu1  ;;  %v10054_v52 = vmul.f32 %v3548_v22, %v11984_v48  ;;  %v3511_v27 = vmul.f32 0.5, %v7130_v9  ;;  %v3393_v53 = vadd.f32 %v9953_v38, %v9896_v6 }
 0x4ec   :  { %v7134_v11 = vpop.eup %7133  ;;  %7159 = vtanh.f32 %v10041_v50  ;;  %v10049_v33 = vadd.f32 %v3595_v42, %v3582_v54  ;;  %v3593_v49 = vmul.f32 %v7132_v4, %v9969_v32  ;;  %v3406_v63 = vadd.f32 %v3345_v19, %v9967_v59 }
 0x4ed   :  { %v7136_v34 = vpop.eup %7135  ;;  %7161 = vtanh.f32 %v3408_v61  ;;  %v3547_v32 = vadd.f32 0.5, %v3508_v40  ;;  %v3395_v59 = vadd.f32 %v9948_v18, %v9892_v2  ;;  %v3513_v25 = vmul.f32 0.5, %v7126_v55  ;;  %v11987_v55 = vld [vmem:[#allocation79_spill] sm:$0xff]  ;;  %v11990_v61 = vld [vmem:[#allocation82_spill] sm:$0xff] }
 0x4ee   :  { %v7138_v47 = vpop.eup %7137  ;;  %7163 = vtanh.f32 %v10038_v26  ;;  %v10058_v51 = vadd.f32 %v3593_v49, %v3580_v39  ;;  %v3598_v36 = vmul.f32 %v7136_v34, %v9985_v21  ;;  %v3510_v21 = vmul.f32 0.5, %v10019_v20 }
 0x4ef   :  { %v7140_v13 = vpop.eup %7139  ;;  %7165 = vtanh.f32 %v3406_v63  ;;  %v3394_v43 = vadd.f32 %v9977_v58, %v9903_v62  ;;  %v3550_v18 = vadd.f32 0.5, %v3511_v27  ;;  %v3514_v22 = vmul.f32 0.5, %v7134_v11 }
 0x4f0   :  { %v7142_v24 = vpop.eup %7141  ;;  %7167 = vtanh.f32 %v10058_v51  ;;  %v10066_v3 = vadd.f32 %v3598_v36, %v3585_v29  ;;  %v3596_v39 = vmul.f32 %v7140_v13, %v9989_v30  ;;  %v3512_v30 = vmul.f32 0.5, %v7138_v47  ;;  %v11994_v13 = vld [vmem:[#allocation47_spill] sm:$0xff] }
 0x4f1   :  { %v7144_v54 = vpop.eup %7143  ;;  %7169 = vtanh.f32 %v3443_v60  ;;  %v3447_v57 = vmul.f32 0.5, %v3395_v59  ;;  %v3586_v7 = vmul.f32 %v3547_v32, %v11987_v55  ;;  %v3445_v28 = vmul.f32 0.5, %v3393_v53 }
 0x4f2   :  { %11986 = vst [vmem:[#allocation155_spill] sm:$0xff] %v10066_v3  ;;  %v7146_v2 = vpop.eup %7145  ;;  %7171 = vtanh.f32 %v10049_v33  ;;  %v10074_v6 = vadd.f32 %v3596_v39, %v10024_v44  ;;  %v3599_v38 = vmul.f32 %v7144_v54, %v9996_v10  ;;  %v3552_v41 = vadd.f32 0.5, %v3513_v25  ;;  %v11989_v10 = vld [vmem:[#allocation151_spill] sm:$0xff] }
 0x4f3   :  { %v7148_v15 = vpop.eup %7147  ;;  %7173 = vtanh.f32 %v3444_v46  ;;  %v3389_v44 = vadd.f32 %v9888_v35, %v9876_v16  ;;  %v3390_v56 = vadd.f32 %v11989_v10, %v11988_v8  ;;  %v3446_v9 = vmul.f32 0.5, %v3394_v43  ;;  %v11995_v43 = vld [vmem:[#allocation86_spill] sm:$0xff] }
 0x4f4   :  { %v7150_v20 = vpop.eup %7149  ;;  %7175 = vtanh.f32 %v10074_v6  ;;  %v3597_v62 = vmul.f32 %v7148_v15, %v9979_v31  ;;  %v3589_v4 = vmul.f32 %v3550_v18, %v11990_v61  ;;  %v10085_v17 = vadd.f32 %v3599_v38, %v3586_v7 }
 0x4f5   :  { %v7152_v58 = vpop.eup %7151  ;;  %v3553_v31 = vadd.f32 0.5, %v3514_v22  ;;  %v3551_v11 = vadd.f32 0.5, %v3512_v30  ;;  %v3515_v49 = vmul.f32 0.5, %v7146_v2  ;;  %7177 = vtanh.f32 %v3447_v57 }
 0x4f6   :  { %v7154_v42 = vpop.eup %7153  ;;  %11991 = vst [vmem:[#allocation160_spill] sm:$0xff] %v10085_v17  ;;  %v10087_v40 = vadd.f32 %v3597_v62, %v3584_v14  ;;  %v3602_v37 = vmul.f32 %v7152_v58, %v9999_v45  ;;  %v3516_v16 = vmul.f32 0.5, %v7150_v20  ;;  %7179 = vtanh.f32 %v3445_v28 }
 0x4f7   :  { %v7156_v19 = vpop.eup %7155  ;;  %v3549_v0 = vadd.f32 0.5, %v3510_v21  ;;  %v3441_v29 = vmul.f32 0.5, %v3389_v44  ;;  %v3442_v60 = vmul.f32 0.5, %v3390_v56  ;;  %7181 = vtanh.f32 %v3446_v9 }
 0x4f8   :  { %v7158_v63 = vpop.eup %7157  ;;  %v10090_v35 = vadd.f32 %v3602_v37, %v3589_v4  ;;  %v3600_v34 = vmul.f32 %v7156_v19, %v10001_v23  ;;  %7183 = vtanh.f32 %v10085_v17  ;;  %v3630_v47 = vmul.f32 %v7154_v42, %v3552_v41 }
 0x4f9   :  { %v7160_v48 = vpop.eup %7159  ;;  %v3590_v32 = vmul.f32 %v3551_v11, %v11994_v13  ;;  %v3517_v46 = vmul.f32 0.5, %v7142_v24  ;;  %v3554_v59 = vadd.f32 0.5, %v3515_v49  ;;  %v3518_v39 = vmul.f32 0.5, %v7158_v63 }
 0x4fa   :  { %11992 = vst [vmem:[#allocation165_spill] sm:$0xff] %v10090_v35  ;;  %v7162_v14 = vpop.eup %7161  ;;  %v10095_v45 = vadd.f32 %v3600_v34, %v10054_v52  ;;  %v3631_v27 = vmul.f32 %v7160_v48, %v3553_v31  ;;  %v3555_v54 = vadd.f32 0.5, %v3516_v16  ;;  %v3588_v52 = vmul.f32 %v3549_v0, %v11995_v43 }
 0x4fb   :  { %v7164_v36 = vpop.eup %7163  ;;  %v3603_v23 = vmul.f32 %v7162_v14, %v10012_v1  ;;  %v3556_v57 = vadd.f32 0.5, %v3517_v46  ;;  %v3557_v20 = vadd.f32 0.5, %v3518_v39 }
 0x4fc   :  { %11993 = vst [vmem:[#allocation170_spill] sm:$0xff] %v10095_v45  ;;  %v7166_v53 = vpop.eup %7165  ;;  %7185 = vtanh.f32 %v10095_v45  ;;  %v10100_v21 = vpack.c.bf16 %v3631_v27, %v3630_v47  ;;  %v3633_v1 = vmul.f32 %v7164_v36, %v3555_v54 }
 0x4fd   :  { %v7168_v25 = vpop.eup %7167  ;;  %7187 = vtanh.f32 %v3441_v29  ;;  %v10103_v2 = vadd.f32 %v3603_v23, %v3590_v32  ;;  %v3601_v18 = vmul.f32 %v7166_v53, %v9991_v12 }
 0x4fe   :  { %v7170_v38 = vpop.eup %7169  ;;  %7189 = vtanh.f32 %v10090_v35  ;;  %v3632_v24 = vmul.f32 %v7168_v25, %v3554_v59 }
 0x4ff   :  { %11996 = vst [vmem:[#allocation173_spill] sm:$0xff] %v10103_v2  ;;  %v7172_v15 = vpop.eup %7171  ;;  %7191 = vtanh.f32 %v10103_v2  ;;  %v10108_v22 = vadd.f32 %v3601_v18, %v3588_v52  ;;  %v3521_v58 = vmul.f32 0.5, %v7170_v38  ;;  %v11998_v38 = vmov 0.0  }
 0x500   :  { %v7174_v30 = vpop.eup %7173  ;;  %7193 = vtanh.f32 %v3442_v60  ;;  %v3644_v55 = vpack.c.bf16 %v3633_v1, %v3632_v24  ;;  %v3634_v28 = vmul.f32 %v7172_v15, %v3556_v57  ;;  %v10121_v24 = vld [vmem:[%s11338_s4 + $0x8] sm:$0xff]   ;;  %v10128_v1 = vld [vmem:[%s11338_s4 + $0x10] sm:$0xff]   ;;  %v10147_v57 = vld [vmem:[%s11338_s4 + $0x18] sm:$0xff]  }
 0x501   :  { %11997 = vst [vmem:[#allocation56_spill] sm:$0xff] %v10108_v22  ;;  %v7176_v7 = vpop.eup %7175  ;;  %7195 = vtanh.f32 %v10108_v22  ;;  %v3522_v41 = vmul.f32 0.5, %v7174_v30  ;;  %v3560_v42 = vadd.f32 0.5, %v3521_v58  ;;  %11999 = vst [vmem:[#allocation141_spill] sm:$0xff] %v10121_v24  ;;  %v7490_v15 = vld [vmem:[%s11334_s0 + $0x68] sm:$0xff]  ;;  %v7491_v30 = vld [vmem:[%s11334_s0 + $0x60] sm:$0xff] }
 0x502   :  { %v3635_v12 = vmul.f32 %v7176_v7, %v3557_v20  ;;  %v7178_v62 = vpop.eup %7177  ;;  %7197 = vtanh.f32 %v10087_v40  ;;  %12000 = vst [vmem:[#allocation145_spill] sm:$0xff] %v10128_v1  ;;  %12001 = vst [vmem:[#allocation181_spill] sm:$0xff] %v10147_v57  ;;  %v10154_v20 = vld [vmem:[%s11338_s4 + $0x20] sm:$0xff]   ;;  %v10168_v7 = vld [vmem:[%s11338_s4 + $0x30] sm:$0xff]  }
 0x503   :  { %v7180_v8 = vpop.eup %7179  ;;  %v3525_v9 = vmul.f32 0.5, %v7178_v62  ;;  %7199 = vtanh.f32 %v10066_v3  ;;  %v3561_v61 = vadd.f32 0.5, %v3522_v41  ;;  %12002 = vst [vmem:[#allocation149_spill] sm:$0xff] %v10154_v20  ;;  %12004 = vst [vmem:[#allocation52_spill] sm:$0xff] %v10168_v7  ;;  %v10189_v62 = vld [vmem:[%s11338_s4 + $0x48] sm:$0xff]   ;;  %v10196_v58 = vld [vmem:[%s11338_s4 + $0x50] sm:$0xff]  }
 0x504   :  { %v3645_v44 = vpack.c.bf16 %v3635_v12, %v3634_v28  ;;  %v7182_v10 = vpop.eup %7181  ;;  %v3523_v37 = vmul.f32 0.5, %v7180_v8  ;;  %v10175_v28 = vld [vmem:[%s11338_s4 + $0x38] sm:$0xff]   ;;  %v10182_v12 = vld [vmem:[%s11338_s4 + $0x40] sm:$0xff]   ;;  %12007 = vst [vmem:[#allocation168_spill] sm:$0xff] %v10189_v62  ;;  %12008 = vst [vmem:[#allocation51_spill] sm:$0xff] %v10196_v58 }
 0x505   :  { %v7184_v56 = vpop.eup %7183  ;;  %v3524_v19 = vmul.f32 0.5, %v7182_v10  ;;  %v3564_v16 = vadd.f32 0.5, %v3525_v9  ;;  %12005 = vst [vmem:[#allocation157_spill] sm:$0xff] %v10175_v28  ;;  %12006 = vst [vmem:[#allocation162_spill] sm:$0xff] %v10182_v12  ;;  %v10203_v41 = vld [vmem:[%s11338_s4 + $0x58] sm:$0xff]   ;;  %v10217_v8 = vld [vmem:[%s11338_s4 + $0x68] sm:$0xff]  }
 0x506   :  { %v3638_v11 = vmul.f32 %v7184_v56, %v3560_v42  ;;  %v3562_v29 = vadd.f32 0.5, %v3523_v37  ;;  %12009 = vst [vmem:[#allocation175_spill] sm:$0xff] %v10203_v41  ;;  %12011 = vst [vmem:[#allocation178_spill] sm:$0xff] %v10217_v8  ;;  %v10224_v10 = vld [vmem:[%s11338_s4 + $0x70] sm:$0xff]   ;;  %v10231_v56 = vld [vmem:[%s11338_s4 + $0x78] sm:$0xff]  }
 0x507   :  { %v3563_v60 = vadd.f32 0.5, %v3524_v19  ;;  %12012 = vst [vmem:[#allocation74_spill] sm:$0xff] %v10224_v10  ;;  %12013 = vst [vmem:[#allocation59_spill] sm:$0xff] %v10231_v56  ;;  %v10238_v9 = vld [vmem:[%s11338_s4 + $0x80] sm:$0xff]   ;;  %v10245_v42 = vld [vmem:[%s11338_s4 + $0x88] sm:$0xff]  }
 0x508   :  { %12014 = vst [vmem:[#allocation179_spill] sm:$0xff] %v10238_v9  ;;  %12015 = vst [vmem:[#allocation62_spill] sm:$0xff] %v10245_v42  ;;  %v10266_v37 = vld [vmem:[%s11338_s4 + $0xa0] sm:$0xff]   ;;  %v10273_v19 = vld [vmem:[%s11338_s4 + $0xa8] sm:$0xff]  }
 0x509   :  { %v7186_v4 = vpop.eup %7185  ;;  %12018 = vst [vmem:[#allocation50_spill] sm:$0xff] %v10266_v37  ;;  %12019 = vst [vmem:[#allocation54_spill] sm:$0xff] %v10273_v19 }
 0x50a   :  { %v7188_v31 = vpop.eup %7187  ;;  %v3639_v49 = vmul.f32 %v7186_v4, %v3561_v61  ;;  %v10252_v61 = vld [vmem:[%s11338_s4 + $0x90] sm:$0xff]   ;;  %v10259_v4 = vld [vmem:[%s11338_s4 + $0x98] sm:$0xff]  }
 0x50b   :  { %v7190_v63 = vpop.eup %7189  ;;  %v3519_v27 = vmul.f32 0.5, %v7188_v31  ;;  %12016 = vst [vmem:[#allocation64_spill] sm:$0xff] %v10252_v61  ;;  %12017 = vst [vmem:[#allocation66_spill] sm:$0xff] %v10259_v4  ;;  %v10280_v31 = vld [vmem:[%s11338_s4 + $0xb0] sm:$0xff]  }
 0x50c   :  { %v7192_v34 = vpop.eup %7191  ;;  %v3647_v48 = vpack.c.bf16 %v3639_v49, %v3638_v11  ;;  %v3641_v32 = vmul.f32 %v7190_v63, %v3563_v60  ;;  %12020 = vst [vmem:[#allocation63_spill] sm:$0xff] %v10280_v31  ;;  %v10287_v11 = vld [vmem:[%s11338_s4 + $0xb8] sm:$0xff]   ;;  %v10294_v49 = vld [vmem:[%s11338_s4 + $0xc0] sm:$0xff]   ;;  %v10301_v63 = vld [vmem:[%s11338_s4 + $0xc8] sm:$0xff]  }
 0x50d   :  { %v7194_v0 = vpop.eup %7193  ;;  %v3642_v14 = vmul.f32 %v7192_v34, %v3564_v16  ;;  %v3558_v39 = vadd.f32 0.5, %v3519_v27  ;;  %12021 = vst [vmem:[#allocation67_spill] sm:$0xff] %v10287_v11  ;;  %12022 = vst [vmem:[#allocation68_spill] sm:$0xff] %v10294_v49  ;;  %v12024_v16 = vld [vmem:[#allocation21_spill] sm:$0xff]  ;;  %v12027_v60 = vld [vmem:[#allocation102_spill] sm:$0xff] }
 0x50e   :  { %v7196_v47 = vpop.eup %7195  ;;  %v3520_v46 = vmul.f32 0.5, %v7194_v0  ;;  %12023 = vst [vmem:[#allocation69_spill] sm:$0xff] %v10301_v63  ;;  %v12025_v34 = vld [vmem:[#allocation101_spill] sm:$0xff] }
 0x50f   :  { %v3649_v36 = vpack.c.bf16 %v3642_v14, %v3642_v14  ;;  %v3640_v13 = vmul.f32 %v7196_v47, %v3562_v29  ;;  %v7198_v53 = vpop.eup %7197  ;;  %v12026_v29 = vld [vmem:[#allocation27_spill] sm:$0xff] }
 0x510   :  { %v7200_v54 = vpop.eup %7199  ;;  %v3559_v25 = vadd.f32 0.5, %v3520_v46  ;;  %v3636_v43 = vmul.f32 %v7198_v53, %v3558_v39  ;;  %v1700_v14 = vadd.f32 %v12027_v60, %v12026_v29  ;;  %v12030_v39 = vld [vmem:[#allocation13_spill] sm:$0xff]  ;;  %v12035_v60 = vld [vmem:[#allocation107_spill] sm:$0xff] }
 0x511   :  { %6775 = vmatprep.subr.msk.bf16.mxu0 %vm936_vm3, %v3649_v36  ;;  %v3651_v59 = vsel %vm936_vm3, %v3649_v36, 0  ;;  %v3648_v23 = vpack.c.bf16 %v3641_v32, %v3640_v13  ;;  %v12028_v36 = vld [vmem:[#allocation24_spill] sm:$0xff]  ;;  %v12029_v13 = vld [vmem:[#allocation103_spill] sm:$0xff] }
 0x512   :  { %6492 = vmatpush3.bf16.msra.mxu0 %v3651_v59  ;;  %v3637_v52 = vmul.f32 %v7200_v54, %v3559_v25  ;;  %v1711_v32 = vadd.f32 %v12029_v13, %v12028_v36  ;;  %v12031_v54 = vld [vmem:[#allocation105_spill] sm:$0xff]  ;;  %v12038_v36 = vld [vmem:[#allocation8_spill] sm:$0xff] }
 0x513   :  { %6493 = vmatprep.subr.bf16.mxu0 %v3648_v23  ;;  %v1724_v25 = vadd.f32 %v12031_v54, %v12030_v39 }
 0x514   :  { %v3646_v18 = vpack.c.bf16 %v3637_v52, %v3636_v43  ;;  %v12032_v52 = vld [vmem:[#allocation18_spill] sm:$0xff] }
 0x516   :  { %6494 = vmatpush3.bf16.msra.mxu0 %v3648_v23 }
 0x517   :  { %6495 = vmatprep.subr.bf16.mxu0 %v3647_v48 }
 0x51a   :  { %6496 = vmatpush3.bf16.msra.mxu0 %v3647_v48  ;;  %v1708_v48 = vadd.f32 %v12025_v34, %v12024_v16  ;;  %v12034_v34 = vld [vmem:[#allocation14_spill] sm:$0xff] }
 0x51b   :  { %6497 = vmatprep.subr.bf16.mxu0 %v3646_v18 }
 0x51e   :  { %6498 = vmatpush3.bf16.msra.mxu0 %v3646_v18  ;;  %v12033_v18 = vld [vmem:[#allocation106_spill] sm:$0xff] }
 0x51f   :  { %6499 = vmatprep.subr.bf16.mxu0 %v3645_v44 }
 0x522   :  { %6500 = vmatpush3.bf16.msra.mxu0 %v3645_v44  ;;  %v10210_v44 = vld [vmem:[%s11338_s4 + $0x60] sm:$0xff]  }
 0x523   :  { %6501 = vmatprep.subr.bf16.mxu0 %v3644_v55  ;;  %12010 = vst [vmem:[#allocation55_spill] sm:$0xff] %v10210_v44 }
 0x526   :  { %6502 = vmatpush3.bf16.msra.mxu0 %v3644_v55  ;;  %v10161_v55 = vld [vmem:[%s11338_s4 + $0x28] sm:$0xff]  }
 0x527   :  { %6503 = vmatprep.subr.bf16.mxu0 %v10100_v21  ;;  %12003 = vst [vmem:[#allocation153_spill] sm:$0xff] %v10161_v55 }
 0x52a   :  { %6504 = vmatpush3.bf16.msra.mxu0 %v10100_v21  ;;  %v7489_v21 = vld [vmem:[%s11334_s0 + $0x70] sm:$0xff] }
 0x52b   :  { %6623 = vmatprep.subr.mxu0 %v11998_v38 }
 0x52d   :  { %6506 = vmatmul.mubr.msk.bf16.vlgmr.msra.gmra.mxu0 %vm2497_vm4, %v10121_v24 }
 0x52e   :  { %6509 = vmatprep.mubr.msk.bf16.mxu0 %vm2497_vm4, %v10128_v1  ;;  %6624 = vmatpush3.msra.mxu0 %v7489_v21  ;;  %v1716_v21 = vadd.f32 %v12033_v18, %v12032_v52  ;;  %v12111_v1 = vld [vmem:[#allocation144_spill] sm:$0xff] }
 0x52f   :  { %6625 = vmatprep.subr.mxu0 %v11998_v38 }
 0x530   :  { %6626 = vmatpush3.msra.mxu0 %v7490_v15 }
 0x531   :  { %6627 = vmatprep.subr.mxu0 %v11998_v38 }
 0x532   :  { %6628 = vmatpush3.msra.mxu0 %v7491_v30 }
 0x533   :  { %6733 = vmatprep.subr.mxu0 %v11998_v38 }
 0x535   :  { %6510 = vmatmul.mubr.msk.bf16.gmra.mxu0 %vm2497_vm4, %v10147_v57  ;;  %v12108_v57 = vld [vmem:[#allocation142_spill] sm:$0xff] }
 0x536   :  { %6513 = vmatprep.mubr.msk.bf16.mxu0 %vm2497_vm4, %v10154_v20  ;;  %v12106_v20 = vld [vmem:[#allocation140_spill] sm:$0xff] }
 0x53d   :  { %6514 = vmatmul.mubr.msk.bf16.gmra.mxu0 %vm2497_vm4, %v10161_v55  ;;  %v12102_v55 = vld [vmem:[#allocation23_spill] sm:$0xff] }
 0x53e   :  { %6517 = vmatprep.mubr.msk.bf16.mxu0 %vm2497_vm4, %v10168_v7 }
 0x545   :  { %6518 = vmatmul.mubr.msk.bf16.gmra.mxu0 %vm2497_vm4, %v10175_v28 }
 0x546   :  { %6521 = vmatprep.mubr.msk.bf16.mxu0 %vm2497_vm4, %v10182_v12 }
 0x54d   :  { %6522 = vmatmul.mubr.msk.bf16.gmra.mxu0 %vm2497_vm4, %v10189_v62 }
 0x54e   :  { %6525 = vmatprep.mubr.msk.bf16.mxu0 %vm2497_vm4, %v10196_v58 }
 0x555   :  { %6526 = vmatmul.mubr.msk.bf16.gmra.mxu0 %vm2497_vm4, %v10203_v41  ;;  %v12061_v41 = vld [vmem:[#allocation127_spill] sm:$0xff] }
 0x556   :  { %6529 = vmatprep.mubr.msk.bf16.mxu0 %vm2497_vm4, %v10210_v44  ;;  %v12060_v44 = vld [vmem:[#allocation43_spill] sm:$0xff] }
 0x557   :  { %v1807_v58 = vadd.f32 %v12061_v41, %v12060_v44  ;;  %v12071_v44 = vld [vmem:[#allocation131_spill] sm:$0xff] }
 0x55d   :  { %6530 = vmatmul.mubr.msk.bf16.gmra.mxu0 %vm2497_vm4, %v10217_v8 }
 0x55e   :  { %6533 = vmatprep.mubr.msk.bf16.mxu0 %vm2497_vm4, %v10224_v10  ;;  %v12059_v10 = vld [vmem:[#allocation108_spill] sm:$0xff] }
 0x565   :  { %6534 = vmatmul.mubr.msk.bf16.gmra.mxu0 %vm2497_vm4, %v10231_v56  ;;  %v12058_v56 = vld [vmem:[#allocation17_spill] sm:$0xff] }
 0x566   :  { %6537 = vmatprep.mubr.msk.bf16.mxu0 %vm2497_vm4, %v10238_v9  ;;  %v1719_v8 = vadd.f32 %v12059_v10, %v12058_v56  ;;  %v12064_v10 = vld [vmem:[#allocation37_spill] sm:$0xff] }
 0x567   :  { %v12065_v56 = vld [vmem:[#allocation129_spill] sm:$0xff] }
 0x56d   :  { %6538 = vmatmul.mubr.msk.bf16.gmra.mxu0 %vm2497_vm4, %v10245_v42 }
 0x56e   :  { %6541 = vmatprep.mubr.msk.bf16.mxu0 %vm2497_vm4, %v10252_v61  ;;  %v12053_v61 = vld [vmem:[#allocation119_spill] sm:$0xff] }
 0x575   :  { %6542 = vmatmul.mubr.msk.bf16.gmra.mxu0 %vm2497_vm4, %v10259_v4 }
 0x576   :  { %6545 = vmatprep.mubr.msk.bf16.mxu0 %vm2497_vm4, %v10266_v37 }
 0x57d   :  { %6546 = vmatmul.mubr.msk.bf16.gmra.mxu0 %vm2497_vm4, %v10273_v19  ;;  %v12049_v19 = vld [vmem:[#allocation117_spill] sm:$0xff] }
 0x57e   :  { %6549 = vmatprep.mubr.msk.bf16.mxu0 %vm2497_vm4, %v10280_v31  ;;  %v12045_v31 = vld [vmem:[#allocation114_spill] sm:$0xff] }
 0x585   :  { %6550 = vmatmul.mubr.msk.bf16.gmra.mxu0 %vm2497_vm4, %v10287_v11 }
 0x586   :  { %6553 = vmatprep.mubr.msk.bf16.mxu0 %vm2497_vm4, %v10294_v49 }
 0x58d   :  { %6554 = vmatmul.mubr.msk.bf16.gmra.mxu0 %vm2497_vm4, %v10301_v63  ;;  %v12039_v63 = vld [vmem:[#allocation110_spill] sm:$0xff] }
 0x58e   :  { %6629 = vmatprep.mubr.msk.f32.mxu0 %vm7539_vm0, %v11998_v38  ;;  %v1732_v54 = vadd.f32 %v12039_v63, %v12038_v36  ;;  %v12113_v38 = vld [vmem:[#allocation146_spill] sm:$0xff] }
 0x5ed   :  { %v6507_v0 = vpop.f32.mrf.mxu0 }
 0x5ee   :  { %v3896_v47 = vadd.f32 %v6507_v0, %v1708_v48  ;;  %v1727_v48 = vadd.f32 %v12035_v60, %v12034_v34 }
 0x5ef   :  { %v3687_v27 = vpop.f32.mrf.mxu0 }
 0x5f0   :  { %v3894_v46 = vadd.f32 %v3687_v27, %v1700_v14  ;;  %v12036_v14 = vld [vmem:[#allocation7_spill] sm:$0xff]  ;;  %v12037_v27 = vld [vmem:[#allocation109_spill] sm:$0xff] }
 0x5f1   :  { %v6508_v59 = vpop.f32.mrf.mxu0 }
 0x5f2   :  { %v3897_v23 = vadd.f32 %v6508_v59, %v1711_v32  ;;  %v1740_v32 = vadd.f32 %v12037_v27, %v12036_v14  ;;  %v12044_v14 = vld [vmem:[#allocation5_spill] sm:$0xff]  ;;  %v3946_v62 = vmul.f32 0.5, %v3894_v46 }
 0x5f3   :  { %v3690_v53 = vpop.f32.mrf.mxu0  ;;  %v1748_v63 = vadd.f32 %v12045_v31, %v12044_v14  ;;  %v12052_v14 = vld [vmem:[#allocation174_spill] sm:$0xff] }
 0x5f4   :  { %v1775_v42 = vadd.f32 %v12053_v61, %v12052_v14  ;;  %v12057_v61 = vld [vmem:[#allocation125_spill] sm:$0xff]  ;;  %v3949_v12 = vmul.f32 0.5, %v3897_v23  ;;  %v12066_v23 = vld [vmem:[#allocation72_spill] sm:$0xff] }
 0x5f5   :  { %v6511_v43 = vpop.f32.mrf.mxu0 }
 0x5f6   :  { %v3900_v15 = vadd.f32 %v6511_v43, %v1724_v25  ;;  %v12040_v25 = vld [vmem:[#allocation6_spill] sm:$0xff]  ;;  %v12041_v43 = vld [vmem:[#allocation111_spill] sm:$0xff] }
 0x5f7   :  { %v3703_v30 = vpop.f32.mrf.mxu0  ;;  %v1743_v18 = vadd.f32 %v12041_v43, %v12040_v25 }
 0x5f8   :  { %v3898_v0 = vadd.f32 %v3703_v30, %v1716_v21  ;;  %v12043_v30 = vld [vmem:[#allocation113_spill] sm:$0xff] }
 0x5f9   :  { %v6512_v29 = vpop.f32.mrf.mxu0 }
 0x5fa   :  { %v3901_v16 = vadd.f32 %v6512_v29, %v1727_v48  ;;  %v12042_v29 = vld [vmem:[#allocation58_spill] sm:$0xff] }
 0x5fb   :  { %v3706_v13 = vpop.f32.mrf.mxu0  ;;  %v1756_v48 = vadd.f32 %v12043_v30, %v12042_v29  ;;  %v12050_v29 = vld [vmem:[#allocation176_spill] sm:$0xff] }
 0x5fc   :  { %v3953_v41 = vmul.f32 0.5, %v3901_v16 }
 0x5fd   :  { %v6515_v59 = vpop.f32.mrf.mxu0 }
 0x5fe   :  { %v3904_v39 = vadd.f32 %v6515_v59, %v1740_v32  ;;  %v12046_v59 = vld [vmem:[#allocation60_spill] sm:$0xff] }
 0x5ff   :  { %v3719_v49 = vpop.f32.mrf.mxu0 }
 0x600   :  { %v10323_v11 = vadd.f32 %v3719_v49, %v1732_v54  ;;  %v12047_v49 = vld [vmem:[#allocation115_spill] sm:$0xff] }
 0x601   :  { %v6516_v52 = vpop.f32.mrf.mxu0  ;;  %v1759_v54 = vadd.f32 %v12047_v49, %v12046_v59  ;;  %v12056_v59 = vld [vmem:[#allocation41_spill] sm:$0xff] }
 0x602   :  { %v10327_v60 = vadd.f32 %v6516_v52, %v1743_v18  ;;  %v12048_v18 = vld [vmem:[#allocation53_spill] sm:$0xff] }
 0x603   :  { %v3722_v21 = vpop.f32.mrf.mxu0  ;;  %v1772_v37 = vadd.f32 %v12049_v19, %v12048_v18 }
 0x605   :  { %v6519_v34 = vpop.f32.mrf.mxu0 }
 0x606   :  { %v10331_v27 = vadd.f32 %v6519_v34, %v1756_v48  ;;  %v12051_v34 = vld [vmem:[#allocation118_spill] sm:$0xff] }
 0x607   :  { %v3735_v32 = vpop.f32.mrf.mxu0  ;;  %v1764_v48 = vadd.f32 %v12051_v34, %v12050_v29 }
 0x608   :  { %v10337_v36 = vadd.f32 %v3735_v32, %v1748_v63 }
 0x609   :  { %v6520_v43 = vpop.f32.mrf.mxu0 }
 0x60a   :  { %v10339_v25 = vadd.f32 %v6520_v43, %v1759_v54 }
 0x60b   :  { %v3738_v52 = vpop.f32.mrf.mxu0 }
 0x60d   :  { %v6523_v30 = vpop.f32.mrf.mxu0 }
 0x60e   :  { %v10345_v4 = vadd.f32 %v6523_v30, %v1772_v37  ;;  %v12054_v37 = vld [vmem:[#allocation30_spill] sm:$0xff]  ;;  %v12055_v30 = vld [vmem:[#allocation104_spill] sm:$0xff] }
 0x60f   :  { %v3751_v31 = vpop.f32.mrf.mxu0  ;;  %v1703_v29 = vadd.f32 %v12055_v30, %v12054_v37  ;;  %v3899_v37 = vadd.f32 %v3706_v13, %v1719_v8 }
 0x610   :  { %v10349_v49 = vadd.f32 %v3751_v31, %v1764_v48  ;;  %v1804_v48 = vadd.f32 %v12057_v61, %v12056_v59  ;;  %v12062_v61 = vld [vmem:[#allocation11_spill] sm:$0xff]  ;;  %v1820_v59 = vadd.f32 %v12065_v56, %v12064_v10 }
 0x611   :  { %v6524_v63 = vpop.f32.mrf.mxu0  ;;  %v3895_v14 = vadd.f32 %v3690_v53, %v1703_v29  ;;  %v3952_v53 = vmul.f32 0.5, %v3900_v15  ;;  %v3950_v29 = vmul.f32 0.5, %v3898_v0  ;;  %v3951_v15 = vmul.f32 0.5, %v3899_v37  ;;  %v12072_v37 = vld [vmem:[#allocation177_spill] sm:$0xff] }
 0x612   :  { %v10351_v32 = vadd.f32 %v6524_v63, %v1775_v42  ;;  %v3948_v42 = vmul.f32 0.5, %v3896_v47 }
 0x613   :  { %v10353_v54 = vpop.f32.mrf.mxu0  ;;  %v3947_v30 = vmul.f32 0.5, %v3895_v14  ;;  %v12067_v14 = vld [vmem:[#allocation116_spill] sm:$0xff] }
 0x614   :  { %7201 = vtanh.f32 %v3948_v42  ;;  %v1751_v8 = vadd.f32 %v12067_v14, %v12066_v23  ;;  %v3957_v14 = vmul.f32 0.5, %v10327_v60  ;;  %v12078_v60 = vld [vmem:[#allocation49_spill] sm:$0xff]  ;;  %v12099_v23 = vld [vmem:[#allocation20_spill] sm:$0xff] }
 0x615   :  { %v10355_v43 = vpop.f32.mrf.mxu0  ;;  %7203 = vtanh.f32 %v3946_v62  ;;  %v3956_v62 = vmul.f32 0.5, %v3904_v39 }
 0x616   :  { %7205 = vtanh.f32 %v3949_v12  ;;  %v3954_v12 = vmul.f32 0.5, %v10323_v11  ;;  %v12077_v11 = vld [vmem:[#allocation122_spill] sm:$0xff] }
 0x617   :  { %v10357_v19 = vpop.f32.mrf.mxu0  ;;  %7207 = vtanh.f32 %v3947_v30 }
 0x618   :  { %7209 = vtanh.f32 %v3952_v53  ;;  %v12073_v53 = vld [vmem:[#allocation120_spill] sm:$0xff] }
 0x619   :  { %v10359_v18 = vpop.f32.mrf.mxu0  ;;  %7211 = vtanh.f32 %v3950_v29  ;;  %v1767_v39 = vadd.f32 %v12073_v53, %v12072_v37  ;;  %v12081_v53 = vld [vmem:[#allocation124_spill] sm:$0xff]  ;;  %v12094_v37 = vld [vmem:[#allocation135_spill] sm:$0xff] }
 0x61a   :  { %7213 = vtanh.f32 %v3953_v41 }
 0x61b   :  { %v10361_v34 = vpop.f32.mrf.mxu0  ;;  %7215 = vtanh.f32 %v3951_v15 }
 0x61c   :  { %7217 = vtanh.f32 %v3956_v62  ;;  %v12086_v62 = vld [vmem:[#allocation42_spill] sm:$0xff] }
 0x61d   :  { %v6531_v31 = vpop.f32.mrf.mxu0  ;;  %7219 = vtanh.f32 %v3954_v12  ;;  %v12093_v12 = vld [vmem:[#allocation32_spill] sm:$0xff] }
 0x61e   :  { %v10367_v63 = vadd.f32 %v6531_v31, %v1804_v48  ;;  %v12063_v48 = vld [vmem:[#allocation112_spill] sm:$0xff]  ;;  %7221 = vtanh.f32 %v3957_v14  ;;  %v3958_v14 = vmul.f32 0.5, %v10337_v36  ;;  %v12107_v36 = vld [vmem:[#allocation26_spill] sm:$0xff] }
 0x61f   :  { %v10369_v9 = vpop.f32.mrf.mxu0  ;;  %v1735_v31 = vadd.f32 %v12063_v48, %v12062_v61  ;;  %v12070_v61 = vld [vmem:[#allocation40_spill] sm:$0xff] }
 0x620   :  { %v1823_v56 = vadd.f32 %v12071_v44, %v12070_v61  ;;  %v12075_v44 = vld [vmem:[#allocation121_spill] sm:$0xff]  ;;  %v12080_v61 = vld [vmem:[#allocation172_spill] sm:$0xff] }
 0x621   :  { %v6532_v28 = vpop.f32.mrf.mxu0  ;;  %v3903_v0 = vadd.f32 %v3722_v21, %v1735_v31  ;;  %v3960_v21 = vmul.f32 0.5, %v10331_v27  ;;  %v12074_v31 = vld [vmem:[#allocation167_spill] sm:$0xff]  ;;  %v10410_v15 = vadd.f32 %v12081_v53, %v12080_v61  ;;  %v12082_v27 = vld [vmem:[#allocation164_spill] sm:$0xff]  ;;  %v12089_v53 = vld [vmem:[#allocation133_spill] sm:$0xff] }
 0x622   :  { %v10375_v7 = vadd.f32 %v6532_v28, %v1807_v58  ;;  %v12068_v28 = vld [vmem:[#allocation39_spill] sm:$0xff]  ;;  %v12069_v58 = vld [vmem:[#allocation130_spill] sm:$0xff]  ;;  %v1788_v29 = vadd.f32 %v12075_v44, %v12074_v31  ;;  %v12090_v31 = vld [vmem:[#allocation33_spill] sm:$0xff] }
 0x623   :  { %v10377_v47 = vpop.f32.mrf.mxu0  ;;  %v1812_v13 = vadd.f32 %v12069_v58, %v12068_v28  ;;  %v3907_v58 = vadd.f32 %v3738_v52, %v1751_v8  ;;  %v3955_v41 = vmul.f32 0.5, %v3903_v0  ;;  %v12079_v52 = vld [vmem:[#allocation123_spill] sm:$0xff]  ;;  %v12085_v28 = vld [vmem:[#allocation128_spill] sm:$0xff]  ;;  %7223 = vtanh.f32 %v3960_v21 }
 0x624   :  { %v1791_v8 = vadd.f32 %v12079_v52, %v12078_v60  ;;  %v12084_v44 = vld [vmem:[#allocation159_spill] sm:$0xff]  ;;  %v12087_v0 = vld [vmem:[#allocation132_spill] sm:$0xff]  ;;  %v12088_v60 = vld [vmem:[#allocation29_spill] sm:$0xff] }
 0x625   :  { %v6535_v46 = vpop.f32.mrf.mxu0  ;;  %v10418_v10 = vadd.f32 %v12085_v28, %v12084_v44  ;;  %v10428_v61 = vadd.f32 %v12089_v53, %v12088_v60  ;;  %v10436_v28 = vadd.f32 %v12094_v37, %v12093_v12  ;;  %v12095_v44 = vld [vmem:[#allocation36_spill] sm:$0xff]  ;;  %7225 = vtanh.f32 %v3955_v41  ;;  %v7202_v60 = vpop.eup %7201  ;;  %v12103_v37 = vld [vmem:[#allocation138_spill] sm:$0xff]  ;;  %v12105_v21 = vld [vmem:[#allocation35_spill] sm:$0xff] }
 0x626   :  { %v10387_v42 = vadd.f32 %v6535_v46, %v1820_v59  ;;  %v12076_v46 = vld [vmem:[#allocation171_spill] sm:$0xff]  ;;  %v10452_v12 = vadd.f32 %v12103_v37, %v12102_v55  ;;  %v3961_v41 = vmul.f32 0.5, %v10339_v25  ;;  %v12112_v55 = vld [vmem:[#allocation38_spill] sm:$0xff]  ;;  %v12114_v25 = vld [vmem:[#allocation25_spill] sm:$0xff] }
 0x627   :  { %v3799_v48 = vpop.f32.mrf.mxu0 }
 0x628   :  { %v10392_v16 = vadd.f32 %v3799_v48, %v1812_v13  ;;  %v1780_v13 = vadd.f32 %v12077_v11, %v12076_v46  ;;  %v10422_v11 = vadd.f32 %v12087_v0, %v12086_v62  ;;  %v3959_v46 = vmul.f32 0.5, %v3907_v58  ;;  %v12096_v0 = vld [vmem:[#allocation136_spill] sm:$0xff]  ;;  %12104 = vst [vmem:[#allocation76_spill] sm:$0xff] %v10452_v12 }
 0x629   :  { %v6536_v30 = vpop.f32.mrf.mxu0  ;;  %v10440_v62 = vadd.f32 %v12096_v0, %v12095_v44  ;;  %v3911_v58 = vadd.f32 %v10353_v54, %v1767_v39  ;;  %v1855_v0 = vadd.f32 %v12106_v20, %v12105_v21  ;;  %v7204_v44 = vpop.eup %7203  ;;  %v10459_v54 = vadd.f32 %v12108_v57, %v12107_v36  ;;  %v12110_v39 = vld [vmem:[#allocation34_spill] sm:$0xff]  ;;  %v12115_v21 = vld [vmem:[#allocation148_spill] sm:$0xff]  ;;  %v12116_v57 = vld [vmem:[#allocation31_spill] sm:$0xff] }
 0x62a   :  { %v10398_v59 = vadd.f32 %v6536_v30, %v1823_v56  ;;  %v12083_v56 = vld [vmem:[#allocation126_spill] sm:$0xff]  ;;  %v10463_v24 = vadd.f32 %v12111_v1, %v12110_v39  ;;  %7227 = vtanh.f32 %v3959_v46  ;;  %v7206_v37 = vpop.eup %7205  ;;  %v10470_v20 = vadd.f32 %v12113_v38, %v12112_v55 }
 0x62b   :  { %v10404_v48 = vpop.f32.mrf.mxu0  ;;  %v10414_v30 = vadd.f32 %v12083_v56, %v12082_v27  ;;  %v12091_v56 = vld [vmem:[#allocation134_spill] sm:$0xff]  ;;  %12097 = vst [vmem:[#allocation143_spill] sm:$0xff] %v10440_v62  ;;  %12109 = vst [vmem:[#allocation78_spill] sm:$0xff] %v10459_v54  ;;  %v10474_v22 = vadd.f32 %v12115_v21, %v12114_v25  ;;  %v3962_v1 = vmul.f32 0.5, %v10349_v49  ;;  %v7208_v46 = vpop.eup %7207  ;;  %7229 = vtanh.f32 %v3958_v14  ;;  %v12121_v21 = vld [vmem:[#allocation28_spill] sm:$0xff] }
 0x62c   :  { %v10432_v27 = vadd.f32 %v12091_v56, %v12090_v31  ;;  %v12100_v56 = vld [vmem:[#allocation137_spill] sm:$0xff]  ;;  %v12117_v36 = vld [vmem:[#allocation150_spill] sm:$0xff]  ;;  %v3963_v62 = vmul.f32 0.5, %v3911_v58  ;;  %v3916_v38 = vadd.f32 %v10355_v43, %v1788_v29  ;;  %7231 = vtanh.f32 %v3961_v41  ;;  %v12127_v43 = vld [vmem:[#allocation12_spill] sm:$0xff] }
 0x62d   :  { %v10424_v52 = vpop.f32.mrf.mxu0  ;;  %v10448_v31 = vadd.f32 %v12100_v56, %v12099_v23  ;;  %v3964_v56 = vmul.f32 0.5, %v10345_v4  ;;  %v10478_v2 = vadd.f32 %v12117_v36, %v12116_v57  ;;  %v12118_v39 = vld [vmem:[#allocation22_spill] sm:$0xff]  ;;  %v12119_v4 = vld [vmem:[#allocation152_spill] sm:$0xff]  ;;  %v12123_v36 = vld [vmem:[#allocation15_spill] sm:$0xff]  ;;  %v3914_v49 = vadd.f32 %v10357_v19, %v1780_v13 }
 0x62e   :  { %12092 = vst [vmem:[#allocation139_spill] sm:$0xff] %v10432_v27  ;;  %v10483_v35 = vadd.f32 %v12119_v4, %v12118_v39  ;;  %v12122_v25 = vld [vmem:[#allocation154_spill] sm:$0xff]  ;;  %v12124_v57 = vld [vmem:[#allocation156_spill] sm:$0xff]  ;;  %v12125_v39 = vld [vmem:[#allocation19_spill] sm:$0xff]  ;;  %v4026_v54 = vmul.f32 0.5, %v7202_v60  ;;  %v4024_v12 = vmul.f32 0.5, %v7204_v44 }
 0x62f   :  { %v10444_v53 = vpop.f32.mrf.mxu0  ;;  %12101 = vst [vmem:[#allocation70_spill] sm:$0xff] %v10448_v31  ;;  %v10490_v27 = vadd.f32 %v12122_v25, %v12121_v21  ;;  %v10494_v17 = vadd.f32 %v12124_v57, %v12123_v36  ;;  %v12126_v14 = vld [vmem:[#allocation158_spill] sm:$0xff]  ;;  %v12128_v29 = vld [vmem:[#allocation161_spill] sm:$0xff]  ;;  %7233 = vtanh.f32 %v3964_v56  ;;  %v4027_v57 = vmul.f32 0.5, %v7206_v37  ;;  %v12132_v60 = vld [vmem:[#allocation163_spill] sm:$0xff] }
 0x630   :  { %12098 = vst [vmem:[#allocation73_spill] sm:$0xff] %v10444_v53  ;;  %v7210_v53 = vpop.eup %7209  ;;  %v10499_v58 = vadd.f32 %v12126_v14, %v12125_v39  ;;  %7235 = vtanh.f32 %v3962_v1  ;;  %v3965_v41 = vmul.f32 0.5, %v10351_v32  ;;  %v4025_v13 = vmul.f32 0.5, %v7208_v46  ;;  %v12134_v31 = vld [vmem:[#allocation166_spill] sm:$0xff]  ;;  %v12136_v46 = vld [vmem:[#allocation169_spill] sm:$0xff] }
 0x631   :  { %v10466_v23 = vpop.f32.mrf.mxu0  ;;  %v7212_v4 = vpop.eup %7211  ;;  %7237 = vtanh.f32 %v3963_v62  ;;  %v3968_v36 = vmul.f32 0.5, %v3916_v38  ;;  %v3917_v14 = vadd.f32 %v10359_v18, %v1791_v8  ;;  %v3966_v37 = vmul.f32 0.5, %v3914_v49  ;;  %v12135_v62 = vld [vmem:[#allocation10_spill] sm:$0xff] }
 0x632   :  { %v7214_v21 = vpop.eup %7213  ;;  %v3915_v32 = vadd.f32 %v10361_v34, %v10410_v15  ;;  %v10523_v38 = vadd.f32 %v12136_v46, %v12135_v62  ;;  %v10525_v18 = vadd.f32 0.5, %v4026_v54  ;;  %v4030_v8 = vmul.f32 0.5, %v7210_v53 }
 0x633   :  { %v10486_v55 = vpop.f32.mrf.mxu0  ;;  %v7216_v19 = vpop.eup %7215  ;;  %v4031_v45 = vmul.f32 0.5, %v7214_v21  ;;  %7239 = vtanh.f32 %v3965_v41  ;;  %v10531_v34 = vadd.f32 0.5, %v4025_v13  ;;  %v3969_v15 = vmul.f32 0.5, %v3917_v14 }
 0x634   :  { %12120 = vst [vmem:[#allocation71_spill] sm:$0xff] %v10486_v55  ;;  %v10503_v55 = vadd.f32 %v12128_v29, %v12127_v43  ;;  %v7218_v29 = vpop.eup %7217  ;;  %v12131_v43 = vld [vmem:[#allocation16_spill] sm:$0xff]  ;;  %12137 = vst [vmem:[#allocation85_spill] sm:$0xff] %v10523_v38  ;;  %7241 = vtanh.f32 %v3968_v36  ;;  %v4029_v62 = vmul.f32 0.5, %v7216_v19  ;;  %v10535_v38 = vadd.f32 0.5, %v4030_v8 }
 0x635   :  { %v10505_v25 = vpop.f32.mrf.mxu0  ;;  %v10513_v56 = vadd.f32 %v12132_v60, %v12131_v43  ;;  %v7220_v1 = vpop.eup %7219  ;;  %v10527_v43 = vadd.f32 0.5, %v4024_v12  ;;  %v4034_v53 = vmul.f32 0.5, %v7218_v29  ;;  %7243 = vtanh.f32 %v3966_v37 }
 0x636   :  { %12129 = vst [vmem:[#allocation75_spill] sm:$0xff] %v10505_v25  ;;  %v12133_v25 = vld [vmem:[#allocation9_spill] sm:$0xff]  ;;  %v7222_v60 = vpop.eup %7221  ;;  %v4032_v36 = vmul.f32 0.5, %v7220_v1  ;;  %v3972_v29 = vmul.f32 0.5, %v10367_v63 }
 0x637   :  { %v10509_v39 = vpop.f32.mrf.mxu0  ;;  %v10517_v44 = vadd.f32 %v12134_v31, %v12133_v25  ;;  %v7224_v49 = vpop.eup %7223  ;;  %v10529_v25 = vadd.f32 0.5, %v4027_v57  ;;  %v10541_v57 = vadd.f32 0.5, %v4031_v45  ;;  %v4035_v19 = vmul.f32 0.5, %v7222_v60 }
 0x638   :  { %12130 = vst [vmem:[#allocation81_spill] sm:$0xff] %v10509_v39  ;;  %v4028_v39 = vmul.f32 0.5, %v7212_v4  ;;  %v7226_v54 = vpop.eup %7225  ;;  %v3967_v4 = vmul.f32 0.5, %v3915_v32  ;;  %v4038_v41 = vmul.f32 0.5, %v7224_v49  ;;  %v10545_v32 = vadd.f32 0.5, %v4029_v62 }
 0x639   :  { %v6544_v3 = vpop.f32.mrf.mxu0  ;;  %v7228_v21 = vpop.eup %7227  ;;  %v4033_v14 = vmul.f32 0.5, %v7226_v54  ;;  %v10547_v8 = vadd.f32 0.5, %v4034_v53  ;;  %v10552_v49 = vadd.f32 0.5, %v4032_v36  ;;  %v10555_v54 = vadd.f32 0.5, %v4035_v19 }
 0x63a   :  { %v3933_v31 = vadd.f32 %v6544_v3, %v1855_v0  ;;  %v10537_v12 = vadd.f32 0.5, %v4028_v39  ;;  %v3918_v3 = vadd.f32 %v10369_v9, %v10414_v30  ;;  %v7230_v39 = vpop.eup %7229  ;;  %v4037_v30 = vmul.f32 0.5, %v7228_v21 }
 0x63b   :  { %v10533_v46 = vpop.f32.mrf.mxu0  ;;  %v7232_v45 = vpop.eup %7231  ;;  %v4077_v63 = vadd.f32 0.5, %v4038_v41  ;;  %v10557_v53 = vadd.f32 0.5, %v4033_v14 }
 0x63c   :  { %7245 = vtanh.f32 %v3933_v31  ;;  %v3970_v1 = vmul.f32 0.5, %v3918_v3  ;;  %v7234_v31 = vpop.eup %7233  ;;  %v4076_v21 = vadd.f32 0.5, %v4037_v30 }
 0x63d   :  { %v6547_v0 = vpop.f32.mrf.mxu0  ;;  %7247 = vtanh.f32 %v3969_v15  ;;  %v7236_v15 = vpop.eup %7235  ;;  %v4042_v36 = vmul.f32 0.5, %v7234_v31 }
 0x63e   :  { %v3936_v13 = vadd.f32 %v6547_v0, %v10463_v24  ;;  %7249 = vtanh.f32 %v3967_v4  ;;  %v3919_v24 = vadd.f32 %v10377_v47, %v10418_v10  ;;  %v7238_v3 = vpop.eup %7237  ;;  %v4036_v47 = vmul.f32 0.5, %v7230_v39 }
 0x63f   :  { %v3847_v37 = vpop.f32.mrf.mxu0  ;;  %v4039_v10 = vmul.f32 0.5, %v7232_v45  ;;  %v4040_v19 = vmul.f32 0.5, %v7236_v15 }
 0x640   :  { %v3934_v9 = vadd.f32 %v3847_v37, %v10470_v20  ;;  %7251 = vtanh.f32 %v3936_v13  ;;  %v3973_v20 = vmul.f32 0.5, %v10375_v7  ;;  %v3971_v41 = vmul.f32 0.5, %v3919_v24  ;;  %v7240_v7 = vpop.eup %7239 }
 0x641   :  { %v6548_v60 = vpop.f32.mrf.mxu0  ;;  %v10562_v13 = vmul.f32 %v4077_v63, %v10041_v50  ;;  %v3976_v37 = vmul.f32 0.5, %v10387_v42  ;;  %v10568_v45 = vadd.f32 0.5, %v4036_v47  ;;  %v4078_v30 = vadd.f32 0.5, %v4039_v10 }
 0x642   :  { %7253 = vtanh.f32 %v3934_v9  ;;  %v3937_v62 = vadd.f32 %v6548_v60, %v10474_v22  ;;  %v7242_v9 = vpop.eup %7241  ;;  %v4115_v24 = vmul.f32 %v4076_v21, %v10026_v5  ;;  %v3974_v60 = vmul.f32 0.5, %v10392_v16 }
 0x643   :  { %7255 = vtanh.f32 %v3972_v29  ;;  %v3850_v4 = vpop.f32.mrf.mxu0  ;;  %v4041_v29 = vmul.f32 0.5, %v7238_v3  ;;  %v4079_v63 = vadd.f32 0.5, %v4040_v19  ;;  %v4117_v5 = vmul.f32 %v4078_v30, %v10058_v51 }
 0x644   :  { %7257 = vtanh.f32 %v3937_v62  ;;  %v3935_v0 = vadd.f32 %v3850_v4, %v10478_v2  ;;  %v3923_v2 = vadd.f32 %v10404_v48, %v10422_v11  ;;  %v4043_v62 = vmul.f32 0.5, %v7240_v7 }
 0x645   :  { %7259 = vtanh.f32 %v3970_v1  ;;  %v6551_v22 = vpop.f32.mrf.mxu0  ;;  %v7244_v1 = vpop.eup %7243  ;;  %v4080_v11 = vadd.f32 0.5, %v4041_v29  ;;  %v4046_v3 = vmul.f32 0.5, %v7242_v9 }
 0x646   :  { %7261 = vtanh.f32 %v3935_v0  ;;  %v3940_v14 = vadd.f32 %v6551_v22, %v10483_v35  ;;  %v4081_v35 = vadd.f32 0.5, %v4042_v36  ;;  %v3975_v15 = vmul.f32 0.5, %v3923_v2 }
 0x647   :  { %7263 = vtanh.f32 %v3973_v20  ;;  %v3863_v39 = vpop.f32.mrf.mxu0  ;;  %v4044_v0 = vmul.f32 0.5, %v7244_v1  ;;  %v4119_v19 = vmul.f32 %v4080_v11, %v10049_v33  ;;  %v4085_v29 = vadd.f32 0.5, %v4046_v3  ;;  %v12142_v3 = vld [vmem:[#allocation75_spill] sm:$0xff] }
 0x648   :  { %7265 = vtanh.f32 %v3940_v14  ;;  %v3938_v50 = vadd.f32 %v3863_v39, %v10490_v27  ;;  %v10580_v10 = vmul.f32 %v4081_v35, %v10074_v6 }
 0x649   :  { %7267 = vtanh.f32 %v3971_v41  ;;  %v6552_v31 = vpop.f32.mrf.mxu0  ;;  %v7246_v42 = vpop.eup %7245  ;;  %v4082_v41 = vadd.f32 0.5, %v4043_v62  ;;  %v4083_v39 = vadd.f32 0.5, %v4044_v0  ;;  %v12143_v0 = vld [vmem:[#allocation76_spill] sm:$0xff] }
 0x64a   :  { %7269 = vtanh.f32 %v3938_v50  ;;  %v3941_v48 = vadd.f32 %v6552_v31, %v10494_v17  ;;  %v4128_v20 = vmul.f32 %v7246_v42, %v10527_v43  ;;  %v10575_v4 = vpop.eup %7247  ;;  %v4118_v43 = vmul.f32 %v4079_v63, %v10038_v26 }
 0x64b   :  { %7271 = vtanh.f32 %v3976_v37  ;;  %v3866_v27 = vpop.f32.mrf.mxu0  ;;  %v7250_v47 = vpop.eup %7249  ;;  %v4121_v50 = vmul.f32 %v4082_v41, %v10087_v40  ;;  %v12140_v40 = vld [vmem:[#allocation155_spill] sm:$0xff] }
 0x64c   :  { %7273 = vtanh.f32 %v3941_v48  ;;  %v3939_v16 = vadd.f32 %v3866_v27, %v10499_v58  ;;  %v10582_v17 = vadd.f32 %v4128_v20, %v4115_v24  ;;  %v3977_v58 = vmul.f32 0.5, %v10398_v59  ;;  %v12141_v27 = vld [vmem:[#allocation70_spill] sm:$0xff] }
 0x64d   :  { %7275 = vtanh.f32 %v3974_v60  ;;  %v6555_v21 = vpop.f32.mrf.mxu0  ;;  %v7252_v36 = vpop.eup %7251  ;;  %v4045_v1 = vmul.f32 0.5, %v7250_v47  ;;  %v4122_v63 = vmul.f32 %v4083_v39, %v12140_v40 }
 0x64e   :  { %7277 = vtanh.f32 %v3939_v16  ;;  %v3944_v51 = vadd.f32 %v6555_v21, %v10503_v55  ;;  %v4131_v6 = vmul.f32 %v7252_v36, %v10529_v25  ;;  %v3928_v55 = vadd.f32 %v10424_v52, %v10428_v61  ;;  %v12144_v21 = vld [vmem:[#allocation81_spill] sm:$0xff] }
 0x64f   :  { %v7254_v22 = vpop.eup %7253  ;;  %7279 = vtanh.f32 %v3975_v15  ;;  %v3879_v14 = vpop.f32.mrf.mxu0  ;;  %v3929_v61 = vadd.f32 %v10466_v23, %v10436_v28  ;;  %v3932_v16 = vadd.f32 %v12142_v3, %v12141_v27  ;;  %v3930_v36 = vadd.f32 %v12144_v21, %v12143_v0  ;;  %v12155_v21 = vld [vmem:[#allocation173_spill] sm:$0xff] }
 0x650   :  { %v7256_v7 = vpop.eup %7255  ;;  %v4129_v37 = vmul.f32 %v7254_v22, %v10531_v34  ;;  %7281 = vtanh.f32 %v3944_v51  ;;  %v3942_v26 = vadd.f32 %v3879_v14, %v10513_v56  ;;  %v10594_v33 = vadd.f32 %v4131_v6, %v4118_v43  ;;  %v12145_v22 = vld [vmem:[#allocation78_spill] sm:$0xff] }
 0x651   :  { %v7258_v2 = vpop.eup %7257  ;;  %7283 = vtanh.f32 %v10582_v17  ;;  %v6556_v59 = vpop.f32.mrf.mxu0  ;;  %v3980_v62 = vmul.f32 0.5, %v3928_v55  ;;  %v3981_v20 = vmul.f32 0.5, %v3929_v61  ;;  %v4050_v51 = vmul.f32 0.5, %v7256_v7  ;;  %v12146_v7 = vld [vmem:[#allocation160_spill] sm:$0xff] }
 0x652   :  { %v7260_v9 = vpop.eup %7259  ;;  %v10597_v25 = vadd.f32 %v4129_v37, %v10562_v13  ;;  %v4132_v30 = vmul.f32 %v7258_v2, %v10537_v12  ;;  %7285 = vtanh.f32 %v3942_v26  ;;  %v3945_v34 = vadd.f32 %v6556_v59, %v10517_v44  ;;  %v12138_v12 = vld [vmem:[#allocation85_spill] sm:$0xff]  ;;  %v12139_v44 = vld [vmem:[#allocation170_spill] sm:$0xff] }
 0x653   :  { %v7262_v56 = vpop.eup %7261  ;;  %7287 = vtanh.f32 %v3977_v58  ;;  %v3882_v52 = vpop.f32.mrf.mxu0  ;;  %v10610_v42 = vmul.f32 %v4085_v29, %v12139_v44  ;;  %v4048_v23 = vmul.f32 0.5, %v7260_v9  ;;  %v3984_v2 = vmul.f32 0.5, %v3932_v16 }
 0x654   :  { %v7264_v24 = vpop.eup %7263  ;;  %7289 = vtanh.f32 %v10597_v25  ;;  %v10605_v35 = vadd.f32 %v4132_v30, %v4119_v19  ;;  %v4130_v13 = vmul.f32 %v7262_v56, %v10525_v18  ;;  %v3943_v60 = vadd.f32 %v3882_v52, %v12138_v12  ;;  %v12147_v30 = vld [vmem:[#allocation139_spill] sm:$0xff] }
 0x655   :  { %v7266_v31 = vpop.eup %7265  ;;  %7291 = vtanh.f32 %v3945_v34  ;;  %v4084_v18 = vadd.f32 0.5, %v4045_v1  ;;  %v3931_v19 = vadd.f32 %v10533_v46, %v12145_v22  ;;  %v4087_v6 = vadd.f32 0.5, %v4048_v23  ;;  %v12149_v56 = vld [vmem:[#allocation143_spill] sm:$0xff] }
 0x656   :  { %v7268_v48 = vpop.eup %7267  ;;  %7293 = vtanh.f32 %v10594_v33  ;;  %v10614_v28 = vadd.f32 %v4130_v13, %v4117_v5  ;;  %v4135_v11 = vmul.f32 %v7266_v31, %v10541_v57  ;;  %v4047_v57 = vmul.f32 0.5, %v10575_v4 }
 0x657   :  { %v7270_v15 = vpop.eup %7269  ;;  %7295 = vtanh.f32 %v3943_v60  ;;  %v4051_v26 = vmul.f32 0.5, %v7264_v24  ;;  %v4123_v39 = vmul.f32 %v4084_v18, %v12146_v7  ;;  %v3982_v55 = vmul.f32 0.5, %v3930_v36  ;;  %v12151_v24 = vld [vmem:[#allocation165_spill] sm:$0xff] }
 0x658   :  { %v7272_v47 = vpop.eup %7271  ;;  %7297 = vtanh.f32 %v10614_v28  ;;  %v10622_v43 = vadd.f32 %v4135_v11, %v4122_v63  ;;  %v4133_v5 = vmul.f32 %v7270_v15, %v10545_v32  ;;  %v4049_v32 = vmul.f32 0.5, %v7268_v48 }
 0x659   :  { %v7274_v41 = vpop.eup %7273  ;;  %7299 = vtanh.f32 %v3980_v62  ;;  %v4089_v9 = vadd.f32 0.5, %v4050_v51  ;;  %v3983_v61 = vmul.f32 0.5, %v3931_v19  ;;  %v4126_v13 = vmul.f32 %v4087_v6, %v12151_v24  ;;  %v12156_v6 = vld [vmem:[#allocation56_spill] sm:$0xff] }
 0x65a   :  { %v7276_v58 = vpop.eup %7275  ;;  %7301 = vtanh.f32 %v10605_v35  ;;  %v10630_v14 = vadd.f32 %v4133_v5, %v10580_v10  ;;  %v4136_v29 = vmul.f32 %v7274_v41, %v10552_v49  ;;  %v12148_v10 = vld [vmem:[#allocation73_spill] sm:$0xff]  ;;  %v12150_v49 = vld [vmem:[#allocation71_spill] sm:$0xff]  ;;  %v4088_v40 = vadd.f32 0.5, %v4049_v32 }
 0x65b   :  { %v7278_v37 = vpop.eup %7277  ;;  %7303 = vtanh.f32 %v3981_v20  ;;  %v3926_v34 = vadd.f32 %v12148_v10, %v12147_v30  ;;  %v3927_v1 = vadd.f32 %v12150_v49, %v12149_v56  ;;  %v4052_v63 = vmul.f32 0.5, %v7276_v58 }
 0x65c   :  { %v7280_v4 = vpop.eup %7279  ;;  %7305 = vtanh.f32 %v10630_v14  ;;  %v4134_v46 = vmul.f32 %v7278_v37, %v10535_v38  ;;  %v10641_v12 = vadd.f32 %v4136_v29, %v4123_v39  ;;  %v4090_v38 = vadd.f32 0.5, %v4051_v26 }
 0x65d   :  { %v7282_v59 = vpop.eup %7281  ;;  %7307 = vtanh.f32 %v3984_v2  ;;  %v4053_v48 = vmul.f32 0.5, %v7280_v4  ;;  %v4086_v18 = vadd.f32 0.5, %v4047_v57  ;;  %v3978_v20 = vmul.f32 0.5, %v3926_v34 }
 0x65e   :  { %v7284_v52 = vpop.eup %7283  ;;  %12152 = vst [vmem:[#allocation77_spill] sm:$0xff] %v10641_v12  ;;  %v10643_v60 = vadd.f32 %v4134_v46, %v4121_v50  ;;  %v4139_v31 = vmul.f32 %v7282_v59, %v10555_v54  ;;  %7309 = vtanh.f32 %v3982_v55  ;;  %v3979_v27 = vmul.f32 0.5, %v3927_v1 }
 0x65f   :  { %v7286_v44 = vpop.eup %7285  ;;  %7311 = vtanh.f32 %v3983_v61  ;;  %v4167_v3 = vmul.f32 %v7284_v52, %v4089_v9  ;;  %v4127_v36 = vmul.f32 %v4088_v40, %v12155_v21  ;;  %v4054_v5 = vmul.f32 0.5, %v7272_v47 }
 0x660   :  { %v7288_v62 = vpop.eup %7287  ;;  %v10646_v23 = vadd.f32 %v4139_v31, %v4126_v13  ;;  %v4137_v11 = vmul.f32 %v7286_v44, %v10557_v53  ;;  %7313 = vtanh.f32 %v10641_v12  ;;  %v4091_v41 = vadd.f32 0.5, %v4052_v63 }
 0x661   :  { %v7290_v15 = vpop.eup %7289  ;;  %v4055_v57 = vmul.f32 0.5, %v7288_v62  ;;  %v4092_v22 = vadd.f32 0.5, %v4053_v48  ;;  %v4093_v7 = vadd.f32 0.5, %v4054_v5 }
 0x662   :  { %12153 = vst [vmem:[#allocation79_spill] sm:$0xff] %v10646_v23  ;;  %v7292_v50 = vpop.eup %7291  ;;  %v10651_v54 = vadd.f32 %v4137_v11, %v10610_v42  ;;  %v4168_v16 = vmul.f32 %v7290_v15, %v4090_v38  ;;  %v4125_v42 = vmul.f32 %v4086_v18, %v12156_v6 }
 0x663   :  { %v7294_v0 = vpop.eup %7293  ;;  %v4140_v53 = vmul.f32 %v7292_v50, %v10568_v45  ;;  %v4094_v39 = vadd.f32 0.5, %v4055_v57 }
 0x664   :  { %12154 = vst [vmem:[#allocation147_spill] sm:$0xff] %v10651_v54  ;;  %v7296_v51 = vpop.eup %7295  ;;  %7315 = vtanh.f32 %v10651_v54  ;;  %v10656_v19 = vpack.c.bf16 %v4168_v16, %v4167_v3  ;;  %v4170_v45 = vmul.f32 %v7294_v0, %v4092_v22 }
 0x665   :  { %v7298_v58 = vpop.eup %7297  ;;  %7317 = vtanh.f32 %v3978_v20  ;;  %v10659_v29 = vadd.f32 %v4140_v53, %v4127_v36  ;;  %v4138_v37 = vmul.f32 %v7296_v51, %v10547_v8 }
 0x666   :  { %v7300_v26 = vpop.eup %7299  ;;  %7319 = vtanh.f32 %v10646_v23  ;;  %v4169_v47 = vmul.f32 %v7298_v58, %v4091_v41  ;;  %v12274_v23 = vld [vmem:[#allocation31_spill] sm:$0xff] }
 0x667   :  { %12157 = vst [vmem:[#allocation151_spill] sm:$0xff] %v10659_v29  ;;  %v7302_v32 = vpop.eup %7301  ;;  %7321 = vtanh.f32 %v10659_v29  ;;  %v10664_v2 = vadd.f32 %v4138_v37, %v4125_v42  ;;  %v4058_v30 = vmul.f32 0.5, %v7300_v26  ;;  %v12159_v26 = vmov 0.0  }
 0x668   :  { %v7304_v4 = vpop.eup %7303  ;;  %7323 = vtanh.f32 %v3979_v27  ;;  %v4181_v55 = vpack.c.bf16 %v4170_v45, %v4169_v47  ;;  %v4171_v59 = vmul.f32 %v7302_v32, %v4093_v7  ;;  %v12160_v47 = vld [vmem:[#allocation141_spill] sm:$0xff] }
 0x669   :  { %12158 = vst [vmem:[#allocation82_spill] sm:$0xff] %v10664_v2  ;;  %v7306_v46 = vpop.eup %7305  ;;  %7325 = vtanh.f32 %v10664_v2  ;;  %v4059_v10 = vmul.f32 0.5, %v7304_v4  ;;  %v4097_v52 = vadd.f32 0.5, %v4058_v30  ;;  %v12161_v45 = vld [vmem:[#allocation145_spill] sm:$0xff]  ;;  %v12172_v30 = vld [vmem:[#allocation178_spill] sm:$0xff]  ;;  %v12273_v2 = vld [vmem:[#allocation199_spill] sm:$0xff] }
 0x66a   :  { %v4172_v8 = vmul.f32 %v7306_v46, %v4094_v39  ;;  %v7308_v9 = vpop.eup %7307  ;;  %7327 = vtanh.f32 %v10643_v60  ;;  %v12162_v32 = vld [vmem:[#allocation181_spill] sm:$0xff]  ;;  %v12165_v39 = vld [vmem:[#allocation52_spill] sm:$0xff] }
 0x66b   :  { %v7310_v56 = vpop.eup %7309  ;;  %v4062_v61 = vmul.f32 0.5, %v7308_v9  ;;  %7329 = vtanh.f32 %v10622_v43  ;;  %v4098_v24 = vadd.f32 0.5, %v4059_v10  ;;  %v12163_v4 = vld [vmem:[#allocation149_spill] sm:$0xff]  ;;  %v12168_v46 = vld [vmem:[#allocation168_spill] sm:$0xff]  ;;  %v12171_v9 = vld [vmem:[#allocation55_spill] sm:$0xff] }
 0x66c   :  { %v4182_v34 = vpack.c.bf16 %v4172_v8, %v4171_v59  ;;  %v7312_v49 = vpop.eup %7311  ;;  %v4060_v31 = vmul.f32 0.5, %v7310_v56  ;;  %v12164_v7 = vld [vmem:[#allocation153_spill] sm:$0xff]  ;;  %v12169_v59 = vld [vmem:[#allocation51_spill] sm:$0xff]  ;;  %v12173_v10 = vld [vmem:[#allocation74_spill] sm:$0xff] }
 0x66d   :  { %v7314_v1 = vpop.eup %7313  ;;  %v4061_v44 = vmul.f32 0.5, %v7312_v49  ;;  %v4101_v48 = vadd.f32 0.5, %v4062_v61  ;;  %v12170_v8 = vld [vmem:[#allocation175_spill] sm:$0xff]  ;;  %v12176_v49 = vld [vmem:[#allocation62_spill] sm:$0xff] }
 0x66e   :  { %v4175_v40 = vmul.f32 %v7314_v1, %v4097_v52  ;;  %v4099_v20 = vadd.f32 0.5, %v4060_v31  ;;  %v12175_v56 = vld [vmem:[#allocation179_spill] sm:$0xff]  ;;  %v12177_v1 = vld [vmem:[#allocation64_spill] sm:$0xff]  ;;  %v12178_v61 = vld [vmem:[#allocation66_spill] sm:$0xff] }
 0x66f   :  { %v4100_v27 = vadd.f32 0.5, %v4061_v44  ;;  %v12179_v52 = vld [vmem:[#allocation50_spill] sm:$0xff]  ;;  %v12182_v31 = vld [vmem:[#allocation67_spill] sm:$0xff]  ;;  %v12183_v44 = vld [vmem:[#allocation68_spill] sm:$0xff] }
 0x671   :  { %v7316_v13 = vpop.eup %7315 }
 0x672   :  { %v7318_v38 = vpop.eup %7317  ;;  %v4176_v63 = vmul.f32 %v7316_v13, %v4098_v24  ;;  %v12180_v24 = vld [vmem:[#allocation54_spill] sm:$0xff]  ;;  %v12181_v13 = vld [vmem:[#allocation63_spill] sm:$0xff] }
 0x673   :  { %v7320_v62 = vpop.eup %7319  ;;  %v4056_v16 = vmul.f32 0.5, %v7318_v38  ;;  %v12184_v38 = vld [vmem:[#allocation69_spill] sm:$0xff] }
 0x674   :  { %v7322_v11 = vpop.eup %7321  ;;  %v4184_v15 = vpack.c.bf16 %v4176_v63, %v4175_v40  ;;  %v4178_v36 = vmul.f32 %v7320_v62, %v4100_v27  ;;  %v12185_v40 = vld [vmem:[#allocation21_spill] sm:$0xff]  ;;  %v12186_v63 = vld [vmem:[#allocation180_spill] sm:$0xff] }
 0x675   :  { %v7324_v18 = vpop.eup %7323  ;;  %v4179_v50 = vmul.f32 %v7322_v11, %v4101_v48  ;;  %v4095_v57 = vadd.f32 0.5, %v4056_v16  ;;  %v1954_v62 = vadd.f32 %v12186_v63, %v12185_v40  ;;  %v12187_v11 = vld [vmem:[#allocation27_spill] sm:$0xff] }
 0x676   :  { %v7326_v3 = vpop.eup %7325  ;;  %v4057_v5 = vmul.f32 0.5, %v7324_v18 }
 0x677   :  { %v4186_v0 = vpack.c.bf16 %v4179_v50, %v4179_v50  ;;  %v4177_v21 = vmul.f32 %v7326_v3, %v4099_v20  ;;  %v7328_v51 = vpop.eup %7327  ;;  %v12189_v50 = vld [vmem:[#allocation24_spill] sm:$0xff]  ;;  %v12190_v3 = vld [vmem:[#allocation94_spill] sm:$0xff] }
 0x678   :  { %v7330_v22 = vpop.eup %7329  ;;  %v4096_v58 = vadd.f32 0.5, %v4057_v5  ;;  %v4173_v6 = vmul.f32 %v7328_v51, %v4095_v57  ;;  %v1957_v16 = vadd.f32 %v12190_v3, %v12189_v50  ;;  %v12208_v50 = vld [vmem:[#allocation84_spill] sm:$0xff] }
 0x679   :  { %6776 = vmatprep.subr.msk.bf16.mxu1 %vm936_vm3, %v4186_v0  ;;  %v4188_v41 = vsel %vm936_vm3, %v4186_v0, 0  ;;  %v4185_v53 = vpack.c.bf16 %v4178_v36, %v4177_v21 }
 0x67a   :  { %6558 = vmatpush3.bf16.msra.mxu1 %v4188_v41  ;;  %v4174_v42 = vmul.f32 %v7330_v22, %v4096_v58  ;;  %v12191_v41 = vld [vmem:[#allocation13_spill] sm:$0xff]  ;;  %v12193_v22 = vld [vmem:[#allocation18_spill] sm:$0xff]  ;;  %v12194_v58 = vld [vmem:[#allocation96_spill] sm:$0xff] }
 0x67b   :  { %6559 = vmatprep.subr.bf16.mxu1 %v4185_v53 }
 0x67c   :  { %v4183_v37 = vpack.c.bf16 %v4174_v42, %v4173_v6  ;;  %v1962_v6 = vadd.f32 %v12194_v58, %v12193_v22 }
 0x67e   :  { %6560 = vmatpush3.bf16.msra.mxu1 %v4185_v53  ;;  %v12192_v53 = vld [vmem:[#allocation95_spill] sm:$0xff] }
 0x67f   :  { %6561 = vmatprep.subr.bf16.mxu1 %v4184_v15  ;;  %v1970_v51 = vadd.f32 %v12192_v53, %v12191_v41 }
 0x682   :  { %6562 = vmatpush3.bf16.msra.mxu1 %v4184_v15  ;;  %v12188_v15 = vld [vmem:[#allocation90_spill] sm:$0xff] }
 0x683   :  { %6563 = vmatprep.subr.bf16.mxu1 %v4183_v37  ;;  %v1946_v18 = vadd.f32 %v12188_v15, %v12187_v11  ;;  %v12206_v11 = vld [vmem:[#allocation80_spill] sm:$0xff] }
 0x686   :  { %6564 = vmatpush3.bf16.msra.mxu1 %v4183_v37 }
 0x687   :  { %6565 = vmatprep.subr.bf16.mxu1 %v4182_v34 }
 0x68a   :  { %6566 = vmatpush3.bf16.msra.mxu1 %v4182_v34  ;;  %v12174_v34 = vld [vmem:[#allocation59_spill] sm:$0xff] }
 0x68b   :  { %6567 = vmatprep.subr.bf16.mxu1 %v4181_v55 }
 0x68e   :  { %6568 = vmatpush3.bf16.msra.mxu1 %v4181_v55  ;;  %v12167_v55 = vld [vmem:[#allocation162_spill] sm:$0xff] }
 0x68f   :  { %6569 = vmatprep.subr.bf16.mxu1 %v10656_v19 }
 0x692   :  { %6570 = vmatpush3.bf16.msra.mxu1 %v10656_v19  ;;  %v12166_v19 = vld [vmem:[#allocation157_spill] sm:$0xff] }
 0x693   :  { %6668 = vmatprep.subr.mxu1 %v12159_v26 }
 0x695   :  { %6572 = vmatmul.mubr.msk.bf16.vlgmr.msra.gmra.mxu1 %vm2497_vm4, %v12160_v47  ;;  %v12195_v47 = vld [vmem:[#allocation14_spill] sm:$0xff] }
 0x696   :  { %6575 = vmatprep.mubr.msk.bf16.mxu1 %vm2497_vm4, %v12161_v45  ;;  %v12196_v45 = vld [vmem:[#allocation97_spill] sm:$0xff] }
 0x69d   :  { %6576 = vmatmul.mubr.msk.bf16.gmra.mxu1 %vm2497_vm4, %v12162_v32  ;;  %v1973_v32 = vadd.f32 %v12196_v45, %v12195_v47  ;;  %v12212_v47 = vld [vmem:[#allocation92_spill] sm:$0xff] }
 0x69e   :  { %6579 = vmatprep.mubr.msk.bf16.mxu1 %vm2497_vm4, %v12163_v4 }
 0x6a5   :  { %6580 = vmatmul.mubr.msk.bf16.gmra.mxu1 %vm2497_vm4, %v12164_v7 }
 0x6a6   :  { %6583 = vmatprep.mubr.msk.bf16.mxu1 %vm2497_vm4, %v12165_v39 }
 0x6ad   :  { %6584 = vmatmul.mubr.msk.bf16.gmra.mxu1 %vm2497_vm4, %v12166_v19 }
 0x6ae   :  { %6587 = vmatprep.mubr.msk.bf16.mxu1 %vm2497_vm4, %v12167_v55  ;;  %v12197_v55 = vld [vmem:[#allocation7_spill] sm:$0xff] }
 0x6b5   :  { %6588 = vmatmul.mubr.msk.bf16.gmra.mxu1 %vm2497_vm4, %v12168_v46  ;;  %v12198_v46 = vld [vmem:[#allocation98_spill] sm:$0xff] }
 0x6b6   :  { %6591 = vmatprep.mubr.msk.bf16.mxu1 %vm2497_vm4, %v12169_v59  ;;  %v1986_v59 = vadd.f32 %v12198_v46, %v12197_v55  ;;  %v12213_v55 = vld [vmem:[#allocation174_spill] sm:$0xff]  ;;  %v12214_v46 = vld [vmem:[#allocation83_spill] sm:$0xff] }
 0x6bd   :  { %6592 = vmatmul.mubr.msk.bf16.gmra.mxu1 %vm2497_vm4, %v12170_v8 }
 0x6be   :  { %6595 = vmatprep.mubr.msk.bf16.mxu1 %vm2497_vm4, %v12171_v9  ;;  %v12199_v9 = vld [vmem:[#allocation8_spill] sm:$0xff] }
 0x6c5   :  { %6596 = vmatmul.mubr.msk.bf16.gmra.mxu1 %vm2497_vm4, %v12172_v30  ;;  %v12200_v30 = vld [vmem:[#allocation99_spill] sm:$0xff] }
 0x6c6   :  { %6599 = vmatprep.mubr.msk.bf16.mxu1 %vm2497_vm4, %v12173_v10  ;;  %v1978_v10 = vadd.f32 %v12200_v30, %v12199_v9  ;;  %v4731_v30 = vld [vmem:[%s11341_s7 + $0x8] sm:$0xff] }
 0x6cd   :  { %6600 = vmatmul.mubr.msk.bf16.gmra.mxu1 %vm2497_vm4, %v12174_v34 }
 0x6ce   :  { %6603 = vmatprep.mubr.msk.bf16.mxu1 %vm2497_vm4, %v12175_v56 }
 0x6d5   :  { %6604 = vmatmul.mubr.msk.bf16.gmra.mxu1 %vm2497_vm4, %v12176_v49 }
 0x6d6   :  { %6607 = vmatprep.mubr.msk.bf16.mxu1 %vm2497_vm4, %v12177_v1  ;;  %v12201_v1 = vld [vmem:[#allocation6_spill] sm:$0xff] }
 0x6dd   :  { %6608 = vmatmul.mubr.msk.bf16.gmra.mxu1 %vm2497_vm4, %v12178_v61  ;;  %v12202_v61 = vld [vmem:[#allocation184_spill] sm:$0xff] }
 0x6de   :  { %6611 = vmatprep.mubr.msk.bf16.mxu1 %vm2497_vm4, %v12179_v52  ;;  %v1989_v52 = vadd.f32 %v12202_v61, %v12201_v1  ;;  %v4732_v61 = vld [vmem:[%s11341_s7 + $0x10] sm:$0xff] }
 0x6e5   :  { %6612 = vmatmul.mubr.msk.bf16.gmra.mxu1 %vm2497_vm4, %v12180_v24 }
 0x6e6   :  { %6615 = vmatprep.mubr.msk.bf16.mxu1 %vm2497_vm4, %v12181_v13 }
 0x6ed   :  { %6616 = vmatmul.mubr.msk.bf16.gmra.mxu1 %vm2497_vm4, %v12182_v31 }
 0x6ee   :  { %6619 = vmatprep.mubr.msk.bf16.mxu1 %vm2497_vm4, %v12183_v44  ;;  %v12203_v44 = vld [vmem:[#allocation58_spill] sm:$0xff] }
 0x6f5   :  { %6620 = vmatmul.mubr.msk.bf16.gmra.mxu1 %vm2497_vm4, %v12184_v38  ;;  %v12204_v38 = vld [vmem:[#allocation45_spill] sm:$0xff] }
 0x6f6   :  { %6694 = vmatprep.mubr.msk.f32.mxu1 %vm7539_vm0, %v12159_v26  ;;  %v2002_v40 = vadd.f32 %v12204_v38, %v12203_v44  ;;  %v4733_v44 = vld [vmem:[%s11341_s7 + $0x18] sm:$0xff] }
 0x755   :  { %v6573_v48 = vpop.f32.mrf.mxu1 }
 0x756   :  { %v10730_v20 = vadd.f32 %v6573_v48, %v1954_v62  ;;  %v12205_v48 = vld [vmem:[#allocation5_spill] sm:$0xff] }
 0x757   :  { %v4224_v27 = vpop.f32.mrf.mxu1  ;;  %v1994_v15 = vadd.f32 %v12206_v11, %v12205_v48  ;;  %v12217_v11 = vld [vmem:[#allocation41_spill] sm:$0xff] }
 0x758   :  { %v10734_v0 = vadd.f32 %v4224_v27, %v1946_v18  ;;  %v12207_v27 = vld [vmem:[#allocation60_spill] sm:$0xff] }
 0x759   :  { %v6574_v21 = vpop.f32.mrf.mxu1  ;;  %v2005_v3 = vadd.f32 %v12208_v50, %v12207_v27  ;;  %v4734_v50 = vld [vmem:[%s11341_s7 + $0x20] sm:$0xff] }
 0x75a   :  { %v10736_v36 = vadd.f32 %v6574_v21, %v1957_v16 }
 0x75b   :  { %v4227_v5 = vpop.f32.mrf.mxu1 }
 0x75d   :  { %v6577_v57 = vpop.f32.mrf.mxu1 }
 0x75e   :  { %v10742_v42 = vadd.f32 %v6577_v57, %v1970_v51  ;;  %v12209_v51 = vld [vmem:[#allocation53_spill] sm:$0xff]  ;;  %v12210_v57 = vld [vmem:[#allocation44_spill] sm:$0xff] }
 0x75f   :  { %v4240_v37 = vpop.f32.mrf.mxu1  ;;  %v2018_v22 = vadd.f32 %v12210_v57, %v12209_v51  ;;  %v12219_v57 = vld [vmem:[#allocation43_spill] sm:$0xff] }
 0x760   :  { %v10746_v4 = vadd.f32 %v4240_v37, %v1962_v6  ;;  %v4730_v6 = vld [vmem:[%s11341_s7] sm:$0xff]  ;;  %v12211_v37 = vld [vmem:[#allocation176_spill] sm:$0xff] }
 0x761   :  { %v6578_v7 = vpop.f32.mrf.mxu1  ;;  %v2010_v45 = vadd.f32 %v12212_v47, %v12211_v37  ;;  %6630 = vmatmul.mubr.msk.f32.vlgmr.msra.gmra.mxu0 %vm857_vm2, %v4730_v6  ;;  %v4485_v6 = vmul.f32 0.5, %v10730_v20  ;;  %v12221_v37 = vld [vmem:[#allocation17_spill] sm:$0xff]  ;;  %v12222_v47 = vld [vmem:[#allocation183_spill] sm:$0xff] }
 0x762   :  { %v10748_v39 = vadd.f32 %v6578_v7, %v1973_v32  ;;  %6632 = vmatprep.mubr.msk.f32.mxu0 %vm7539_vm0, %v12159_v26  ;;  %v12227_v20 = vld [vmem:[#allocation177_spill] sm:$0xff] }
 0x763   :  { %v10750_v19 = vpop.f32.mrf.mxu1  ;;  %7331 = vtanh.f32 %v4485_v6 }
 0x765   :  { %v6581_v8 = vpop.f32.mrf.mxu1  ;;  %6633 = vmatmul.mubr.msk.f32.gmra.mxu0 %vm857_vm2, %v4731_v30  ;;  %v12225_v30 = vld [vmem:[#allocation72_spill] sm:$0xff] }
 0x766   :  { %v10756_v34 = vadd.f32 %v6581_v8, %v1986_v59  ;;  %v2021_v59 = vadd.f32 %v12214_v46, %v12213_v55  ;;  %6635 = vmatprep.mubr.msk.f32.mxu0 %vm7539_vm0, %v12159_v26  ;;  %v12223_v46 = vld [vmem:[#allocation11_spill] sm:$0xff] }
 0x767   :  { %v4256_v56 = vpop.f32.mrf.mxu1 }
 0x768   :  { %v10758_v49 = vadd.f32 %v4256_v56, %v1978_v10 }
 0x769   :  { %v6582_v24 = vpop.f32.mrf.mxu1  ;;  %6636 = vmatmul.mubr.msk.f32.gmra.mxu0 %vm857_vm2, %v4732_v61  ;;  %v12226_v61 = vld [vmem:[#allocation46_spill] sm:$0xff] }
 0x76a   :  { %v10762_v13 = vadd.f32 %v6582_v24, %v1989_v52  ;;  %6638 = vmatprep.mubr.msk.f32.mxu0 %vm7539_vm0, %v12159_v26 }
 0x76b   :  { %v10764_v31 = vpop.f32.mrf.mxu1 }
 0x76d   :  { %v6585_v63 = vpop.f32.mrf.mxu1  ;;  %6639 = vmatmul.mubr.msk.f32.gmra.mxu0 %vm857_vm2, %v4733_v44  ;;  %v1997_v44 = vadd.f32 %v12226_v61, %v12225_v30  ;;  %v4487_v61 = vmul.f32 0.5, %v10746_v4 }
 0x76e   :  { %v10768_v62 = vadd.f32 %v6585_v63, %v2002_v40  ;;  %6641 = vmatprep.mubr.msk.f32.mxu0 %vm7539_vm0, %v12159_v26  ;;  %v12215_v40 = vld [vmem:[#allocation30_spill] sm:$0xff] }
 0x76f   :  { %v4272_v18 = vpop.f32.mrf.mxu1  ;;  %v12216_v63 = vld [vmem:[#allocation182_spill] sm:$0xff] }
 0x770   :  { %v10774_v16 = vadd.f32 %v4272_v18, %v1994_v15  ;;  %v1949_v48 = vadd.f32 %v12216_v63, %v12215_v40  ;;  %v12218_v15 = vld [vmem:[#allocation65_spill] sm:$0xff]  ;;  %v4486_v40 = vmul.f32 0.5, %v10736_v36  ;;  %v12231_v36 = vld [vmem:[#allocation171_spill] sm:$0xff] }
 0x771   :  { %v6586_v21 = vpop.f32.mrf.mxu1  ;;  %v2050_v18 = vadd.f32 %v12218_v15, %v12217_v11  ;;  %6642 = vmatmul.mubr.msk.f32.gmra.mxu0 %vm857_vm2, %v4734_v50  ;;  %v12229_v11 = vld [vmem:[#allocation167_spill] sm:$0xff]  ;;  %v12230_v15 = vld [vmem:[#allocation93_spill] sm:$0xff] }
 0x772   :  { %v10776_v41 = vadd.f32 %v6586_v21, %v2005_v3  ;;  %v4432_v3 = vadd.f32 %v4227_v5, %v1949_v48  ;;  %6644 = vmatprep.mubr.msk.f32.mxu0 %vm7539_vm0, %v12159_v26  ;;  %v4735_v5 = vld [vmem:[%s11341_s7 + $0x28] sm:$0xff] }
 0x773   :  { %v10778_v53 = vpop.f32.mrf.mxu1  ;;  %v12228_v48 = vld [vmem:[#allocation87_spill] sm:$0xff] }
 0x775   :  { %v6589_v58 = vpop.f32.mrf.mxu1  ;;  %6645 = vmatmul.mubr.msk.f32.gmra.mxu0 %vm857_vm2, %v4735_v5  ;;  %v4489_v5 = vmul.f32 0.5, %v10742_v42  ;;  %v12241_v42 = vld [vmem:[#allocation39_spill] sm:$0xff] }
 0x776   :  { %v10788_v32 = vadd.f32 %v6589_v58, %v2018_v22  ;;  %v12220_v22 = vld [vmem:[#allocation88_spill] sm:$0xff]  ;;  %6647 = vmatprep.mubr.msk.f32.mxu0 %vm7539_vm0, %v12159_v26 }
 0x777   :  { %v4288_v7 = vpop.f32.mrf.mxu1  ;;  %v2053_v58 = vadd.f32 %v12220_v22, %v12219_v57  ;;  %v12232_v22 = vld [vmem:[#allocation89_spill] sm:$0xff] }
 0x778   :  { %v10794_v8 = vadd.f32 %v4288_v7, %v2010_v45  ;;  %v1965_v45 = vadd.f32 %v12222_v47, %v12221_v37  ;;  %v4483_v7 = vmul.f32 0.5, %v10734_v0  ;;  %v10859_v0 = vadd.f32 %v12228_v48, %v12227_v20  ;;  %v12233_v37 = vld [vmem:[#allocation49_spill] sm:$0xff]  ;;  %v4736_v48 = vld [vmem:[%s11341_s7 + $0x30] sm:$0xff] }
 0x779   :  { %v6590_v9 = vpop.f32.mrf.mxu1  ;;  %v12234_v47 = vld [vmem:[#allocation61_spill] sm:$0xff]  ;;  %6648 = vmatmul.mubr.msk.f32.gmra.mxu0 %vm857_vm2, %v4736_v48  ;;  %v12246_v48 = vld [vmem:[#allocation91_spill] sm:$0xff] }
 0x77a   :  { %v10799_v10 = vadd.f32 %v6590_v9, %v2021_v59  ;;  %v12224_v59 = vld [vmem:[#allocation100_spill] sm:$0xff]  ;;  %v4436_v50 = vadd.f32 %v10750_v19, %v1965_v45  ;;  %v12237_v19 = vld [vmem:[#allocation37_spill] sm:$0xff]  ;;  %7333 = vtanh.f32 %v4483_v7  ;;  %6650 = vmatprep.mubr.msk.f32.mxu0 %vm7539_vm0, %v12159_v26 }
 0x77b   :  { %v10802_v56 = vpop.f32.mrf.mxu1  ;;  %v1981_v9 = vadd.f32 %v12224_v59, %v12223_v46  ;;  %v12235_v46 = vld [vmem:[#allocation172_spill] sm:$0xff]  ;;  %v12238_v45 = vld [vmem:[#allocation185_spill] sm:$0xff]  ;;  %7335 = vtanh.f32 %v4486_v40 }
 0x77c   :  { %v2066_v30 = vadd.f32 %v12238_v45, %v12237_v19  ;;  %v12243_v7 = vld [vmem:[#allocation40_spill] sm:$0xff]  ;;  %v4491_v45 = vmul.f32 0.5, %v10758_v49  ;;  %v4737_v49 = vld [vmem:[%s11341_s7 + $0x38] sm:$0xff] }
 0x77d   :  { %v10806_v1 = vpop.f32.mrf.mxu1  ;;  %v4440_v40 = vadd.f32 %v10764_v31, %v1981_v9  ;;  %v12250_v31 = vld [vmem:[#allocation189_spill] sm:$0xff]  ;;  %6651 = vmatmul.mubr.msk.f32.gmra.mxu0 %vm857_vm2, %v4737_v49 }
 0x77e   :  { %6653 = vmatprep.mubr.msk.f32.mxu0 %vm7539_vm0, %v12159_v26 }
 0x77f   :  { %v10812_v52 = vpop.f32.mrf.mxu1 }
 0x781   :  { %v10816_v24 = vpop.f32.mrf.mxu1 }
 0x783   :  { %v10822_v38 = vpop.f32.mrf.mxu1 }
 0x785   :  { %v6597_v27 = vpop.f32.mrf.mxu1 }
 0x786   :  { %v10834_v21 = vadd.f32 %v6597_v27, %v2050_v18  ;;  %v10863_v18 = vadd.f32 %v12230_v15, %v12229_v11  ;;  %v4484_v27 = vmul.f32 0.5, %v4432_v3  ;;  %v12236_v3 = vld [vmem:[#allocation57_spill] sm:$0xff]  ;;  %v12239_v11 = vld [vmem:[#allocation164_spill] sm:$0xff] }
 0x787   :  { %v10836_v51 = vpop.f32.mrf.mxu1  ;;  %v10881_v59 = vadd.f32 %v12236_v3, %v12235_v46  ;;  %v12240_v15 = vld [vmem:[#allocation48_spill] sm:$0xff]  ;;  %v4488_v46 = vmul.f32 0.5, %v4436_v50 }
 0x788   :  { %v10891_v6 = vadd.f32 %v12240_v15, %v12239_v11  ;;  %7337 = vtanh.f32 %v4484_v27  ;;  %v12248_v27 = vld [vmem:[#allocation188_spill] sm:$0xff] }
 0x789   :  { %v6598_v55 = vpop.f32.mrf.mxu1  ;;  %7339 = vtanh.f32 %v4489_v5  ;;  %v12249_v5 = vld [vmem:[#allocation29_spill] sm:$0xff] }
 0x78a   :  { %v10854_v63 = vadd.f32 %v6598_v55, %v2053_v58  ;;  %v10872_v58 = vadd.f32 %v12232_v22, %v12231_v36  ;;  %v10876_v55 = vadd.f32 %v12234_v47, %v12233_v37  ;;  %v12242_v36 = vld [vmem:[#allocation186_spill] sm:$0xff]  ;;  %v4490_v37 = vmul.f32 0.5, %v10748_v39  ;;  %v12244_v47 = vld [vmem:[#allocation187_spill] sm:$0xff] }
 0x78b   :  { %v10866_v57 = vpop.f32.mrf.mxu1  ;;  %v2058_v22 = vadd.f32 %v12242_v36, %v12241_v42  ;;  %v2069_v4 = vadd.f32 %v12244_v47, %v12243_v7  ;;  %v12245_v39 = vld [vmem:[#allocation159_spill] sm:$0xff]  ;;  %v12247_v42 = vld [vmem:[#allocation42_spill] sm:$0xff]  ;;  %7341 = vtanh.f32 %v4487_v61  ;;  %v10921_v9 = vadd.f32 %v12250_v31, %v12249_v5  ;;  %v12251_v7 = vld [vmem:[#allocation33_spill] sm:$0xff] }
 0x78c   :  { %v10909_v15 = vadd.f32 %v12246_v48, %v12245_v39  ;;  %v10913_v50 = vadd.f32 %v12248_v27, %v12247_v42  ;;  %7343 = vtanh.f32 %v4490_v37  ;;  %v4497_v36 = vmul.f32 0.5, %v10768_v62  ;;  %v12252_v61 = vld [vmem:[#allocation190_spill] sm:$0xff]  ;;  %v12255_v62 = vld [vmem:[#allocation36_spill] sm:$0xff]  ;;  %v12260_v31 = vld [vmem:[#allocation23_spill] sm:$0xff] }
 0x78d   :  { %v6601_v20 = vpop.f32.mrf.mxu1  ;;  %v10929_v47 = vadd.f32 %v12252_v61, %v12251_v7  ;;  %7345 = vtanh.f32 %v4488_v46  ;;  %v4444_v48 = vadd.f32 %v10778_v53, %v1997_v44  ;;  %v12256_v37 = vld [vmem:[#allocation192_spill] sm:$0xff]  ;;  %v4492_v5 = vmul.f32 0.5, %v4440_v40  ;;  %v12261_v7 = vld [vmem:[#allocation194_spill] sm:$0xff]  ;;  %v12263_v53 = vld [vmem:[#allocation35_spill] sm:$0xff] }
 0x78e   :  { %v10899_v3 = vadd.f32 %v6601_v20, %v2066_v30  ;;  %v4494_v30 = vmul.f32 0.5, %v10762_v13  ;;  %v12253_v13 = vld [vmem:[#allocation32_spill] sm:$0xff]  ;;  %7347 = vtanh.f32 %v4491_v45  ;;  %v10950_v46 = vadd.f32 %v12261_v7, %v12260_v31  ;;  %v12264_v44 = vld [vmem:[#allocation195_spill] sm:$0xff] }
 0x78f   :  { %v4336_v19 = vpop.f32.mrf.mxu1  ;;  %v12258_v27 = vld [vmem:[#allocation20_spill] sm:$0xff]  ;;  %v10954_v61 = vadd.f32 %v12264_v44, %v12263_v53  ;;  %v4495_v7 = vmul.f32 0.5, %v10774_v16  ;;  %v12272_v44 = vld [vmem:[#allocation25_spill] sm:$0xff]  ;;  %v12276_v16 = vld [vmem:[#allocation22_spill] sm:$0xff] }
 0x790   :  { %v10905_v11 = vadd.f32 %v4336_v19, %v2058_v22  ;;  %v12254_v19 = vld [vmem:[#allocation191_spill] sm:$0xff]  ;;  %12262 = vst [vmem:[#allocation86_spill] sm:$0xff] %v10950_v46  ;;  %7349 = vtanh.f32 %v4494_v30  ;;  %v12266_v45 = vld [vmem:[#allocation196_spill] sm:$0xff]  ;;  %v12271_v30 = vld [vmem:[#allocation198_spill] sm:$0xff]  ;;  %v10978_v29 = vadd.f32 %v12273_v2, %v12272_v44  ;;  %v4448_v2 = vadd.f32 %v10802_v56, %v10859_v0 }
 0x791   :  { %v6602_v20 = vpop.f32.mrf.mxu1  ;;  %v10933_v39 = vadd.f32 %v12254_v19, %v12253_v13  ;;  %v4493_v13 = vmul.f32 0.5, %v10756_v34  ;;  %7351 = vtanh.f32 %v4497_v36  ;;  %v12270_v34 = vld [vmem:[#allocation38_spill] sm:$0xff]  ;;  %v12277_v36 = vld [vmem:[#allocation201_spill] sm:$0xff]  ;;  %v12281_v56 = vld [vmem:[#allocation203_spill] sm:$0xff] }
 0x792   :  { %v10924_v22 = vadd.f32 %v6602_v20, %v2069_v4  ;;  %v10942_v4 = vadd.f32 %v12256_v37, %v12255_v62  ;;  %v12259_v20 = vld [vmem:[#allocation193_spill] sm:$0xff]  ;;  %v4738_v62 = vld [vmem:[%s11341_s7 + $0x40] sm:$0xff]  ;;  %v10974_v53 = vadd.f32 %v12271_v30, %v12270_v34  ;;  %7353 = vtanh.f32 %v4492_v5  ;;  %v7332_v34 = vpop.eup %7331  ;;  %v12278_v30 = vld [vmem:[#allocation28_spill] sm:$0xff] }
 0x793   :  { %v10936_v42 = vpop.f32.mrf.mxu1  ;;  %v10946_v49 = vadd.f32 %v12259_v20, %v12258_v27  ;;  %v12265_v37 = vld [vmem:[#allocation26_spill] sm:$0xff]  ;;  %v12269_v20 = vld [vmem:[#allocation197_spill] sm:$0xff]  ;;  %6654 = vmatmul.mubr.msk.f32.gmra.mxu0 %vm857_vm2, %v4738_v62  ;;  %v10990_v62 = vadd.f32 %v12277_v36, %v12276_v16  ;;  %7355 = vtanh.f32 %v4493_v13  ;;  %v7334_v5 = vpop.eup %7333  ;;  %v12280_v16 = vld [vmem:[#allocation15_spill] sm:$0xff]  ;;  %v4499_v36 = vmul.f32 0.5, %v10794_v8 }
 0x794   :  { %12257 = vst [vmem:[#allocation47_spill] sm:$0xff] %v10942_v4  ;;  %v10964_v40 = vadd.f32 %v12266_v45, %v12265_v37  ;;  %v12268_v27 = vld [vmem:[#allocation34_spill] sm:$0xff]  ;;  %v12275_v37 = vld [vmem:[#allocation200_spill] sm:$0xff]  ;;  %v4496_v4 = vmul.f32 0.5, %v4444_v48  ;;  %6656 = vmatprep.mubr.msk.f32.mxu0 %vm7539_vm0, %v12159_v26  ;;  %v4501_v48 = vmul.f32 0.5, %v10788_v32  ;;  %v11009_v0 = vadd.f32 %v12281_v56, %v12280_v16 }
 0x795   :  { %v10957_v19 = vpop.f32.mrf.mxu1  ;;  %v10968_v31 = vadd.f32 %v12269_v20, %v12268_v27  ;;  %v10982_v45 = vadd.f32 %v12275_v37, %v12274_v23  ;;  %v4498_v20 = vmul.f32 0.5, %v10776_v41  ;;  %v12279_v23 = vld [vmem:[#allocation202_spill] sm:$0xff]  ;;  %v4453_v37 = vadd.f32 %v10806_v1, %v10863_v18  ;;  %v4739_v41 = vld [vmem:[%s11341_s7 + $0x48] sm:$0xff]  ;;  %v7336_v1 = vpop.eup %7335  ;;  %v12283_v13 = vld [vmem:[#allocation204_spill] sm:$0xff] }
 0x796   :  { %12267 = vst [vmem:[#allocation101_spill] sm:$0xff] %v10964_v40  ;;  %v10997_v44 = vadd.f32 %v12279_v23, %v12278_v30  ;;  %7357 = vtanh.f32 %v4495_v7  ;;  %v4451_v32 = vadd.f32 %v10812_v52, %v10872_v58  ;;  %v12282_v18 = vld [vmem:[#allocation19_spill] sm:$0xff]  ;;  %v4502_v23 = vmul.f32 0.5, %v10799_v10  ;;  %v7338_v8 = vpop.eup %7337 }
 0x797   :  { %v10984_v27 = vpop.f32.mrf.mxu1  ;;  %6657 = vmatmul.mubr.msk.f32.gmra.mxu0 %vm857_vm2, %v4739_v41  ;;  %v11017_v30 = vadd.f32 %v12283_v13, %v12282_v18  ;;  %7359 = vtanh.f32 %v4496_v4  ;;  %v4454_v16 = vadd.f32 %v10816_v24, %v10876_v55  ;;  %v4563_v52 = vmul.f32 0.5, %v7332_v34  ;;  %v7340_v41 = vpop.eup %7339  ;;  %v12285_v18 = vld [vmem:[#allocation12_spill] sm:$0xff]  ;;  %v12286_v4 = vld [vmem:[#allocation205_spill] sm:$0xff] }
 0x798   :  { %6659 = vmatprep.mubr.msk.f32.mxu0 %vm7539_vm0, %v12159_v26  ;;  %7361 = vtanh.f32 %v4498_v20  ;;  %v4500_v58 = vmul.f32 0.5, %v4448_v2  ;;  %v4452_v7 = vadd.f32 %v10822_v38, %v10881_v59  ;;  %v11030_v13 = vadd.f32 %v12286_v4, %v12285_v18  ;;  %v7342_v34 = vpop.eup %7341  ;;  %v12288_v20 = vld [vmem:[#allocation16_spill] sm:$0xff]  ;;  %v12289_v2 = vld [vmem:[#allocation206_spill] sm:$0xff]  ;;  %v12290_v38 = vld [vmem:[#allocation9_spill] sm:$0xff] }
 0x799   :  { %v11002_v40 = vpop.f32.mrf.mxu1  ;;  %v4561_v10 = vmul.f32 0.5, %v7334_v5  ;;  %7363 = vtanh.f32 %v4501_v48  ;;  %v4505_v24 = vmul.f32 0.5, %v4453_v37  ;;  %v11039_v12 = vadd.f32 %v12289_v2, %v12288_v20  ;;  %v12291_v59 = vld [vmem:[#allocation207_spill] sm:$0xff]  ;;  %v7344_v48 = vpop.eup %7343  ;;  %v12292_v37 = vld [vmem:[#allocation10_spill] sm:$0xff]  ;;  %v12293_v5 = vld [vmem:[#allocation208_spill] sm:$0xff] }
 0x79a   :  { %v11043_v46 = vadd.f32 %v12291_v59, %v12290_v38  ;;  %7365 = vtanh.f32 %v4499_v36  ;;  %v4503_v18 = vmul.f32 0.5, %v4451_v32  ;;  %v11048_v4 = vadd.f32 %v12293_v5, %v12292_v37  ;;  %v7346_v2 = vpop.eup %7345 }
 0x79b   :  { %v11022_v56 = vpop.f32.mrf.mxu1  ;;  %7367 = vtanh.f32 %v4502_v23  ;;  %v4506_v54 = vmul.f32 0.5, %v4454_v16  ;;  %v11056_v36 = vadd.f32 0.5, %v4563_v52  ;;  %v4564_v32 = vmul.f32 0.5, %v7336_v1  ;;  %v7348_v38 = vpop.eup %7347 }
 0x79c   :  { %12284 = vst [vmem:[#allocation102_spill] sm:$0xff] %v11022_v56  ;;  %v4740_v56 = vld [vmem:[%s11341_s7 + $0x50] sm:$0xff]  ;;  %7369 = vtanh.f32 %v4500_v58  ;;  %v11058_v59 = vadd.f32 0.5, %v4561_v10  ;;  %v4562_v37 = vmul.f32 0.5, %v7338_v8  ;;  %v4567_v23 = vmul.f32 0.5, %v7340_v41 }
 0x79d   :  { %v11032_v55 = vpop.f32.mrf.mxu1  ;;  %6660 = vmatmul.mubr.msk.f32.gmra.mxu0 %vm857_vm2, %v4740_v56  ;;  %v4504_v56 = vmul.f32 0.5, %v4452_v7  ;;  %7371 = vtanh.f32 %v4505_v24  ;;  %v4565_v5 = vmul.f32 0.5, %v7342_v34  ;;  %v4509_v52 = vmul.f32 0.5, %v10834_v21 }
 0x79e   :  { %12287 = vst [vmem:[#allocation103_spill] sm:$0xff] %v11032_v55  ;;  %v4455_v55 = vadd.f32 %v10836_v51, %v10891_v6  ;;  %6662 = vmatprep.mubr.msk.f32.mxu0 %vm7539_vm0, %v12159_v26  ;;  %v4741_v51 = vld [vmem:[%s11341_s7 + $0x58] sm:$0xff]  ;;  %v7350_v6 = vpop.eup %7349  ;;  %7373 = vtanh.f32 %v4503_v18  ;;  %v4568_v7 = vmul.f32 0.5, %v7344_v48  ;;  %v4456_v41 = vadd.f32 %v10866_v57, %v10909_v15  ;;  %v4742_v57 = vld [vmem:[%s11341_s7 + $0x60] sm:$0xff] }
 0x79f   :  { %v11052_v20 = vpop.f32.mrf.mxu1  ;;  %v7352_v58 = vpop.eup %7351  ;;  %7375 = vtanh.f32 %v4506_v54  ;;  %v11072_v24 = vadd.f32 0.5, %v4564_v32  ;;  %v4566_v34 = vmul.f32 0.5, %v7346_v2  ;;  %v4510_v21 = vmul.f32 0.5, %v10854_v63 }
 0x7a0   :  { %v4507_v8 = vmul.f32 0.5, %v4455_v55  ;;  %7377 = vtanh.f32 %v4504_v56  ;;  %v11075_v18 = vadd.f32 0.5, %v4562_v37  ;;  %v11077_v48 = vadd.f32 0.5, %v4567_v23 }
 0x7a1   :  { %v6610_v16 = vpop.f32.mrf.mxu1  ;;  %6663 = vmatmul.mubr.msk.f32.gmra.mxu0 %vm857_vm2, %v4741_v51  ;;  %v4569_v54 = vmul.f32 0.5, %v7348_v38  ;;  %v4575_v32 = vmul.f32 0.5, %v7352_v58  ;;  %v11084_v56 = vadd.f32 0.5, %v4565_v5  ;;  %v11086_v37 = vadd.f32 0.5, %v4568_v7 }
 0x7a2   :  { %v4470_v1 = vadd.f32 %v6610_v16, %v10954_v61  ;;  %6665 = vmatprep.mubr.msk.f32.mxu0 %vm7539_vm0, %v12159_v26  ;;  %v7354_v61 = vpop.eup %7353  ;;  %v4572_v16 = vmul.f32 0.5, %v7350_v6  ;;  %v4508_v38 = vmul.f32 0.5, %v4456_v41  ;;  %v4513_v7 = vmul.f32 0.5, %v10899_v3 }
 0x7a3   :  { %v11068_v10 = vpop.f32.mrf.mxu1  ;;  %v7356_v15 = vpop.eup %7355  ;;  %v4570_v6 = vmul.f32 0.5, %v7354_v61  ;;  %v11095_v5 = vadd.f32 0.5, %v4569_v54  ;;  %v4460_v54 = vadd.f32 %v10936_v42, %v10913_v50 }
 0x7a4   :  { %7379 = vtanh.f32 %v4470_v1  ;;  %v7358_v63 = vpop.eup %7357  ;;  %v11090_v1 = vadd.f32 0.5, %v4566_v34  ;;  %v11093_v58 = vmul.f32 0.5, %v7356_v15 }
 0x7a5   :  { %v6613_v55 = vpop.f32.mrf.mxu1  ;;  %7381 = vtanh.f32 %v4509_v52  ;;  %6666 = vmatmul.mubr.msk.f32.gmra.mxu0 %vm857_vm2, %v4742_v57  ;;  %v7360_v51 = vpop.eup %7359  ;;  %v4614_v57 = vadd.f32 0.5, %v4575_v32  ;;  %v11104_v3 = vadd.f32 0.5, %v4570_v6 }
 0x7a6   :  { %v4473_v2 = vadd.f32 %v6613_v55, %v10968_v31  ;;  %7383 = vtanh.f32 %v4507_v8  ;;  %6759 = vmatprep.mubr.msk.f32.mxu0 %vm7539_vm0, %v12159_v26  ;;  %v7362_v52 = vpop.eup %7361  ;;  %v11098_v55 = vadd.f32 0.5, %v4572_v16 }
 0x7a7   :  { %v4384_v23 = vpop.f32.mrf.mxu1  ;;  %7385 = vtanh.f32 %v4510_v21  ;;  %v7364_v41 = vpop.eup %7363  ;;  %v4574_v21 = vmul.f32 0.5, %v7360_v51 }
 0x7a8   :  { %v4471_v31 = vadd.f32 %v4384_v23, %v10974_v53  ;;  %7387 = vtanh.f32 %v4473_v2  ;;  %v7366_v61 = vpop.eup %7365  ;;  %v4511_v53 = vmul.f32 0.5, %v10905_v11  ;;  %v4576_v2 = vmul.f32 0.5, %v7362_v52 }
 0x7a9   :  { %v6614_v8 = vpop.f32.mrf.mxu1  ;;  %v7368_v23 = vpop.eup %7367  ;;  %v4465_v11 = vadd.f32 %v10957_v19, %v10921_v9  ;;  %v4579_v50 = vmul.f32 0.5, %v7364_v41  ;;  %v4577_v42 = vmul.f32 0.5, %v7366_v61 }
 0x7aa   :  { %7389 = vtanh.f32 %v4471_v31  ;;  %v4474_v34 = vadd.f32 %v6614_v8, %v10978_v29  ;;  %v7370_v32 = vpop.eup %7369  ;;  %v11107_v31 = vmul.f32 0.5, %v7358_v63  ;;  %v4514_v29 = vmul.f32 0.5, %v10924_v22 }
 0x7ab   :  { %7391 = vtanh.f32 %v4508_v38  ;;  %v4387_v15 = vpop.f32.mrf.mxu1  ;;  %v7372_v51 = vpop.eup %7371  ;;  %v4653_v8 = vmul.f32 %v4614_v57, %v10597_v25  ;;  %v4512_v63 = vmul.f32 0.5, %v4460_v54  ;;  %v4615_v22 = vadd.f32 0.5, %v4576_v2 }
 0x7ac   :  { %7393 = vtanh.f32 %v4474_v34  ;;  %v4472_v16 = vadd.f32 %v4387_v15, %v10982_v45  ;;  %v7374_v52 = vpop.eup %7373  ;;  %v4613_v45 = vadd.f32 0.5, %v4574_v21  ;;  %v4580_v15 = vmul.f32 0.5, %v7368_v23 }
 0x7ad   :  { %7395 = vtanh.f32 %v4513_v7  ;;  %v6617_v38 = vpop.f32.mrf.mxu1  ;;  %v11114_v7 = vpop.eup %7375  ;;  %v4578_v41 = vmul.f32 0.5, %v7370_v32  ;;  %v4517_v61 = vmul.f32 0.5, %v4465_v11  ;;  %v4618_v57 = vadd.f32 0.5, %v4579_v50 }
 0x7ae   :  { %7397 = vtanh.f32 %v4472_v16  ;;  %v4477_v6 = vadd.f32 %v6617_v38, %v10990_v62  ;;  %v7378_v19 = vpop.eup %7377  ;;  %v4463_v62 = vadd.f32 %v10984_v27, %v10929_v47  ;;  %v4616_v21 = vadd.f32 0.5, %v4577_v42 }
 0x7af   :  { %7399 = vtanh.f32 %v4511_v53  ;;  %v4400_v34 = vpop.f32.mrf.mxu1  ;;  %v4652_v23 = vmul.f32 %v4613_v45, %v10582_v17  ;;  %v4581_v2 = vmul.f32 0.5, %v7374_v52  ;;  %v4654_v11 = vmul.f32 %v4615_v22, %v10614_v28 }
 0x7b0   :  { %7401 = vtanh.f32 %v4477_v6  ;;  %v4475_v9 = vadd.f32 %v4400_v34, %v10997_v44  ;;  %v4619_v38 = vadd.f32 0.5, %v4580_v15  ;;  %v4617_v50 = vadd.f32 0.5, %v4578_v41 }
 0x7b1   :  { %7403 = vtanh.f32 %v4514_v29  ;;  %v6618_v16 = vpop.f32.mrf.mxu1  ;;  %v7380_v25 = vpop.eup %7379  ;;  %v11127_v52 = vmul.f32 %v4618_v57, %v10630_v14  ;;  %v4620_v34 = vadd.f32 0.5, %v4581_v2 }
 0x7b2   :  { %7405 = vtanh.f32 %v4475_v9  ;;  %v4478_v53 = vadd.f32 %v6618_v16, %v11009_v0  ;;  %v7382_v54 = vpop.eup %7381  ;;  %v4665_v44 = vmul.f32 %v7380_v25, %v11058_v59  ;;  %v4515_v0 = vmul.f32 0.5, %v4463_v62 }
 0x7b3   :  { %7407 = vtanh.f32 %v4512_v63  ;;  %v4403_v32 = vpop.f32.mrf.mxu1  ;;  %v7384_v29 = vpop.eup %7383  ;;  %v4655_v59 = vmul.f32 %v4616_v21, %v10594_v33  ;;  %v4583_v63 = vmul.f32 0.5, %v7372_v51  ;;  %v11133_v9 = vmul.f32 %v4619_v38, %v10643_v60 }
 0x7b4   :  { %7409 = vtanh.f32 %v4478_v53  ;;  %v4476_v47 = vadd.f32 %v4403_v32, %v11017_v30  ;;  %v11124_v27 = vpop.eup %7385  ;;  %v4678_v42 = vadd.f32 %v4665_v44, %v4652_v23  ;;  %v4585_v44 = vmul.f32 0.5, %v7384_v29 }
 0x7b5   :  { %7411 = vtanh.f32 %v4517_v61  ;;  %v6621_v6 = vpop.f32.mrf.mxu1  ;;  %v7388_v17 = vpop.eup %7387  ;;  %v4656_v61 = vmul.f32 %v4617_v50, %v10605_v35  ;;  %v4622_v21 = vadd.f32 0.5, %v4583_v63  ;;  %v4587_v38 = vmul.f32 0.5, %v7382_v54  ;;  %v12295_v50 = vld [vmem:[#allocation147_spill] sm:$0xff] }
 0x7b6   :  { %7413 = vtanh.f32 %v4476_v47  ;;  %v4481_v28 = vadd.f32 %v6621_v6, %v11030_v13  ;;  %v4668_v30 = vmul.f32 %v7388_v17, %v11072_v24  ;;  %v4582_v13 = vmul.f32 0.5, %v7378_v19 }
 0x7b7   :  { %v7390_v45 = vpop.eup %7389  ;;  %7415 = vtanh.f32 %v4678_v42  ;;  %v4416_v22 = vpop.f32.mrf.mxu1  ;;  %v12296_v42 = vld [vmem:[#allocation86_spill] sm:$0xff]  ;;  %v4584_v6 = vmul.f32 0.5, %v11114_v7 }
 0x7b8   :  { %v7392_v15 = vpop.eup %7391  ;;  %v4666_v41 = vmul.f32 %v7390_v45, %v11075_v18  ;;  %7417 = vtanh.f32 %v4481_v28  ;;  %v4479_v14 = vadd.f32 %v4416_v22, %v11039_v12  ;;  %v4681_v51 = vadd.f32 %v4668_v30, %v4655_v59  ;;  %v12298_v45 = vld [vmem:[#allocation101_spill] sm:$0xff] }
 0x7b9   :  { %v7394_v33 = vpop.eup %7393  ;;  %7419 = vtanh.f32 %v4515_v0  ;;  %v6622_v62 = vpop.f32.mrf.mxu1  ;;  %v4659_v18 = vmul.f32 %v4620_v34, %v10622_v43  ;;  %v4466_v12 = vadd.f32 %v11002_v40, %v10933_v39  ;;  %v4621_v2 = vadd.f32 0.5, %v4582_v13  ;;  %v12299_v13 = vld [vmem:[#allocation47_spill] sm:$0xff] }
 0x7ba   :  { %v7396_v16 = vpop.eup %7395  ;;  %v4679_v25 = vadd.f32 %v4666_v41, %v4653_v8  ;;  %v4669_v24 = vmul.f32 %v7394_v33, %v11084_v56  ;;  %7421 = vtanh.f32 %v4479_v14  ;;  %v4482_v60 = vadd.f32 %v6622_v62, %v11043_v46  ;;  %v12294_v46 = vld [vmem:[#allocation103_spill] sm:$0xff] }
 0x7bb   :  { %v7398_v57 = vpop.eup %7397  ;;  %7423 = vtanh.f32 %v4681_v51  ;;  %v4419_v35 = vpop.f32.mrf.mxu1  ;;  %v4469_v32 = vadd.f32 %v12294_v46, %v10946_v49  ;;  %v4661_v0 = vmul.f32 %v4622_v21, %v12295_v50  ;;  %v4468_v63 = vadd.f32 %v11068_v10, %v12298_v45  ;;  %v12300_v51 = vld [vmem:[#allocation102_spill] sm:$0xff] }
 0x7bc   :  { %v7400_v19 = vpop.eup %7399  ;;  %7425 = vtanh.f32 %v4679_v25  ;;  %v4682_v53 = vadd.f32 %v4669_v24, %v4656_v61  ;;  %v4667_v23 = vmul.f32 %v7398_v57, %v11056_v36  ;;  %v4480_v8 = vadd.f32 %v4419_v35, %v11048_v4 }
 0x7bd   :  { %v7402_v56 = vpop.eup %7401  ;;  %7427 = vtanh.f32 %v4482_v60  ;;  %v4518_v36 = vmul.f32 0.5, %v4466_v12  ;;  %v4467_v4 = vadd.f32 %v11052_v20, %v12296_v42  ;;  %v4521_v28 = vmul.f32 0.5, %v4469_v32  ;;  %v12301_v60 = vld [vmem:[#allocation79_spill] sm:$0xff] }
 0x7be   :  { %v11147_v43 = vpop.eup %7403  ;;  %7429 = vtanh.f32 %v4682_v53  ;;  %v4680_v39 = vadd.f32 %v4667_v23, %v4654_v11  ;;  %v4672_v40 = vmul.f32 %v7402_v56, %v11086_v37  ;;  %v12297_v11 = vld [vmem:[#allocation77_spill] sm:$0xff]  ;;  %v4624_v37 = vadd.f32 0.5, %v4585_v44 }
 0x7bf   :  { %v7406_v47 = vpop.eup %7405  ;;  %7431 = vtanh.f32 %v4480_v8  ;;  %v4660_v59 = vmul.f32 %v4621_v2, %v12297_v11  ;;  %v4626_v30 = vadd.f32 0.5, %v4587_v38  ;;  %v4588_v20 = vmul.f32 0.5, %v11124_v27 }
 0x7c0   :  { %v7408_v29 = vpop.eup %7407  ;;  %7433 = vtanh.f32 %v4680_v39  ;;  %v11154_v49 = vadd.f32 %v4672_v40, %v4659_v18  ;;  %v4670_v54 = vmul.f32 %v7406_v47, %v11090_v1  ;;  %v4586_v14 = vmul.f32 0.5, %v7392_v15 }
 0x7c1   :  { %v7410_v17 = vpop.eup %7409  ;;  %v4590_v33 = vmul.f32 0.5, %v7408_v29  ;;  %7435 = vtanh.f32 %v4518_v36  ;;  %v4519_v1 = vmul.f32 0.5, %v4467_v4  ;;  %v4464_v62 = vadd.f32 %v12300_v51, %v12299_v13 }
 0x7c2   :  { %v7412_v34 = vpop.eup %7411  ;;  %v4683_v22 = vadd.f32 %v4670_v54, %v11127_v52  ;;  %v4673_v7 = vmul.f32 %v7410_v17, %v11095_v5  ;;  %v4663_v27 = vmul.f32 %v4624_v37, %v12301_v60  ;;  %v4520_v52 = vmul.f32 0.5, %v4468_v63  ;;  %v12303_v54 = vld [vmem:[#allocation82_spill] sm:$0xff] }
 0x7c3   :  { %v7414_v41 = vpop.eup %7413  ;;  %v4591_v15 = vmul.f32 0.5, %v7396_v16  ;;  %v4627_v35 = vadd.f32 0.5, %v4588_v20  ;;  %v4625_v53 = vadd.f32 0.5, %v4586_v14  ;;  %v4629_v23 = vadd.f32 0.5, %v4590_v33 }
 0x7c4   :  { %v7416_v61 = vpop.eup %7415  ;;  %7437 = vtanh.f32 %v4683_v22  ;;  %v4686_v25 = vadd.f32 %v4673_v7, %v4660_v59  ;;  %v4671_v10 = vmul.f32 %v7414_v41, %v11077_v48  ;;  %v4589_v8 = vmul.f32 0.5, %v7400_v19  ;;  %v12302_v19 = vld [vmem:[#allocation151_spill] sm:$0xff] }
 0x7c5   :  { %v7418_v24 = vpop.eup %7417  ;;  %7439 = vtanh.f32 %v4521_v28  ;;  %v11167_v57 = vmul.f32 %v7416_v61, %v4626_v30  ;;  %v4612_v46 = vadd.f32 0.5, %v11107_v31  ;;  %v4623_v16 = vadd.f32 0.5, %v4584_v6 }
 0x7c6   :  { %v7420_v5 = vpop.eup %7419  ;;  %7441 = vtanh.f32 %v4686_v25  ;;  %v4684_v21 = vadd.f32 %v4671_v10, %v11133_v9  ;;  %v4676_v18 = vmul.f32 %v7418_v24, %v11098_v55  ;;  %v4630_v55 = vadd.f32 0.5, %v4591_v15 }
 0x7c7   :  { %v7422_v12 = vpop.eup %7421  ;;  %7443 = vtanh.f32 %v4519_v1  ;;  %v4610_v47 = vadd.f32 0.5, %v11093_v58  ;;  %v4664_v50 = vmul.f32 %v4625_v53, %v12302_v19  ;;  %v4516_v36 = vmul.f32 0.5, %v4464_v62  ;;  %v4729_v19 = vld [vmem:[%s11340_s6 + $0x60] sm:$0xff] }
 0x7c8   :  { %v7424_v48 = vpop.eup %7423  ;;  %7445 = vtanh.f32 %v4684_v21  ;;  %v4689_v56 = vadd.f32 %v4676_v18, %v4663_v27  ;;  %v4674_v2 = vmul.f32 %v7422_v12, %v11104_v3  ;;  %v4628_v4 = vadd.f32 0.5, %v4589_v8 }
 0x7c9   :  { %v7426_v44 = vpop.eup %7425  ;;  %7447 = vtanh.f32 %v4520_v52  ;;  %v11173_v32 = vmul.f32 %v7424_v48, %v4629_v23  ;;  %v4592_v31 = vmul.f32 0.5, %v11147_v43  ;;  %v4662_v17 = vmul.f32 %v4623_v16, %v12303_v54  ;;  %v4721_v16 = vld [vmem:[%s11340_s6 + $0x20] sm:$0xff] }
 0x7ca   :  { %v7428_v9 = vpop.eup %7427  ;;  %v4687_v38 = vadd.f32 %v4674_v2, %v4661_v0  ;;  %v11175_v39 = vmul.f32 %v7426_v44, %v4627_v35  ;;  %v4595_v59 = vmul.f32 0.5, %v7412_v34  ;;  %v4593_v63 = vmul.f32 0.5, %v7420_v5  ;;  %v4717_v2 = vld [vmem:[%s11340_s6] sm:$0xff]  ;;  %v4718_v44 = vld [vmem:[%s11340_s6 + $0x8] sm:$0xff] }
 0x7cb   :  { %v7430_v40 = vpop.eup %7429  ;;  %v4677_v42 = vmul.f32 %v7428_v9, %v4612_v46  ;;  %v4631_v45 = vadd.f32 0.5, %v4592_v31  ;;  %v4719_v46 = vld [vmem:[%s11340_s6 + $0x10] sm:$0xff] }
 0x7cc   :  { %v7432_v3 = vpop.eup %7431  ;;  %7449 = vtanh.f32 %v4687_v38  ;;  %v11180_v29 = vmul.f32 %v7430_v40, %v4630_v55  ;;  %v4634_v20 = vadd.f32 0.5, %v4595_v59  ;;  %v4632_v14 = vadd.f32 0.5, %v4593_v63  ;;  %v4723_v9 = vld [vmem:[%s11340_s6 + $0x30] sm:$0xff]  ;;  %v4724_v55 = vld [vmem:[%s11340_s6 + $0x38] sm:$0xff]  ;;  %v4725_v38 = vld [vmem:[%s11340_s6 + $0x40] sm:$0xff] }
 0x7cd   :  { %v7434_v6 = vpop.eup %7433  ;;  %v4690_v0 = vadd.f32 %v4677_v42, %v4664_v50  ;;  %v4675_v11 = vmul.f32 %v7432_v3, %v4610_v47  ;;  %7451 = vtanh.f32 %v4689_v56  ;;  %v4727_v40 = vld [vmem:[%s11340_s6 + $0x50] sm:$0xff]  ;;  %v4728_v47 = vld [vmem:[%s11340_s6 + $0x58] sm:$0xff] }
 0x7ce   :  { %v4706_v37 = vmul.f32 %v7434_v6, %v4628_v4  ;;  %v7436_v28 = vpop.eup %7435 }
 0x7cf   :  { %7453 = vtanh.f32 %v4690_v0  ;;  %v4688_v58 = vadd.f32 %v4675_v11, %v4662_v17  ;;  %v4596_v33 = vmul.f32 0.5, %v7436_v28 }
 0x7d0   :  { %7455 = vtanh.f32 %v4516_v36 }
 0x7d1   :  { %v7438_v30 = vpop.eup %7437  ;;  %7457 = vtanh.f32 %v4688_v58  ;;  %v4635_v62 = vadd.f32 0.5, %v4596_v33 }
 0x7d2   :  { %v7440_v43 = vpop.eup %7439  ;;  %v4709_v22 = vmul.f32 %v7438_v30, %v4631_v45  ;;  %7459 = vtanh.f32 %v11154_v49 }
 0x7d3   :  { %v7442_v7 = vpop.eup %7441  ;;  %v4599_v51 = vmul.f32 0.5, %v7440_v43 }
 0x7d4   :  { %v7444_v41 = vpop.eup %7443  ;;  %v4712_v1 = vmul.f32 %v7442_v7, %v4634_v20 }
 0x7d5   :  { %v7446_v61 = vpop.eup %7445  ;;  %v4597_v10 = vmul.f32 0.5, %v7444_v41  ;;  %v4638_v52 = vadd.f32 0.5, %v4599_v51 }
 0x7d6   :  { %v7448_v34 = vpop.eup %7447  ;;  %v4710_v13 = vmul.f32 %v7446_v61, %v4632_v14 }
 0x7d7   :  { %v4598_v24 = vmul.f32 0.5, %v7448_v34  ;;  %v4636_v21 = vadd.f32 0.5, %v4597_v10 }
 0x7d9   :  { %v7450_v25 = vpop.eup %7449  ;;  %v4637_v18 = vadd.f32 0.5, %v4598_v24 }
 0x7da   :  { %v4713_v60 = vmul.f32 %v7450_v25, %v4635_v62  ;;  %v7452_v27 = vpop.eup %7451 }
 0x7db   :  { %v4715_v53 = vmul.f32 %v7452_v27, %v4637_v18 }
 0x7dc   :  { %v7454_v5 = vpop.eup %7453 }
 0x7dd   :  { %v7456_v15 = vpop.eup %7455  ;;  %v4716_v12 = vmul.f32 %v7454_v5, %v4638_v52 }
 0x7de   :  { %v7458_v35 = vpop.eup %7457  ;;  %v4594_v48 = vmul.f32 0.5, %v7456_v15 }
 0x7df   :  { %6669 = vmatpush3.msra.mxu1 %v4716_v12  ;;  %v4714_v23 = vmul.f32 %v7458_v35, %v4636_v21  ;;  %v7460_v49 = vpop.eup %7459 }
 0x7e0   :  { %6670 = vmatprep.subr.mxu1 %v12159_v26  ;;  %v4633_v8 = vadd.f32 0.5, %v4594_v48 }
 0x7e1   :  { %6671 = vmatpush3.msra.mxu1 %v4715_v53  ;;  %v5157_v53 = vpop.permute.xlu1 %5156 }
 0x7e2   :  { %6672 = vmatprep.subr.mxu1 %v12159_v26  ;;  %v4711_v56 = vmul.f32 %v7460_v49, %v4633_v8  ;;  %v5152_v49 = vpop.permute.xlu0 %5151 }
 0x7e3   :  { %6673 = vmatpush3.msra.mxu1 %v4714_v23 }
 0x7e4   :  { %6674 = vmatprep.subr.mxu1 %v12159_v26 }
 0x7e5   :  { %6675 = vmatpush3.msra.mxu1 %v4713_v60 }
 0x7e6   :  { %6676 = vmatprep.subr.mxu1 %v12159_v26 }
 0x7e7   :  { %6677 = vmatpush3.msra.mxu1 %v4712_v1 }
 0x7e8   :  { %6678 = vmatprep.subr.mxu1 %v12159_v26 }
 0x7e9   :  { %6679 = vmatpush3.msra.mxu1 %v4711_v56  ;;  %v5147_v56 = vpop.permute.xlu1 %5146 }
 0x7ea   :  { %6680 = vmatprep.subr.mxu1 %v12159_v26 }
 0x7eb   :  { %6681 = vmatpush3.msra.mxu1 %v4710_v13 }
 0x7ec   :  { %6682 = vmatprep.subr.mxu1 %v12159_v26 }
 0x7ed   :  { %6683 = vmatpush3.msra.mxu1 %v4709_v22 }
 0x7ee   :  { %6684 = vmatprep.subr.mxu1 %v12159_v26 }
 0x7ef   :  { %6685 = vmatpush3.msra.mxu1 %v11180_v29 }
 0x7f0   :  { %6686 = vmatprep.subr.mxu1 %v12159_v26 }
 0x7f1   :  { %6687 = vmatpush3.msra.mxu1 %v11173_v32  ;;  %v4722_v32 = vld [vmem:[%s11340_s6 + $0x28] sm:$0xff] }
 0x7f2   :  { %6688 = vmatprep.subr.mxu1 %v12159_v26 }
 0x7f3   :  { %6689 = vmatpush3.msra.mxu1 %v4706_v37 }
 0x7f4   :  { %6690 = vmatprep.subr.mxu1 %v12159_v26 }
 0x7f5   :  { %6691 = vmatpush3.msra.mxu1 %v11175_v39  ;;  %v4726_v39 = vld [vmem:[%s11340_s6 + $0x48] sm:$0xff] }
 0x7f6   :  { %6692 = vmatprep.subr.mxu1 %v12159_v26 }
 0x7f7   :  { %6693 = vmatpush3.msra.mxu1 %v11167_v57  ;;  %v4720_v57 = vld [vmem:[%s11340_s6 + $0x18] sm:$0xff] }
 0x7f8   :  { %6695 = vmatmul.mubr.msk.f32.vlgmr.msra.gmra.mxu1 %vm2497_vm4, %v4717_v2 }
 0x7f9   :  { %6697 = vmatprep.mubr.msk.f32.mxu1 %vm7539_vm0, %v12159_v26 }
 0x7fc   :  { %6698 = vmatmul.mubr.msk.f32.gmra.mxu1 %vm2497_vm4, %v4718_v44 }
 0x7fd   :  { %6700 = vmatprep.mubr.msk.f32.mxu1 %vm7539_vm0, %v12159_v26 }
 0x800   :  { %6701 = vmatmul.mubr.msk.f32.gmra.mxu1 %vm2497_vm4, %v4719_v46  ;;  %v5142_v46 = vpop.permute.xlu0 %5141 }
 0x801   :  { %6703 = vmatprep.mubr.msk.f32.mxu1 %vm7539_vm0, %v12159_v26 }
 0x804   :  { %6704 = vmatmul.mubr.msk.f32.gmra.mxu1 %vm2497_vm4, %v4720_v57 }
 0x805   :  { %6706 = vmatprep.mubr.msk.f32.mxu1 %vm7539_vm0, %v12159_v26 }
 0x808   :  { %6707 = vmatmul.mubr.msk.f32.gmra.mxu1 %vm2497_vm4, %v4721_v16 }
 0x809   :  { %6709 = vmatprep.mubr.msk.f32.mxu1 %vm7539_vm0, %v12159_v26 }
 0x80c   :  { %6710 = vmatmul.mubr.msk.f32.gmra.mxu1 %vm2497_vm4, %v4722_v32  ;;  %v5137_v32 = vpop.permute.xlu1 %5136 }
 0x80d   :  { %6712 = vmatprep.mubr.msk.f32.mxu1 %vm7539_vm0, %v12159_v26 }
 0x810   :  { %6713 = vmatmul.mubr.msk.f32.gmra.mxu1 %vm2497_vm4, %v4723_v9 }
 0x811   :  { %6715 = vmatprep.mubr.msk.f32.mxu1 %vm7539_vm0, %v12159_v26 }
 0x814   :  { %6716 = vmatmul.mubr.msk.f32.gmra.mxu1 %vm2497_vm4, %v4724_v55 }
 0x815   :  { %6718 = vmatprep.mubr.msk.f32.mxu1 %vm7539_vm0, %v12159_v26 }
 0x818   :  { %6719 = vmatmul.mubr.msk.f32.gmra.mxu1 %vm2497_vm4, %v4725_v38 }
 0x819   :  { %6721 = vmatprep.mubr.msk.f32.mxu1 %vm7539_vm0, %v12159_v26 }
 0x81c   :  { %6722 = vmatmul.mubr.msk.f32.gmra.mxu1 %vm2497_vm4, %v4726_v39 }
 0x81d   :  { %6724 = vmatprep.mubr.msk.f32.mxu1 %vm7539_vm0, %v12159_v26 }
 0x820   :  { %6725 = vmatmul.mubr.msk.f32.gmra.mxu1 %vm2497_vm4, %v4727_v40 }
 0x821   :  { %6727 = vmatprep.mubr.msk.f32.mxu1 %vm7539_vm0, %v12159_v26  ;;  %v11276_v50 = vpop.f32.mrf.mxu0 }
 0x823   :  { %v6631_v36 = vpop.f32.mrf.mxu0 }
 0x824   :  { %6728 = vmatmul.mubr.msk.f32.gmra.mxu1 %vm2497_vm4, %v4728_v47  ;;  %v5132_v36 = vpop.permute.xlu0 %5131 }
 0x825   :  { %6730 = vmatprep.mubr.msk.f32.mxu1 %vm7539_vm0, %v12159_v26  ;;  %v11278_v42 = vpop.f32.mrf.mxu0 }
 0x827   :  { %v6634_v3 = vpop.f32.mrf.mxu0 }
 0x828   :  { %6731 = vmatmul.mubr.msk.f32.gmra.mxu1 %vm2497_vm4, %v4729_v19 }
 0x829   :  { %v11280_v4 = vpop.f32.mrf.mxu0 }
 0x82b   :  { %v6637_v31 = vpop.f32.mrf.mxu0 }
 0x82d   :  { %v11282_v29 = vpop.f32.mrf.mxu0 }
 0x82f   :  { %v6640_v6 = vpop.f32.mrf.mxu0 }
 0x831   :  { %v11284_v54 = vpop.f32.mrf.mxu0 }
 0x833   :  { %v6643_v17 = vpop.f32.mrf.mxu0 }
 0x834   :  { %v5127_v17 = vpop.permute.xlu1 %5126 }
 0x835   :  { %v11286_v0 = vpop.f32.mrf.mxu0 }
 0x837   :  { %v6646_v11 = vpop.f32.mrf.mxu0 }
 0x839   :  { %v4878_v59 = vpop.f32.mrf.mxu0 }
 0x83b   :  { %v6649_v37 = vpop.f32.mrf.mxu0 }
 0x83d   :  { %v4883_v58 = vpop.f32.mrf.mxu0 }
 0x83f   :  { %v6652_v28 = vpop.f32.mrf.mxu0 }
 0x853   :  { %v4888_v45 = vpop.f32.mrf.mxu0 }
 0x855   :  { %v6655_v63 = vpop.f32.mrf.mxu0 }
 0x857   :  { %v4893_v30 = vpop.f32.mrf.mxu0 }
 0x859   :  { %v6658_v43 = vpop.f32.mrf.mxu0 }
 0x85d   :  { %v4898_v20 = vpop.f32.mrf.mxu0 }
 0x85f   :  { %v6661_v22 = vpop.f32.mrf.mxu0 }
 0x861   :  { %v4903_v7 = vpop.f32.mrf.mxu0 }
 0x863   :  { %v6664_v41 = vpop.f32.mrf.mxu0 }
 0x864   :  { %v5117_v41 = vpop.permute.xlu1 %5116 }
 0x865   :  { %v4908_v14 = vpop.f32.mrf.mxu0 }
 0x867   :  { %v6667_v33 = vpop.f32.mrf.mxu0 }
 0x8b8   :  { %v11288_v1 = vpop.f32.mrf.mxu1 }
 0x8ba   :  { %v6696_v61 = vpop.f32.mrf.mxu1 }
 0x8bc   :  { %v11290_v34 = vpop.f32.mrf.mxu1 }
 0x8be   :  { %v6699_v13 = vpop.f32.mrf.mxu1 }
 0x8c0   :  { %v11292_v51 = vpop.f32.mrf.mxu1 }
 0x8c2   :  { %v6702_v62 = vpop.f32.mrf.mxu1 }
 0x8c4   :  { %v5032_v25 = vpop.f32.mrf.mxu1 }
 0x8c6   :  { %v6705_v10 = vpop.f32.mrf.mxu1 }
 0x8c8   :  { %v5037_v24 = vpop.f32.mrf.mxu1 }
 0x8ca   :  { %v6708_v60 = vpop.f32.mrf.mxu1 }
 0x8cc   :  { %v5042_v27 = vpop.f32.mrf.mxu1 }
 0x8ce   :  { %v6711_v52 = vpop.f32.mrf.mxu1 }
 0x8d0   :  { %v5047_v5 = vpop.f32.mrf.mxu1 }
 0x8d1   :  { %v5048_v63 = vadd.f32 %v5047_v5, %v4878_v59  ;;  %v5033_v59 = vadd.f32 %v5032_v25, %v11282_v29  ;;  %v5018_v25 = vadd.f32 %v11288_v1, %v11276_v50  ;;  %v5185_v1 = vld [vmem:[%s11343_s9] sm:$0xff] }
 0x8d2   :  { %v6714_v15 = vpop.f32.mrf.mxu1 }
 0x8d4   :  { %v5052_v21 = vpop.f32.mrf.mxu1 }
 0x8d5   :  { %v5053_v11 = vadd.f32 %v5052_v21, %v4883_v58  ;;  %v5038_v58 = vadd.f32 %v5037_v24, %v11284_v54  ;;  %v5107_v54 = vpop.permute.xlu1 %5106  ;;  %v5023_v24 = vadd.f32 %v11290_v34, %v11278_v42 }
 0x8d6   :  { %v6717_v18 = vpop.f32.mrf.mxu1 }
 0x8d7   :  { %v5163_v10 = vadd.f32 %v5117_v41, %v5038_v58 }
 0x8d8   :  { %v5057_v12 = vpop.f32.mrf.mxu1 }
 0x8d9   :  { %v5058_v3 = vadd.f32 %v5057_v12, %v4888_v45  ;;  %v5176_v5 = vmax.f32 %v5163_v10, 0.0  ;;  %v5097_v21 = vpop.permute.xlu1 %5096  ;;  %v5186_v12 = vld [vmem:[%s11343_s9 + $0x8] sm:$0xff] }
 0x8da   :  { %v6720_v35 = vpop.f32.mrf.mxu1  ;;  %v5159_v42 = vadd.f32 %v5097_v21, %v5018_v25 }
 0x8db   :  { %v5167_v43 = vadd.f32 %v5137_v32, %v5058_v3  ;;  %v5187_v35 = vld [vmem:[%s11343_s9 + $0x10] sm:$0xf]  ;;  %s7515_s9 = scalar_lea.vmem %s5304_s16, 384 }
 0x8dc   :  { %v5062_v23 = vpop.f32.mrf.mxu1  ;;  %v5172_v50 = vmax.f32 %v5159_v42, 0.0  ;;  %p7516_p0 = scmp.ne.s32.totalorder %s5304_s16, %s7515_s9  ;;  %p7521_p2 = scmp.lt.s32.totalorder %s7515_s9, %s7515_s9 }
 0x8dd   :  { %v5063_v40 = vadd.f32 %v5062_v23, %v4893_v30  ;;  %v5043_v30 = vadd.f32 %v5042_v27, %v11286_v0  ;;  %v5180_v33 = vmax.f32 %v5167_v43, 0.0  ;;  %v5028_v0 = vadd.f32 %v11292_v51, %v11280_v4 }
 0x8de   :  { %v6723_v48 = vpop.f32.mrf.mxu1  ;;  %p7522_p3 = por %p7521_p2, %p7520_p1 }
 0x8df   :  { %v5168_v37 = vadd.f32 %v5142_v46, %v5063_v40  ;;  %v5161_v52 = vadd.f32 %v5107_v54, %v5028_v0 }
 0x8e0   :  { %v5067_v8 = vpop.f32.mrf.mxu1  ;;  %p7523_p4 = pnand %p7522_p3, %p7516_p0 }
 0x8e1   :  { %v5068_v55 = vadd.f32 %v5067_v8, %v4898_v20  ;;  %v5122_v20 = vpop.permute.xlu0 %5121  ;;  %v5181_v45 = vmax.f32 %v5168_v37, 0.0  ;;  %v5174_v34 = vmax.f32 %v5161_v52, 0.0  ;;  %v5199_v8 = vpop.permute.xlu1 %5198 }
 0x8e2   :  { %v6726_v2 = vpop.f32.mrf.mxu1  ;;  %v5164_v61 = vadd.f32 %v5122_v20, %v5043_v30 }
 0x8e3   :  { %v5169_v31 = vadd.f32 %v5147_v56, %v5068_v55 }
 0x8e4   :  { %v5072_v44 = vpop.f32.mrf.mxu1  ;;  %v5177_v29 = vmax.f32 %v5164_v61, 0.0 }
 0x8e5   :  { %v5073_v16 = vadd.f32 %v5072_v44, %v4903_v7  ;;  %v5182_v22 = vmax.f32 %v5169_v31, 0.0  ;;  %v5166_v7 = vadd.f32 %v5132_v36, %v5053_v11  ;;  %v5112_v62 = vpop.permute.xlu0 %5111 }
 0x8e6   :  { %v6729_v57 = vpop.f32.mrf.mxu1  ;;  %v5162_v27 = vadd.f32 %v5112_v62, %v5033_v59 }
 0x8e7   :  { %v5170_v47 = vadd.f32 %v5152_v49, %v5073_v16  ;;  %v5179_v13 = vmax.f32 %v5166_v7, 0.0 }
 0x8e8   :  { %v5077_v9 = vpop.f32.mrf.mxu1  ;;  %v5175_v15 = vmax.f32 %v5162_v27, 0.0 }
 0x8e9   :  { %v5078_v38 = vadd.f32 %v5077_v9, %v4908_v14  ;;  %v5183_v28 = vmax.f32 %v5170_v47, 0.0  ;;  %v5165_v14 = vadd.f32 %v5127_v17, %v5048_v63  ;;  %v5102_v4 = vpop.permute.xlu0 %5101 }
 0x8ea   :  { %v6732_v39 = vpop.f32.mrf.mxu1  ;;  %v5160_v51 = vadd.f32 %v5102_v4, %v5023_v24 }
 0x8eb   :  { %v5171_v19 = vadd.f32 %v5157_v53, %v5078_v38  ;;  %v5178_v60 = vmax.f32 %v5165_v14, 0.0 }
 0x8ec   :  { %v5173_v18 = vmax.f32 %v5160_v51, 0.0 }
 0x8ed   :  { %v5184_v6 = vmax.f32 %v5171_v19, 0.0  ;;  %v5194_v53 = vpop.permute.xlu0 %5193 }
 0x8ef   :  { %6734 = vmatpush3.msra.mxu0 %v5184_v6 }
 0x8f0   :  { %6735 = vmatprep.subr.mxu0 %v12159_v26 }
 0x8f1   :  { %6736 = vmatpush3.msra.mxu0 %v5183_v28  ;;  %v5204_v46 = vpop.permute.xlu0 %5203 }
 0x8f2   :  { %6737 = vmatprep.subr.mxu0 %v12159_v26 }
 0x8f3   :  { %6738 = vmatpush3.msra.mxu0 %v5182_v22 }
 0x8f4   :  { %6739 = vmatprep.subr.mxu0 %v12159_v26 }
 0x8f5   :  { %6740 = vmatpush3.msra.mxu0 %v5181_v45 }
 0x8f6   :  { %6741 = vmatprep.subr.mxu0 %v12159_v26 }
 0x8f7   :  { %6742 = vmatpush3.msra.mxu0 %v5180_v33 }
 0x8f8   :  { %6743 = vmatprep.subr.mxu0 %v12159_v26 }
 0x8f9   :  { %6744 = vmatpush3.msra.mxu0 %v5179_v13 }
 0x8fa   :  { %6745 = vmatprep.subr.mxu0 %v12159_v26 }
 0x8fb   :  { %6746 = vmatpush3.msra.mxu0 %v5178_v60 }
 0x8fc   :  { %6747 = vmatprep.subr.mxu0 %v12159_v26 }
 0x8fd   :  { %6748 = vmatpush3.msra.mxu0 %v5177_v29 }
 0x8fe   :  { %6749 = vmatprep.subr.mxu0 %v12159_v26 }
 0x8ff   :  { %6750 = vmatpush3.msra.mxu0 %v5176_v5 }
 0x900   :  { %6751 = vmatprep.subr.mxu0 %v12159_v26 }
 0x901   :  { %6752 = vmatpush3.msra.mxu0 %v5175_v15 }
 0x902   :  { %6753 = vmatprep.subr.mxu0 %v12159_v26 }
 0x903   :  { %6754 = vmatpush3.msra.mxu0 %v5174_v34 }
 0x904   :  { %6755 = vmatprep.subr.mxu0 %v12159_v26 }
 0x905   :  { %6756 = vmatpush3.msra.mxu0 %v5173_v18 }
 0x906   :  { %6757 = vmatprep.subr.mxu0 %v12159_v26 }
 0x907   :  { %6758 = vmatpush3.msra.mxu0 %v5172_v50 }
 0x908   :  { %6760 = vmatmul.mubr.msk.f32.vlgmr.msra.gmra.mxu0 %vm2497_vm4, %v5185_v1 }
 0x909   :  { %6762 = vmatprep.mubr.msk.f32.mxu0 %vm7539_vm0, %v12159_v26 }
 0x90c   :  { %6763 = vmatmul.mubr.msk.f32.gmra.mxu0 %vm2497_vm4, %v5186_v12 }
 0x90d   :  { %6765 = vmatprep.mubr.msk.f32.mxu0 %vm7539_vm0, %v12159_v26 }
 0x910   :  { %6766 = vmatmul.mubr.msk.f32.gmra.mxu0 %vm2497_vm4, %v5187_v35 }
 0x9c8   :  { %v5281_v23 = vpop.f32.mrf.mxu0 }
 0x9c9   :  { %v5282_v48 = vadd.f32 %v5281_v23, %v5194_v53 }
 0x9ca   :  { %v6761_v49 = vpop.f32.mrf.mxu0 }
 0x9cb   :  { %5295 = vst [vmem:[#allocation2] sm:$0xff] %v5282_v48 }
 0x9cc   :  { %v5286_v56 = vpop.f32.mrf.mxu0 }
 0x9cd   :  { %v5287_v2 = vadd.f32 %v5286_v56, %v5199_v8 }
 0x9ce   :  { %v6764_v44 = vpop.f32.mrf.mxu0 }
 0x9cf   :  { %5296 = vst [vmem:[#allocation2 + $0x8] sm:$0xff] %v5287_v2 }
 0x9d0   :  { %v5291_v26 = vpop.f32.mrf.mxu0 }
 0x9d1   :  { %v5292_v57 = vadd.f32 %v5291_v26, %v5204_v46 }
 0x9d2   :  { %v6767_v16 = vpop.f32.mrf.mxu0 }
 0x9d3   :  { %5297 = vst [vmem:[#allocation2 + $0x10] sm:$0xf] %v5292_v57 }
 0x9d4   :  { %7526 = shalt.err (!%p7523_p4)
}
 0x9d5   :  { %s7541_s17 = smov 128   ;;  %s7542_s18 = smov 8  }
 0x9d6   :  { %5309 = dma.vmem_to_hbm [thread:$0]  %s5304_s16, 384, %s11345_s11, [#allocation3], %s7541_s17, %s7541_s17, %s7542_s18  }
 0x9d7   :  { %7535 = dma.done.wait [#allocation3], 384  }
 0x9d8   :  { %7536 = vsyncadd [#allocation3], 4294966912 }
 0x9d9   :  { %5313 = vsyncpa [#allocation3], 1 }

</bundles_post_ra>
